<compile_context>
chip_gen: v5e
topology: v5e:2x2
jax: 0.10.0
libtpu: 0.0.40
codegen_flags: <defaults>
</compile_context>

<pallas_src>
import jax
import jax.numpy as jnp
from jax.experimental import pallas as pl
from jax.experimental.pallas import tpu as pltpu

# ---------------------------- problem sizes ----------------------------
B = 2                      # real batch
BM = 8                     # batch tile (f32 sublane tile); batch padded to it
CH, H, W_IMG = 3, 16, 16
FH, FW = 8, 8              # spatial size of target feature map / pose masks
S = FH * FW                # 64
N_AGE, N_GENDER, N_EMOTION = 8, 2, 7
D_CTX = CH * H * W_IMG     # 768


# ============================ fused Pallas kernel ============================

def _fused_kernel(
        ctx_ref, tgt_ref, pix_ref, mask_ref,
        obj_w1_ref, obj_b1_ref, obj_fcw_ref, obj_fcb_ref,
        evt_w_ref, evt_b_ref,
        rel_wc_ref, rel_wt_ref, rel_b_ref,
        tb_w_ref, tb_b_ref, pool4_ref,
        e_w_pg_ref, e_w_obj_ref, e_w_relm_ref, e_w_rela_ref, e_w_evt_ref,
        e_b1_ref, e_w2_ref, e_b2_ref,
        sc_w_obj_ref, sc_w_relm_ref, sc_w_rela_ref, sc_w_evt_ref, sc_b_ref,
        h_w1_pg_ref, h_w1_sc_ref, h_b1_ref, h_w2_ref, h_b2_ref,
        h_w3_ref, h_b3_ref,
        emo_out_ref, head_out_ref):
    f32 = jnp.float32
    bf16 = jnp.bfloat16

    def mm(a, w_ref):
        # activations kept f32 on the VPU side; cast only the MXU operand.
        return jnp.dot(a.astype(bf16), w_ref[...], preferred_element_type=f32)

    relu = lambda x: jnp.maximum(x, 0.0)
    leaky = lambda x: jnp.where(x > 0, x, 0.2 * x)          # LeakyReLU(0.2)

    ctx = ctx_ref[...]                                       # (BM, 768) f32
    tgt = tgt_ref[...]                                       # (BM, 768) f32
    bm = ctx.shape[0]

    # ---- objects stream (ResNet34 stub: Linear+ReLU, fc Linear(512,256)) ----
    h = relu(mm(ctx, obj_w1_ref) + obj_b1_ref[...])          # (BM, 512)
    obj_p = relu(mm(h, obj_fcw_ref) + obj_fcb_ref[...])      # (BM, 256) evens||odds

    # ---- event (places) stream stub, num_places_scene = 512 ----
    evt_p = relu(mm(ctx, evt_w_ref) + evt_b_ref[...])        # (BM, 512) evens||odds

    # ---- relationship stream stub + gat_pool_max / gat_pool_avg ----
    # GAT stub columns are ordered [g(4q) | g(4q+2) | g(4q+1) | g(4q+3)] so the
    # adjacent-pair max/avg pooling is a pure VPU op on two 128-lane halves.
    raw = (mm(ctx, rel_wc_ref) + mm(tgt, rel_wt_ref)
           + rel_b_ref[...])                                 # (BM, 256)
    e_half, o_half = raw[:, :128], raw[:, 128:]
    rel_m = relu(jnp.maximum(e_half, o_half))                # lane q: rel[2q], 64+q: rel[2q+1]
    rel_a = relu(0.5 * (e_half + o_half))                    # lane q: rel[128+2q], ...

    # ---- target base stub: 1x1 conv (3 -> 512, K padded to 8) + ReLU ----
    # The 1/(255*S) pose-mask scale is folded into tb_w / tb_b.
    pix = pix_ref[...].reshape(bm * S, pix_ref.shape[2])     # (BM*64, 8)
    feat = relu(mm(pix, tb_w_ref) + tb_b_ref[...]).reshape(bm, S, 512)

    # ---- pose-guided pooling ----
    pg = jnp.einsum("bis,bsc->bic", mask_ref[...], feat,
                    preferred_element_type=f32)              # (BM, 18, 512)
    pg_max = jnp.max(pg, axis=1)                             # (BM, 512)
    pg_pool = mm(pg_max, pool4_ref)                          # (BM, 128)  AvgPool1d(4)

    # ---- emotion head (BN(1152)+BN(64) folded; split matmuls, no concat) ----
    eh = (mm(pg_pool, e_w_pg_ref) + mm(obj_p, e_w_obj_ref)
          + mm(rel_m, e_w_relm_ref) + mm(rel_a, e_w_rela_ref)
          + mm(evt_p, e_w_evt_ref) + e_b1_ref[...])          # (BM, 128)
    eh = leaky(eh)
    emo_out_ref[...] = mm(eh, e_w2_ref) + e_b2_ref[...]      # (BM, 128)

    # ---- sc branch: lane-aligned MaxPool1d(2) + (Linear(512,128)+BN folded) ----
    obj_pool = jnp.maximum(obj_p[:, :128], obj_p[:, 128:])   # (BM, 128)
    evt_pool = jnp.maximum(evt_p[:, :256], evt_p[:, 256:])   # (BM, 256)
    # rel pair-max: lanes q and 64+q hold the two pair members -> roll by 64
    # (XLU lane rotate); only lanes 0..63 are used (weight rows 64..127 are 0).
    pm = jnp.maximum(rel_m, pltpu.roll(rel_m, 64, 1))        # (BM, 128)
    pa = jnp.maximum(rel_a, pltpu.roll(rel_a, 64, 1))        # (BM, 128)
    sc_out = relu(mm(obj_pool, sc_w_obj_ref) + mm(pm, sc_w_relm_ref)
                  + mm(pa, sc_w_rela_ref) + mm(evt_pool, sc_w_evt_ref)
                  + sc_b_ref[...])                           # (BM, 128)

    # ---- age + gender heads stacked along lanes (block-diag W2 / W3) ----
    h1 = leaky(mm(pg_pool, h_w1_pg_ref) + mm(sc_out, h_w1_sc_ref)
               + h_b1_ref[...])                              # (BM, 256)
    h2 = leaky(mm(h1, h_w2_ref) + h_b2_ref[...])             # (BM, 128)
    head_out_ref[...] = mm(h2, h_w3_ref) + h_b3_ref[...]     # (BM, 256)


# ============================ parameters ============================

def _bn_params(key, n):
    k1, k2, k3, k4 = jax.random.split(key, 4)
    gamma = 1.0 + 0.1 * jax.random.normal(k1, (n,), jnp.float32)
    beta = 0.1 * jax.random.normal(k2, (n,), jnp.float32)
    mean = 0.1 * jax.random.normal(k3, (n,), jnp.float32)
    var = 1.0 + 0.2 * jax.random.uniform(k4, (n,), jnp.float32)
    return gamma, beta, mean, var


def _bn_fold(bn, eps=1e-5):
    gamma, beta, mean, var = bn
    scale = gamma * jax.lax.rsqrt(var + eps)
    return scale, beta - mean * scale


def init_canonical(key, n_age, n_gender, n_emotion):
    """Canonical (unpermuted, unfolded) f32 parameters of the stubbed graph."""
    ks = iter(jax.random.split(key, 64))
    w = lambda shape: 0.05 * jax.random.normal(next(ks), shape, jnp.float32)
    b = lambda n: 0.05 * jax.random.normal(next(ks), (n,), jnp.float32)

    p = {}
    # TODO(synk): pretrained ResNet34 objects backbone replaced by a 2-layer linear stub.
    p["obj_w1"], p["obj_b1"] = w((D_CTX, 512)), b(512)
    p["obj_fc_w"], p["obj_fc_b"] = w((512, 256)), b(256)
    # TODO(synk): pretrained Places365 backbone replaced by a linear stub (512 scene feats).
    p["evt_w"], p["evt_b"] = w((D_CTX, 512)), b(512)
    # TODO(synk): VisualRelationshipStream GAT replaced by a bilinear stub -> 256 feats.
    p["rel_wc"], p["rel_wt"], p["rel_b"] = w((D_CTX, 256)), w((D_CTX, 256)), b(256)
    # TODO(synk): ResNet34 target backbone replaced by 2x2 avg-pool + 1x1 conv (3->512) stub.
    p["tb_w"], p["tb_b"] = w((CH, 512)), b(512)

    p["emo_bn_in"] = _bn_params(next(ks), 1152)
    p["emo_w1"], p["emo_b1"] = w((1152, 64)), b(64)
    p["emo_bn_h"] = _bn_params(next(ks), 64)
    p["emo_w2"], p["emo_b2"] = w((64, n_emotion)), b(n_emotion)

    p["sc_w"], p["sc_b"] = w((512, 128)), b(128)
    p["sc_bn"] = _bn_params(next(ks), 128)

    for name, n_out in (("age", n_age), ("gender", n_gender)):
        p[f"{name}_w1"], p[f"{name}_b1"] = w((256, 128)), b(128)
        p[f"{name}_bn1"] = _bn_params(next(ks), 128)
        p[f"{name}_w2"], p[f"{name}_b2"] = w((128, 64)), b(64)
        p[f"{name}_bn2"] = _bn_params(next(ks), 64)
        p[f"{name}_w3"], p[f"{name}_b3"] = w((64, n_out)), b(n_out)
    return p


def build_kernel_params(p, n_age, n_gender, n_emotion):
    """Derive bf16-weight / f32-bias kernel params (BN folds + permutations)."""
    f32, bf16 = jnp.float32, jnp.bfloat16
    row = lambda v: v.reshape(1, -1).astype(f32)
    bf = lambda m: m.astype(bf16)

    ev = lambda n: jnp.concatenate([jnp.arange(0, n, 2), jnp.arange(1, n, 2)])
    p_obj = ev(256)                                   # evens-then-odds (obj cols)
    p_evt = ev(512)                                   # evens-then-odds (evt cols)
    q = jnp.arange(64)
    p_g = jnp.concatenate([4 * q, 4 * q + 2, 4 * q + 1, 4 * q + 3])  # GAT cols
    p_rel_m = ev(128)                                 # rel_m lane -> rel index
    p_rel_a = 128 + ev(128)                           # rel_a lane -> rel index

    # ---- stream stubs ----
    obj_w1, obj_b1 = bf(p["obj_w1"]), row(p["obj_b1"])
    obj_fcw = bf(p["obj_fc_w"][:, p_obj])
    obj_fcb = row(p["obj_fc_b"][p_obj])
    evt_w = bf(p["evt_w"][:, p_evt])
    evt_b = row(p["evt_b"][p_evt])
    rel_wc = bf(p["rel_wc"][:, p_g])
    rel_wt = bf(p["rel_wt"][:, p_g])
    rel_b = row(p["rel_b"][p_g])

    # ---- target base: pad K 3->8, fold 1/(255*S) mask scale (ReLU pos-homog) ----
    scale = 1.0 / (255.0 * S)
    tb_w = bf(jnp.pad(p["tb_w"] * scale, ((0, 8 - CH), (0, 0))))
    tb_b = row(p["tb_b"] * scale)

    # AvgPool1d(4) over 512 channels as a lane-dense (512, 128) matmul.
    pool4 = bf((jnp.arange(512)[:, None] // 4
                == jnp.arange(128)[None, :]).astype(f32) * 0.25)

    # ---- emotion head: fold BN(1152) & BN(64) into Linear(1152,64) ----
    s_in, t_in = _bn_fold(p["emo_bn_in"])
    s_h, t_h = _bn_fold(p["emo_bn_h"])
    w1 = (s_in[:, None] * p["emo_w1"]) * s_h[None, :]             # (1152, 64)
    b1 = (t_in @ p["emo_w1"] + p["emo_b1"]) * s_h + t_h           # (64,)
    w1 = jnp.pad(w1, ((0, 0), (0, 64)))                           # hidden 64 -> 128
    e_b1 = row(jnp.pad(b1, (0, 64)))
    e_w_pg = bf(w1[:128])
    e_w_obj = bf(w1[128:384][p_obj])
    e_w_relm = bf(w1[384:640][p_rel_m])
    e_w_rela = bf(w1[384:640][p_rel_a])
    e_w_evt = bf(w1[640:][p_evt])
    e_w2 = bf(jnp.pad(p["emo_w2"], ((0, 64), (0, 128 - n_emotion))))
    e_b2 = row(jnp.pad(p["emo_b2"], (0, 128 - n_emotion)))

    # ---- sc branch: fold BN(128); split rows per pooled-component block ----
    s_sc, t_sc = _bn_fold(p["sc_bn"])
    scw = p["sc_w"] * s_sc[None, :]                               # (512, 128)
    sc_b = row(p["sc_b"] * s_sc + t_sc)
    z64 = jnp.zeros((64, 128), f32)
    sc_w_obj = bf(scw[:128])
    sc_w_relm = bf(jnp.concatenate([scw[128:192], z64], axis=0))  # lanes 64.. unused
    sc_w_rela = bf(jnp.concatenate([scw[192:256], z64], axis=0))
    sc_w_evt = bf(scw[256:])

    # ---- age / gender heads: fold BNs, stack block-diagonally along lanes ----
    def head(name, n_out):
        s1, t1 = _bn_fold(p[f"{name}_bn1"])
        s2, t2 = _bn_fold(p[f"{name}_bn2"])
        w1_ = p[f"{name}_w1"] * s1[None, :]
        b1_ = p[f"{name}_b1"] * s1 + t1
        w2_ = p[f"{name}_w2"] * s2[None, :]
        b2_ = p[f"{name}_b2"] * s2 + t2
        w3_ = jnp.pad(p[f"{name}_w3"], ((0, 0), (0, 128 - n_out)))
        b3_ = jnp.pad(p[f"{name}_b3"], (0, 128 - n_out))
        return w1_, b1_, w2_, b2_, w3_, b3_

    a = head("age", n_age)
    g = head("gender", n_gender)
    hw1 = jnp.concatenate([a[0], g[0]], axis=1)                   # (256, 256)
    hb1 = row(jnp.concatenate([a[1], g[1]]))
    zb = jnp.zeros((128, 64), f32)
    hw2 = jnp.block([[a[2], zb], [zb, g[2]]])                     # (256, 128)
    hb2 = row(jnp.concatenate([a[3], g[3]]))
    zc = jnp.zeros((64, 128), f32)
    hw3 = jnp.block([[a[4], zc], [zc, g[4]]])                     # (128, 256)
    hb3 = row(jnp.concatenate([a[5], g[5]]))
    h_w1_pg, h_w1_sc = bf(hw1[:128]), bf(hw1[128:])

    return [obj_w1, obj_b1, obj_fcw, obj_fcb,
            evt_w, evt_b,
            rel_wc, rel_wt, rel_b,
            tb_w, tb_b, pool4,
            e_w_pg, e_w_obj, e_w_relm, e_w_rela, e_w_evt, e_b1, e_w2, e_b2,
            sc_w_obj, sc_w_relm, sc_w_rela, sc_w_evt, sc_b,
            h_w1_pg, h_w1_sc, hb1, bf(hw2), hb2, bf(hw3), hb3]


# ============================ pure-JAX reference ============================

def reference_forward(p, context, target, pose_masks):
    """f32 reference of the stubbed graph in canonical ordering (no folding)."""
    bsz = target.shape[0]
    relu = lambda x: jnp.maximum(x, 0.0)
    leaky = lambda x: jnp.where(x > 0, x, 0.2 * x)

    def bn(x, params, eps=1e-5):
        gamma, beta, mean, var = params
        return (x - mean) * gamma * jax.lax.rsqrt(var + eps) + beta

    ctx = context.reshape(bsz, -1)
    tgt = target.reshape(bsz, -1)

    h = relu(ctx @ p["obj_w1"] + p["obj_b1"])
    obj = relu(h @ p["obj_fc_w"] + p["obj_fc_b"])
    evt = relu(ctx @ p["evt_w"] + p["evt_b"])

    g = ctx @ p["rel_wc"] + tgt @ p["rel_wt"] + p["rel_b"]
    gp = g.reshape(bsz, 128, 2)
    rel = relu(jnp.concatenate([gp.max(-1), gp.mean(-1)], axis=1))

    tgt_ds = target.reshape(bsz, CH, FH, 2, FW, 2).mean(axis=(3, 5))
    pix = tgt_ds.transpose(0, 2, 3, 1).reshape(bsz, S, CH)
    feat = relu(jnp.einsum("bsk,kc->bsc", pix, p["tb_w"]) + p["tb_b"])

    mask = pose_masks.reshape(bsz, 18, S) / 255.0
    pg = jnp.einsum("bis,bsc->bic", mask, feat) / S
    pg_max = pg.max(axis=1)
    pg_pool = pg_max.reshape(bsz, 128, 4).mean(-1)

    sc_feat = relu(jnp.concatenate([obj, rel, evt], axis=1))

    emo_in = jnp.concatenate([pg_pool, sc_feat], axis=1)
    x = bn(emo_in, p["emo_bn_in"]) @ p["emo_w1"] + p["emo_b1"]
    x = leaky(bn(x, p["emo_bn_h"]))
    emo = x @ p["emo_w2"] + p["emo_b2"]

    sc_pool = sc_feat.reshape(bsz, 512, 2).max(-1)
    sc_out = relu(bn(sc_pool @ p["sc_w"] + p["sc_b"], p["sc_bn"]))

    cf = jnp.concatenate([pg_pool, sc_out], axis=1)
    heads = {}
    for name in ("age", "gender"):
        h1 = leaky(bn(cf @ p[f"{name}_w1"] + p[f"{name}_b1"], p[f"{name}_bn1"]))
        h2 = leaky(bn(h1 @ p[f"{name}_w2"] + p[f"{name}_b2"], p[f"{name}_bn2"]))
        heads[name] = h2 @ p[f"{name}_w3"] + p[f"{name}_b3"]
    return {"age": heads["age"], "gender": heads["gender"], "emotion": emo}


# ============================ forward pass ============================

def forward(kparams, context, target, pose_masks):
    bsz = target.shape[0]
    bp = ((bsz + BM - 1) // BM) * BM
    nb = bp // BM

    ctx = context.reshape(bsz, -1)
    tgt = target.reshape(bsz, -1)
    pad_b = lambda x: jnp.pad(x, ((0, bp - bsz),) + ((0, 0),) * (x.ndim - 1))
    ctx_p, tgt_p = pad_b(ctx), pad_b(tgt)

    # target-base stub preprocessing: 2x2 avg pool, per-pixel channels, pad 3->8.
    # TODO(synk): these <10 KB reshapes could also be folded in-kernel; kept in
    # the wrapper where XLA fuses them into a single tiny op.
    tgt_ds = target.reshape(bsz, CH, FH, 2, FW, 2).mean(axis=(3, 5))  # (B,3,8,8)
    pix = tgt_ds.transpose(0, 2, 3, 1).reshape(bsz, S, CH)
    pix = jnp.pad(pix, ((0, bp - bsz), (0, 0), (0, 8 - CH)))          # (bp,64,8)

    # raw pose masks; the /255 and the spatial mean 1/S are folded into tb_w/tb_b.
    masks = pad_b(pose_masks.reshape(bsz, 18, S))                     # (bp,18,64)

    act_specs = [
        pl.BlockSpec((BM, D_CTX), lambda i: (i, 0)),
        pl.BlockSpec((BM, D_CTX), lambda i: (i, 0)),
        pl.BlockSpec((BM, S, 8), lambda i: (i, 0, 0)),
        pl.BlockSpec((BM, 18, S), lambda i: (i, 0, 0)),
    ]

    def const_spec(arr):
        nd = arr.ndim
        # full-array block, constant block index -> weights DMA'd once per call
        # and kept VMEM-resident across all batch-grid steps.
        return pl.BlockSpec(arr.shape, lambda *_, _nd=nd: (0,) * _nd)

    w_specs = [const_spec(w) for w in kparams]

    emo_pad, head_pad = pl.pallas_call(
        _fused_kernel,
        grid=(nb,),
        out_shape=(jax.ShapeDtypeStruct((bp, 128), jnp.float32),
                   jax.ShapeDtypeStruct((bp, 256), jnp.float32)),
        in_specs=act_specs + w_specs,
        out_specs=(pl.BlockSpec((BM, 128), lambda i: (i, 0)),
                   pl.BlockSpec((BM, 256), lambda i: (i, 0))),
        compiler_params=pltpu.CompilerParams(
            dimension_semantics=("parallel",),
            vmem_limit_bytes=32 * 1024 * 1024),
    )(ctx_p, tgt_p, pix, masks, *kparams)

    # note: self.dropout is defined but never used in the reference forward().
    return {"age": head_pad[:bsz, :N_AGE],
            "gender": head_pad[:bsz, 128:128 + N_GENDER],
            "emotion": emo_pad[:bsz, :N_EMOTION]}


# ============================ driver ============================

if __name__ == "__main__":
    root = jax.random.PRNGKey(0)
    k_ctx, k_tgt, k_msk, k_par = jax.random.split(root, 4)

    context = jax.random.normal(k_ctx, (B, CH, H, W_IMG), jnp.float32)
    target = jax.random.normal(k_tgt, (B, CH, H, W_IMG), jnp.float32)
    pose_masks = jax.random.uniform(k_msk, (B, 18, FH, FW), jnp.float32,
                                    minval=0.0, maxval=255.0)

    canon = init_canonical(k_par, N_AGE, N_GENDER, N_EMOTION)
    kparams = build_kernel_params(canon, N_AGE, N_GENDER, N_EMOTION)

    out = jax.jit(forward)(kparams, context, target, pose_masks)
    out = jax.block_until_ready(out)

    ref = jax.jit(reference_forward)(canon, context, target, pose_masks)
    ref = jax.block_until_ready(ref)

    assert out["age"].shape == (B, N_AGE)
    assert out["gender"].shape == (B, N_GENDER)
    assert out["emotion"].shape == (B, N_EMOTION)
    assert all(bool(jnp.all(jnp.isfinite(v))) for v in out.values())

    # bf16 weights vs f32 reference: relaxed tolerance, catches any
    # permutation / folding mistake (those produce O(1) errors).
    for k in ("age", "gender", "emotion"):
        diff = float(jnp.max(jnp.abs(out[k] - ref[k])))
        scale = float(jnp.max(jnp.abs(ref[k]))) + 1e-6
        assert diff <= 0.1 + 0.1 * scale, f"{k}: max|diff|={diff} scale={scale}"

    print("KERNEL_OK")
</pallas_src>

<mosaic_0001>
module attributes {stable_mosaic.version = 11 : i64} {
  func.func @_fused_kernel(%arg0: i32, %arg1: memref<8x768xf32, #tpu.memory_space<vmem>>, %arg2: memref<8x768xf32, #tpu.memory_space<vmem>>, %arg3: memref<8x64x8xf32, #tpu.memory_space<vmem>>, %arg4: memref<8x18x64xf32, #tpu.memory_space<vmem>>, %arg5: memref<768x512xbf16, #tpu.memory_space<vmem>>, %arg6: memref<1x512xf32, #tpu.memory_space<vmem>>, %arg7: memref<512x256xbf16, #tpu.memory_space<vmem>>, %arg8: memref<1x256xf32, #tpu.memory_space<vmem>>, %arg9: memref<768x512xbf16, #tpu.memory_space<vmem>>, %arg10: memref<1x512xf32, #tpu.memory_space<vmem>>, %arg11: memref<768x256xbf16, #tpu.memory_space<vmem>>, %arg12: memref<768x256xbf16, #tpu.memory_space<vmem>>, %arg13: memref<1x256xf32, #tpu.memory_space<vmem>>, %arg14: memref<8x512xbf16, #tpu.memory_space<vmem>>, %arg15: memref<1x512xf32, #tpu.memory_space<vmem>>, %arg16: memref<512x128xbf16, #tpu.memory_space<vmem>>, %arg17: memref<128x128xbf16, #tpu.memory_space<vmem>>, %arg18: memref<256x128xbf16, #tpu.memory_space<vmem>>, %arg19: memref<128x128xbf16, #tpu.memory_space<vmem>>, %arg20: memref<128x128xbf16, #tpu.memory_space<vmem>>, %arg21: memref<512x128xbf16, #tpu.memory_space<vmem>>, %arg22: memref<1x128xf32, #tpu.memory_space<vmem>>, %arg23: memref<128x128xbf16, #tpu.memory_space<vmem>>, %arg24: memref<1x128xf32, #tpu.memory_space<vmem>>, %arg25: memref<128x128xbf16, #tpu.memory_space<vmem>>, %arg26: memref<128x128xbf16, #tpu.memory_space<vmem>>, %arg27: memref<128x128xbf16, #tpu.memory_space<vmem>>, %arg28: memref<256x128xbf16, #tpu.memory_space<vmem>>, %arg29: memref<1x128xf32, #tpu.memory_space<vmem>>, %arg30: memref<128x256xbf16, #tpu.memory_space<vmem>>, %arg31: memref<128x256xbf16, #tpu.memory_space<vmem>>, %arg32: memref<1x256xf32, #tpu.memory_space<vmem>>, %arg33: memref<256x128xbf16, #tpu.memory_space<vmem>>, %arg34: memref<1x128xf32, #tpu.memory_space<vmem>>, %arg35: memref<128x256xbf16, #tpu.memory_space<vmem>>, %arg36: memref<1x256xf32, #tpu.memory_space<vmem>>, %arg37: memref<8x128xf32, #tpu.memory_space<vmem>>, %arg38: memref<8x256xf32, #tpu.memory_space<vmem>>) attributes {dimension_semantics = [#tpu.dimension_semantics<parallel>], iteration_bounds = array<i64: 1>, scalar_prefetch = 0 : i64, scratch_operands = 0 : i64, tpu.core_type = #tpu.core_type<tc>, window_params = [{transform_indices = @transform_0, window_bounds = array<i64: 8, 768>}, {transform_indices = @transform_1, window_bounds = array<i64: 8, 768>}, {transform_indices = @transform_2, window_bounds = array<i64: 8, 64, 8>}, {transform_indices = @transform_3, window_bounds = array<i64: 8, 18, 64>}, {pipeline_mode = #tpu.pipeline_mode<synchronous>, transform_indices = @transform_4, window_bounds = array<i64: 768, 512>}, {pipeline_mode = #tpu.pipeline_mode<synchronous>, transform_indices = @transform_5, window_bounds = array<i64: 1, 512>}, {pipeline_mode = #tpu.pipeline_mode<synchronous>, transform_indices = @transform_6, window_bounds = array<i64: 512, 256>}, {pipeline_mode = #tpu.pipeline_mode<synchronous>, transform_indices = @transform_7, window_bounds = array<i64: 1, 256>}, {pipeline_mode = #tpu.pipeline_mode<synchronous>, transform_indices = @transform_8, window_bounds = array<i64: 768, 512>}, {pipeline_mode = #tpu.pipeline_mode<synchronous>, transform_indices = @transform_9, window_bounds = array<i64: 1, 512>}, {pipeline_mode = #tpu.pipeline_mode<synchronous>, transform_indices = @transform_10, window_bounds = array<i64: 768, 256>}, {pipeline_mode = #tpu.pipeline_mode<synchronous>, transform_indices = @transform_11, window_bounds = array<i64: 768, 256>}, {pipeline_mode = #tpu.pipeline_mode<synchronous>, transform_indices = @transform_12, window_bounds = array<i64: 1, 256>}, {pipeline_mode = #tpu.pipeline_mode<synchronous>, transform_indices = @transform_13, window_bounds = array<i64: 8, 512>}, {pipeline_mode = #tpu.pipeline_mode<synchronous>, transform_indices = @transform_14, window_bounds = array<i64: 1, 512>}, {pipeline_mode = #tpu.pipeline_mode<synchronous>, transform_indices = @transform_15, window_bounds = array<i64: 512, 128>}, {pipeline_mode = #tpu.pipeline_mode<synchronous>, transform_indices = @transform_16, window_bounds = array<i64: 128, 128>}, {pipeline_mode = #tpu.pipeline_mode<synchronous>, transform_indices = @transform_17, window_bounds = array<i64: 256, 128>}, {pipeline_mode = #tpu.pipeline_mode<synchronous>, transform_indices = @transform_18, window_bounds = array<i64: 128, 128>}, {pipeline_mode = #tpu.pipeline_mode<synchronous>, transform_indices = @transform_19, window_bounds = array<i64: 128, 128>}, {pipeline_mode = #tpu.pipeline_mode<synchronous>, transform_indices = @transform_20, window_bounds = array<i64: 512, 128>}, {pipeline_mode = #tpu.pipeline_mode<synchronous>, transform_indices = @transform_21, window_bounds = array<i64: 1, 128>}, {pipeline_mode = #tpu.pipeline_mode<synchronous>, transform_indices = @transform_22, window_bounds = array<i64: 128, 128>}, {pipeline_mode = #tpu.pipeline_mode<synchronous>, transform_indices = @transform_23, window_bounds = array<i64: 1, 128>}, {pipeline_mode = #tpu.pipeline_mode<synchronous>, transform_indices = @transform_24, window_bounds = array<i64: 128, 128>}, {pipeline_mode = #tpu.pipeline_mode<synchronous>, transform_indices = @transform_25, window_bounds = array<i64: 128, 128>}, {pipeline_mode = #tpu.pipeline_mode<synchronous>, transform_indices = @transform_26, window_bounds = array<i64: 128, 128>}, {pipeline_mode = #tpu.pipeline_mode<synchronous>, transform_indices = @transform_27, window_bounds = array<i64: 256, 128>}, {pipeline_mode = #tpu.pipeline_mode<synchronous>, transform_indices = @transform_28, window_bounds = array<i64: 1, 128>}, {pipeline_mode = #tpu.pipeline_mode<synchronous>, transform_indices = @transform_29, window_bounds = array<i64: 128, 256>}, {pipeline_mode = #tpu.pipeline_mode<synchronous>, transform_indices = @transform_30, window_bounds = array<i64: 128, 256>}, {pipeline_mode = #tpu.pipeline_mode<synchronous>, transform_indices = @transform_31, window_bounds = array<i64: 1, 256>}, {pipeline_mode = #tpu.pipeline_mode<synchronous>, transform_indices = @transform_32, window_bounds = array<i64: 256, 128>}, {pipeline_mode = #tpu.pipeline_mode<synchronous>, transform_indices = @transform_33, window_bounds = array<i64: 1, 128>}, {pipeline_mode = #tpu.pipeline_mode<synchronous>, transform_indices = @transform_34, window_bounds = array<i64: 128, 256>}, {pipeline_mode = #tpu.pipeline_mode<synchronous>, transform_indices = @transform_35, window_bounds = array<i64: 1, 256>}, {transform_indices = @transform_36, window_bounds = array<i64: 8, 128>}, {transform_indices = @transform_37, window_bounds = array<i64: 8, 256>}]} {
    %c0 = arith.constant 0 : index
    %c0_0 = arith.constant 0 : index
    %0 = vector.load %arg1[%c0, %c0_0] : memref<8x768xf32, #tpu.memory_space<vmem>>, vector<8x768xf32>
    %c0_1 = arith.constant 0 : index
    %c0_2 = arith.constant 0 : index
    %1 = vector.load %arg2[%c0_1, %c0_2] : memref<8x768xf32, #tpu.memory_space<vmem>>, vector<8x768xf32>
    %2 = arith.truncf %0 : vector<8x768xf32> to vector<8x768xbf16>
    %c0_3 = arith.constant 0 : index
    %c0_4 = arith.constant 0 : index
    %3 = vector.load %arg5[%c0_3, %c0_4] : memref<768x512xbf16, #tpu.memory_space<vmem>>, vector<768x512xbf16>
    %cst = arith.constant dense<0.000000e+00> : vector<8x512xf32>
    %4 = tpu.matmul %2, %3, %cst {dimension_numbers = #tpu.dot_dimension_numbers<[1], [0], [0], [1], [0, 0, 1, 1], [], []>} : vector<8x768xbf16>, vector<768x512xbf16>, vector<8x512xf32> -> vector<8x512xf32>
    %c0_5 = arith.constant 0 : index
    %c0_6 = arith.constant 0 : index
    %5 = vector.load %arg6[%c0_5, %c0_6] : memref<1x512xf32, #tpu.memory_space<vmem>>, vector<1x512xf32>
    %6 = vector.broadcast %5 : vector<1x512xf32> to vector<8x512xf32>
    %7 = arith.addf %4, %6 : vector<8x512xf32>
    %cst_7 = arith.constant 0.000000e+00 : f32
    %8 = vector.broadcast %cst_7 : f32 to vector<8x512xf32>
    %9 = arith.maximumf %7, %8 : vector<8x512xf32>
    %10 = arith.truncf %9 : vector<8x512xf32> to vector<8x512xbf16>
    %c0_8 = arith.constant 0 : index
    %c0_9 = arith.constant 0 : index
    %11 = vector.load %arg7[%c0_8, %c0_9] : memref<512x256xbf16, #tpu.memory_space<vmem>>, vector<512x256xbf16>
    %cst_10 = arith.constant dense<0.000000e+00> : vector<8x256xf32>
    %12 = tpu.matmul %10, %11, %cst_10 {dimension_numbers = #tpu.dot_dimension_numbers<[1], [0], [0], [1], [0, 0, 1, 1], [], []>} : vector<8x512xbf16>, vector<512x256xbf16>, vector<8x256xf32> -> vector<8x256xf32>
    %c0_11 = arith.constant 0 : index
    %c0_12 = arith.constant 0 : index
    %13 = vector.load %arg8[%c0_11, %c0_12] : memref<1x256xf32, #tpu.memory_space<vmem>>, vector<1x256xf32>
    %14 = vector.broadcast %13 : vector<1x256xf32> to vector<8x256xf32>
    %15 = arith.addf %12, %14 : vector<8x256xf32>
    %cst_13 = arith.constant 0.000000e+00 : f32
    %16 = vector.broadcast %cst_13 : f32 to vector<8x256xf32>
    %17 = arith.maximumf %15, %16 : vector<8x256xf32>
    %18 = arith.truncf %0 : vector<8x768xf32> to vector<8x768xbf16>
    %c0_14 = arith.constant 0 : index
    %c0_15 = arith.constant 0 : index
    %19 = vector.load %arg9[%c0_14, %c0_15] : memref<768x512xbf16, #tpu.memory_space<vmem>>, vector<768x512xbf16>
    %cst_16 = arith.constant dense<0.000000e+00> : vector<8x512xf32>
    %20 = tpu.matmul %18, %19, %cst_16 {dimension_numbers = #tpu.dot_dimension_numbers<[1], [0], [0], [1], [0, 0, 1, 1], [], []>} : vector<8x768xbf16>, vector<768x512xbf16>, vector<8x512xf32> -> vector<8x512xf32>
    %c0_17 = arith.constant 0 : index
    %c0_18 = arith.constant 0 : index
    %21 = vector.load %arg10[%c0_17, %c0_18] : memref<1x512xf32, #tpu.memory_space<vmem>>, vector<1x512xf32>
    %22 = vector.broadcast %21 : vector<1x512xf32> to vector<8x512xf32>
    %23 = arith.addf %20, %22 : vector<8x512xf32>
    %cst_19 = arith.constant 0.000000e+00 : f32
    %24 = vector.broadcast %cst_19 : f32 to vector<8x512xf32>
    %25 = arith.maximumf %23, %24 : vector<8x512xf32>
    %26 = arith.truncf %0 : vector<8x768xf32> to vector<8x768xbf16>
    %c0_20 = arith.constant 0 : index
    %c0_21 = arith.constant 0 : index
    %27 = vector.load %arg11[%c0_20, %c0_21] : memref<768x256xbf16, #tpu.memory_space<vmem>>, vector<768x256xbf16>
    %cst_22 = arith.constant dense<0.000000e+00> : vector<8x256xf32>
    %28 = tpu.matmul %26, %27, %cst_22 {dimension_numbers = #tpu.dot_dimension_numbers<[1], [0], [0], [1], [0, 0, 1, 1], [], []>} : vector<8x768xbf16>, vector<768x256xbf16>, vector<8x256xf32> -> vector<8x256xf32>
    %29 = arith.truncf %1 : vector<8x768xf32> to vector<8x768xbf16>
    %c0_23 = arith.constant 0 : index
    %c0_24 = arith.constant 0 : index
    %30 = vector.load %arg12[%c0_23, %c0_24] : memref<768x256xbf16, #tpu.memory_space<vmem>>, vector<768x256xbf16>
    %cst_25 = arith.constant dense<0.000000e+00> : vector<8x256xf32>
    %31 = tpu.matmul %29, %30, %cst_25 {dimension_numbers = #tpu.dot_dimension_numbers<[1], [0], [0], [1], [0, 0, 1, 1], [], []>} : vector<8x768xbf16>, vector<768x256xbf16>, vector<8x256xf32> -> vector<8x256xf32>
    %32 = arith.addf %28, %31 : vector<8x256xf32>
    %c0_26 = arith.constant 0 : index
    %c0_27 = arith.constant 0 : index
    %33 = vector.load %arg13[%c0_26, %c0_27] : memref<1x256xf32, #tpu.memory_space<vmem>>, vector<1x256xf32>
    %34 = vector.broadcast %33 : vector<1x256xf32> to vector<8x256xf32>
    %35 = arith.addf %32, %34 : vector<8x256xf32>
    %36 = vector.extract_strided_slice %35 {offsets = [0, 0], sizes = [8, 128], strides = [1, 1]} : vector<8x256xf32> to vector<8x128xf32>
    %37 = vector.extract_strided_slice %35 {offsets = [0, 128], sizes = [8, 128], strides = [1, 1]} : vector<8x256xf32> to vector<8x128xf32>
    %38 = arith.maximumf %36, %37 : vector<8x128xf32>
    %cst_28 = arith.constant 0.000000e+00 : f32
    %39 = vector.broadcast %cst_28 : f32 to vector<8x128xf32>
    %40 = arith.maximumf %38, %39 : vector<8x128xf32>
    %41 = arith.addf %36, %37 : vector<8x128xf32>
    %cst_29 = arith.constant 5.000000e-01 : f32
    %42 = vector.broadcast %cst_29 : f32 to vector<8x128xf32>
    %43 = arith.mulf %42, %41 : vector<8x128xf32>
    %cst_30 = arith.constant 0.000000e+00 : f32
    %44 = vector.broadcast %cst_30 : f32 to vector<8x128xf32>
    %45 = arith.maximumf %43, %44 : vector<8x128xf32>
    %c0_31 = arith.constant 0 : index
    %c0_32 = arith.constant 0 : index
    %c0_33 = arith.constant 0 : index
    %46 = vector.load %arg3[%c0_31, %c0_32, %c0_33] : memref<8x64x8xf32, #tpu.memory_space<vmem>>, vector<8x64x8xf32>
    %47 = vector.shape_cast %46 : vector<8x64x8xf32> to vector<512x8xf32>
    %48 = arith.truncf %47 : vector<512x8xf32> to vector<512x8xbf16>
    %c0_34 = arith.constant 0 : index
    %c0_35 = arith.constant 0 : index
    %49 = vector.load %arg14[%c0_34, %c0_35] : memref<8x512xbf16, #tpu.memory_space<vmem>>, vector<8x512xbf16>
    %cst_36 = arith.constant dense<0.000000e+00> : vector<512x512xf32>
    %50 = tpu.matmul %48, %49, %cst_36 {dimension_numbers = #tpu.dot_dimension_numbers<[1], [0], [0], [1], [0, 0, 1, 1], [], []>} : vector<512x8xbf16>, vector<8x512xbf16>, vector<512x512xf32> -> vector<512x512xf32>
    %c0_37 = arith.constant 0 : index
    %c0_38 = arith.constant 0 : index
    %51 = vector.load %arg15[%c0_37, %c0_38] : memref<1x512xf32, #tpu.memory_space<vmem>>, vector<1x512xf32>
    %52 = vector.broadcast %51 : vector<1x512xf32> to vector<512x512xf32>
    %53 = arith.addf %50, %52 : vector<512x512xf32>
    %cst_39 = arith.constant 0.000000e+00 : f32
    %54 = vector.broadcast %cst_39 : f32 to vector<512x512xf32>
    %55 = arith.maximumf %53, %54 : vector<512x512xf32>
    %56 = vector.shape_cast %55 : vector<512x512xf32> to vector<8x64x512xf32>
    %c0_40 = arith.constant 0 : index
    %c0_41 = arith.constant 0 : index
    %c0_42 = arith.constant 0 : index
    %57 = vector.load %arg4[%c0_40, %c0_41, %c0_42] : memref<8x18x64xf32, #tpu.memory_space<vmem>>, vector<8x18x64xf32>
    "tpu.trace_start"() <{level = 10 : i32, message = "bis,bsc->bic"}> : () -> ()
    %cst_43 = arith.constant dense<0.000000e+00> : vector<8x18x512xf32>
    %58 = tpu.matmul %57, %56, %cst_43 {dimension_numbers = #tpu.dot_dimension_numbers<[2], [1], [1], [2], [0, 0, 0, 1, 1, 2], [0], [0]>} : vector<8x18x64xf32>, vector<8x64x512xf32>, vector<8x18x512xf32> -> vector<8x18x512xf32>
    "tpu.trace_stop"() : () -> ()
    %cst_44 = arith.constant dense<0xFF800000> : vector<8x512xf32>
    %59 = vector.multi_reduction <maximumf>, %58, %cst_44 [1] : vector<8x18x512xf32> to vector<8x512xf32>
    %60 = arith.truncf %59 : vector<8x512xf32> to vector<8x512xbf16>
    %c0_45 = arith.constant 0 : index
    %c0_46 = arith.constant 0 : index
    %61 = vector.load %arg16[%c0_45, %c0_46] : memref<512x128xbf16, #tpu.memory_space<vmem>>, vector<512x128xbf16>
    %cst_47 = arith.constant dense<0.000000e+00> : vector<8x128xf32>
    %62 = tpu.matmul %60, %61, %cst_47 {dimension_numbers = #tpu.dot_dimension_numbers<[1], [0], [0], [1], [0, 0, 1, 1], [], []>} : vector<8x512xbf16>, vector<512x128xbf16>, vector<8x128xf32> -> vector<8x128xf32>
    %63 = arith.truncf %62 : vector<8x128xf32> to vector<8x128xbf16>
    %c0_48 = arith.constant 0 : index
    %c0_49 = arith.constant 0 : index
    %64 = vector.load %arg17[%c0_48, %c0_49] : memref<128x128xbf16, #tpu.memory_space<vmem>>, vector<128x128xbf16>
    %cst_50 = arith.constant dense<0.000000e+00> : vector<8x128xf32>
    %65 = tpu.matmul %63, %64, %cst_50 {dimension_numbers = #tpu.dot_dimension_numbers<[1], [0], [0], [1], [0, 0, 1, 1], [], []>} : vector<8x128xbf16>, vector<128x128xbf16>, vector<8x128xf32> -> vector<8x128xf32>
    %66 = arith.truncf %17 : vector<8x256xf32> to vector<8x256xbf16>
    %c0_51 = arith.constant 0 : index
    %c0_52 = arith.constant 0 : index
    %67 = vector.load %arg18[%c0_51, %c0_52] : memref<256x128xbf16, #tpu.memory_space<vmem>>, vector<256x128xbf16>
    %cst_53 = arith.constant dense<0.000000e+00> : vector<8x128xf32>
    %68 = tpu.matmul %66, %67, %cst_53 {dimension_numbers = #tpu.dot_dimension_numbers<[1], [0], [0], [1], [0, 0, 1, 1], [], []>} : vector<8x256xbf16>, vector<256x128xbf16>, vector<8x128xf32> -> vector<8x128xf32>
    %69 = arith.addf %65, %68 : vector<8x128xf32>
    %70 = arith.truncf %40 : vector<8x128xf32> to vector<8x128xbf16>
    %c0_54 = arith.constant 0 : index
    %c0_55 = arith.constant 0 : index
    %71 = vector.load %arg19[%c0_54, %c0_55] : memref<128x128xbf16, #tpu.memory_space<vmem>>, vector<128x128xbf16>
    %cst_56 = arith.constant dense<0.000000e+00> : vector<8x128xf32>
    %72 = tpu.matmul %70, %71, %cst_56 {dimension_numbers = #tpu.dot_dimension_numbers<[1], [0], [0], [1], [0, 0, 1, 1], [], []>} : vector<8x128xbf16>, vector<128x128xbf16>, vector<8x128xf32> -> vector<8x128xf32>
    %73 = arith.addf %69, %72 : vector<8x128xf32>
    %74 = arith.truncf %45 : vector<8x128xf32> to vector<8x128xbf16>
    %c0_57 = arith.constant 0 : index
    %c0_58 = arith.constant 0 : index
    %75 = vector.load %arg20[%c0_57, %c0_58] : memref<128x128xbf16, #tpu.memory_space<vmem>>, vector<128x128xbf16>
    %cst_59 = arith.constant dense<0.000000e+00> : vector<8x128xf32>
    %76 = tpu.matmul %74, %75, %cst_59 {dimension_numbers = #tpu.dot_dimension_numbers<[1], [0], [0], [1], [0, 0, 1, 1], [], []>} : vector<8x128xbf16>, vector<128x128xbf16>, vector<8x128xf32> -> vector<8x128xf32>
    %77 = arith.addf %73, %76 : vector<8x128xf32>
    %78 = arith.truncf %25 : vector<8x512xf32> to vector<8x512xbf16>
    %c0_60 = arith.constant 0 : index
    %c0_61 = arith.constant 0 : index
    %79 = vector.load %arg21[%c0_60, %c0_61] : memref<512x128xbf16, #tpu.memory_space<vmem>>, vector<512x128xbf16>
    %cst_62 = arith.constant dense<0.000000e+00> : vector<8x128xf32>
    %80 = tpu.matmul %78, %79, %cst_62 {dimension_numbers = #tpu.dot_dimension_numbers<[1], [0], [0], [1], [0, 0, 1, 1], [], []>} : vector<8x512xbf16>, vector<512x128xbf16>, vector<8x128xf32> -> vector<8x128xf32>
    %81 = arith.addf %77, %80 : vector<8x128xf32>
    %c0_63 = arith.constant 0 : index
    %c0_64 = arith.constant 0 : index
    %82 = vector.load %arg22[%c0_63, %c0_64] : memref<1x128xf32, #tpu.memory_space<vmem>>, vector<1x128xf32>
    %83 = vector.broadcast %82 : vector<1x128xf32> to vector<8x128xf32>
    %84 = arith.addf %81, %83 : vector<8x128xf32>
    %cst_65 = arith.constant 0.000000e+00 : f32
    %85 = vector.broadcast %cst_65 : f32 to vector<8x128xf32>
    %86 = arith.cmpf ogt, %84, %85 : vector<8x128xf32>
    %cst_66 = arith.constant 2.000000e-01 : f32
    %87 = vector.broadcast %cst_66 : f32 to vector<8x128xf32>
    %88 = arith.mulf %87, %84 : vector<8x128xf32>
    %89 = arith.select %86, %84, %88 : vector<8x128xi1>, vector<8x128xf32>
    %90 = arith.truncf %89 : vector<8x128xf32> to vector<8x128xbf16>
    %c0_67 = arith.constant 0 : index
    %c0_68 = arith.constant 0 : index
    %91 = vector.load %arg23[%c0_67, %c0_68] : memref<128x128xbf16, #tpu.memory_space<vmem>>, vector<128x128xbf16>
    %cst_69 = arith.constant dense<0.000000e+00> : vector<8x128xf32>
    %92 = tpu.matmul %90, %91, %cst_69 {dimension_numbers = #tpu.dot_dimension_numbers<[1], [0], [0], [1], [0, 0, 1, 1], [], []>} : vector<8x128xbf16>, vector<128x128xbf16>, vector<8x128xf32> -> vector<8x128xf32>
    %c0_70 = arith.constant 0 : index
    %c0_71 = arith.constant 0 : index
    %93 = vector.load %arg24[%c0_70, %c0_71] : memref<1x128xf32, #tpu.memory_space<vmem>>, vector<1x128xf32>
    %94 = vector.broadcast %93 : vector<1x128xf32> to vector<8x128xf32>
    %95 = arith.addf %92, %94 : vector<8x128xf32>
    %c0_72 = arith.constant 0 : index
    %c0_73 = arith.constant 0 : index
    %96 = vector.load %arg37[%c0_72, %c0_73] : memref<8x128xf32, #tpu.memory_space<vmem>>, vector<8x128xf32>
    tpu.vector_store %arg37[%c0_72, %c0_73], %95 {strides = array<i32>} : memref<8x128xf32, #tpu.memory_space<vmem>>, vector<8x128xf32>,
    %97 = vector.extract_strided_slice %17 {offsets = [0, 0], sizes = [8, 128], strides = [1, 1]} : vector<8x256xf32> to vector<8x128xf32>
    %98 = vector.extract_strided_slice %17 {offsets = [0, 128], sizes = [8, 128], strides = [1, 1]} : vector<8x256xf32> to vector<8x128xf32>
    %99 = arith.maximumf %97, %98 : vector<8x128xf32>
    %100 = vector.extract_strided_slice %25 {offsets = [0, 0], sizes = [8, 256], strides = [1, 1]} : vector<8x512xf32> to vector<8x256xf32>
    %101 = vector.extract_strided_slice %25 {offsets = [0, 256], sizes = [8, 256], strides = [1, 1]} : vector<8x512xf32> to vector<8x256xf32>
    %102 = arith.maximumf %100, %101 : vector<8x256xf32>
    %c64_i32 = arith.constant 64 : i32
    %103 = tpu.dynamic_rotate %40 by %c64_i32 dim 1 : vector<8x128xf32>, i32 -> vector<8x128xf32>
    %104 = arith.maximumf %40, %103 : vector<8x128xf32>
    %c64_i32_74 = arith.constant 64 : i32
    %105 = tpu.dynamic_rotate %45 by %c64_i32_74 dim 1 : vector<8x128xf32>, i32 -> vector<8x128xf32>
    %106 = arith.maximumf %45, %105 : vector<8x128xf32>
    %107 = arith.truncf %99 : vector<8x128xf32> to vector<8x128xbf16>
    %c0_75 = arith.constant 0 : index
    %c0_76 = arith.constant 0 : index
    %108 = vector.load %arg25[%c0_75, %c0_76] : memref<128x128xbf16, #tpu.memory_space<vmem>>, vector<128x128xbf16>
    %cst_77 = arith.constant dense<0.000000e+00> : vector<8x128xf32>
    %109 = tpu.matmul %107, %108, %cst_77 {dimension_numbers = #tpu.dot_dimension_numbers<[1], [0], [0], [1], [0, 0, 1, 1], [], []>} : vector<8x128xbf16>, vector<128x128xbf16>, vector<8x128xf32> -> vector<8x128xf32>
    %110 = arith.truncf %104 : vector<8x128xf32> to vector<8x128xbf16>
    %c0_78 = arith.constant 0 : index
    %c0_79 = arith.constant 0 : index
    %111 = vector.load %arg26[%c0_78, %c0_79] : memref<128x128xbf16, #tpu.memory_space<vmem>>, vector<128x128xbf16>
    %cst_80 = arith.constant dense<0.000000e+00> : vector<8x128xf32>
    %112 = tpu.matmul %110, %111, %cst_80 {dimension_numbers = #tpu.dot_dimension_numbers<[1], [0], [0], [1], [0, 0, 1, 1], [], []>} : vector<8x128xbf16>, vector<128x128xbf16>, vector<8x128xf32> -> vector<8x128xf32>
    %113 = arith.addf %109, %112 : vector<8x128xf32>
    %114 = arith.truncf %106 : vector<8x128xf32> to vector<8x128xbf16>
    %c0_81 = arith.constant 0 : index
    %c0_82 = arith.constant 0 : index
    %115 = vector.load %arg27[%c0_81, %c0_82] : memref<128x128xbf16, #tpu.memory_space<vmem>>, vector<128x128xbf16>
    %cst_83 = arith.constant dense<0.000000e+00> : vector<8x128xf32>
    %116 = tpu.matmul %114, %115, %cst_83 {dimension_numbers = #tpu.dot_dimension_numbers<[1], [0], [0], [1], [0, 0, 1, 1], [], []>} : vector<8x128xbf16>, vector<128x128xbf16>, vector<8x128xf32> -> vector<8x128xf32>
    %117 = arith.addf %113, %116 : vector<8x128xf32>
    %118 = arith.truncf %102 : vector<8x256xf32> to vector<8x256xbf16>
    %c0_84 = arith.constant 0 : index
    %c0_85 = arith.constant 0 : index
    %119 = vector.load %arg28[%c0_84, %c0_85] : memref<256x128xbf16, #tpu.memory_space<vmem>>, vector<256x128xbf16>
    %cst_86 = arith.constant dense<0.000000e+00> : vector<8x128xf32>
    %120 = tpu.matmul %118, %119, %cst_86 {dimension_numbers = #tpu.dot_dimension_numbers<[1], [0], [0], [1], [0, 0, 1, 1], [], []>} : vector<8x256xbf16>, vector<256x128xbf16>, vector<8x128xf32> -> vector<8x128xf32>
    %121 = arith.addf %117, %120 : vector<8x128xf32>
    %c0_87 = arith.constant 0 : index
    %c0_88 = arith.constant 0 : index
    %122 = vector.load %arg29[%c0_87, %c0_88] : memref<1x128xf32, #tpu.memory_space<vmem>>, vector<1x128xf32>
    %123 = vector.broadcast %122 : vector<1x128xf32> to vector<8x128xf32>
    %124 = arith.addf %121, %123 : vector<8x128xf32>
    %cst_89 = arith.constant 0.000000e+00 : f32
    %125 = vector.broadcast %cst_89 : f32 to vector<8x128xf32>
    %126 = arith.maximumf %124, %125 : vector<8x128xf32>
    %127 = arith.truncf %62 : vector<8x128xf32> to vector<8x128xbf16>
    %c0_90 = arith.constant 0 : index
    %c0_91 = arith.constant 0 : index
    %128 = vector.load %arg30[%c0_90, %c0_91] : memref<128x256xbf16, #tpu.memory_space<vmem>>, vector<128x256xbf16>
    %cst_92 = arith.constant dense<0.000000e+00> : vector<8x256xf32>
    %129 = tpu.matmul %127, %128, %cst_92 {dimension_numbers = #tpu.dot_dimension_numbers<[1], [0], [0], [1], [0, 0, 1, 1], [], []>} : vector<8x128xbf16>, vector<128x256xbf16>, vector<8x256xf32> -> vector<8x256xf32>
    %130 = arith.truncf %126 : vector<8x128xf32> to vector<8x128xbf16>
    %c0_93 = arith.constant 0 : index
    %c0_94 = arith.constant 0 : index
    %131 = vector.load %arg31[%c0_93, %c0_94] : memref<128x256xbf16, #tpu.memory_space<vmem>>, vector<128x256xbf16>
    %cst_95 = arith.constant dense<0.000000e+00> : vector<8x256xf32>
    %132 = tpu.matmul %130, %131, %cst_95 {dimension_numbers = #tpu.dot_dimension_numbers<[1], [0], [0], [1], [0, 0, 1, 1], [], []>} : vector<8x128xbf16>, vector<128x256xbf16>, vector<8x256xf32> -> vector<8x256xf32>
    %133 = arith.addf %129, %132 : vector<8x256xf32>
    %c0_96 = arith.constant 0 : index
    %c0_97 = arith.constant 0 : index
    %134 = vector.load %arg32[%c0_96, %c0_97] : memref<1x256xf32, #tpu.memory_space<vmem>>, vector<1x256xf32>
    %135 = vector.broadcast %134 : vector<1x256xf32> to vector<8x256xf32>
    %136 = arith.addf %133, %135 : vector<8x256xf32>
    %cst_98 = arith.constant 0.000000e+00 : f32
    %137 = vector.broadcast %cst_98 : f32 to vector<8x256xf32>
    %138 = arith.cmpf ogt, %136, %137 : vector<8x256xf32>
    %cst_99 = arith.constant 2.000000e-01 : f32
    %139 = vector.broadcast %cst_99 : f32 to vector<8x256xf32>
    %140 = arith.mulf %139, %136 : vector<8x256xf32>
    %141 = arith.select %138, %136, %140 : vector<8x256xi1>, vector<8x256xf32>
    %142 = arith.truncf %141 : vector<8x256xf32> to vector<8x256xbf16>
    %c0_100 = arith.constant 0 : index
    %c0_101 = arith.constant 0 : index
    %143 = vector.load %arg33[%c0_100, %c0_101] : memref<256x128xbf16, #tpu.memory_space<vmem>>, vector<256x128xbf16>
    %cst_102 = arith.constant dense<0.000000e+00> : vector<8x128xf32>
    %144 = tpu.matmul %142, %143, %cst_102 {dimension_numbers = #tpu.dot_dimension_numbers<[1], [0], [0], [1], [0, 0, 1, 1], [], []>} : vector<8x256xbf16>, vector<256x128xbf16>, vector<8x128xf32> -> vector<8x128xf32>
    %c0_103 = arith.constant 0 : index
    %c0_104 = arith.constant 0 : index
    %145 = vector.load %arg34[%c0_103, %c0_104] : memref<1x128xf32, #tpu.memory_space<vmem>>, vector<1x128xf32>
    %146 = vector.broadcast %145 : vector<1x128xf32> to vector<8x128xf32>
    %147 = arith.addf %144, %146 : vector<8x128xf32>
    %cst_105 = arith.constant 0.000000e+00 : f32
    %148 = vector.broadcast %cst_105 : f32 to vector<8x128xf32>
    %149 = arith.cmpf ogt, %147, %148 : vector<8x128xf32>
    %cst_106 = arith.constant 2.000000e-01 : f32
    %150 = vector.broadcast %cst_106 : f32 to vector<8x128xf32>
    %151 = arith.mulf %150, %147 : vector<8x128xf32>
    %152 = arith.select %149, %147, %151 : vector<8x128xi1>, vector<8x128xf32>
    %153 = arith.truncf %152 : vector<8x128xf32> to vector<8x128xbf16>
    %c0_107 = arith.constant 0 : index
    %c0_108 = arith.constant 0 : index
    %154 = vector.load %arg35[%c0_107, %c0_108] : memref<128x256xbf16, #tpu.memory_space<vmem>>, vector<128x256xbf16>
    %cst_109 = arith.constant dense<0.000000e+00> : vector<8x256xf32>
    %155 = tpu.matmul %153, %154, %cst_109 {dimension_numbers = #tpu.dot_dimension_numbers<[1], [0], [0], [1], [0, 0, 1, 1], [], []>} : vector<8x128xbf16>, vector<128x256xbf16>, vector<8x256xf32> -> vector<8x256xf32>
    %c0_110 = arith.constant 0 : index
    %c0_111 = arith.constant 0 : index
    %156 = vector.load %arg36[%c0_110, %c0_111] : memref<1x256xf32, #tpu.memory_space<vmem>>, vector<1x256xf32>
    %157 = vector.broadcast %156 : vector<1x256xf32> to vector<8x256xf32>
    %158 = arith.addf %155, %157 : vector<8x256xf32>
    %c0_112 = arith.constant 0 : index
    %c0_113 = arith.constant 0 : index
    %159 = vector.load %arg38[%c0_112, %c0_113] : memref<8x256xf32, #tpu.memory_space<vmem>>, vector<8x256xf32>
    tpu.vector_store %arg38[%c0_112, %c0_113], %158 {strides = array<i32>} : memref<8x256xf32, #tpu.memory_space<vmem>>, vector<8x256xf32>,
    return
  }
  func.func @transform_0(%arg0: i32) -> (i32, i32) {
    %c0_i32 = arith.constant 0 : i32
    %c0_i32_0 = arith.constant 0 : i32
    return %arg0, %c0_i32 : i32, i32
  }
  func.func @transform_1(%arg0: i32) -> (i32, i32) {
    %c0_i32 = arith.constant 0 : i32
    %c0_i32_0 = arith.constant 0 : i32
    return %arg0, %c0_i32 : i32, i32
  }
  func.func @transform_2(%arg0: i32) -> (i32, i32, i32) {
    %c0_i32 = arith.constant 0 : i32
    %c0_i32_0 = arith.constant 0 : i32
    %c0_i32_1 = arith.constant 0 : i32
    return %arg0, %c0_i32, %c0_i32_0 : i32, i32, i32
  }
  func.func @transform_3(%arg0: i32) -> (i32, i32, i32) {
    %c0_i32 = arith.constant 0 : i32
    %c0_i32_0 = arith.constant 0 : i32
    %c0_i32_1 = arith.constant 0 : i32
    return %arg0, %c0_i32, %c0_i32_0 : i32, i32, i32
  }
  func.func @transform_4(%arg0: i32) -> (i32, i32) {
    %c0_i32 = arith.constant 0 : i32
    %c0_i32_0 = arith.constant 0 : i32
    %c0_i32_1 = arith.constant 0 : i32
    return %c0_i32, %c0_i32_0 : i32, i32
  }
  func.func @transform_5(%arg0: i32) -> (i32, i32) {
    %c0_i32 = arith.constant 0 : i32
    %c0_i32_0 = arith.constant 0 : i32
    %c0_i32_1 = arith.constant 0 : i32
    return %c0_i32, %c0_i32_0 : i32, i32
  }
  func.func @transform_6(%arg0: i32) -> (i32, i32) {
    %c0_i32 = arith.constant 0 : i32
    %c0_i32_0 = arith.constant 0 : i32
    %c0_i32_1 = arith.constant 0 : i32
    return %c0_i32, %c0_i32_0 : i32, i32
  }
  func.func @transform_7(%arg0: i32) -> (i32, i32) {
    %c0_i32 = arith.constant 0 : i32
    %c0_i32_0 = arith.constant 0 : i32
    %c0_i32_1 = arith.constant 0 : i32
    return %c0_i32, %c0_i32_0 : i32, i32
  }
  func.func @transform_8(%arg0: i32) -> (i32, i32) {
    %c0_i32 = arith.constant 0 : i32
    %c0_i32_0 = arith.constant 0 : i32
    %c0_i32_1 = arith.constant 0 : i32
    return %c0_i32, %c0_i32_0 : i32, i32
  }
  func.func @transform_9(%arg0: i32) -> (i32, i32) {
    %c0_i32 = arith.constant 0 : i32
    %c0_i32_0 = arith.constant 0 : i32
    %c0_i32_1 = arith.constant 0 : i32
    return %c0_i32, %c0_i32_0 : i32, i32
  }
  func.func @transform_10(%arg0: i32) -> (i32, i32) {
    %c0_i32 = arith.constant 0 : i32
    %c0_i32_0 = arith.constant 0 : i32
    %c0_i32_1 = arith.constant 0 : i32
    return %c0_i32, %c0_i32_0 : i32, i32
  }
  func.func @transform_11(%arg0: i32) -> (i32, i32) {
    %c0_i32 = arith.constant 0 : i32
    %c0_i32_0 = arith.constant 0 : i32
    %c0_i32_1 = arith.constant 0 : i32
    return %c0_i32, %c0_i32_0 : i32, i32
  }
  func.func @transform_12(%arg0: i32) -> (i32, i32) {
    %c0_i32 = arith.constant 0 : i32
    %c0_i32_0 = arith.constant 0 : i32
    %c0_i32_1 = arith.constant 0 : i32
    return %c0_i32, %c0_i32_0 : i32, i32
  }
  func.func @transform_13(%arg0: i32) -> (i32, i32) {
    %c0_i32 = arith.constant 0 : i32
    %c0_i32_0 = arith.constant 0 : i32
    %c0_i32_1 = arith.constant 0 : i32
    return %c0_i32, %c0_i32_0 : i32, i32
  }
  func.func @transform_14(%arg0: i32) -> (i32, i32) {
    %c0_i32 = arith.constant 0 : i32
    %c0_i32_0 = arith.constant 0 : i32
    %c0_i32_1 = arith.constant 0 : i32
    return %c0_i32, %c0_i32_0 : i32, i32
  }
  func.func @transform_15(%arg0: i32) -> (i32, i32) {
    %c0_i32 = arith.constant 0 : i32
    %c0_i32_0 = arith.constant 0 : i32
    %c0_i32_1 = arith.constant 0 : i32
    return %c0_i32, %c0_i32_0 : i32, i32
  }
  func.func @transform_16(%arg0: i32) -> (i32, i32) {
    %c0_i32 = arith.constant 0 : i32
    %c0_i32_0 = arith.constant 0 : i32
    %c0_i32_1 = arith.constant 0 : i32
    return %c0_i32, %c0_i32_0 : i32, i32
  }
  func.func @transform_17(%arg0: i32) -> (i32, i32) {
    %c0_i32 = arith.constant 0 : i32
    %c0_i32_0 = arith.constant 0 : i32
    %c0_i32_1 = arith.constant 0 : i32
    return %c0_i32, %c0_i32_0 : i32, i32
  }
  func.func @transform_18(%arg0: i32) -> (i32, i32) {
    %c0_i32 = arith.constant 0 : i32
    %c0_i32_0 = arith.constant 0 : i32
    %c0_i32_1 = arith.constant 0 : i32
    return %c0_i32, %c0_i32_0 : i32, i32
  }
  func.func @transform_19(%arg0: i32) -> (i32, i32) {
    %c0_i32 = arith.constant 0 : i32
    %c0_i32_0 = arith.constant 0 : i32
    %c0_i32_1 = arith.constant 0 : i32
    return %c0_i32, %c0_i32_0 : i32, i32
  }
  func.func @transform_20(%arg0: i32) -> (i32, i32) {
    %c0_i32 = arith.constant 0 : i32
    %c0_i32_0 = arith.constant 0 : i32
    %c0_i32_1 = arith.constant 0 : i32
    return %c0_i32, %c0_i32_0 : i32, i32
  }
  func.func @transform_21(%arg0: i32) -> (i32, i32) {
    %c0_i32 = arith.constant 0 : i32
    %c0_i32_0 = arith.constant 0 : i32
    %c0_i32_1 = arith.constant 0 : i32
    return %c0_i32, %c0_i32_0 : i32, i32
  }
  func.func @transform_22(%arg0: i32) -> (i32, i32) {
    %c0_i32 = arith.constant 0 : i32
    %c0_i32_0 = arith.constant 0 : i32
    %c0_i32_1 = arith.constant 0 : i32
    return %c0_i32, %c0_i32_0 : i32, i32
  }
  func.func @transform_23(%arg0: i32) -> (i32, i32) {
    %c0_i32 = arith.constant 0 : i32
    %c0_i32_0 = arith.constant 0 : i32
    %c0_i32_1 = arith.constant 0 : i32
    return %c0_i32, %c0_i32_0 : i32, i32
  }
  func.func @transform_24(%arg0: i32) -> (i32, i32) {
    %c0_i32 = arith.constant 0 : i32
    %c0_i32_0 = arith.constant 0 : i32
    %c0_i32_1 = arith.constant 0 : i32
    return %c0_i32, %c0_i32_0 : i32, i32
  }
  func.func @transform_25(%arg0: i32) -> (i32, i32) {
    %c0_i32 = arith.constant 0 : i32
    %c0_i32_0 = arith.constant 0 : i32
    %c0_i32_1 = arith.constant 0 : i32
    return %c0_i32, %c0_i32_0 : i32, i32
  }
  func.func @transform_26(%arg0: i32) -> (i32, i32) {
    %c0_i32 = arith.constant 0 : i32
    %c0_i32_0 = arith.constant 0 : i32
    %c0_i32_1 = arith.constant 0 : i32
    return %c0_i32, %c0_i32_0 : i32, i32
  }
  func.func @transform_27(%arg0: i32) -> (i32, i32) {
    %c0_i32 = arith.constant 0 : i32
    %c0_i32_0 = arith.constant 0 : i32
    %c0_i32_1 = arith.constant 0 : i32
    return %c0_i32, %c0_i32_0 : i32, i32
  }
  func.func @transform_28(%arg0: i32) -> (i32, i32) {
    %c0_i32 = arith.constant 0 : i32
    %c0_i32_0 = arith.constant 0 : i32
    %c0_i32_1 = arith.constant 0 : i32
    return %c0_i32, %c0_i32_0 : i32, i32
  }
  func.func @transform_29(%arg0: i32) -> (i32, i32) {
    %c0_i32 = arith.constant 0 : i32
    %c0_i32_0 = arith.constant 0 : i32
    %c0_i32_1 = arith.constant 0 : i32
    return %c0_i32, %c0_i32_0 : i32, i32
  }
  func.func @transform_30(%arg0: i32) -> (i32, i32) {
    %c0_i32 = arith.constant 0 : i32
    %c0_i32_0 = arith.constant 0 : i32
    %c0_i32_1 = arith.constant 0 : i32
    return %c0_i32, %c0_i32_0 : i32, i32
  }
  func.func @transform_31(%arg0: i32) -> (i32, i32) {
    %c0_i32 = arith.constant 0 : i32
    %c0_i32_0 = arith.constant 0 : i32
    %c0_i32_1 = arith.constant 0 : i32
    return %c0_i32, %c0_i32_0 : i32, i32
  }
  func.func @transform_32(%arg0: i32) -> (i32, i32) {
    %c0_i32 = arith.constant 0 : i32
    %c0_i32_0 = arith.constant 0 : i32
    %c0_i32_1 = arith.constant 0 : i32
    return %c0_i32, %c0_i32_0 : i32, i32
  }
  func.func @transform_33(%arg0: i32) -> (i32, i32) {
    %c0_i32 = arith.constant 0 : i32
    %c0_i32_0 = arith.constant 0 : i32
    %c0_i32_1 = arith.constant 0 : i32
    return %c0_i32, %c0_i32_0 : i32, i32
  }
  func.func @transform_34(%arg0: i32) -> (i32, i32) {
    %c0_i32 = arith.constant 0 : i32
    %c0_i32_0 = arith.constant 0 : i32
    %c0_i32_1 = arith.constant 0 : i32
    return %c0_i32, %c0_i32_0 : i32, i32
  }
  func.func @transform_35(%arg0: i32) -> (i32, i32) {
    %c0_i32 = arith.constant 0 : i32
    %c0_i32_0 = arith.constant 0 : i32
    %c0_i32_1 = arith.constant 0 : i32
    return %c0_i32, %c0_i32_0 : i32, i32
  }
  func.func @transform_36(%arg0: i32) -> (i32, i32) {
    %c0_i32 = arith.constant 0 : i32
    %c0_i32_0 = arith.constant 0 : i32
    return %arg0, %c0_i32 : i32, i32
  }
  func.func @transform_37(%arg0: i32) -> (i32, i32) {
    %c0_i32 = arith.constant 0 : i32
    %c0_i32_0 = arith.constant 0 : i32
    return %arg0, %c0_i32 : i32, i32
  }
}

</mosaic_0001>

<bundles_post_ra>
// kernel: forward.1
= control target key start
LH: loop header
LB: loop body
LE: loop exit
PB: predicated region body
PF: predicated region fallthrough
CT: control target
= control target key end

     0   :  { %s14898_s6 = smov 1   ;;  %s14899_s10 = smov 2   ;;  %s18102_s0 = inlined_call_operand.smem [shape: u32[38], index: -1, kind: input, shape index: {}] }
   0x1   :  { %s14963_s5 = sld [smem:[%s18102_s0]]   ;;  %s14900_s14 = smov 3  }
   0x2   :  { %s14968_s9 = sld [smem:[%s18102_s0 + %s14898_s6]]   ;;  %s14901_s18 = smov 4  }
   0x3   :  { %s14973_s13 = sld [smem:[%s18102_s0 + %s14899_s10]]   ;;  %s14902_s22 = smov 5  }
   0x4   :  { %s14978_s17 = sld [smem:[%s18102_s0 + %s14900_s14]]   ;;  %s14903_s26 = smov 6  }
   0x5   :  { %s14983_s21 = sld [smem:[%s18102_s0 + %s14901_s18]]   ;;  %s14904_s30 = smov 7  }
   0x6   :  { %s14988_s25 = sld [smem:[%s18102_s0 + %s14902_s22]]   ;;  %s14905_s4 = smov 8  }
   0x7   :  { %18124 = sst [smem:[#allocation32_spill]] %s14963_s5  ;;  %s14906_s10 = smov 9  }
   0x8   :  { %18125 = sst [smem:[#allocation33_spill]] %s14968_s9  ;;  %s14907_s15 = smov 10  }
   0x9   :  { %18126 = sst [smem:[#allocation34_spill]] %s14973_s13  ;;  %s14908_s20 = smov 11  }
   0xa   :  { %18127 = sst [smem:[#allocation35_spill]] %s14978_s17  ;;  %s14910_s1 = smov 13  }
   0xb   :  { %s14993_s29 = sld [smem:[%s18102_s0 + %s14903_s26]]   ;;  %s14909_s26 = smov 12  }
   0xc   :  { %18128 = sst [smem:[#allocation36_spill]] %s14988_s25  ;;  %s14911_s7 = smov 14  }
   0xd   :  { %s14998_s3 = sld [smem:[%s18102_s0 + %s14904_s30]]   ;;  %s14913_s22 = smov 16  }
   0xe   :  { %s15003_s8 = sld [smem:[%s18102_s0 + %s14905_s4]]   ;;  %s14914_s28 = smov 17  }
   0xf   :  { %s15008_s14 = sld [smem:[%s18102_s0 + %s14906_s10]]  }
  0x10   :  { %s15013_s19 = sld [smem:[%s18102_s0 + %s14907_s15]]   ;;  %s14912_s15 = smov 15  }
  0x11   :  { %s15018_s24 = sld [smem:[%s18102_s0 + %s14908_s20]]  }
  0x12   :  { %s15023_s30 = sld [smem:[%s18102_s0 + %s14909_s26]]  }
  0x13   :  { %18129 = sst [smem:[#allocation37_spill]] %s14998_s3 }
  0x14   :  { %s15028_s6 = sld [smem:[%s18102_s0 + %s14910_s1]]  }
  0x15   :  { %18130 = sst [smem:[#allocation38_spill]] %s15008_s14 }
  0x16   :  { %18131 = sst [smem:[#allocation39_spill]] %s15013_s19 }
  0x17   :  { %s15033_s12 = sld [smem:[%s18102_s0 + %s14911_s7]]   ;;  %s14915_s7 = smov 18  }
  0x18   :  { %18132 = sst [smem:[#allocation40_spill]] %s15023_s30 }
  0x19   :  { %s15038_s20 = sld [smem:[%s18102_s0 + %s14912_s15]]   ;;  %s14916_s15 = smov 19  }
  0x1a   :  { %18133 = sst [smem:[#allocation41_spill]] %s15028_s6 }
  0x1b   :  { %s15043_s27 = sld [smem:[%s18102_s0 + %s14913_s22]]   ;;  %s14917_s22 = smov 20  }
  0x1c   :  { %s15048_s4 = sld [smem:[%s18102_s0 + %s14914_s28]]   ;;  %s14918_s28 = smov 21  }
  0x1d   :  { %18134 = sst [smem:[#allocation42_spill]] %s15033_s12 }
  0x1e   :  { %s15053_s17 = sld [smem:[%s18102_s0 + %s14915_s7]]   ;;  %s14919_s7 = smov 22  }
  0x1f   :  { %18135 = sst [smem:[#allocation43_spill]] %s15038_s20 }
  0x20   :  { %s15058_s20 = sld [smem:[%s18102_s0 + %s14916_s15]]   ;;  %s14920_s15 = smov 23  }
  0x21   :  { %s15063_s30 = sld [smem:[%s18102_s0 + %s14917_s22]]   ;;  %s14921_s22 = smov 24  }
  0x22   :  { %18136 = sst [smem:[#allocation44_spill]] %s15048_s4 }
  0x23   :  { %s15068_s4 = sld [smem:[%s18102_s0 + %s14918_s28]]   ;;  %s14922_s28 = smov 25  }
  0x24   :  { %s15073_s12 = sld [smem:[%s18102_s0 + %s14919_s7]]   ;;  %s14923_s7 = smov 26  }
  0x25   :  { %s15078_s13 = sld [smem:[%s18102_s0 + %s14920_s15]]   ;;  %s14924_s15 = smov 27  }
  0x26   :  { %s15083_s6 = sld [smem:[%s18102_s0 + %s14921_s22]]   ;;  %s14925_s22 = smov 28  }
  0x27   :  { %s15093_s19 = sld [smem:[%s18102_s0 + %s14923_s7]]   ;;  %s14927_s7 = smov 30  }
  0x28   :  { %s15103_s9 = sld [smem:[%s18102_s0 + %s14925_s22]]   ;;  %s14929_s22 = smov 32  }
  0x29   :  { %18137 = sst [smem:[#allocation45_spill]] %s15068_s4 }
  0x2a   :  { %s15088_s4 = sld [smem:[%s18102_s0 + %s14922_s28]]   ;;  %s14926_s28 = smov 29  }
  0x2b   :  { %18138 = sst [smem:[#allocation46_spill]] %s15078_s13 }
  0x2c   :  { %s15098_s13 = sld [smem:[%s18102_s0 + %s14924_s15]]   ;;  %s14928_s15 = smov 31  }
  0x2d   :  { %s15108_s14 = sld [smem:[%s18102_s0 + %s14926_s28]]   ;;  %s14930_s28 = smov 33  }
  0x2e   :  { %18140 = sst [smem:[#allocation48_spill]] %s15103_s9 }
  0x2f   :  { %s15113_s3 = sld [smem:[%s18102_s0 + %s14927_s7]]   ;;  %s14931_s7 = smov 34  }
  0x30   :  { %s15123_s9 = sld [smem:[%s18102_s0 + %s14929_s22]]   ;;  %s14933_s22 = smov 36  }
  0x31   :  { %s15133_s25 = sld [smem:[%s18102_s0 + %s14931_s7]]  }
  0x32   :  { %18139 = sst [smem:[#allocation47_spill]] %s15098_s13 }
  0x33   :  { %18141 = sst [smem:[#allocation49_spill]] %s15108_s14 }
  0x34   :  { %s15118_s13 = sld [smem:[%s18102_s0 + %s14928_s15]]   ;;  %s14932_s15 = smov 35  }
  0x35   :  { %s15128_s14 = sld [smem:[%s18102_s0 + %s14930_s28]]   ;;  %s14934_s28 = smov 37  }
  0x36   :  { %s15143_s5 = sld [smem:[%s18102_s0 + %s14933_s22]]  }
  0x3a   :  { %18142 = sst [smem:[#allocation50_spill]] %s15118_s13 }
  0x3b   :  { %18143 = sst [smem:[#allocation51_spill]] %s15128_s14 }
  0x3c   :  { %s15138_s13 = sld [smem:[%s18102_s0 + %s14932_s15]]  }
  0x3d   :  { %s15148_s14 = sld [smem:[%s18102_s0 + %s14934_s28]]  }
  0x3e   :  { %81 = vsyncpa [#allocation3], 0 }
  0x3f   :  { %82 = vsyncpa [#allocation5], 0 }
  0x40   :  { %83 = vsyncpa [#allocation8], 0 }
  0x41   :  { %84 = vsyncpa [#allocation11], 0 }
  0x42   :  { %85 = vsyncpa [#allocation14], 0 }
  0x43   :  { %86 = vsyncpa [#allocation17], 0 }
  0x44   :  { %87 = vsyncpa [#allocation20], 0  ;;  %s120_s7 = sshll.u32 %s15003_s8, 4  ;;  %s121_s7 = int_to_ptr.hbm [resolvable:$true] %s120_s7 }
  0x45   :  { %88 = vsyncpa [#allocation23], 0  ;;  %s14935_s10 = smov [#allocation4]   ;;  %s158_s15 = sshll.u32 %s15043_s27, 4  ;;  %s159_s15 = int_to_ptr.hbm [resolvable:$true] %s158_s15 }
  0x46   :  { %s122_s11 = sshll.u32 %s14935_s10, 4  ;;  %s14546_s0 = sshra.s32 %s121_s7, 4  ;;  %s123_s11 = int_to_ptr.vmem [resolvable:$true] %s122_s11  ;;  %s14547_s0 = int_to_ptr.hbm [resolvable:$true] %s14546_s0 }
  0x47   :  { %s14548_s16 = scalar_lea.hbm %s14547_s0, 1536  ;;  %s14550_s18 = scalar_lea.hbm %s15003_s8, 1536 }
  0x48   :  { %p14549_p0 = scmp.ne.s32.totalorder %s14547_s0, %s14548_s16  ;;  %p14551_p1 = scmp.lt.s32.totalorder %s14547_s0, %s15003_s8 }
  0x49   :  { %p14552_p2 = scmp.lt.s32.totalorder %s14550_s18, %s14548_s16 }
  0x4b   :  { %p14553_p3 = por %p14552_p2, %p14551_p1 }
  0x4d   :  { %p14554_p4 = pnand %p14553_p3, %p14549_p0 }
  0x4f   :  { %14557 = shalt.err (!%p14554_p4)
}
  0x50   :  { %s14936_s22 = smov 256   ;;  %s14937_s23 = smov 16  }
  0x51   :  { %128 = dma.hbm_to_vmem [thread:$0]  %s121_s7, 24576, %s123_s11, [#allocation5], %s14936_s22, %s14936_s22, %s14937_s23  }
  0x52   :  { %s14938_s26 = smov [#allocation7]   ;;  %s14570_s1 = sshra.s32 %s159_s15, 4  ;;  %s14571_s1 = int_to_ptr.hbm [resolvable:$true] %s14570_s1 }
  0x53   :  { %s160_s28 = sshll.u32 %s14938_s26, 4  ;;  %s14572_s2 = scalar_lea.hbm %s14571_s1, 64  ;;  %s161_s28 = int_to_ptr.vmem [resolvable:$true] %s160_s28 }
  0x54   :  { %p14573_p5 = scmp.ne.s32.totalorder %s14571_s1, %s14572_s2  ;;  %s14574_s10 = scalar_lea.hbm %s15043_s27, 64 }
  0x55   :  { %p14575_p6 = scmp.lt.s32.totalorder %s14571_s1, %s15043_s27  ;;  %p14576_p7 = scmp.lt.s32.totalorder %s14574_s10, %s14572_s2 }
  0x57   :  { %p14577_p8 = por %p14576_p7, %p14575_p6 }
  0x59   :  { %p14578_p9 = pnand %p14577_p8, %p14573_p5 }
  0x5b   :  { %14581 = shalt.err (!%p14578_p9)
}
  0x5c   :  { %s14939_s8 = smov 64   ;;  %s14940_s7 = smov 4  }
  0x5d   :  { %166 = dma.hbm_to_vmem [thread:$0]  %s159_s15, 1024, %s161_s28, [#allocation8], %s14939_s8, %s14939_s8, %s14940_s7  }
  0x5e   :  { %s186_s11 = sshll.u32 %s15058_s20, 4  ;;  %s14941_s0 = smov [#allocation10]   ;;  %s187_s11 = int_to_ptr.hbm [resolvable:$true] %s186_s11 }
  0x5f   :  { %s188_s16 = sshll.u32 %s14941_s0, 4  ;;  %s214_s27 = sshll.u32 %s15073_s12, 4  ;;  %s189_s16 = int_to_ptr.vmem [resolvable:$true] %s188_s16  ;;  %s215_s27 = int_to_ptr.hbm [resolvable:$true] %s214_s27 }
  0x60   :  { %s14594_s18 = sshra.s32 %s187_s11, 4  ;;  %s14598_s23 = scalar_lea.hbm %s15058_s20, 64  ;;  %s14595_s18 = int_to_ptr.hbm [resolvable:$true] %s14594_s18 }
  0x61   :  { %s14596_s22 = scalar_lea.hbm %s14595_s18, 64  ;;  %p14599_p11 = scmp.lt.s32.totalorder %s14595_s18, %s15058_s20 }
  0x62   :  { %p14597_p10 = scmp.ne.s32.totalorder %s14595_s18, %s14596_s22  ;;  %p14600_p12 = scmp.lt.s32.totalorder %s14598_s23, %s14596_s22 }
  0x64   :  { %p14601_p13 = por %p14600_p12, %p14599_p11 }
  0x66   :  { %p14602_p0 = pnand %p14601_p13, %p14597_p10 }
  0x68   :  { %14605 = shalt.err (!%p14602_p0)
}
  0x69   :  { %194 = dma.hbm_to_vmem [thread:$0]  %s187_s11, 1024, %s189_s16, [#allocation11], %s14939_s8, %s14939_s8, %s14940_s7  }
  0x6a   :  { %s14942_s15 = smov [#allocation13]   ;;  %s242_s28 = sshll.u32 %s15088_s4, 4  ;;  %s15167_s28 = int_to_ptr.hbm [resolvable:$true] %s242_s28 }
  0x6b   :  { %s216_s26 = sshll.u32 %s14942_s15, 4  ;;  %s14618_s1 = sshra.s32 %s215_s27, 4  ;;  %s217_s26 = int_to_ptr.vmem [resolvable:$true] %s216_s26  ;;  %s14619_s1 = int_to_ptr.hbm [resolvable:$true] %s14618_s1 }
  0x6c   :  { %s14620_s20 = scalar_lea.hbm %s14619_s1, 64  ;;  %s14622_s2 = scalar_lea.hbm %s15073_s12, 64 }
  0x6d   :  { %p14621_p1 = scmp.ne.s32.totalorder %s14619_s1, %s14620_s20  ;;  %p14623_p2 = scmp.lt.s32.totalorder %s14619_s1, %s15073_s12 }
  0x6e   :  { %p14624_p3 = scmp.lt.s32.totalorder %s14622_s2, %s14620_s20 }
  0x70   :  { %p14625_p4 = por %p14624_p3, %p14623_p2 }
  0x72   :  { %p14626_p5 = pnand %p14625_p4, %p14621_p1 }
  0x74   :  { %14629 = shalt.err (!%p14626_p5)
}
  0x75   :  { %222 = dma.hbm_to_vmem [thread:$0]  %s215_s27, 1024, %s217_s26, [#allocation14], %s14939_s8, %s14939_s8, %s14940_s7  }
  0x76   :  { %s14943_s10 = smov [#allocation16]   ;;  %s274_s0 = sshll.u32 %s15113_s3, 4  ;;  %s275_s0 = int_to_ptr.hbm [resolvable:$true] %s274_s0 }
  0x77   :  { %s244_s11 = sshll.u32 %s14943_s10, 4  ;;  %s14642_s16 = sshra.s32 %s15167_s28, 4  ;;  %s245_s11 = int_to_ptr.vmem [resolvable:$true] %s244_s11  ;;  %s14643_s16 = int_to_ptr.hbm [resolvable:$true] %s14642_s16 }
  0x78   :  { %s14644_s18 = scalar_lea.hbm %s14643_s16, 64  ;;  %s14646_s12 = scalar_lea.hbm %s15088_s4, 64 }
  0x79   :  { %p14645_p6 = scmp.ne.s32.totalorder %s14643_s16, %s14644_s18  ;;  %p14647_p7 = scmp.lt.s32.totalorder %s14643_s16, %s15088_s4 }
  0x7a   :  { %p14648_p8 = scmp.lt.s32.totalorder %s14646_s12, %s14644_s18 }
  0x7c   :  { %p14649_p9 = por %p14648_p8, %p14647_p7 }
  0x7e   :  { %p14650_p10 = pnand %p14649_p9, %p14645_p6 }
  0x80   :  { %14653 = shalt.err (!%p14650_p10)
}
  0x81   :  { %250 = dma.hbm_to_vmem [thread:$0]  %s15167_s28, 1024, %s245_s11, [#allocation17], %s14939_s8, %s14939_s8, %s14940_s7  }
  0x82   :  { %s14944_s27 = smov [#allocation19]   ;;  %s105_s23 = sshll.u32 %s14993_s29, 4  ;;  %s15183_s23 = int_to_ptr.hbm [resolvable:$true] %s105_s23 }
  0x83   :  { %s276_s22 = sshll.u32 %s14944_s27, 4  ;;  %s14666_s4 = sshra.s32 %s275_s0, 4  ;;  %s277_s22 = int_to_ptr.vmem [resolvable:$true] %s276_s22  ;;  %s14667_s4 = int_to_ptr.hbm [resolvable:$true] %s14666_s4 }
  0x84   :  { %s14668_s15 = scalar_lea.hbm %s14667_s4, 128  ;;  %s14670_s26 = scalar_lea.hbm %s15113_s3, 128 }
  0x85   :  { %p14669_p11 = scmp.ne.s32.totalorder %s14667_s4, %s14668_s15  ;;  %p14671_p12 = scmp.lt.s32.totalorder %s14667_s4, %s15113_s3 }
  0x86   :  { %p14672_p13 = scmp.lt.s32.totalorder %s14670_s26, %s14668_s15 }
  0x88   :  { %p14673_p0 = por %p14672_p13, %p14671_p12 }
  0x8a   :  { %p14674_p1 = pnand %p14673_p0, %p14669_p11 }
  0x8c   :  { %14677 = shalt.err (!%p14674_p1)
}
  0x8d   :  { %s14945_s1 = smov 128   ;;  %s14946_s28 = smov 8  }
  0x8e   :  { %282 = dma.hbm_to_vmem [thread:$0]  %s275_s0, 2048, %s277_s22, [#allocation20], %s14945_s1, %s14945_s1, %s14946_s28  }
  0x8f   :  { %s137_s20 = sshll.u32 %s15018_s24, 4  ;;  %s14947_s2 = smov [#allocation2]   ;;  %s15191_s20 = int_to_ptr.hbm [resolvable:$true] %s137_s20 }
  0x90   :  { %s107_s10 = sshll.u32 %s14947_s2, 4  ;;  %s14690_s3 = sshra.s32 %s15183_s23, 4  ;;  %s108_s10 = int_to_ptr.vmem [resolvable:$true] %s107_s10  ;;  %s14691_s3 = int_to_ptr.hbm [resolvable:$true] %s14690_s3 }
  0x91   :  { %s14692_s11 = scalar_lea.hbm %s14691_s3, 512  ;;  %s14694_s16 = scalar_lea.hbm %s14993_s29, 512 }
  0x92   :  { %p14693_p2 = scmp.ne.s32.totalorder %s14691_s3, %s14692_s11  ;;  %p14695_p3 = scmp.lt.s32.totalorder %s14691_s3, %s14993_s29 }
  0x93   :  { %p14696_p4 = scmp.lt.s32.totalorder %s14694_s16, %s14692_s11 }
  0x95   :  { %p14697_p5 = por %p14696_p4, %p14695_p3 }
  0x97   :  { %p14698_p6 = pnand %p14697_p5, %p14693_p2 }
  0x99   :  { %14701 = shalt.err (!%p14698_p6)
}
  0x9a   :  { %113 = dma.hbm_to_vmem [thread:$0]  %s15183_s23, 8192, %s108_s10, [#allocation3], %s14945_s1, %s14945_s1, %s14946_s28  }
  0x9b   :  { %s14948_s0 = smov [#allocation6]   ;;  %s173_s12 = sshll.u32 %s15053_s17, 4  ;;  %s15201_s12 = int_to_ptr.hbm [resolvable:$true] %s173_s12 }
  0x9c   :  { %s139_s18 = sshll.u32 %s14948_s0, 4  ;;  %s14714_s29 = sshra.s32 %s15191_s20, 4  ;;  %s140_s18 = int_to_ptr.vmem [resolvable:$true] %s139_s18  ;;  %s14715_s29 = int_to_ptr.hbm [resolvable:$true] %s14714_s29 }
  0x9d   :  { %s14716_s27 = scalar_lea.hbm %s14715_s29, 768  ;;  %s14718_s22 = scalar_lea.hbm %s15018_s24, 768 }
  0x9e   :  { %p14717_p7 = scmp.ne.s32.totalorder %s14715_s29, %s14716_s27  ;;  %p14719_p8 = scmp.lt.s32.totalorder %s14715_s29, %s15018_s24 }
  0x9f   :  { %p14720_p9 = scmp.lt.s32.totalorder %s14718_s22, %s14716_s27 }
  0xa1   :  { %p14721_p10 = por %p14720_p9, %p14719_p8 }
  0xa3   :  { %p14722_p11 = pnand %p14721_p10, %p14717_p7 }
  0xa5   :  { %14725 = shalt.err (!%p14722_p11)
}
  0xa6   :  { %145 = dma.hbm_to_vmem [thread:$0]  %s15191_s20, 12288, %s140_s18, [#allocation5], %s14945_s1, %s14945_s1, %s14946_s28  }
  0xa7   :  { %s199_s23 = sshll.u32 %s15063_s30, 4  ;;  %s14949_s4 = smov [#allocation9]   ;;  %s15211_s23 = int_to_ptr.hbm [resolvable:$true] %s199_s23 }
  0xa8   :  { %s175_s15 = sshll.u32 %s14949_s4, 4  ;;  %s14738_s24 = sshra.s32 %s15201_s12, 4  ;;  %s176_s15 = int_to_ptr.vmem [resolvable:$true] %s175_s15  ;;  %s14739_s24 = int_to_ptr.hbm [resolvable:$true] %s14738_s24 }
  0xa9   :  { %s14740_s26 = scalar_lea.hbm %s14739_s24, 64  ;;  %s14742_s2 = scalar_lea.hbm %s15053_s17, 64 }
  0xaa   :  { %p14741_p12 = scmp.ne.s32.totalorder %s14739_s24, %s14740_s26  ;;  %p14743_p13 = scmp.lt.s32.totalorder %s14739_s24, %s15053_s17 }
  0xab   :  { %p14744_p0 = scmp.lt.s32.totalorder %s14742_s2, %s14740_s26 }
  0xad   :  { %p14745_p1 = por %p14744_p0, %p14743_p13 }
  0xaf   :  { %p14746_p2 = pnand %p14745_p1, %p14741_p12 }
  0xb1   :  { %14749 = shalt.err (!%p14746_p2)
}
  0xb2   :  { %181 = dma.hbm_to_vmem [thread:$0]  %s15201_s12, 1024, %s176_s15, [#allocation8], %s14939_s8, %s14939_s8, %s14940_s7  }
  0xb3   :  { %s14950_s20 = smov [#allocation12]   ;;  %s229_s3 = sshll.u32 %s15083_s6, 4  ;;  %s15221_s3 = int_to_ptr.hbm [resolvable:$true] %s229_s3 }
  0xb4   :  { %s201_s10 = sshll.u32 %s14950_s20, 4  ;;  %s14762_s17 = sshra.s32 %s15211_s23, 4  ;;  %s202_s10 = int_to_ptr.vmem [resolvable:$true] %s201_s10  ;;  %s14763_s17 = int_to_ptr.hbm [resolvable:$true] %s14762_s17 }
  0xb5   :  { %s14764_s11 = scalar_lea.hbm %s14763_s17, 256  ;;  %s14766_s16 = scalar_lea.hbm %s15063_s30, 256 }
  0xb6   :  { %p14765_p3 = scmp.ne.s32.totalorder %s14763_s17, %s14764_s11  ;;  %p14767_p4 = scmp.lt.s32.totalorder %s14763_s17, %s15063_s30 }
  0xb7   :  { %p14768_p5 = scmp.lt.s32.totalorder %s14766_s16, %s14764_s11 }
  0xb9   :  { %p14769_p6 = por %p14768_p5, %p14767_p4 }
  0xbb   :  { %p14770_p7 = pnand %p14769_p6, %p14765_p3 }
  0xbd   :  { %14773 = shalt.err (!%p14770_p7)
}
  0xbe   :  { %207 = dma.hbm_to_vmem [thread:$0]  %s15211_s23, 4096, %s202_s10, [#allocation11], %s14939_s8, %s14939_s8, %s14940_s7  }
  0xbf   :  { %s255_s0 = sshll.u32 %s15093_s19, 4  ;;  %s14951_s18 = smov [#allocation15]   ;;  %s15231_s0 = int_to_ptr.hbm [resolvable:$true] %s255_s0 }
  0xc0   :  { %s231_s12 = sshll.u32 %s14951_s18, 4  ;;  %s14786_s30 = sshra.s32 %s15221_s3, 4  ;;  %s232_s12 = int_to_ptr.vmem [resolvable:$true] %s231_s12  ;;  %s14787_s30 = int_to_ptr.hbm [resolvable:$true] %s14786_s30 }
  0xc1   :  { %s14788_s29 = scalar_lea.hbm %s14787_s30, 64  ;;  %s14790_s27 = scalar_lea.hbm %s15083_s6, 64 }
  0xc2   :  { %p14789_p8 = scmp.ne.s32.totalorder %s14787_s30, %s14788_s29  ;;  %p14791_p9 = scmp.lt.s32.totalorder %s14787_s30, %s15083_s6 }
  0xc3   :  { %p14792_p10 = scmp.lt.s32.totalorder %s14790_s27, %s14788_s29 }
  0xc5   :  { %p14793_p11 = por %p14792_p10, %p14791_p9 }
  0xc7   :  { %p14794_p12 = pnand %p14793_p11, %p14789_p8 }
  0xc9   :  { %14797 = shalt.err (!%p14794_p12)
}
  0xca   :  { %237 = dma.hbm_to_vmem [thread:$0]  %s15221_s3, 1024, %s232_s12, [#allocation14], %s14939_s8, %s14939_s8, %s14940_s7  }
  0xcb   :  { %s14952_s22 = smov [#allocation18]   ;;  %s289_s4 = sshll.u32 %s15123_s9, 4  ;;  %s15241_s4 = int_to_ptr.hbm [resolvable:$true] %s289_s4 }
  0xcc   :  { %s257_s23 = sshll.u32 %s14952_s22, 4  ;;  %s14810_s6 = sshra.s32 %s15231_s0, 4  ;;  %s258_s23 = int_to_ptr.vmem [resolvable:$true] %s257_s23  ;;  %s14811_s6 = int_to_ptr.hbm [resolvable:$true] %s14810_s6 }
  0xcd   :  { %s14812_s15 = scalar_lea.hbm %s14811_s6, 64  ;;  %s14814_s24 = scalar_lea.hbm %s15093_s19, 64 }
  0xce   :  { %p14813_p13 = scmp.ne.s32.totalorder %s14811_s6, %s14812_s15  ;;  %p14815_p0 = scmp.lt.s32.totalorder %s14811_s6, %s15093_s19 }
  0xcf   :  { %p14816_p1 = scmp.lt.s32.totalorder %s14814_s24, %s14812_s15 }
  0xd1   :  { %p14817_p2 = por %p14816_p1, %p14815_p0 }
  0xd3   :  { %p14818_p3 = pnand %p14817_p2, %p14813_p13 }
  0xd5   :  { %14821 = shalt.err (!%p14818_p3)
}
  0xd6   :  { %263 = dma.hbm_to_vmem [thread:$0]  %s15231_s0, 1024, %s258_s23, [#allocation17], %s14939_s8, %s14939_s8, %s14940_s7  }
  0xd7   :  { %s304_s26 = sshll.u32 %s15133_s25, 4  ;;  %s14953_s2 = smov [#allocation21]   ;;  %s15251_s26 = int_to_ptr.hbm [resolvable:$true] %s304_s26 }
  0xd8   :  { %s291_s20 = sshll.u32 %s14953_s2, 4  ;;  %s14834_s19 = sshra.s32 %s15241_s4, 4  ;;  %s292_s20 = int_to_ptr.vmem [resolvable:$true] %s291_s20  ;;  %s14835_s19 = int_to_ptr.hbm [resolvable:$true] %s14834_s19 }
  0xd9   :  { %s14836_s10 = scalar_lea.hbm %s14835_s19, 128  ;;  %s14838_s3 = scalar_lea.hbm %s15123_s9, 128 }
  0xda   :  { %p14837_p4 = scmp.ne.s32.totalorder %s14835_s19, %s14836_s10  ;;  %p14839_p5 = scmp.lt.s32.totalorder %s14835_s19, %s15123_s9 }
  0xdb   :  { %p14840_p6 = scmp.lt.s32.totalorder %s14838_s3, %s14836_s10 }
  0xdd   :  { %p14841_p7 = por %p14840_p6, %p14839_p5 }
  0xdf   :  { %p14842_p8 = pnand %p14841_p7, %p14837_p4 }
  0xe1   :  { %14845 = shalt.err (!%p14842_p8)
}
  0xe2   :  { %297 = dma.hbm_to_vmem [thread:$0]  %s15241_s4, 2048, %s292_s20, [#allocation20], %s14939_s8, %s14939_s8, %s14940_s7  }
  0xe3   :  { %s14954_s17 = smov [#allocation22]   ;;  %s14858_s16 = sshra.s32 %s15251_s26, 4  ;;  %s14859_s16 = int_to_ptr.hbm [resolvable:$true] %s14858_s16 }
  0xe4   :  { %s306_s11 = sshll.u32 %s14954_s17, 4  ;;  %s14860_s0 = scalar_lea.hbm %s14859_s16, 128  ;;  %s307_s11 = int_to_ptr.vmem [resolvable:$true] %s306_s11 }
  0xe5   :  { %p14861_p9 = scmp.ne.s32.totalorder %s14859_s16, %s14860_s0  ;;  %s14862_s9 = scalar_lea.hbm %s15133_s25, 128 }
  0xe6   :  { %p14863_p10 = scmp.lt.s32.totalorder %s14859_s16, %s15133_s25  ;;  %p14864_p11 = scmp.lt.s32.totalorder %s14862_s9, %s14860_s0 }
  0xe8   :  { %p14865_p12 = por %p14864_p11, %p14863_p10 }
  0xea   :  { %p14866_p13 = pnand %p14865_p12, %p14861_p9 }
  0xec   :  { %14869 = shalt.err (!%p14866_p13)
}
  0xed   :  { %312 = dma.hbm_to_vmem [thread:$0]  %s15251_s26, 2048, %s307_s11, [#allocation23], %s14945_s1, %s14945_s1, %s14946_s28  }
  0xee   :  { %14882 = dma.done.wait [#allocation3], 8192  }
  0xef   :  { %14883 = vsyncadd [#allocation3], 4294959104 }
  0xf0   :  { %14884 = dma.done.wait [#allocation5], 36864  }
  0xf1   :  { %14885 = vsyncadd [#allocation5], 4294930432 }
  0xf2   :  { %14886 = dma.done.wait [#allocation8], 2048  }
  0xf3   :  { %14887 = vsyncadd [#allocation8], 4294965248 }
  0xf4   :  { %14888 = dma.done.wait [#allocation11], 5120  }
  0xf5   :  { %14889 = vsyncadd [#allocation11], 4294962176 }
  0xf6   :  { %14890 = dma.done.wait [#allocation14], 2048  }
  0xf7   :  { %14891 = vsyncadd [#allocation14], 4294965248 }
  0xf8   :  { %14892 = dma.done.wait [#allocation17], 2048  }
  0xf9   :  { %14893 = vsyncadd [#allocation17], 4294965248 }
  0xfa   :  { %14894 = dma.done.wait [#allocation20], 4096  }
  0xfb   :  { %14895 = vsyncadd [#allocation20], 4294963200 }
  0xfc   :  { %14896 = dma.done.wait [#allocation23], 2048  }
  0xfd   :  { %14897 = vsyncadd [#allocation23], 4294965248  ;;  %v10077_v0 = vld [vmem:[%s14983_s21 + $0xe0] sm:$0xf]  ;;  %v13641_v1 = vld [vmem:[%s14983_s21 + $0xec] sm:$0xf0] }
  0xfe   :  { %v10205_v2 = vld [vmem:[%s14983_s21 + $0x1e0] sm:$0xf]  ;;  %v10078_v3 = vor.u32 %v13641_v1, %v10077_v0  ;;  %v13673_v4 = vld [vmem:[%s14983_s21 + $0x1ec] sm:$0xf0]  ;;  %s18144_s25 = sld [smem:[#allocation32_spill]]  ;;  %vm5544_vm0 = vcmask 1043456  }
  0xff   :  { %v10333_v5 = vld [vmem:[%s14983_s21 + $0x2e0] sm:$0xf]  ;;  %v13705_v6 = vld [vmem:[%s14983_s21 + $0x2ec] sm:$0xf0]  ;;  %v10206_v7 = vor.u32 %v13673_v4, %v10205_v2  ;;  %s18145_s7 = sld [smem:[#allocation36_spill]]  ;;  %vm5447_vm1 = vcmask 64512  }
 0x100   :  { %v10334_v8 = vor.u32 %v13705_v6, %v10333_v5  ;;  %v10461_v9 = vld [vmem:[%s14983_s21 + $0x3e0] sm:$0xf]  ;;  %v13737_v10 = vld [vmem:[%s14983_s21 + $0x3ec] sm:$0xf0]  ;;  %1552 = vmatpush.bf16.msra.mxu0 %v10078_v3  ;;  %s18147_s1 = sld [smem:[#allocation38_spill]]  ;;  %vm6513_vm2 = vcmask 523264  }
 0x101   :  { %v10061_v11 = vld [vmem:[%s14983_s21 + $0xc0] sm:$0xf]  ;;  %v10462_v12 = vor.u32 %v13737_v10, %v10461_v9  ;;  %v13637_v13 = vld [vmem:[%s14983_s21 + $0xcc] sm:$0xf0]  ;;  %1565 = vmatpush.bf16.msra.mxu1 %v10206_v7  ;;  %s18148_s28 = sld [smem:[#allocation33_spill]]  ;;  %vm7419_vm3 = vcmask 1041408  }
 0x102   :  { %v10189_v14 = vld [vmem:[%s14983_s21 + $0x1c0] sm:$0xf]  ;;  %v13669_v15 = vld [vmem:[%s14983_s21 + $0x1cc] sm:$0xf0]  ;;  %1578 = vmatpush.bf16.msra.mxu2 %v10334_v8  ;;  %v10062_v16 = vor.u32 %v13637_v13, %v10061_v11  ;;  %s18153_s18 = sld [smem:[#allocation39_spill]]  ;;  %vm7867_vm4 = vcmask 1041409  }
 0x103   :  { %v10190_v17 = vor.u32 %v13669_v15, %v10189_v14  ;;  %v10317_v18 = vld [vmem:[%s14983_s21 + $0x2c0] sm:$0xf]  ;;  %v13701_v19 = vld [vmem:[%s14983_s21 + $0x2cc] sm:$0xf0]  ;;  %1591 = vmatpush.bf16.msra.mxu3 %v10462_v12  ;;  %s18154_s12 = sld [smem:[#allocation41_spill]]  ;;  %vm7869_vm5 = vcmask 1042434  }
 0x104   :  { %v10445_v20 = vld [vmem:[%s14983_s21 + $0x3c0] sm:$0xf]  ;;  %v10318_v21 = vor.u32 %v13701_v19, %v10317_v18  ;;  %v13733_v22 = vld [vmem:[%s14983_s21 + $0x3cc] sm:$0xf0]  ;;  %1553 = vmatpush.bf16.msra.mxu0 %v10062_v16  ;;  %s18156_s30 = sld [smem:[#allocation34_spill]]  ;;  %vm7871_vm6 = vcmask 1043459  }
 0x105   :  { %v10045_v23 = vld [vmem:[%s14983_s21 + $0xa0] sm:$0xf]  ;;  %v13633_v24 = vld [vmem:[%s14983_s21 + $0xac] sm:$0xf0]  ;;  %v10446_v25 = vor.u32 %v13733_v22, %v10445_v20  ;;  %1566 = vmatpush.bf16.msra.mxu1 %v10190_v17  ;;  %s18160_s29 = sld [smem:[#allocation42_spill]]  ;;  %vm7873_vm7 = vcmask 1044484  }
 0x106   :  { %v10173_v26 = vld [vmem:[%s14983_s21 + $0x1a0] sm:$0xf]  ;;  %v13665_v27 = vld [vmem:[%s14983_s21 + $0x1ac] sm:$0xf0]  ;;  %v10046_v29 = vor.u32 %v13633_v24, %v10045_v23  ;;  %1579 = vmatpush.bf16.msra.mxu2 %v10318_v21  ;;  %s18161_s27 = sld [smem:[#allocation40_spill]]  ;;  %vm7875_vm8 = vcmask 1045509  }
 0x107   :  { %v10301_v28 = vld [vmem:[%s14983_s21 + $0x2a0] sm:$0xf]  ;;  %v13697_v30 = vld [vmem:[%s14983_s21 + $0x2ac] sm:$0xf0]  ;;  %v10174_v33 = vor.u32 %v13665_v27, %v10173_v26  ;;  %1592 = vmatpush.bf16.msra.mxu3 %v10446_v25  ;;  %s18335_s22 = sld [smem:[#allocation43_spill]]  ;;  %vm7877_vm9 = vcmask 1046534  }
 0x108   :  { %v10429_v31 = vld [vmem:[%s14983_s21 + $0x3a0] sm:$0xf]  ;;  %v13729_v32 = vld [vmem:[%s14983_s21 + $0x3ac] sm:$0xf0]  ;;  %v10302_v34 = vor.u32 %v13697_v30, %v10301_v28  ;;  %1554 = vmatpush.bf16.msra.mxu0 %v10046_v29  ;;  %v13639_v30 = vld [vmem:[%s14983_s21 + $0xe4] sm:$0xf] }
 0x109   :  { %v10029_v35 = vld [vmem:[%s14983_s21 + $0x80] sm:$0xf]  ;;  %v13629_v36 = vld [vmem:[%s14983_s21 + $0x8c] sm:$0xf0]  ;;  %v10430_v38 = vor.u32 %v13729_v32, %v10429_v31  ;;  %1567 = vmatpush.bf16.msra.mxu1 %v10174_v33  ;;  %v10079_v32 = vld [vmem:[%s14983_s21 + $0xf0] sm:$0xf0] }
 0x10a   :  { %v10157_v37 = vld [vmem:[%s14983_s21 + $0x180] sm:$0xf]  ;;  %v13661_v39 = vld [vmem:[%s14983_s21 + $0x18c] sm:$0xf0]  ;;  %v10030_v44 = vor.u32 %v13629_v36, %v10029_v35  ;;  %1580 = vmatpush.bf16.msra.mxu2 %v10302_v34  ;;  %s18336_s23 = sld [smem:[#allocation44_spill]]  ;;  %vm7879_vm10 = vcmask 1047559  }
 0x10b   :  { %v10285_v40 = vld [vmem:[%s14983_s21 + $0x280] sm:$0xf]  ;;  %v13693_v41 = vld [vmem:[%s14983_s21 + $0x28c] sm:$0xf0]  ;;  %v10158_v45 = vor.u32 %v13661_v39, %v10157_v37  ;;  %1593 = vmatpush.bf16.msra.mxu3 %v10430_v38  ;;  %v13671_v37 = vld [vmem:[%s14983_s21 + $0x1e4] sm:$0xf] }
 0x10c   :  { %v10413_v42 = vld [vmem:[%s14983_s21 + $0x380] sm:$0xf]  ;;  %v13725_v43 = vld [vmem:[%s14983_s21 + $0x38c] sm:$0xf0]  ;;  %v10286_v46 = vor.u32 %v13693_v41, %v10285_v40  ;;  %1555 = vmatpush.bf16.msra.mxu0 %v10030_v44  ;;  %v10207_v38 = vld [vmem:[%s14983_s21 + $0x1f0] sm:$0xf0] }
 0x10d   :  { %v10013_v47 = vld [vmem:[%s14983_s21 + $0x60] sm:$0xf]  ;;  %v13625_v48 = vld [vmem:[%s14983_s21 + $0x6c] sm:$0xf0]  ;;  %v10414_v50 = vor.u32 %v13725_v43, %v10413_v42  ;;  %1568 = vmatpush.bf16.msra.mxu1 %v10158_v45  ;;  %v10082_v42 = vor.u32 %v13639_v30, %v10079_v32  ;;  %v10143_v30 = vld [vmem:[%s14983_s21 + $0x170] sm:$0xf0] }
 0x10e   :  { %v10141_v49 = vld [vmem:[%s14983_s21 + $0x160] sm:$0xf]  ;;  %v13657_v51 = vld [vmem:[%s14983_s21 + $0x16c] sm:$0xf0]  ;;  %v10014_v56 = vor.u32 %v13625_v48, %v10013_v47  ;;  %1581 = vmatpush.bf16.msra.mxu2 %v10286_v46  ;;  %v10210_v47 = vor.u32 %v13671_v37, %v10207_v38  ;;  %v13635_v48 = vld [vmem:[%s14983_s21 + $0xc4] sm:$0xf] }
 0x10f   :  { %v10269_v52 = vld [vmem:[%s14983_s21 + $0x260] sm:$0xf]  ;;  %v13689_v53 = vld [vmem:[%s14983_s21 + $0x26c] sm:$0xf0]  ;;  %v10142_v57 = vor.u32 %v13657_v51, %v10141_v49  ;;  %1594 = vmatpush.bf16.msra.mxu3 %v10414_v50  ;;  %v10063_v49 = vld [vmem:[%s14983_s21 + $0xd0] sm:$0xf0] }
 0x110   :  { %v10397_v54 = vld [vmem:[%s14983_s21 + $0x360] sm:$0xf]  ;;  %v13721_v55 = vld [vmem:[%s14983_s21 + $0x36c] sm:$0xf0]  ;;  %v10270_v58 = vor.u32 %v13689_v53, %v10269_v52  ;;  %1556 = vmatpush.bf16.msra.mxu0 %v10014_v56  ;;  %v13667_v50 = vld [vmem:[%s14983_s21 + $0x1c4] sm:$0xf] }
 0x111   :  { %v9997_v59 = vld [vmem:[%s14983_s21 + $0x40] sm:$0xf]  ;;  %v13621_v60 = vld [vmem:[%s14983_s21 + $0x4c] sm:$0xf0]  ;;  %v10398_v62 = vor.u32 %v13721_v55, %v10397_v54  ;;  %1569 = vmatpush.bf16.msra.mxu1 %v10142_v57  ;;  %v10191_v51 = vld [vmem:[%s14983_s21 + $0x1d0] sm:$0xf0]  ;;  %v10066_v55 = vor.u32 %v13635_v48, %v10063_v49 }
 0x112   :  { %v10125_v61 = vld [vmem:[%s14983_s21 + $0x140] sm:$0xf]  ;;  %v13653_v63 = vld [vmem:[%s14983_s21 + $0x14c] sm:$0xf0]  ;;  %v9998_v4 = vor.u32 %v13621_v60, %v9997_v59  ;;  %1582 = vmatpush.bf16.msra.mxu2 %v10270_v58  ;;  %v10194_v59 = vor.u32 %v13667_v50, %v10191_v51  ;;  %v13631_v60 = vld [vmem:[%s14983_s21 + $0xa4] sm:$0xf] }
 0x113   :  { %v10253_v0 = vld [vmem:[%s14983_s21 + $0x240] sm:$0xf]  ;;  %v13685_v1 = vld [vmem:[%s14983_s21 + $0x24c] sm:$0xf0]  ;;  %v10126_v5 = vor.u32 %v13653_v63, %v10125_v61  ;;  %1595 = vmatpush.bf16.msra.mxu3 %v10398_v62  ;;  %v10047_v61 = vld [vmem:[%s14983_s21 + $0xb0] sm:$0xf0] }
 0x114   :  { %v10381_v2 = vld [vmem:[%s14983_s21 + $0x340] sm:$0xf]  ;;  %v13717_v3 = vld [vmem:[%s14983_s21 + $0x34c] sm:$0xf0]  ;;  %v10254_v6 = vor.u32 %v13685_v1, %v10253_v0  ;;  %1557 = vmatpush.bf16.msra.mxu0 %v9998_v4  ;;  %v13663_v62 = vld [vmem:[%s14983_s21 + $0x1a4] sm:$0xf] }
 0x115   :  { %v9981_v7 = vld [vmem:[%s14983_s21 + $0x20] sm:$0xf]  ;;  %v13617_v8 = vld [vmem:[%s14983_s21 + $0x2c] sm:$0xf0]  ;;  %v10382_v10 = vor.u32 %v13717_v3, %v10381_v2  ;;  %1570 = vmatpush.bf16.msra.mxu1 %v10126_v5  ;;  %v10175_v63 = vld [vmem:[%s14983_s21 + $0x1b0] sm:$0xf0] }
 0x116   :  { %v10109_v9 = vld [vmem:[%s14983_s21 + $0x120] sm:$0xf]  ;;  %v13649_v11 = vld [vmem:[%s14983_s21 + $0x12c] sm:$0xf0]  ;;  %v9982_v16 = vor.u32 %v13617_v8, %v9981_v7  ;;  %1583 = vmatpush.bf16.msra.mxu2 %v10254_v6  ;;  %v373_v5 = vld [vmem:[%s18144_s25 + $0x8] sm:$0xff]  ;;  %v10050_v6 = vor.u32 %v13631_v60, %v10047_v61  ;;  %s18345_s4 = sld [smem:[#allocation47_spill]] }
 0x117   :  { %v10237_v12 = vld [vmem:[%s14983_s21 + $0x220] sm:$0xf]  ;;  %v13681_v13 = vld [vmem:[%s14983_s21 + $0x22c] sm:$0xf0]  ;;  %v10110_v19 = vor.u32 %v13649_v11, %v10109_v9  ;;  %1596 = vmatpush.bf16.msra.mxu3 %v10382_v10  ;;  %v15363_v10 = vpack.c.bf16 %v373_v5, %v373_v5  ;;  %v10178_v11 = vor.u32 %v13663_v62, %v10175_v63  ;;  %v13611_v63 = vld [vmem:[%s14983_s21 + $0x4] sm:$0xf] }
 0x118   :  { %v10365_v14 = vld [vmem:[%s14983_s21 + $0x320] sm:$0xf]  ;;  %v13713_v15 = vld [vmem:[%s14983_s21 + $0x32c] sm:$0xf0]  ;;  %v10238_v20 = vor.u32 %v13681_v13, %v10237_v12  ;;  %1558 = vmatpush.bf16.msra.mxu0 %v9982_v16  ;;  %v13627_v12 = vld [vmem:[%s14983_s21 + $0x84] sm:$0xf] }
 0x119   :  { %v9965_v17 = vld [vmem:[%s14983_s21] sm:$0xf]  ;;  %v13613_v18 = vld [vmem:[%s14983_s21 + $0xc] sm:$0xf0]  ;;  %v10366_v24 = vor.u32 %v13713_v15, %v10365_v14  ;;  %1571 = vmatpush.bf16.msra.mxu1 %v10110_v19  ;;  %v10031_v13 = vld [vmem:[%s14983_s21 + $0x90] sm:$0xf0] }
 0x11a   :  { %v10093_v21 = vld [vmem:[%s14983_s21 + $0x100] sm:$0xf]  ;;  %v13645_v22 = vld [vmem:[%s14983_s21 + $0x10c] sm:$0xf0]  ;;  %v9966_v31 = vor.u32 %v13613_v18, %v9965_v17  ;;  %1584 = vmatpush.bf16.msra.mxu2 %v10238_v20  ;;  %v13659_v14 = vld [vmem:[%s14983_s21 + $0x184] sm:$0xf] }
 0x11b   :  { %v10221_v23 = vld [vmem:[%s14983_s21 + $0x200] sm:$0xf]  ;;  %v13677_v25 = vld [vmem:[%s14983_s21 + $0x20c] sm:$0xf0]  ;;  %v10094_v35 = vor.u32 %v13645_v22, %v10093_v21  ;;  %1597 = vmatpush.bf16.msra.mxu3 %v10366_v24  ;;  %v10159_v15 = vld [vmem:[%s14983_s21 + $0x190] sm:$0xf0]  ;;  %v10034_v21 = vor.u32 %v13627_v12, %v10031_v13 }
 0x11c   :  { %v10589_v26 = vld [vmem:[%s14983_s21 + $0x4e0] sm:$0xf]  ;;  %v13769_v27 = vld [vmem:[%s14983_s21 + $0x4ec] sm:$0xf0]  ;;  %v10222_v36 = vor.u32 %v13677_v25, %v10221_v23  ;;  %1559 = vmatpush.bf16.msra.mxu0 %v9966_v31  ;;  %v10162_v25 = vor.u32 %v13659_v14, %v10159_v15  ;;  %v13735_v5 = vld [vmem:[%s14983_s21 + $0x3e4] sm:$0xf] }
 0x11d   :  { %v10717_v28 = vld [vmem:[%s14983_s21 + $0x5e0] sm:$0xf]  ;;  %v13801_v29 = vld [vmem:[%s14983_s21 + $0x5ec] sm:$0xf0]  ;;  %v10590_v39 = vor.u32 %v13769_v27, %v10589_v26  ;;  %1572 = vmatpush.bf16.msra.mxu1 %v10094_v35  ;;  %v13623_v26 = vld [vmem:[%s14983_s21 + $0x64] sm:$0xf] }
 0x11e   :  { %v10349_v33 = vld [vmem:[%s14983_s21 + $0x300] sm:$0xf]  ;;  %v13709_v34 = vld [vmem:[%s14983_s21 + $0x30c] sm:$0xf0]  ;;  %v10718_v40 = vor.u32 %v13801_v29, %v10717_v28  ;;  %1585 = vmatpush.bf16.msra.mxu2 %v10222_v36  ;;  %v10015_v27 = vld [vmem:[%s14983_s21 + $0x70] sm:$0xf0] }
 0x11f   :  { %v10573_v41 = vld [vmem:[%s14983_s21 + $0x4c0] sm:$0xf]  ;;  %v10350_v43 = vor.u32 %v13709_v34, %v10349_v33  ;;  %v13765_v44 = vld [vmem:[%s14983_s21 + $0x4cc] sm:$0xf0]  ;;  %v375_v28 = vld [vmem:[%s18144_s25 + $0x18] sm:$0xff]  ;;  %v10018_v35 = vor.u32 %v13623_v26, %v10015_v27  ;;  %s18347_s6 = sld [smem:[#allocation49_spill]] }
 0x120   :  { %v10701_v45 = vld [vmem:[%s14983_s21 + $0x5c0] sm:$0xf]  ;;  %v13797_v46 = vld [vmem:[%s14983_s21 + $0x5cc] sm:$0xf0]  ;;  %1604 = vmatpush.bf16.msrb.mxu0 %v10590_v39  ;;  %v10574_v52 = vor.u32 %v13765_v44, %v10573_v41  ;;  %1573 = vmatmul.bf16.vlgmr.msra.gmra.mxu1 %v15363_v10  ;;  %v13655_v29 = vld [vmem:[%s14983_s21 + $0x164] sm:$0xf]  ;;  %v15384_v31 = vpack.c.bf16 %v375_v28, %v375_v28 }
 0x121   :  { %1617 = vmatpush.bf16.msrb.mxu1 %v10718_v40  ;;  %v10702_v53 = vor.u32 %v13797_v46, %v10701_v45  ;;  %v10557_v54 = vld [vmem:[%s14983_s21 + $0x4a0] sm:$0xf]  ;;  %1598 = vmatpush.bf16.msra.mxu3 %v10350_v43  ;;  %v13761_v56 = vld [vmem:[%s14983_s21 + $0x4ac] sm:$0xf0]  ;;  %v10146_v39 = vor.u32 %v13655_v29, %v10143_v30  ;;  %v13619_v40 = vld [vmem:[%s14983_s21 + $0x44] sm:$0xf] }
 0x122   :  { %1630 = vmatpush.bf16.msrb.mxu2 %v10082_v42  ;;  %v10685_v57 = vld [vmem:[%s14983_s21 + $0x5a0] sm:$0xf]  ;;  %v13793_v58 = vld [vmem:[%s14983_s21 + $0x5ac] sm:$0xf0]  ;;  %v10558_v1 = vor.u32 %v13761_v56, %v10557_v54  ;;  %v9999_v41 = vld [vmem:[%s14983_s21 + $0x50] sm:$0xf0] }
 0x123   :  { %v372_v0 = vld [vmem:[%s18144_s25] sm:$0xff]  ;;  %v10686_v2 = vor.u32 %v13793_v58, %v10685_v57  ;;  %v13757_v7 = vld [vmem:[%s14983_s21 + $0x48c] sm:$0xf0]  ;;  %v10127_v43 = vld [vmem:[%s14983_s21 + $0x150] sm:$0xf0]  ;;  %s18349_s15 = sld [smem:[#allocation45_spill]] }
 0x124   :  { %1605 = vmatpush.bf16.msrb.mxu0 %v10574_v52  ;;  %v10541_v3 = vld [vmem:[%s14983_s21 + $0x480] sm:$0xf]  ;;  %v15357_v4 = vpack.c.bf16 %v372_v0, %v372_v0  ;;  %v13789_v9 = vld [vmem:[%s14983_s21 + $0x58c] sm:$0xf0]  ;;  %1599 = vmatmul.bf16.vlgmr.msra.gmra.mxu3 %v15384_v31  ;;  %v13651_v42 = vld [vmem:[%s14983_s21 + $0x144] sm:$0xf] }
 0x125   :  { %1643 = vmatpush.bf16.msrb.mxu3 %v10210_v47  ;;  %1618 = vmatpush.bf16.msrb.mxu1 %v10702_v53  ;;  %v10669_v8 = vld [vmem:[%s14983_s21 + $0x580] sm:$0xf]  ;;  %v374_v16 = vld [vmem:[%s18144_s25 + $0x10] sm:$0xff]  ;;  %v10542_v17 = vor.u32 %v13757_v7, %v10541_v3  ;;  %v10002_v47 = vor.u32 %v13619_v40, %v9999_v41  ;;  %v10130_v51 = vor.u32 %v13651_v42, %v10127_v43  ;;  %v13615_v52 = vld [vmem:[%s14983_s21 + $0x24] sm:$0xf]  ;;  %s18350_s24 = sld [smem:[#allocation46_spill]] }
 0x126   :  { %1631 = vmatpush.bf16.msrb.mxu2 %v10066_v55  ;;  %1560 = vmatmul.bf16.vlgmr.msra.gmra.mxu0 %v15357_v4  ;;  %v10670_v18 = vor.u32 %v13789_v9, %v10669_v8  ;;  %v10525_v19 = vld [vmem:[%s14983_s21 + $0x460] sm:$0xf]  ;;  %v15373_v20 = vpack.c.bf16 %v374_v16, %v374_v16  ;;  %v13753_v22 = vld [vmem:[%s14983_s21 + $0x46c] sm:$0xf0]  ;;  %v9983_v53 = vld [vmem:[%s14983_s21 + $0x30] sm:$0xf0] }
 0x127   :  { %v10653_v23 = vld [vmem:[%s14983_s21 + $0x560] sm:$0xf]  ;;  %v13785_v24 = vld [vmem:[%s14983_s21 + $0x56c] sm:$0xf0]  ;;  %v10526_v32 = vor.u32 %v13753_v22, %v10525_v19  ;;  %v13647_v54 = vld [vmem:[%s14983_s21 + $0x124] sm:$0xf]  ;;  %v9986_v61 = vor.u32 %v13615_v52, %v9983_v53 }
 0x128   :  { %1606 = vmatpush.bf16.msrb.mxu0 %v10558_v1  ;;  %1586 = vmatmul.bf16.vlgmr.msra.gmra.mxu2 %v15373_v20  ;;  %v10654_v33 = vor.u32 %v13785_v24, %v10653_v23  ;;  %v10509_v34 = vld [vmem:[%s14983_s21 + $0x440] sm:$0xf]  ;;  %v13749_v36 = vld [vmem:[%s14983_s21 + $0x44c] sm:$0xf0]  ;;  %v10111_v55 = vld [vmem:[%s14983_s21 + $0x130] sm:$0xf0] }
 0x129   :  { %1644 = vmatpush.bf16.msrb.mxu3 %v10194_v59  ;;  %1619 = vmatpush.bf16.msrb.mxu1 %v10686_v2  ;;  %v10637_v37 = vld [vmem:[%s14983_s21 + $0x540] sm:$0xf]  ;;  %v13781_v38 = vld [vmem:[%s14983_s21 + $0x54c] sm:$0xf0]  ;;  %v10510_v44 = vor.u32 %v13749_v36, %v10509_v34  ;;  %v9967_v0 = vld [vmem:[%s14983_s21 + $0x10] sm:$0xf0]  ;;  %v10114_v1 = vor.u32 %v13647_v54, %v10111_v55 }
 0x12a   :  { %1632 = vmatpush.bf16.msrb.mxu2 %v10050_v6  ;;  %v10638_v45 = vor.u32 %v13781_v38, %v10637_v37  ;;  %v10493_v46 = vld [vmem:[%s14983_s21 + $0x420] sm:$0xf]  ;;  %v13745_v48 = vld [vmem:[%s14983_s21 + $0x42c] sm:$0xf0]  ;;  %v13703_v2 = vld [vmem:[%s14983_s21 + $0x2e4] sm:$0xf]  ;;  %v9970_v15 = vor.u32 %v13611_v63, %v9967_v0 }
 0x12b   :  { %v10621_v49 = vld [vmem:[%s14983_s21 + $0x520] sm:$0xf]  ;;  %v13777_v50 = vld [vmem:[%s14983_s21 + $0x52c] sm:$0xf0]  ;;  %v10494_v56 = vor.u32 %v13745_v48, %v10493_v46  ;;  %v10335_v3 = vld [vmem:[%s14983_s21 + $0x2f0] sm:$0xf0] }
 0x12c   :  { %1607 = vmatpush.bf16.msrb.mxu0 %v10542_v17  ;;  %v10622_v57 = vor.u32 %v13777_v50, %v10621_v49  ;;  %v10477_v58 = vld [vmem:[%s14983_s21 + $0x400] sm:$0xf]  ;;  %v13741_v59 = vld [vmem:[%s14983_s21 + $0x40c] sm:$0xf0]  ;;  %v10463_v6 = vld [vmem:[%s14983_s21 + $0x3f0] sm:$0xf0]  ;;  %v10338_v16 = vor.u32 %v13703_v2, %v10335_v3 }
 0x12d   :  { %1645 = vmatpush.bf16.msrb.mxu3 %v10178_v11  ;;  %1620 = vmatpush.bf16.msrb.mxu1 %v10670_v18  ;;  %v10605_v60 = vld [vmem:[%s14983_s21 + $0x500] sm:$0xf]  ;;  %v13773_v62 = vld [vmem:[%s14983_s21 + $0x50c] sm:$0xf0]  ;;  %v13767_v7 = vld [vmem:[%s14983_s21 + $0x4e4] sm:$0xf]  ;;  %v10478_v9 = vor.u32 %v13741_v59, %v10477_v58 }
 0x12e   :  { %1633 = vmatpush.bf16.msrb.mxu2 %v10034_v21  ;;  %v10591_v8 = vld [vmem:[%s14983_s21 + $0x4f0] sm:$0xf0]  ;;  %v10606_v11 = vor.u32 %v13773_v62, %v10605_v60  ;;  %v13643_v12 = vld [vmem:[%s14983_s21 + $0x104] sm:$0xf]  ;;  %v377_v19 = vld [vmem:[%s18144_s25 + $0x28] sm:$0xff]  ;;  %v10466_v21 = vor.u32 %v13735_v5, %v10463_v6  ;;  %s18351_s26 = sld [smem:[#allocation48_spill]] }
 0x12f   :  { %v10095_v13 = vld [vmem:[%s14983_s21 + $0x110] sm:$0xf0]  ;;  %v376_v14 = vld [vmem:[%s18144_s25 + $0x20] sm:$0xff]  ;;  %v10594_v22 = vor.u32 %v13767_v7, %v10591_v8  ;;  %s18353_s2 = sld [smem:[#allocation51_spill]] }
 0x130   :  { %1608 = vmatpush.bf16.msrb.mxu0 %v10526_v32  ;;  %v13799_v17 = vld [vmem:[%s14983_s21 + $0x5e4] sm:$0xf]  ;;  %v10719_v18 = vld [vmem:[%s14983_s21 + $0x5f0] sm:$0xf0]  ;;  %v10098_v26 = vor.u32 %v13643_v12, %v10095_v13  ;;  %v15427_v30 = vpack.c.bf16 %v376_v14, %v376_v14 }
 0x131   :  { %1646 = vmatpush.bf16.msrb.mxu3 %v10162_v25  ;;  %1621 = vmatpush.bf16.msrb.mxu1 %v10654_v33  ;;  %v13699_v23 = vld [vmem:[%s14983_s21 + $0x2c4] sm:$0xf]  ;;  %v10319_v24 = vld [vmem:[%s14983_s21 + $0x2d0] sm:$0xf0]  ;;  %v10722_v32 = vor.u32 %v13799_v17, %v10719_v18  ;;  %v15429_v33 = vpack.c.bf16 %v377_v19, %v377_v19 }
 0x132   :  { %1634 = vmatpush.bf16.msrb.mxu2 %v10018_v35  ;;  %v13731_v25 = vld [vmem:[%s14983_s21 + $0x3c4] sm:$0xf]  ;;  %v10447_v27 = vld [vmem:[%s14983_s21 + $0x3d0] sm:$0xf0]  ;;  %v10322_v34 = vor.u32 %v13699_v23, %v10319_v24 }
 0x133   :  { %v13763_v28 = vld [vmem:[%s14983_s21 + $0x4c4] sm:$0xf]  ;;  %v10575_v29 = vld [vmem:[%s14983_s21 + $0x4d0] sm:$0xf0]  ;;  %v10450_v37 = vor.u32 %v13731_v25, %v10447_v27 }
 0x134   :  { %1609 = vmatpush.bf16.msrb.mxu0 %v10510_v44  ;;  %v13795_v35 = vld [vmem:[%s14983_s21 + $0x5c4] sm:$0xf]  ;;  %v10703_v36 = vld [vmem:[%s14983_s21 + $0x5d0] sm:$0xf0]  ;;  %v10578_v38 = vor.u32 %v13763_v28, %v10575_v29 }
 0x135   :  { %1647 = vmatpush.bf16.msrb.mxu3 %v10146_v39  ;;  %1622 = vmatpush.bf16.msrb.mxu1 %v10638_v45  ;;  %v13695_v39 = vld [vmem:[%s14983_s21 + $0x2a4] sm:$0xf]  ;;  %v10303_v40 = vld [vmem:[%s14983_s21 + $0x2b0] sm:$0xf0]  ;;  %v10706_v45 = vor.u32 %v13795_v35, %v10703_v36 }
 0x136   :  { %1635 = vmatpush.bf16.msrb.mxu2 %v10002_v47  ;;  %v13727_v41 = vld [vmem:[%s14983_s21 + $0x3a4] sm:$0xf]  ;;  %v10431_v42 = vld [vmem:[%s14983_s21 + $0x3b0] sm:$0xf0]  ;;  %v10306_v46 = vor.u32 %v13695_v39, %v10303_v40 }
 0x137   :  { %v13759_v43 = vld [vmem:[%s14983_s21 + $0x4a4] sm:$0xf]  ;;  %v10559_v44 = vld [vmem:[%s14983_s21 + $0x4b0] sm:$0xf0]  ;;  %v10434_v49 = vor.u32 %v13727_v41, %v10431_v42 }
 0x138   :  { %1610 = vmatpush.bf16.msrb.mxu0 %v10494_v56  ;;  %v13791_v47 = vld [vmem:[%s14983_s21 + $0x5a4] sm:$0xf]  ;;  %v10687_v48 = vld [vmem:[%s14983_s21 + $0x5b0] sm:$0xf0]  ;;  %v10562_v50 = vor.u32 %v13759_v43, %v10559_v44 }
 0x139   :  { %1648 = vmatpush.bf16.msrb.mxu3 %v10130_v51  ;;  %1623 = vmatpush.bf16.msrb.mxu1 %v10622_v57  ;;  %v13691_v51 = vld [vmem:[%s14983_s21 + $0x284] sm:$0xf]  ;;  %v10287_v52 = vld [vmem:[%s14983_s21 + $0x290] sm:$0xf0]  ;;  %v10690_v57 = vor.u32 %v13791_v47, %v10687_v48  ;;  %v10085_v47 = vld [vmem:[%s14983_s21 + $0xe8] sm:$0xf] }
 0x13a   :  { %1636 = vmatpush.bf16.msrb.mxu2 %v9986_v61  ;;  %v13723_v53 = vld [vmem:[%s14983_s21 + $0x384] sm:$0xf]  ;;  %v10415_v54 = vld [vmem:[%s14983_s21 + $0x390] sm:$0xf0]  ;;  %v10290_v58 = vor.u32 %v13691_v51, %v10287_v52  ;;  %v13642_v48 = vld [vmem:[%s14983_s21 + $0xf4] sm:$0xf0] }
 0x13b   :  { %v13755_v55 = vld [vmem:[%s14983_s21 + $0x484] sm:$0xf]  ;;  %v10543_v56 = vld [vmem:[%s14983_s21 + $0x490] sm:$0xf0]  ;;  %v10418_v61 = vor.u32 %v13723_v53, %v10415_v54  ;;  %v10341_v51 = vld [vmem:[%s14983_s21 + $0x2e8] sm:$0xf] }
 0x13c   :  { %1611 = vmatpush.bf16.msrb.mxu0 %v10478_v9  ;;  %v13787_v59 = vld [vmem:[%s14983_s21 + $0x584] sm:$0xf]  ;;  %v10671_v60 = vld [vmem:[%s14983_s21 + $0x590] sm:$0xf0]  ;;  %v10546_v62 = vor.u32 %v13755_v55, %v10543_v56  ;;  %v13706_v54 = vld [vmem:[%s14983_s21 + $0x2f4] sm:$0xf0] }
 0x13d   :  { %1649 = vmatpush.bf16.msrb.mxu3 %v10114_v1  ;;  %1624 = vmatpush.bf16.msrb.mxu1 %v10606_v11  ;;  %v13687_v63 = vld [vmem:[%s14983_s21 + $0x264] sm:$0xf]  ;;  %v10271_v0 = vld [vmem:[%s14983_s21 + $0x270] sm:$0xf0]  ;;  %v10674_v6 = vor.u32 %v13787_v59, %v10671_v60  ;;  %v10469_v59 = vld [vmem:[%s14983_s21 + $0x3e8] sm:$0xf] }
 0x13e   :  { %1637 = vmatpush.bf16.msrb.mxu2 %v9970_v15  ;;  %v13719_v1 = vld [vmem:[%s14983_s21 + $0x364] sm:$0xf]  ;;  %v10399_v2 = vld [vmem:[%s14983_s21 + $0x370] sm:$0xf0]  ;;  %v10274_v7 = vor.u32 %v13687_v63, %v10271_v0  ;;  %v13738_v60 = vld [vmem:[%s14983_s21 + $0x3f4] sm:$0xf0]  ;;  %v10342_v63 = vor.u32 %v13706_v54, %v10341_v51 }
 0x13f   :  { %1612 = vmatmul.bf16.vlgmr.msrb.gmra.mxu0 %v15427_v30  ;;  %v13751_v3 = vld [vmem:[%s14983_s21 + $0x464] sm:$0xf]  ;;  %v10527_v5 = vld [vmem:[%s14983_s21 + $0x470] sm:$0xf0]  ;;  %v10402_v11 = vor.u32 %v13719_v1, %v10399_v2  ;;  %v10069_v1 = vld [vmem:[%s14983_s21 + $0xc8] sm:$0xf] }
 0x140   :  { %1656 = vmatpush.bf16.msra.mxu0 %v10338_v16  ;;  %1625 = vmatmul.bf16.vlgmr.msrb.gmra.mxu1 %v15429_v33  ;;  %v13783_v8 = vld [vmem:[%s14983_s21 + $0x564] sm:$0xf]  ;;  %v10655_v9 = vld [vmem:[%s14983_s21 + $0x570] sm:$0xf0]  ;;  %v10530_v12 = vor.u32 %v13751_v3, %v10527_v5  ;;  %v13638_v2 = vld [vmem:[%s14983_s21 + $0xd4] sm:$0xf0]  ;;  %v10470_v5 = vor.u32 %v13738_v60, %v10469_v59 }
 0x141   :  { %1669 = vmatpush.bf16.msra.mxu1 %v10466_v21  ;;  %1650 = vmatpush.bf16.msrb.mxu3 %v10098_v26  ;;  %v13683_v13 = vld [vmem:[%s14983_s21 + $0x244] sm:$0xf]  ;;  %v10255_v14 = vld [vmem:[%s14983_s21 + $0x250] sm:$0xf0]  ;;  %v10658_v19 = vor.u32 %v13783_v8, %v10655_v9  ;;  %v10197_v3 = vld [vmem:[%s14983_s21 + $0x1c8] sm:$0xf] }
 0x142   :  { %1682 = vmatpush.bf16.msra.mxu2 %v10594_v22  ;;  %v13715_v15 = vld [vmem:[%s14983_s21 + $0x344] sm:$0xf]  ;;  %v10383_v16 = vld [vmem:[%s14983_s21 + $0x350] sm:$0xf0]  ;;  %v10258_v21 = vor.u32 %v13683_v13, %v10255_v14  ;;  %v13702_v8 = vld [vmem:[%s14983_s21 + $0x2d4] sm:$0xf0] }
 0x143   :  { %1638 = vmatmul.bf16.vlgmr.msrb.gmra.mxu2 %v15357_v4  ;;  %v13747_v17 = vld [vmem:[%s14983_s21 + $0x444] sm:$0xf]  ;;  %v10511_v18 = vld [vmem:[%s14983_s21 + $0x450] sm:$0xf0]  ;;  %v10386_v25 = vor.u32 %v13715_v15, %v10383_v16  ;;  %v10453_v9 = vld [vmem:[%s14983_s21 + $0x3c8] sm:$0xf] }
 0x144   :  { %1657 = vmatpush.bf16.msra.mxu0 %v10322_v34  ;;  %1651 = vmatmul.bf16.vlgmr.msrb.gmra.mxu3 %v15363_v10  ;;  %v13779_v22 = vld [vmem:[%s14983_s21 + $0x544] sm:$0xf]  ;;  %v10639_v23 = vld [vmem:[%s14983_s21 + $0x550] sm:$0xf0]  ;;  %v10514_v26 = vor.u32 %v13747_v17, %v10511_v18  ;;  %v10053_v15 = vld [vmem:[%s14983_s21 + $0xa8] sm:$0xf] }
 0x145   :  { %1695 = vmatpush.bf16.msra.mxu3 %v10722_v32  ;;  %1670 = vmatpush.bf16.msra.mxu1 %v10450_v37  ;;  %v13679_v24 = vld [vmem:[%s14983_s21 + $0x224] sm:$0xf]  ;;  %v10239_v27 = vld [vmem:[%s14983_s21 + $0x230] sm:$0xf0]  ;;  %v10642_v36 = vor.u32 %v13779_v22, %v10639_v23  ;;  %v13634_v16 = vld [vmem:[%s14983_s21 + $0xb4] sm:$0xf0] }
 0x146   :  { %1683 = vmatpush.bf16.msra.mxu2 %v10578_v38  ;;  %v13711_v28 = vld [vmem:[%s14983_s21 + $0x324] sm:$0xf]  ;;  %v10367_v29 = vld [vmem:[%s14983_s21 + $0x330] sm:$0xf0]  ;;  %v10242_v40 = vor.u32 %v13679_v24, %v10239_v27  ;;  %v10181_v17 = vld [vmem:[%s14983_s21 + $0x1a8] sm:$0xf] }
 0x147   :  { %v13743_v32 = vld [vmem:[%s14983_s21 + $0x424] sm:$0xf]  ;;  %v10495_v34 = vld [vmem:[%s14983_s21 + $0x430] sm:$0xf0]  ;;  %v10370_v44 = vor.u32 %v13711_v28, %v10367_v29  ;;  %v13698_v22 = vld [vmem:[%s14983_s21 + $0x2b4] sm:$0xf0] }
 0x148   :  { %1658 = vmatpush.bf16.msra.mxu0 %v10306_v46  ;;  %v13775_v35 = vld [vmem:[%s14983_s21 + $0x524] sm:$0xf]  ;;  %v10623_v37 = vld [vmem:[%s14983_s21 + $0x530] sm:$0xf0]  ;;  %v10437_v23 = vld [vmem:[%s14983_s21 + $0x3a8] sm:$0xf] }
 0x149   :  { %1696 = vmatpush.bf16.msra.mxu3 %v10706_v45  ;;  %1671 = vmatpush.bf16.msra.mxu1 %v10434_v49  ;;  %v13675_v38 = vld [vmem:[%s14983_s21 + $0x204] sm:$0xf]  ;;  %v10223_v39 = vld [vmem:[%s14983_s21 + $0x210] sm:$0xf0]  ;;  %v10498_v45 = vor.u32 %v13743_v32, %v10495_v34  ;;  %v10213_v49 = vld [vmem:[%s14983_s21 + $0x1e8] sm:$0xf]  ;;  %v10626_v52 = vor.u32 %v13775_v35, %v10623_v37 }
 0x14a   :  { %1684 = vmatpush.bf16.msra.mxu2 %v10562_v50  ;;  %v13707_v41 = vld [vmem:[%s14983_s21 + $0x304] sm:$0xf]  ;;  %v10351_v42 = vld [vmem:[%s14983_s21 + $0x310] sm:$0xf0]  ;;  %v13674_v50 = vld [vmem:[%s14983_s21 + $0x1f4] sm:$0xf0]  ;;  %v10226_v53 = vor.u32 %v13675_v38, %v10223_v39 }
 0x14b   :  { %v13739_v43 = vld [vmem:[%s14983_s21 + $0x404] sm:$0xf]  ;;  %v10479_v46 = vld [vmem:[%s14983_s21 + $0x410] sm:$0xf0]  ;;  %v13730_v24 = vld [vmem:[%s14983_s21 + $0x3b4] sm:$0xf0] }
 0x14c   :  { %1659 = vmatpush.bf16.msra.mxu0 %v10290_v58  ;;  %v13771_v55 = vld [vmem:[%s14983_s21 + $0x504] sm:$0xf]  ;;  %v10607_v56 = vld [vmem:[%s14983_s21 + $0x510] sm:$0xf0]  ;;  %v10482_v58 = vor.u32 %v13739_v43, %v10479_v46  ;;  %v10037_v28 = vld [vmem:[%s14983_s21 + $0x88] sm:$0xf]  ;;  %v10438_v34 = vor.u32 %v13730_v24, %v10437_v23 }
 0x14d   :  { %1697 = vmatpush.bf16.msra.mxu3 %v10690_v57  ;;  %1672 = vmatpush.bf16.msra.mxu1 %v10418_v61  ;;  %v10354_v57 = vor.u32 %v13707_v41, %v10351_v42  ;;  %v10086_v61 = vor.u32 %v13642_v48, %v10085_v47  ;;  %v10610_v0 = vor.u32 %v13771_v55, %v10607_v56  ;;  %v13630_v29 = vld [vmem:[%s14983_s21 + $0x94] sm:$0xf0]  ;;  %v10165_v32 = vld [vmem:[%s14983_s21 + $0x188] sm:$0xf] }
 0x14e   :  { %1685 = vmatpush.bf16.msra.mxu2 %v10546_v62  ;;  %v10214_v62 = vor.u32 %v13674_v50, %v10213_v49  ;;  %v13662_v35 = vld [vmem:[%s14983_s21 + $0x194] sm:$0xf0]  ;;  %v10421_v38 = vld [vmem:[%s14983_s21 + $0x388] sm:$0xf] }
 0x14f   :  { %v13694_v37 = vld [vmem:[%s14983_s21 + $0x294] sm:$0xf0]  ;;  %v10166_v41 = vor.u32 %v13662_v35, %v10165_v32  ;;  %v10021_v43 = vld [vmem:[%s14983_s21 + $0x68] sm:$0xf] }
 0x150   :  { %1660 = vmatpush.bf16.msra.mxu0 %v10274_v7  ;;  %v10325_v7 = vld [vmem:[%s14983_s21 + $0x2c8] sm:$0xf]  ;;  %v13726_v39 = vld [vmem:[%s14983_s21 + $0x394] sm:$0xf0] }
 0x151   :  { %1698 = vmatpush.bf16.msra.mxu3 %v10674_v6  ;;  %1673 = vmatpush.bf16.msra.mxu1 %v10402_v11  ;;  %v13670_v6 = vld [vmem:[%s14983_s21 + $0x1d4] sm:$0xf0]  ;;  %v10326_v14 = vor.u32 %v13702_v8, %v10325_v7  ;;  %v10422_v46 = vor.u32 %v13726_v39, %v10421_v38  ;;  %v10277_v48 = vld [vmem:[%s14983_s21 + $0x268] sm:$0xf]  ;;  %v13672_v39 = vld [vmem:[%s14983_s21 + $0x1ec] sm:$0xf] }
 0x152   :  { %1686 = vmatpush.bf16.msra.mxu2 %v10530_v12  ;;  %v13734_v11 = vld [vmem:[%s14983_s21 + $0x3d4] sm:$0xf0]  ;;  %v10070_v12 = vor.u32 %v13638_v2, %v10069_v1  ;;  %v10198_v13 = vor.u32 %v13670_v6, %v10197_v3  ;;  %v10405_v50 = vld [vmem:[%s14983_s21 + $0x368] sm:$0xf] }
 0x153   :  { %v10454_v18 = vor.u32 %v13734_v11, %v10453_v9  ;;  %v13658_v47 = vld [vmem:[%s14983_s21 + $0x174] sm:$0xf0]  ;;  %v10005_v55 = vld [vmem:[%s14983_s21 + $0x48] sm:$0xf] }
 0x154   :  { %1661 = vmatpush.bf16.msra.mxu0 %v10258_v21  ;;  %v10309_v21 = vld [vmem:[%s14983_s21 + $0x2a8] sm:$0xf]  ;;  %v13690_v49 = vld [vmem:[%s14983_s21 + $0x274] sm:$0xf0] }
 0x155   :  { %1699 = vmatpush.bf16.msra.mxu3 %v10658_v19  ;;  %1674 = vmatpush.bf16.msra.mxu1 %v10386_v25  ;;  %v13666_v19 = vld [vmem:[%s14983_s21 + $0x1b4] sm:$0xf0]  ;;  %v10054_v25 = vor.u32 %v13634_v16, %v10053_v15  ;;  %v10310_v27 = vor.u32 %v13698_v22, %v10309_v21  ;;  %v10278_v54 = vor.u32 %v13690_v49, %v10277_v48  ;;  %v10261_v60 = vld [vmem:[%s14983_s21 + $0x248] sm:$0xf] }
 0x156   :  { %1687 = vmatpush.bf16.msra.mxu2 %v10514_v26  ;;  %v10182_v26 = vor.u32 %v13666_v19, %v10181_v17  ;;  %v13722_v51 = vld [vmem:[%s14983_s21 + $0x374] sm:$0xf0]  ;;  %v9989_v3 = vld [vmem:[%s14983_s21 + $0x28] sm:$0xf] }
 0x157   :  { %v13622_v56 = vld [vmem:[%s14983_s21 + $0x54] sm:$0xf0]  ;;  %v10117_v6 = vld [vmem:[%s14983_s21 + $0x128] sm:$0xf] }
 0x158   :  { %1662 = vmatpush.bf16.msra.mxu0 %v10242_v40  ;;  %v10038_v40 = vor.u32 %v13630_v29, %v10037_v28  ;;  %v13654_v59 = vld [vmem:[%s14983_s21 + $0x154] sm:$0xf0]  ;;  %v10245_v9 = vld [vmem:[%s14983_s21 + $0x228] sm:$0xf]  ;;  %v13640_v29 = vld [vmem:[%s14983_s21 + $0xec] sm:$0xf] }
 0x159   :  { %1700 = vmatpush.bf16.msra.mxu3 %v10642_v36  ;;  %1675 = vmatpush.bf16.msra.mxu1 %v10370_v44  ;;  %v10293_v36 = vld [vmem:[%s14983_s21 + $0x288] sm:$0xf]  ;;  %v13626_v44 = vld [vmem:[%s14983_s21 + $0x74] sm:$0xf0] }
 0x15a   :  { %1688 = vmatpush.bf16.msra.mxu2 %v10498_v45  ;;  %v10294_v42 = vor.u32 %v13694_v37, %v10293_v36  ;;  %v10149_v45 = vld [vmem:[%s14983_s21 + $0x168] sm:$0xf]  ;;  %v13650_v8 = vld [vmem:[%s14983_s21 + $0x134] sm:$0xf0] }
 0x15b   :  { %v13682_v11 = vld [vmem:[%s14983_s21 + $0x234] sm:$0xf0]  ;;  %v9973_v15 = vld [vmem:[%s14983_s21 + $0x8] sm:$0xf]  ;;  %v10118_v17 = vor.u32 %v13650_v8, %v10117_v6 }
 0x15c   :  { %1663 = vmatpush.bf16.msra.mxu0 %v10226_v53  ;;  %v10150_v53 = vor.u32 %v13658_v47, %v10149_v45  ;;  %v13614_v16 = vld [vmem:[%s14983_s21 + $0x14] sm:$0xf0]  ;;  %v10101_v19 = vld [vmem:[%s14983_s21 + $0x108] sm:$0xf] }
 0x15d   :  { %1701 = vmatpush.bf16.msra.mxu3 %v10626_v52  ;;  %1676 = vmatpush.bf16.msra.mxu1 %v10354_v57  ;;  %v10022_v52 = vor.u32 %v13626_v44, %v10021_v43  ;;  %v10133_v57 = vld [vmem:[%s14983_s21 + $0x148] sm:$0xf]  ;;  %v13646_v21 = vld [vmem:[%s14983_s21 + $0x114] sm:$0xf0]  ;;  %v9974_v32 = vor.u32 %v13614_v16, %v9973_v15  ;;  %v10167_v15 = vld [vmem:[%s14983_s21 + $0x198] sm:$0xf0] }
 0x15e   :  { %1689 = vmatpush.bf16.msra.mxu2 %v10482_v58  ;;  %v10406_v58 = vor.u32 %v13722_v51, %v10405_v50  ;;  %v10134_v1 = vor.u32 %v13654_v59, %v10133_v57  ;;  %v10229_v22 = vld [vmem:[%s14983_s21 + $0x208] sm:$0xf]  ;;  %v13678_v24 = vld [vmem:[%s14983_s21 + $0x214] sm:$0xf0]  ;;  %v10102_v37 = vor.u32 %v13646_v21, %v10101_v19  ;;  %v13636_v50 = vld [vmem:[%s14983_s21 + $0xcc] sm:$0xf] }
 0x15f   :  { %1664 = vmatmul.bf16.vlgmr.msra.gmra.mxu0 %v15373_v20  ;;  %v13802_v28 = vld [vmem:[%s14983_s21 + $0x5f4] sm:$0xf0]  ;;  %v10357_v35 = vld [vmem:[%s14983_s21 + $0x308] sm:$0xf]  ;;  %v10230_v38 = vor.u32 %v13678_v24, %v10229_v22  ;;  %v10071_v51 = vld [vmem:[%s14983_s21 + $0xd8] sm:$0xf0] }
 0x160   :  { %1708 = vmatpush.bf16.msrb.mxu0 %v10086_v61  ;;  %1677 = vmatmul.bf16.vlgmr.msra.gmra.mxu1 %v15384_v31  ;;  %v13686_v61 = vld [vmem:[%s14983_s21 + $0x254] sm:$0xf0]  ;;  %v10581_v43 = vld [vmem:[%s14983_s21 + $0x4c8] sm:$0xf]  ;;  %v10074_v57 = vor.u32 %v13636_v50, %v10071_v51 }
 0x161   :  { %1721 = vmatpush.bf16.msrb.mxu1 %v10214_v62  ;;  %1702 = vmatpush.bf16.msra.mxu3 %v10610_v0  ;;  %v10389_v62 = vld [vmem:[%s14983_s21 + $0x348] sm:$0xf]  ;;  %v10006_v0 = vor.u32 %v13622_v56, %v10005_v55  ;;  %v10262_v2 = vor.u32 %v13686_v61, %v10261_v60  ;;  %v13710_v36 = vld [vmem:[%s14983_s21 + $0x314] sm:$0xf0] }
 0x162   :  { %1734 = vmatpush.bf16.msrb.mxu2 %v10342_v63  ;;  %v13718_v63 = vld [vmem:[%s14983_s21 + $0x354] sm:$0xf0]  ;;  %v10358_v45 = vor.u32 %v13710_v36, %v10357_v35  ;;  %v10709_v47 = vld [vmem:[%s14983_s21 + $0x5c8] sm:$0xf] }
 0x163   :  { %1690 = vmatmul.bf16.vlgmr.msra.gmra.mxu2 %v15427_v30  ;;  %v10390_v7 = vor.u32 %v13718_v63, %v10389_v62  ;;  %v13798_v48 = vld [vmem:[%s14983_s21 + $0x5d4] sm:$0xf0]  ;;  %v10565_v56 = vld [vmem:[%s14983_s21 + $0x4a8] sm:$0xf]  ;;  %v13632_v62 = vld [vmem:[%s14983_s21 + $0xac] sm:$0xf] }
 0x164   :  { %1703 = vmatmul.bf16.vlgmr.msra.gmra.mxu3 %v15429_v33  ;;  %1709 = vmatpush.bf16.msrb.mxu0 %v10070_v12  ;;  %v10373_v12 = vld [vmem:[%s14983_s21 + $0x328] sm:$0xf]  ;;  %v10710_v55 = vor.u32 %v13798_v48, %v10709_v47  ;;  %v13794_v60 = vld [vmem:[%s14983_s21 + $0x5b4] sm:$0xf0]  ;;  %v10055_v63 = vld [vmem:[%s14983_s21 + $0xb8] sm:$0xf0] }
 0x165   :  { %1747 = vmatpush.bf16.msrb.mxu3 %v10470_v5  ;;  %1722 = vmatpush.bf16.msrb.mxu1 %v10198_v13  ;;  %v13618_v5 = vld [vmem:[%s14983_s21 + $0x34] sm:$0xf0]  ;;  %v10693_v59 = vld [vmem:[%s14983_s21 + $0x5a8] sm:$0xf]  ;;  %v10058_v6 = vor.u32 %v13632_v62, %v10055_v63  ;;  %v13612_v63 = vld [vmem:[%s14983_s21 + $0xc] sm:$0xf] }
 0x166   :  { %1735 = vmatpush.bf16.msrb.mxu2 %v10326_v14  ;;  %v13714_v13 = vld [vmem:[%s14983_s21 + $0x334] sm:$0xf0]  ;;  %v9990_v14 = vor.u32 %v13618_v5, %v9989_v3  ;;  %v10694_v3 = vor.u32 %v13794_v60, %v10693_v59  ;;  %v10549_v5 = vld [vmem:[%s14983_s21 + $0x488] sm:$0xf] }
 0x167   :  { %v10374_v23 = vor.u32 %v13714_v13, %v10373_v12  ;;  %v10677_v8 = vld [vmem:[%s14983_s21 + $0x588] sm:$0xf]  ;;  %v13628_v12 = vld [vmem:[%s14983_s21 + $0x8c] sm:$0xf]  ;;  %v10039_v13 = vld [vmem:[%s14983_s21 + $0x98] sm:$0xf0] }
 0x168   :  { %1710 = vmatpush.bf16.msrb.mxu0 %v10054_v25  ;;  %v10597_v25 = vld [vmem:[%s14983_s21 + $0x4e8] sm:$0xf]  ;;  %v10042_v19 = vor.u32 %v13628_v12, %v10039_v13  ;;  %v13754_v21 = vld [vmem:[%s14983_s21 + $0x474] sm:$0xf0]  ;;  %v13644_v12 = vld [vmem:[%s14983_s21 + $0x10c] sm:$0xf] }
 0x169   :  { %1748 = vmatpush.bf16.msrb.mxu3 %v10454_v18  ;;  %1723 = vmatpush.bf16.msrb.mxu1 %v10182_v26  ;;  %v10246_v18 = vor.u32 %v13682_v11, %v10245_v9  ;;  %v13770_v26 = vld [vmem:[%s14983_s21 + $0x4f4] sm:$0xf0]  ;;  %v10661_v22 = vld [vmem:[%s14983_s21 + $0x568] sm:$0xf]  ;;  %v10103_v13 = vld [vmem:[%s14983_s21 + $0x118] sm:$0xf0] }
 0x16a   :  { %1736 = vmatpush.bf16.msrb.mxu2 %v10310_v27  ;;  %v10725_v27 = vld [vmem:[%s14983_s21 + $0x5e8] sm:$0xf]  ;;  %v13790_v9 = vld [vmem:[%s14983_s21 + $0x594] sm:$0xf0] }
 0x16b   :  { %v13750_v36 = vld [vmem:[%s14983_s21 + $0x454] sm:$0xf0]  ;;  %v10613_v60 = vld [vmem:[%s14983_s21 + $0x508] sm:$0xf] }
 0x16c   :  { %1711 = vmatpush.bf16.msrb.mxu0 %v10038_v40  ;;  %v10215_v40 = vld [vmem:[%s14983_s21 + $0x1f8] sm:$0xf0]  ;;  %v13746_v48 = vld [vmem:[%s14983_s21 + $0x434] sm:$0xf0] }
 0x16d   :  { %1749 = vmatpush.bf16.msrb.mxu3 %v10438_v34  ;;  %1724 = vmatpush.bf16.msrb.mxu1 %v10166_v41  ;;  %v10087_v34 = vld [vmem:[%s14983_s21 + $0xf8] sm:$0xf0]  ;;  %v10598_v41 = vor.u32 %v13770_v26, %v10597_v25  ;;  %v10218_v49 = vor.u32 %v13672_v39, %v10215_v40  ;;  %v13624_v25 = vld [vmem:[%s14983_s21 + $0x6c] sm:$0xf]  ;;  %v13778_v50 = vld [vmem:[%s14983_s21 + $0x534] sm:$0xf0] }
 0x16e   :  { %1737 = vmatpush.bf16.msrb.mxu2 %v10294_v42  ;;  %v10726_v42 = vor.u32 %v13802_v28, %v10725_v27  ;;  %v10090_v44 = vor.u32 %v13640_v29, %v10087_v34  ;;  %v10023_v26 = vld [vmem:[%s14983_s21 + $0x78] sm:$0xf0]  ;;  %v13656_v27 = vld [vmem:[%s14983_s21 + $0x16c] sm:$0xf]  ;;  %v10517_v34 = vld [vmem:[%s14983_s21 + $0x448] sm:$0xf] }
 0x16f   :  { %v10151_v28 = vld [vmem:[%s14983_s21 + $0x178] sm:$0xf0]  ;;  %v10026_v35 = vor.u32 %v13624_v25, %v10023_v26  ;;  %v13620_v40 = vld [vmem:[%s14983_s21 + $0x4c] sm:$0xf]  ;;  %v13742_v59 = vld [vmem:[%s14983_s21 + $0x414] sm:$0xf0] }
 0x170   :  { %1712 = vmatpush.bf16.msrb.mxu0 %v10022_v52  ;;  %v13668_v52 = vld [vmem:[%s14983_s21 + $0x1cc] sm:$0xf]  ;;  %v10154_v39 = vor.u32 %v13656_v27, %v10151_v28  ;;  %v13774_v62 = vld [vmem:[%s14983_s21 + $0x514] sm:$0xf0]  ;;  %v10455_v25 = vld [vmem:[%s14983_s21 + $0x3d8] sm:$0xf0] }
 0x171   :  { %1750 = vmatpush.bf16.msrb.mxu3 %v10422_v46  ;;  %1725 = vmatpush.bf16.msrb.mxu1 %v10150_v53  ;;  %v13766_v46 = vld [vmem:[%s14983_s21 + $0x4d4] sm:$0xf0]  ;;  %v10199_v53 = vld [vmem:[%s14983_s21 + $0x1d8] sm:$0xf0]  ;;  %v13764_v26 = vld [vmem:[%s14983_s21 + $0x4cc] sm:$0xf] }
 0x172   :  { %1738 = vmatpush.bf16.msrb.mxu2 %v10278_v54  ;;  %v10582_v54 = vor.u32 %v13766_v46, %v10581_v43  ;;  %v10202_v61 = vor.u32 %v13668_v52, %v10199_v53  ;;  %v10135_v43 = vld [vmem:[%s14983_s21 + $0x158] sm:$0xf0]  ;;  %v10501_v46 = vld [vmem:[%s14983_s21 + $0x428] sm:$0xf]  ;;  %v13616_v52 = vld [vmem:[%s14983_s21 + $0x2c] sm:$0xf] }
 0x173   :  { %v9991_v53 = vld [vmem:[%s14983_s21 + $0x38] sm:$0xf0] }
 0x174   :  { %1713 = vmatpush.bf16.msrb.mxu0 %v10006_v0  ;;  %v13664_v0 = vld [vmem:[%s14983_s21 + $0x1ac] sm:$0xf]  ;;  %v10583_v27 = vld [vmem:[%s14983_s21 + $0x4d8] sm:$0xf0] }
 0x175   :  { %1751 = vmatpush.bf16.msrb.mxu3 %v10406_v58  ;;  %1726 = vmatpush.bf16.msrb.mxu1 %v10134_v1  ;;  %v13762_v58 = vld [vmem:[%s14983_s21 + $0x4b4] sm:$0xf0]  ;;  %v10183_v1 = vld [vmem:[%s14983_s21 + $0x1b8] sm:$0xf0] }
 0x176   :  { %1739 = vmatpush.bf16.msrb.mxu2 %v10262_v2  ;;  %v10566_v2 = vor.u32 %v13762_v58, %v10565_v56  ;;  %v10186_v11 = vor.u32 %v13664_v0, %v10183_v1  ;;  %v10502_v56 = vor.u32 %v13746_v48, %v10501_v46  ;;  %v10485_v58 = vld [vmem:[%s14983_s21 + $0x408] sm:$0xf]  ;;  %v9975_v0 = vld [vmem:[%s14983_s21 + $0x18] sm:$0xf0] }
 0x177   :  { %v10695_v46 = vld [vmem:[%s14983_s21 + $0x5b8] sm:$0xf0] }
 0x178   :  { %1714 = vmatpush.bf16.msrb.mxu0 %v9990_v14  ;;  %v13660_v14 = vld [vmem:[%s14983_s21 + $0x18c] sm:$0xf] }
 0x179   :  { %1752 = vmatpush.bf16.msrb.mxu3 %v10390_v7  ;;  %1727 = vmatpush.bf16.msrb.mxu1 %v10118_v17  ;;  %v13758_v7 = vld [vmem:[%s14983_s21 + $0x494] sm:$0xf0]  ;;  %v10678_v17 = vor.u32 %v13790_v9, %v10677_v8  ;;  %v10170_v24 = vor.u32 %v13660_v14, %v10167_v15  ;;  %v10599_v8 = vld [vmem:[%s14983_s21 + $0x4f8] sm:$0xf0]  ;;  %v10486_v9 = vor.u32 %v13742_v59, %v10485_v58 }
 0x17a   :  { %1740 = vmatpush.bf16.msrb.mxu2 %v10246_v18  ;;  %v10550_v16 = vor.u32 %v13758_v7, %v10549_v5  ;;  %v10533_v18 = vld [vmem:[%s14983_s21 + $0x468] sm:$0xf]  ;;  %v13736_v5 = vld [vmem:[%s14983_s21 + $0x3ec] sm:$0xf]  ;;  %v9978_v14 = vor.u32 %v13612_v63, %v9975_v0  ;;  %v10679_v58 = vld [vmem:[%s14983_s21 + $0x598] sm:$0xf0] }
 0x17b   :  { %v10534_v29 = vor.u32 %v13754_v21, %v10533_v18  ;;  %v13768_v7 = vld [vmem:[%s14983_s21 + $0x4ec] sm:$0xf]  ;;  %v10407_v0 = vld [vmem:[%s14983_s21 + $0x378] sm:$0xf0] }
 0x17c   :  { %1715 = vmatpush.bf16.msrb.mxu0 %v9974_v32  ;;  %v13700_v21 = vld [vmem:[%s14983_s21 + $0x2cc] sm:$0xf] }
 0x17d   :  { %1753 = vmatpush.bf16.msrb.mxu3 %v10374_v23  ;;  %1728 = vmatpush.bf16.msrb.mxu1 %v10102_v37  ;;  %v13786_v23 = vld [vmem:[%s14983_s21 + $0x574] sm:$0xf0]  ;;  %v10645_v37 = vld [vmem:[%s14983_s21 + $0x548] sm:$0xf]  ;;  %v13720_v63 = vld [vmem:[%s14983_s21 + $0x36c] sm:$0xf] }
 0x17e   :  { %1741 = vmatpush.bf16.msrb.mxu2 %v10230_v38  ;;  %v10662_v32 = vor.u32 %v13786_v23, %v10661_v22  ;;  %v13782_v38 = vld [vmem:[%s14983_s21 + $0x554] sm:$0xf0]  ;;  %v10327_v22 = vld [vmem:[%s14983_s21 + $0x2d8] sm:$0xf0]  ;;  %v13732_v23 = vld [vmem:[%s14983_s21 + $0x3cc] sm:$0xf] }
 0x17f   :  { %1716 = vmatmul.bf16.vlgmr.msrb.gmra.mxu0 %v15357_v4 }
 0x180   :  { %1760 = vmatpush.bf16.msra.mxu0 %v10598_v41  ;;  %1729 = vmatmul.bf16.vlgmr.msrb.gmra.mxu1 %v15363_v10  ;;  %v10007_v41 = vld [vmem:[%s14983_s21 + $0x58] sm:$0xf0] }
 0x181   :  { %1773 = vmatpush.bf16.msra.mxu1 %v10726_v42  ;;  %1754 = vmatpush.bf16.msrb.mxu3 %v10358_v45  ;;  %v13652_v42 = vld [vmem:[%s14983_s21 + $0x14c] sm:$0xf]  ;;  %v10646_v45 = vor.u32 %v13782_v38, %v10645_v37  ;;  %v10010_v47 = vor.u32 %v13620_v40, %v10007_v41  ;;  %v10311_v38 = vld [vmem:[%s14983_s21 + $0x2b8] sm:$0xf0] }
 0x182   :  { %1786 = vmatpush.bf16.msra.mxu2 %v10090_v44  ;;  %v10518_v44 = vor.u32 %v13750_v36, %v10517_v34  ;;  %v10138_v51 = vor.u32 %v13652_v42, %v10135_v43  ;;  %v10711_v34 = vld [vmem:[%s14983_s21 + $0x5d8] sm:$0xf0]  ;;  %v10586_v36 = vor.u32 %v13764_v26, %v10583_v27  ;;  %v13696_v37 = vld [vmem:[%s14983_s21 + $0x2ac] sm:$0xf] }
 0x183   :  { %1742 = vmatmul.bf16.vlgmr.msrb.gmra.mxu2 %v15373_v20  ;;  %v10439_v40 = vld [vmem:[%s14983_s21 + $0x3b8] sm:$0xf0]  ;;  %v13760_v41 = vld [vmem:[%s14983_s21 + $0x4ac] sm:$0xf] }
 0x184   :  { %1761 = vmatpush.bf16.msra.mxu0 %v10582_v54  ;;  %1755 = vmatmul.bf16.vlgmr.msrb.gmra.mxu3 %v15384_v31  ;;  %v13648_v54 = vld [vmem:[%s14983_s21 + $0x12c] sm:$0xf]  ;;  %v10567_v42 = vld [vmem:[%s14983_s21 + $0x4b8] sm:$0xf0] }
 0x185   :  { %1799 = vmatpush.bf16.msra.mxu3 %v10218_v49  ;;  %1774 = vmatpush.bf16.msra.mxu1 %v10710_v55  ;;  %v10629_v49 = vld [vmem:[%s14983_s21 + $0x528] sm:$0xf]  ;;  %v10119_v55 = vld [vmem:[%s14983_s21 + $0x138] sm:$0xf0]  ;;  %v10570_v48 = vor.u32 %v13760_v41, %v10567_v42  ;;  %v13680_v26 = vld [vmem:[%s14983_s21 + $0x22c] sm:$0xf] }
 0x186   :  { %1787 = vmatpush.bf16.msra.mxu2 %v10074_v57  ;;  %v10630_v57 = vor.u32 %v13778_v50, %v10629_v49  ;;  %v10122_v1 = vor.u32 %v13648_v54, %v10119_v55  ;;  %v13692_v49 = vld [vmem:[%s14983_s21 + $0x28c] sm:$0xf]  ;;  %v10295_v50 = vld [vmem:[%s14983_s21 + $0x298] sm:$0xf0] }
 0x187   :  { %v10551_v54 = vld [vmem:[%s14983_s21 + $0x498] sm:$0xf0] }
 0x188   :  { %1762 = vmatpush.bf16.msra.mxu0 %v10566_v2  ;;  %v13704_v2 = vld [vmem:[%s14983_s21 + $0x2ec] sm:$0xf]  ;;  %v10247_v27 = vld [vmem:[%s14983_s21 + $0x238] sm:$0xf0] }
 0x189   :  { %1800 = vmatpush.bf16.msra.mxu3 %v10202_v61  ;;  %1775 = vmatpush.bf16.msra.mxu1 %v10694_v3  ;;  %v9994_v61 = vor.u32 %v13616_v52, %v9991_v53  ;;  %v10343_v3 = vld [vmem:[%s14983_s21 + $0x2f8] sm:$0xf0]  ;;  %v13756_v53 = vld [vmem:[%s14983_s21 + $0x48c] sm:$0xf] }
 0x18a   :  { %1788 = vmatpush.bf16.msra.mxu2 %v10058_v6  ;;  %v10471_v6 = vld [vmem:[%s14983_s21 + $0x3f8] sm:$0xf0]  ;;  %v10346_v15 = vor.u32 %v13704_v2, %v10343_v3 }
 0x18b   :  { %v10474_v18 = vor.u32 %v13736_v5, %v10471_v6  ;;  %v10423_v52 = vld [vmem:[%s14983_s21 + $0x398] sm:$0xf0]  ;;  %v13784_v6 = vld [vmem:[%s14983_s21 + $0x56c] sm:$0xf] }
 0x18c   :  { %1763 = vmatpush.bf16.msra.mxu0 %v10550_v16  ;;  %v13800_v16 = vld [vmem:[%s14983_s21 + $0x5ec] sm:$0xf]  ;;  %v10535_v2 = vld [vmem:[%s14983_s21 + $0x478] sm:$0xf0] }
 0x18d   :  { %1801 = vmatpush.bf16.msra.mxu3 %v10186_v11  ;;  %1776 = vmatpush.bf16.msra.mxu1 %v10678_v17  ;;  %v10614_v11 = vor.u32 %v13774_v62, %v10613_v60  ;;  %v10727_v17 = vld [vmem:[%s14983_s21 + $0x5f8] sm:$0xf0]  ;;  %v10554_v60 = vor.u32 %v13756_v53, %v10551_v54  ;;  %v13834_v53 = vld [vmem:[#allocation2 + $0xf4] sm:$0xf0] }
 0x18e   :  { %1789 = vmatpush.bf16.msra.mxu2 %v10042_v19  ;;  %v10602_v19 = vor.u32 %v13768_v7, %v10599_v8  ;;  %v10730_v28 = vor.u32 %v13800_v16, %v10727_v17  ;;  %v10279_v62 = vld [vmem:[%s14983_s21 + $0x278] sm:$0xf0]  ;;  %v10410_v8 = vor.u32 %v13720_v63, %v10407_v0  ;;  %v13748_v16 = vld [vmem:[%s14983_s21 + $0x44c] sm:$0xf] }
 0x18f   :  { %v10663_v7 = vld [vmem:[%s14983_s21 + $0x578] sm:$0xf0] }
 0x190   :  { %1764 = vmatpush.bf16.msra.mxu0 %v10534_v29  ;;  %v10330_v29 = vor.u32 %v13700_v21, %v10327_v22  ;;  %v10519_v17 = vld [vmem:[%s14983_s21 + $0x458] sm:$0xf0]  ;;  %v13780_v22 = vld [vmem:[%s14983_s21 + $0x54c] sm:$0xf] }
 0x191   :  { %1802 = vmatpush.bf16.msra.mxu3 %v10170_v24  ;;  %1777 = vmatpush.bf16.msra.mxu1 %v10662_v32  ;;  %v10106_v24 = vor.u32 %v13644_v12, %v10103_v13  ;;  %v13796_v32 = vld [vmem:[%s14983_s21 + $0x5cc] sm:$0xf]  ;;  %v10263_v12 = vld [vmem:[%s14983_s21 + $0x258] sm:$0xf0] }
 0x192   :  { %1790 = vmatpush.bf16.msra.mxu2 %v10026_v35  ;;  %v10458_v35 = vor.u32 %v13732_v23, %v10455_v25  ;;  %v10714_v43 = vor.u32 %v13796_v32, %v10711_v34  ;;  %v13716_v13 = vld [vmem:[%s14983_s21 + $0x34c] sm:$0xf]  ;;  %v10647_v23 = vld [vmem:[%s14983_s21 + $0x558] sm:$0xf0]  ;;  %v10522_v25 = vor.u32 %v13748_v16, %v10519_v17  ;;  %v13830_v16 = vld [vmem:[#allocation2 + $0xd4] sm:$0xf0] }
 0x193   :  { %v13744_v32 = vld [vmem:[%s14983_s21 + $0x42c] sm:$0xf]  ;;  %v10503_v34 = vld [vmem:[%s14983_s21 + $0x438] sm:$0xf0] }
 0x194   :  { %1765 = vmatpush.bf16.msra.mxu0 %v10518_v44  ;;  %v10314_v44 = vor.u32 %v13696_v37, %v10311_v38  ;;  %v13776_v37 = vld [vmem:[%s14983_s21 + $0x52c] sm:$0xf]  ;;  %v10631_v38 = vld [vmem:[%s14983_s21 + $0x538] sm:$0xf0]  ;;  %v10506_v41 = vor.u32 %v13744_v32, %v10503_v34  ;;  %v10757_v32 = vld [vmem:[#allocation2 + $0x30] sm:$0xf] }
 0x195   :  { %1803 = vmatpush.bf16.msra.mxu3 %v10154_v39  ;;  %1778 = vmatpush.bf16.msra.mxu1 %v10646_v45  ;;  %v13728_v39 = vld [vmem:[%s14983_s21 + $0x3ac] sm:$0xf]  ;;  %v10231_v42 = vld [vmem:[%s14983_s21 + $0x218] sm:$0xf0]  ;;  %v13810_v34 = vld [vmem:[#allocation2 + $0x34] sm:$0xf0] }
 0x196   :  { %1791 = vmatpush.bf16.msra.mxu2 %v10010_v47  ;;  %v13792_v45 = vld [vmem:[%s14983_s21 + $0x5ac] sm:$0xf]  ;;  %v10442_v47 = vor.u32 %v13728_v39, %v10439_v40 }
 0x197   :  { %v10698_v55 = vor.u32 %v13792_v45, %v10695_v46  ;;  %v13676_v39 = vld [vmem:[%s14983_s21 + $0x20c] sm:$0xf] }
 0x198   :  { %1766 = vmatpush.bf16.msra.mxu0 %v10502_v56  ;;  %v10298_v56 = vor.u32 %v13692_v49, %v10295_v50  ;;  %v13740_v46 = vld [vmem:[%s14983_s21 + $0x40c] sm:$0xf]  ;;  %v10634_v50 = vor.u32 %v13776_v37, %v10631_v38  ;;  %v13826_v37 = vld [vmem:[#allocation2 + $0xb4] sm:$0xf0]  ;;  %v10758_v38 = vor.u32 %v13810_v34, %v10757_v32 }
 0x199   :  { %1804 = vmatpush.bf16.msra.mxu3 %v10138_v51  ;;  %1779 = vmatpush.bf16.msra.mxu1 %v10630_v57  ;;  %v13724_v51 = vld [vmem:[%s14983_s21 + $0x38c] sm:$0xf] }
 0x19a   :  { %1792 = vmatpush.bf16.msra.mxu2 %v9994_v61  ;;  %v13788_v57 = vld [vmem:[%s14983_s21 + $0x58c] sm:$0xf]  ;;  %v10426_v59 = vor.u32 %v13724_v51, %v10423_v52  ;;  %v13818_v51 = vld [vmem:[#allocation2 + $0x74] sm:$0xf0]  ;;  %v10853_v52 = vld [vmem:[#allocation2 + $0xf0] sm:$0xf] }
 0x19b   :  { %v13688_v61 = vld [vmem:[%s14983_s21 + $0x26c] sm:$0xf]  ;;  %v10682_v3 = vor.u32 %v13788_v57, %v10679_v58  ;;  %v10615_v58 = vld [vmem:[%s14983_s21 + $0x518] sm:$0xf0] }
 0x19c   :  { %1767 = vmatpush.bf16.msra.mxu0 %v10486_v9  ;;  %v10282_v5 = vor.u32 %v13688_v61, %v10279_v62  ;;  %v13772_v57 = vld [vmem:[%s14983_s21 + $0x50c] sm:$0xf]  ;;  %v10854_v62 = vor.u32 %v13834_v53, %v10853_v52  ;;  %v13806_v52 = vld [vmem:[#allocation2 + $0x14] sm:$0xf0] }
 0x19d   :  { %1805 = vmatpush.bf16.msra.mxu3 %v10122_v1  ;;  %1780 = vmatpush.bf16.msra.mxu1 %v10614_v11  ;;  %v13752_v1 = vld [vmem:[%s14983_s21 + $0x46c] sm:$0xf] }
 0x19e   :  { %1793 = vmatpush.bf16.msra.mxu2 %v9978_v14  ;;  %v10538_v9 = vor.u32 %v13752_v1, %v10535_v2  ;;  %v13684_v11 = vld [vmem:[%s14983_s21 + $0x24c] sm:$0xf]  ;;  %v10618_v1 = vor.u32 %v13772_v57, %v10615_v58  ;;  %v10781_v2 = vld [vmem:[#allocation2 + $0x60] sm:$0xf]  ;;  %v13822_v57 = vld [vmem:[#allocation2 + $0x94] sm:$0xf0] }
 0x19f   :  { %1768 = vmatmul.bf16.vlgmr.msra.gmra.mxu0 %v15427_v30  ;;  %v10266_v21 = vor.u32 %v13684_v11, %v10263_v12  ;;  %v10773_v11 = vld [vmem:[#allocation2 + $0x50] sm:$0xf]  ;;  %v13814_v12 = vld [vmem:[#allocation2 + $0x54] sm:$0xf0] }
 0x1a0   :  { %1812 = vmatpush.bf16.msrb.mxu0 %v10346_v15  ;;  %1781 = vmatmul.bf16.vlgmr.msra.gmra.mxu1 %v15429_v33  ;;  %v10391_v15 = vld [vmem:[%s14983_s21 + $0x358] sm:$0xf0]  ;;  %v10774_v17 = vor.u32 %v13814_v12, %v10773_v11  ;;  %v13833_v11 = vld [vmem:[#allocation2 + $0xf4] sm:$0xf] }
 0x1a1   :  { %1825 = vmatpush.bf16.msrb.mxu1 %v10474_v18  ;;  %1806 = vmatpush.bf16.msra.mxu3 %v10106_v24  ;;  %v15673_v18 = vpop.f32.mrf.mxu1  ;;  %v10394_v24 = vor.u32 %v13716_v13, %v10391_v15  ;;  %v10837_v15 = vld [vmem:[#allocation2 + $0xd0] sm:$0xf]  ;;  %v10855_v12 = vld [vmem:[#allocation2 + $0xf8] sm:$0xf0] }
 0x1a2   :  { %1838 = vmatpush.bf16.msrb.mxu2 %v10602_v19  ;;  %v10666_v19 = vor.u32 %v13784_v6, %v10663_v7  ;;  %v13832_v6 = vld [vmem:[#allocation2 + $0xe4] sm:$0xf0] }
 0x1a3   :  { %1794 = vmatmul.bf16.vlgmr.msra.gmra.mxu2 %v15357_v4  ;;  %v15668_v14 = vpop.f32.mrf.mxu0 }
 0x1a4   :  { %1813 = vmatpush.bf16.msrb.mxu0 %v10330_v29  ;;  %1807 = vmatmul.bf16.vlgmr.msra.gmra.mxu3 %v15363_v10  ;;  %v10375_v29 = vld [vmem:[%s14983_s21 + $0x338] sm:$0xf0] }
 0x1a5   :  { %1851 = vmatpush.bf16.msrb.mxu3 %v10730_v28  ;;  %1826 = vmatpush.bf16.msrb.mxu1 %v10458_v35  ;;  %v13712_v28 = vld [vmem:[%s14983_s21 + $0x32c] sm:$0xf]  ;;  %v10650_v35 = vor.u32 %v13780_v22, %v10647_v23  ;;  %v10765_v22 = vld [vmem:[#allocation2 + $0x40] sm:$0xf]  ;;  %v13812_v23 = vld [vmem:[#allocation2 + $0x44] sm:$0xf0] }
 0x1a6   :  { %1839 = vmatpush.bf16.msrb.mxu2 %v10586_v36  ;;  %v10250_v36 = vor.u32 %v13680_v26, %v10247_v27  ;;  %v10378_v40 = vor.u32 %v13712_v28, %v10375_v29  ;;  %v10766_v26 = vor.u32 %v13812_v23, %v10765_v22  ;;  %v13815_v22 = vld [vmem:[#allocation2 + $0x64] sm:$0xf]  ;;  %v10783_v23 = vld [vmem:[#allocation2 + $0x68] sm:$0xf0] }
 0x1a7   :  { %v1600_v63 = vpop.f32.mrf.mxu3  ;;  %v10786_v34 = vor.u32 %v13815_v22, %v10783_v23 }
 0x1a8   :  { %1814 = vmatpush.bf16.msrb.mxu0 %v10314_v44  ;;  %v10359_v44 = vld [vmem:[%s14983_s21 + $0x318] sm:$0xf0] }
 0x1a9   :  { %1852 = vmatpush.bf16.msrb.mxu3 %v10714_v43  ;;  %1827 = vmatpush.bf16.msrb.mxu1 %v10442_v47  ;;  %v13708_v43 = vld [vmem:[%s14983_s21 + $0x30c] sm:$0xf]  ;;  %v10487_v47 = vld [vmem:[%s14983_s21 + $0x418] sm:$0xf0]  ;;  %v1576_v49 = vpop.f32.mrf.mxu1  ;;  %s18146_s21 = sld [smem:[#allocation37_spill]] }
 0x1aa   :  { %1840 = vmatpush.bf16.msrb.mxu2 %v10570_v48  ;;  %v10789_v48 = vld [vmem:[#allocation2 + $0x70] sm:$0xf] }
 0x1ab   :  { %v1563_v45 = vpop.f32.mrf.mxu0  ;;  %v1587_v54 = vpop.f32.mrf.mxu2  ;;  %v10790_v61 = vor.u32 %v13818_v51, %v10789_v48  ;;  %v13850_v48 = vld [vmem:[#allocation2 + $0x174] sm:$0xf0]  ;;  %v10741_v51 = vld [vmem:[#allocation2 + $0x10] sm:$0xf] }
 0x1ac   :  { %1815 = vmatpush.bf16.msrb.mxu0 %v10298_v56  ;;  %v15692_v56 = vld [vmem:[%s18145_s7] sm:$0xf] }
 0x1ad   :  { %1853 = vmatpush.bf16.msrb.mxu3 %v10698_v55  ;;  %1828 = vmatpush.bf16.msrb.mxu1 %v10426_v59  ;;  %v10234_v55 = vor.u32 %v13676_v39, %v10231_v42  ;;  %v10362_v59 = vor.u32 %v13708_v43, %v10359_v44  ;;  %v584_v0 = vperm.slane %v15692_v56, 0  ;;  %v10813_v42 = vld [vmem:[#allocation2 + $0xa0] sm:$0xf]  ;;  %v13824_v43 = vld [vmem:[#allocation2 + $0xa4] sm:$0xf0] }
 0x1ae   :  { %1841 = vmatpush.bf16.msrb.mxu2 %v10554_v60  ;;  %v10490_v60 = vor.u32 %v13740_v46, %v10487_v47  ;;  %v10917_v47 = vld [vmem:[#allocation2 + $0x170] sm:$0xf] }
 0x1b0   :  { %1816 = vmatpush.bf16.msrb.mxu0 %v10282_v5  ;;  %v10845_v5 = vld [vmem:[#allocation2 + $0xe0] sm:$0xf] }
 0x1b1   :  { %1854 = vmatpush.bf16.msrb.mxu3 %v10682_v3  ;;  %1829 = vmatpush.bf16.msrb.mxu1 %v10410_v8  ;;  %v13816_v3 = vld [vmem:[#allocation2 + $0x64] sm:$0xf0]  ;;  %v1562_v8 = vadd.f32 %v15668_v14, %v584_v0 }
 0x1b2   :  { %1842 = vmatpush.bf16.msrb.mxu2 %v10538_v9  ;;  %v10782_v7 = vor.u32 %v13816_v3, %v10781_v2  ;;  %v10846_v9 = vor.u32 %v13832_v6, %v10845_v5  ;;  %v10797_v3 = vld [vmem:[#allocation2 + $0x80] sm:$0xf]  ;;  %v13820_v5 = vld [vmem:[#allocation2 + $0x84] sm:$0xf0]  ;;  %v13817_v6 = vld [vmem:[#allocation2 + $0x74] sm:$0xf] }
 0x1b3   :  { %v1589_v13 = vpop.f32.mrf.mxu2  ;;  %v1575_v14 = vadd.f32 %v15673_v18, %v1562_v8  ;;  %v10901_v8 = vld [vmem:[#allocation2 + $0x150] sm:$0xf] }
 0x1b4   :  { %1817 = vmatpush.bf16.msrb.mxu0 %v10266_v21  ;;  %v10838_v21 = vor.u32 %v13830_v16, %v10837_v15 }
 0x1b5   :  { %1855 = vmatpush.bf16.msrb.mxu3 %v10666_v19  ;;  %1830 = vmatpush.bf16.msrb.mxu1 %v10394_v24  ;;  %v1602_v19 = vpop.f32.mrf.mxu3  ;;  %v10829_v24 = vld [vmem:[#allocation2 + $0xc0] sm:$0xf]  ;;  %v1588_v29 = vadd.f32 %v1587_v54, %v1575_v14  ;;  %v10918_v54 = vor.u32 %v13850_v48, %v10917_v47  ;;  %v13811_v47 = vld [vmem:[#allocation2 + $0x44] sm:$0xf]  ;;  %v10767_v48 = vld [vmem:[#allocation2 + $0x48] sm:$0xf0] }
 0x1b6   :  { %1843 = vmatpush.bf16.msrb.mxu2 %v10522_v25  ;;  %v13828_v25 = vld [vmem:[#allocation2 + $0xc4] sm:$0xf0]  ;;  %v10798_v19 = vor.u32 %v13820_v5, %v10797_v3 }
 0x1b7   :  { %v10830_v28 = vor.u32 %v13828_v25, %v10829_v24  ;;  %v1601_v18 = vadd.f32 %v1600_v63, %v1588_v29  ;;  %v13804_v63 = vld [vmem:[#allocation2 + $0x4] sm:$0xf0]  ;;  %v13831_v25 = vld [vmem:[#allocation2 + $0xe4] sm:$0xf] }
 0x1b8   :  { %1818 = vmatpush.bf16.msrb.mxu0 %v10250_v36  ;;  %v10821_v36 = vld [vmem:[#allocation2 + $0xb0] sm:$0xf]  ;;  %v13844_v29 = vld [vmem:[#allocation2 + $0x144] sm:$0xf0] }
 0x1b9   :  { %1856 = vmatpush.bf16.msrb.mxu3 %v10650_v35  ;;  %1831 = vmatpush.bf16.msrb.mxu1 %v10378_v40  ;;  %v10822_v39 = vor.u32 %v13826_v37, %v10821_v36  ;;  %v10749_v40 = vld [vmem:[#allocation2 + $0x20] sm:$0xf]  ;;  %v13813_v37 = vld [vmem:[#allocation2 + $0x54] sm:$0xf] }
 0x1ba   :  { %1844 = vmatpush.bf16.msrb.mxu2 %v10506_v41  ;;  %v13808_v41 = vld [vmem:[#allocation2 + $0x24] sm:$0xf0] }
 0x1bb   :  { %v10750_v44 = vor.u32 %v13808_v41, %v10749_v40  ;;  %v10885_v40 = vld [vmem:[#allocation2 + $0x130] sm:$0xf]  ;;  %v13842_v41 = vld [vmem:[#allocation2 + $0x134] sm:$0xf0] }
 0x1bc   :  { %1819 = vmatpush.bf16.msrb.mxu0 %v10234_v55  ;;  %v1613_v27 = vpop.f32.mrf.mxu0  ;;  %v10805_v55 = vld [vmem:[#allocation2 + $0x90] sm:$0xf] }
 0x1bd   :  { %1857 = vmatpush.bf16.msrb.mxu3 %v10634_v50  ;;  %1832 = vmatpush.bf16.msrb.mxu1 %v10362_v59  ;;  %v1626_v35 = vpop.f32.mrf.mxu1  ;;  %v1614_v49 = vadd.f32 %v1613_v27, %v1601_v18  ;;  %v10814_v50 = vor.u32 %v13824_v43, %v10813_v42  ;;  %v10909_v59 = vld [vmem:[#allocation2 + $0x160] sm:$0xf]  ;;  %v10806_v2 = vor.u32 %v13822_v57, %v10805_v55  ;;  %v585_v27 = vperm.slane %v15692_v56, 1  ;;  %v13829_v18 = vld [vmem:[#allocation2 + $0xd4] sm:$0xf] }
 0x1be   :  { %1845 = vmatpush.bf16.msrb.mxu2 %v10490_v60  ;;  %v13848_v60 = vld [vmem:[#allocation2 + $0x164] sm:$0xf0]  ;;  %v10886_v43 = vor.u32 %v13842_v41, %v10885_v40  ;;  %v10770_v55 = vor.u32 %v13811_v47, %v10767_v48  ;;  %v10735_v41 = vld [vmem:[#allocation2 + $0x8] sm:$0xf0]  ;;  %v13897_v47 = vld [vmem:[#allocation4 + $0xec] sm:$0xf0] }
 0x1bf   :  { %1820 = vmatmul.bf16.vlgmr.msrb.gmra.mxu0 %v15373_v20  ;;  %v10910_v0 = vor.u32 %v13848_v60, %v10909_v59  ;;  %v10759_v59 = vld [vmem:[#allocation2 + $0x38] sm:$0xf0]  ;;  %v13825_v60 = vld [vmem:[#allocation2 + $0xb4] sm:$0xf] }
 0x1c0   :  { %2262 = vmatpush.bf16.msra.mxu0 %v10790_v61  ;;  %1833 = vmatmul.bf16.vlgmr.msrb.gmra.mxu1 %v15384_v31  ;;  %v10742_v61 = vor.u32 %v13806_v52, %v10741_v51  ;;  %v10877_v51 = vld [vmem:[#allocation2 + $0x120] sm:$0xf]  ;;  %v13840_v52 = vld [vmem:[#allocation2 + $0x124] sm:$0xf0] }
 0x1c1   :  { %2275 = vmatpush.bf16.msra.mxu1 %v10854_v62  ;;  %1858 = vmatpush.bf16.msrb.mxu3 %v10618_v1  ;;  %v10733_v62 = vld [vmem:[#allocation2] sm:$0xf]  ;;  %v1627_v1 = vadd.f32 %v1626_v35, %v1614_v49  ;;  %v13827_v49 = vld [vmem:[#allocation2 + $0xc4] sm:$0xf] }
 0x1c2   :  { %1846 = vmatmul.bf16.vlgmr.msrb.gmra.mxu2 %v15427_v30  ;;  %v10734_v15 = vor.u32 %v13804_v63, %v10733_v62  ;;  %v10823_v63 = vld [vmem:[#allocation2 + $0xb8] sm:$0xf0] }
 0x1c3   :  { %2288 = vmatpush.bf16.msra.mxu2 %v10918_v54  ;;  %v10878_v54 = vor.u32 %v13840_v52, %v10877_v51  ;;  %v13845_v51 = vld [vmem:[#allocation2 + $0x154] sm:$0xf]  ;;  %v11229_v52 = vld [vmem:[#allocation4 + $0x1e0] sm:$0xf] }
 0x1c4   :  { %1859 = vmatmul.bf16.vlgmr.msrb.gmra.mxu3 %v15429_v33  ;;  %2263 = vmatpush.bf16.msra.mxu0 %v10782_v7  ;;  %v1615_v46 = vpop.f32.mrf.mxu0  ;;  %v10791_v7 = vld [vmem:[#allocation2 + $0x78] sm:$0xf0] }
 0x1c5   :  { %2276 = vmatpush.bf16.msra.mxu1 %v10846_v9  ;;  %v1628_v53 = vpop.f32.mrf.mxu1  ;;  %v13846_v9 = vld [vmem:[#allocation2 + $0x154] sm:$0xf0]  ;;  %v10794_v14 = vor.u32 %v13817_v6, %v10791_v7  ;;  %v13807_v6 = vld [vmem:[#allocation2 + $0x24] sm:$0xf]  ;;  %v10826_v7 = vor.u32 %v13825_v60, %v10823_v63  ;;  %v13893_v63 = vld [vmem:[#allocation4 + $0xcc] sm:$0xf0] }
 0x1c6   :  { %v15703_v45 = vpop.f32.mrf.mxu2  ;;  %v10902_v13 = vor.u32 %v13846_v9, %v10901_v8  ;;  %v10751_v8 = vld [vmem:[#allocation2 + $0x28] sm:$0xf0]  ;;  %v13823_v9 = vld [vmem:[#allocation2 + $0xa4] sm:$0xf] }
 0x1c7   :  { %v15705_v58 = vpop.f32.mrf.mxu3  ;;  %2289 = vmatpush.bf16.msra.mxu2 %v10910_v0  ;;  %v1640_v42 = vadd.f32 %v15703_v45, %v585_v27  ;;  %v13809_v45 = vld [vmem:[#allocation2 + $0x34] sm:$0xf]  ;;  %v10869_v0 = vld [vmem:[#allocation2 + $0x110] sm:$0xf] }
 0x1c8   :  { %2264 = vmatpush.bf16.msra.mxu0 %v10774_v17  ;;  %v1864_v17 = vmax.f32 %v1627_v1, 0.0  ;;  %v13838_v1 = vld [vmem:[#allocation2 + $0x114] sm:$0xf0]  ;;  %v10762_v5 = vor.u32 %v13809_v45, %v10759_v59  ;;  %v13821_v27 = vld [vmem:[#allocation2 + $0x94] sm:$0xf] }
 0x1c9   :  { %2277 = vmatpush.bf16.msra.mxu1 %v10838_v21  ;;  %v10858_v21 = vor.u32 %v13833_v11, %v10855_v12  ;;  %v1653_v53 = vadd.f32 %v15705_v58, %v1640_v42  ;;  %v10870_v3 = vor.u32 %v13838_v1, %v10869_v0  ;;  %v10815_v11 = vld [vmem:[#allocation2 + $0xa8] sm:$0xf0]  ;;  %v10861_v12 = vld [vmem:[#allocation2 + $0x100] sm:$0xf]  ;;  %v13819_v42 = vld [vmem:[#allocation2 + $0x84] sm:$0xf] }
 0x1ca   :  { %v15708_v32 = vpack.c.bf16 %v1864_v17, %v1864_v17 }
 0x1cb   :  { %2290 = vmatpush.bf16.msra.mxu2 %v10902_v13  ;;  %v13836_v13 = vld [vmem:[#allocation2 + $0x104] sm:$0xf0] }
 0x1cc   :  { %2265 = vmatpush.bf16.msra.mxu0 %v10766_v26  ;;  %v10847_v26 = vld [vmem:[#allocation2 + $0xe8] sm:$0xf0]  ;;  %v10862_v17 = vor.u32 %v13836_v13, %v10861_v12  ;;  %v11069_v12 = vld [vmem:[#allocation4 + $0xa0] sm:$0xf]  ;;  %v13889_v13 = vld [vmem:[#allocation4 + $0xac] sm:$0xf0] }
 0x1cd   :  { %2278 = vmatpush.bf16.msra.mxu1 %v10830_v28  ;;  %v10893_v28 = vld [vmem:[#allocation2 + $0x140] sm:$0xf]  ;;  %v10850_v36 = vor.u32 %v13831_v25, %v10847_v26  ;;  %v13805_v25 = vld [vmem:[#allocation2 + $0x14] sm:$0xf]  ;;  %v10743_v26 = vld [vmem:[#allocation2 + $0x18] sm:$0xf0] }
 0x1ce   :  { %v1641_v16 = vpop.f32.mrf.mxu2  ;;  %v10894_v35 = vor.u32 %v13844_v29, %v10893_v28  ;;  %v10807_v29 = vld [vmem:[#allocation2 + $0x98] sm:$0xf0]  ;;  %v10746_v40 = vor.u32 %v13805_v25, %v10743_v26  ;;  %v11070_v25 = vor.u32 %v13889_v13, %v11069_v12  ;;  %v11053_v26 = vld [vmem:[#allocation4 + $0x80] sm:$0xf]  ;;  %v10933_v12 = vld [vmem:[#allocation2 + $0x190] sm:$0xf] }
 0x1cf   :  { %v1654_v24 = vpop.f32.mrf.mxu3  ;;  %v13854_v13 = vld [vmem:[#allocation2 + $0x194] sm:$0xf0] }
 0x1d0   :  { %2266 = vmatpush.bf16.msra.mxu0 %v10758_v38  ;;  %v10775_v38 = vld [vmem:[#allocation2 + $0x58] sm:$0xf0]  ;;  %2291 = vmatpush.bf16.msra.mxu2 %v10894_v35  ;;  %v10818_v24 = vor.u32 %v13823_v9, %v10815_v11 }
 0x1d1   :  { %2279 = vmatpush.bf16.msra.mxu1 %v10822_v39  ;;  %v10839_v39 = vld [vmem:[#allocation2 + $0xd8] sm:$0xf0] }
 0x1d2   :  { %v10842_v46 = vor.u32 %v13829_v18, %v10839_v39 }
 0x1d4   :  { %2267 = vmatpush.bf16.msra.mxu0 %v10750_v44  ;;  %v10778_v44 = vor.u32 %v13813_v37, %v10775_v38  ;;  %2292 = vmatpush.bf16.msra.mxu2 %v10886_v43  ;;  %v10911_v37 = vld [vmem:[#allocation2 + $0x168] sm:$0xf0]  ;;  %v13803_v38 = vld [vmem:[#allocation2 + $0x4] sm:$0xf]  ;;  %v10810_v43 = vor.u32 %v13821_v27, %v10807_v29  ;;  %v10957_v29 = vld [vmem:[#allocation2 + $0x1c0] sm:$0xf] }
 0x1d5   :  { %2280 = vmatpush.bf16.msra.mxu1 %v10814_v50  ;;  %v10831_v50 = vld [vmem:[#allocation2 + $0xc8] sm:$0xf0]  ;;  %v10738_v45 = vor.u32 %v13803_v38, %v10735_v41 }
 0x1d6   :  { %v10834_v57 = vor.u32 %v13827_v49, %v10831_v50  ;;  %v10981_v49 = vld [vmem:[#allocation2 + $0x1f0] sm:$0xf]  ;;  %v13866_v50 = vld [vmem:[#allocation2 + $0x1f4] sm:$0xf0]  ;;  %v10879_v38 = vld [vmem:[#allocation2 + $0x128] sm:$0xf0] }
 0x1d8   :  { %2268 = vmatpush.bf16.msra.mxu0 %v10742_v61  ;;  %2293 = vmatpush.bf16.msra.mxu2 %v10878_v54 }
 0x1d9   :  { %2281 = vmatpush.bf16.msra.mxu1 %v10806_v2 }
 0x1dc   :  { %2269 = vmatpush.bf16.msra.mxu0 %v10734_v15  ;;  %v1665_v61 = vpop.f32.mrf.mxu0  ;;  %2294 = vmatpush.bf16.msra.mxu2 %v10870_v3  ;;  %v13849_v15 = vld [vmem:[#allocation2 + $0x174] sm:$0xf]  ;;  %v10973_v3 = vld [vmem:[#allocation2 + $0x1e0] sm:$0xf] }
 0x1dd   :  { %2282 = vmatpush.bf16.msra.mxu1 %v10798_v19  ;;  %v1678_v62 = vpop.f32.mrf.mxu1  ;;  %v1666_v2 = vadd.f32 %v1665_v61, %v1653_v53  ;;  %v10919_v19 = vld [vmem:[#allocation2 + $0x178] sm:$0xf0]  ;;  %v13929_v53 = vld [vmem:[#allocation4 + $0x1ec] sm:$0xf0] }
 0x1de   :  { %v10922_v22 = vor.u32 %v13849_v15, %v10919_v19  ;;  %v11230_v1 = vor.u32 %v13929_v53, %v11229_v52  ;;  %v13862_v19 = vld [vmem:[#allocation2 + $0x1d4] sm:$0xf0]  ;;  %v13837_v52 = vld [vmem:[#allocation2 + $0x114] sm:$0xf]  ;;  %v10871_v53 = vld [vmem:[#allocation2 + $0x118] sm:$0xf0] }
 0x1df   :  { %2270 = vmatmul.bf16.vlgmr.msra.gmra.mxu0 %v15708_v32  ;;  %v1679_v58 = vadd.f32 %v1678_v62, %v1666_v2  ;;  %v11085_v62 = vld [vmem:[#allocation4 + $0xc0] sm:$0xf] }
 0x1e0   :  { %2314 = vmatpush.bf16.msrb.mxu0 %v10794_v14  ;;  %2295 = vmatpush.bf16.msra.mxu2 %v10862_v17  ;;  %v11213_v2 = vld [vmem:[#allocation4 + $0x1c0] sm:$0xf]  ;;  %v11086_v11 = vor.u32 %v13893_v63, %v11085_v62  ;;  %v10965_v17 = vld [vmem:[#allocation2 + $0x1d0] sm:$0xf] }
 0x1e1   :  { %2327 = vmatpush.bf16.msrb.mxu1 %v10858_v21  ;;  %v10754_v21 = vor.u32 %v13807_v6, %v10751_v8  ;;  %v13925_v6 = vld [vmem:[#allocation4 + $0x1cc] sm:$0xf0]  ;;  %v10895_v8 = vld [vmem:[#allocation2 + $0x148] sm:$0xf0]  ;;  %v11149_v62 = vld [vmem:[#allocation4 + $0x140] sm:$0xf] }
 0x1e2   :  { %v11214_v15 = vor.u32 %v13925_v6, %v11213_v2  ;;  %v13909_v63 = vld [vmem:[#allocation4 + $0x14c] sm:$0xf0]  ;;  %v11005_v6 = vld [vmem:[#allocation4 + $0x20] sm:$0xf] }
 0x1e4   :  { %2315 = vmatpush.bf16.msrb.mxu0 %v10786_v34  ;;  %v1667_v34 = vpop.f32.mrf.mxu0  ;;  %2340 = vmatpush.bf16.msrb.mxu2 %v10922_v22  ;;  %v13841_v22 = vld [vmem:[#allocation2 + $0x134] sm:$0xf] }
 0x1e5   :  { %2328 = vmatpush.bf16.msrb.mxu1 %v10850_v36  ;;  %v1680_v35 = vpop.f32.mrf.mxu1  ;;  %v13847_v36 = vld [vmem:[#allocation2 + $0x164] sm:$0xf]  ;;  %v13860_v34 = vld [vmem:[#allocation2 + $0x1c4] sm:$0xf0] }
 0x1e6   :  { %v1691_v16 = vpop.f32.mrf.mxu2  ;;  %v10914_v18 = vor.u32 %v13847_v36, %v10911_v37  ;;  %v11181_v35 = vld [vmem:[#allocation4 + $0x180] sm:$0xf]  ;;  %v13917_v36 = vld [vmem:[#allocation4 + $0x18c] sm:$0xf0]  ;;  %v10958_v37 = vor.u32 %v13860_v34, %v10957_v29 }
 0x1e7   :  { %v1692_v14 = vadd.f32 %v1691_v16, %v1679_v58  ;;  %v1704_v23 = vpop.f32.mrf.mxu3  ;;  %v11197_v16 = vld [vmem:[#allocation4 + $0x1a0] sm:$0xf]  ;;  %v11182_v41 = vor.u32 %v13917_v36, %v11181_v35  ;;  %v14025_v29 = vld [vmem:[#allocation4 + $0x4ec] sm:$0xf0]  ;;  %v13865_v35 = vld [vmem:[#allocation2 + $0x1f4] sm:$0xf] }
 0x1e8   :  { %2316 = vmatpush.bf16.msrb.mxu0 %v10778_v44  ;;  %v10799_v44 = vld [vmem:[#allocation2 + $0x88] sm:$0xf0]  ;;  %2341 = vmatpush.bf16.msrb.mxu2 %v10914_v18  ;;  %v10983_v36 = vld [vmem:[#allocation2 + $0x1f8] sm:$0xf0] }
 0x1e9   :  { %2329 = vmatpush.bf16.msrb.mxu1 %v10842_v46  ;;  %v1705_v28 = vadd.f32 %v1704_v23, %v1692_v14  ;;  %v11101_v46 = vld [vmem:[#allocation4 + $0xe0] sm:$0xf]  ;;  %v10802_v60 = vor.u32 %v13819_v42, %v10799_v44  ;;  %v13921_v14 = vld [vmem:[#allocation4 + $0x1ac] sm:$0xf0]  ;;  %v10887_v23 = vld [vmem:[#allocation2 + $0x138] sm:$0xf0] }
 0x1ea   :  { %v11102_v61 = vor.u32 %v13897_v47, %v11101_v46  ;;  %v11198_v27 = vor.u32 %v13921_v14, %v11197_v16  ;;  %v13881_v42 = vld [vmem:[#allocation4 + $0x6c] sm:$0xf0]  ;;  %v13858_v44 = vld [vmem:[#allocation2 + $0x1b4] sm:$0xf0]  ;;  %v11165_v47 = vld [vmem:[#allocation4 + $0x160] sm:$0xf]  ;;  %v10934_v14 = vor.u32 %v13854_v13, %v10933_v12 }
 0x1eb   :  { %v1865_v39 = vmax.f32 %v1705_v28, 0.0  ;;  %v13885_v28 = vld [vmem:[#allocation4 + $0x8c] sm:$0xf0] }
 0x1ec   :  { %2317 = vmatpush.bf16.msrb.mxu0 %v10770_v55  ;;  %v10982_v55 = vor.u32 %v13866_v50, %v10981_v49  ;;  %v11054_v18 = vor.u32 %v13885_v28, %v11053_v26  ;;  %v13913_v49 = vld [vmem:[#allocation4 + $0x16c] sm:$0xf0]  ;;  %v11613_v26 = vld [vmem:[#allocation4 + $0x4e0] sm:$0xf]  ;;  %v13852_v28 = vld [vmem:[#allocation2 + $0x184] sm:$0xf0] }
 0x1ed   :  { %2330 = vmatpush.bf16.msrb.mxu1 %v10834_v57  ;;  %v15713_v48 = vpack.c.bf16 %v1865_v39, %v1865_v39  ;;  %v10903_v57 = vld [vmem:[#allocation2 + $0x158] sm:$0xf0]  ;;  %v11037_v39 = vld [vmem:[#allocation4 + $0x60] sm:$0xf] }
 0x1ee   :  { %v1693_v54 = vpop.f32.mrf.mxu2  ;;  %v10906_v59 = vor.u32 %v13845_v51, %v10903_v57  ;;  %2301 = vmatpush.bf16.msra.mxu3 %v10982_v55  ;;  %v11021_v55 = vld [vmem:[#allocation4 + $0x40] sm:$0xf]  ;;  %v10874_v57 = vor.u32 %v13837_v52, %v10871_v53  ;;  %v14053_v52 = vld [vmem:[#allocation4 + $0x5cc] sm:$0xf0] }
 0x1ef   :  { %2283 = vmatmul.bf16.vlgmr.msra.gmra.mxu1 %v15713_v48  ;;  %v1706_v0 = vpop.f32.mrf.mxu3  ;;  %v11038_v54 = vor.u32 %v13881_v42, %v11037_v39 }
 0x1f0   :  { %2318 = vmatpush.bf16.msrb.mxu0 %v10762_v5  ;;  %v13864_v5 = vld [vmem:[#allocation2 + $0x1e4] sm:$0xf0]  ;;  %2342 = vmatpush.bf16.msrb.mxu2 %v10906_v59  ;;  %v13877_v59 = vld [vmem:[#allocation4 + $0x4c] sm:$0xf0] }
 0x1f1   :  { %2331 = vmatpush.bf16.msrb.mxu1 %v10826_v7  ;;  %v10974_v58 = vor.u32 %v13864_v5, %v10973_v3  ;;  %v13843_v7 = vld [vmem:[#allocation2 + $0x144] sm:$0xf]  ;;  %v11022_v2 = vor.u32 %v13877_v59, %v11021_v55  ;;  %v11150_v5 = vor.u32 %v13909_v63, %v11149_v62  ;;  %v10967_v62 = vld [vmem:[#allocation2 + $0x1d8] sm:$0xf0]  ;;  %v11709_v63 = vld [vmem:[#allocation4 + $0x5a0] sm:$0xf] }
 0x1f2   :  { %v10898_v9 = vor.u32 %v13843_v7, %v10895_v8  ;;  %v11133_v7 = vld [vmem:[#allocation4 + $0x120] sm:$0xf] }
 0x1f3   :  { %2302 = vmatpush.bf16.msra.mxu3 %v10974_v58  ;;  %v13873_v58 = vld [vmem:[#allocation4 + $0x2c] sm:$0xf0] }
 0x1f4   :  { %2319 = vmatpush.bf16.msrb.mxu0 %v10754_v21  ;;  %2343 = vmatpush.bf16.msrb.mxu2 %v10898_v9  ;;  %v10966_v21 = vor.u32 %v13862_v19, %v10965_v17  ;;  %v10989_v17 = vld [vmem:[#allocation4] sm:$0xf] }
 0x1f5   :  { %2332 = vmatpush.bf16.msrb.mxu1 %v10818_v24  ;;  %v10890_v24 = vor.u32 %v13841_v22, %v10887_v23  ;;  %v13869_v22 = vld [vmem:[#allocation4 + $0xc] sm:$0xf0]  ;;  %v11117_v23 = vld [vmem:[#allocation4 + $0x100] sm:$0xf] }
 0x1f6   :  { %v10990_v39 = vor.u32 %v13869_v22, %v10989_v17  ;;  %v13857_v17 = vld [vmem:[#allocation2 + $0x1b4] sm:$0xf]  ;;  %v11677_v22 = vld [vmem:[#allocation4 + $0x560] sm:$0xf] }
 0x1f7   :  { %2303 = vmatpush.bf16.msra.mxu3 %v10966_v21  ;;  %v11006_v21 = vor.u32 %v13873_v58, %v11005_v6  ;;  %v13859_v6 = vld [vmem:[#allocation2 + $0x1c4] sm:$0xf]  ;;  %v10959_v58 = vld [vmem:[#allocation2 + $0x1c8] sm:$0xf0] }
 0x1f8   :  { %2320 = vmatpush.bf16.msrb.mxu0 %v10746_v40  ;;  %2344 = vmatpush.bf16.msrb.mxu2 %v10890_v24  ;;  %v13901_v24 = vld [vmem:[#allocation4 + $0x10c] sm:$0xf0] }
 0x1f9   :  { %2333 = vmatpush.bf16.msrb.mxu1 %v10810_v43  ;;  %v10949_v43 = vld [vmem:[#allocation2 + $0x1b0] sm:$0xf] }
 0x1fa   :  { %v10950_v50 = vor.u32 %v13858_v44, %v10949_v43  ;;  %v11597_v44 = vld [vmem:[#allocation4 + $0x4c0] sm:$0xf] }
 0x1fb   :  { %2304 = vmatpush.bf16.msra.mxu3 %v10958_v37  ;;  %v11741_v37 = vld [vmem:[#allocation4 + $0x5e0] sm:$0xf] }
 0x1fc   :  { %2321 = vmatpush.bf16.msrb.mxu0 %v10738_v45  ;;  %v15717_v46 = vpop.f32.mrf.mxu0  ;;  %v11166_v45 = vor.u32 %v13913_v49, %v11165_v47  ;;  %v14021_v47 = vld [vmem:[#allocation4 + $0x4cc] sm:$0xf0]  ;;  %v13863_v49 = vld [vmem:[#allocation2 + $0x1e4] sm:$0xf] }
 0x1fd   :  { %2334 = vmatpush.bf16.msrb.mxu1 %v10802_v60  ;;  %v15720_v51 = vpop.f32.mrf.mxu1  ;;  %v10941_v60 = vld [vmem:[#allocation2 + $0x1a0] sm:$0xf] }
 0x1ff   :  { %2322 = vmatmul.bf16.vlgmr.msrb.gmra.mxu0 %v15708_v32  ;;  %v13839_v32 = vld [vmem:[#allocation2 + $0x124] sm:$0xf]  ;;  %2305 = vmatpush.bf16.msra.mxu3 %v10950_v50  ;;  %v11725_v50 = vld [vmem:[#allocation4 + $0x5c0] sm:$0xf] }
 0x200   :  { %3530 = vmatpush.bf16.msra.mxu0 %v11102_v61  ;;  %v10882_v40 = vor.u32 %v13839_v32, %v10879_v38  ;;  %2335 = vmatmul.bf16.vlgmr.msrb.gmra.mxu1 %v15713_v48  ;;  %v13856_v61 = vld [vmem:[#allocation2 + $0x1a4] sm:$0xf0]  ;;  %v10863_v48 = vld [vmem:[#allocation2 + $0x108] sm:$0xf0]  ;;  %v14057_v32 = vld [vmem:[#allocation4 + $0x5ec] sm:$0xf0]  ;;  %v10986_v38 = vor.u32 %v13865_v35, %v10983_v36  ;;  %v11726_v59 = vor.u32 %v14053_v52, %v11725_v50 }
 0x201   :  { %3543 = vmatpush.bf16.msra.mxu1 %v11230_v1  ;;  %v10942_v0 = vor.u32 %v13856_v61, %v10941_v60  ;;  %v13835_v1 = vld [vmem:[#allocation2 + $0x104] sm:$0xf]  ;;  %v11742_v43 = vor.u32 %v14057_v32, %v11741_v37  ;;  %v14017_v60 = vld [vmem:[#allocation4 + $0x4ac] sm:$0xf0]  ;;  %v13861_v61 = vld [vmem:[#allocation2 + $0x1d4] sm:$0xf] }
 0x202   :  { %2345 = vmatpush.bf16.msrb.mxu2 %v10882_v40  ;;  %v10866_v3 = vor.u32 %v13835_v1, %v10863_v48  ;;  %v11118_v40 = vor.u32 %v13901_v24, %v11117_v23  ;;  %v10970_v1 = vor.u32 %v13861_v61, %v10967_v62  ;;  %v14041_v23 = vld [vmem:[#allocation4 + $0x56c] sm:$0xf0]  ;;  %v13855_v37 = vld [vmem:[#allocation2 + $0x1a4] sm:$0xf]  ;;  %v10943_v32 = vld [vmem:[#allocation2 + $0x1a8] sm:$0xf0] }
 0x203   :  { %2306 = vmatpush.bf16.msra.mxu3 %v10942_v0  ;;  %v14049_v0 = vld [vmem:[#allocation4 + $0x5ac] sm:$0xf0]  ;;  %v11678_v35 = vor.u32 %v14041_v23, %v11677_v22  ;;  %v11517_v50 = vld [vmem:[#allocation4 + $0x420] sm:$0xf]  ;;  %v13955_v23 = vld [vmem:[#allocation4 + $0x2c4] sm:$0xf] }
 0x204   :  { %3531 = vmatpush.bf16.msra.mxu0 %v11086_v11  ;;  %v1719_v9 = vpop.f32.mrf.mxu0  ;;  %v13905_v11 = vld [vmem:[#allocation4 + $0x12c] sm:$0xf0] }
 0x205   :  { %3544 = vmatpush.bf16.msra.mxu1 %v11214_v15  ;;  %v586_v15 = vperm.slane %v15692_v56, 2  ;;  %v1732_v16 = vpop.f32.mrf.mxu1  ;;  %v14045_v9 = vld [vmem:[#allocation4 + $0x58c] sm:$0xf0] }
 0x206   :  { %2346 = vmatpush.bf16.msrb.mxu2 %v10874_v57  ;;  %v15722_v8 = vpop.f32.mrf.mxu2  ;;  %v11598_v57 = vor.u32 %v14021_v47, %v11597_v44  ;;  %v14009_v16 = vld [vmem:[#allocation4 + $0x46c] sm:$0xf0] }
 0x207   :  { %v15725_v19 = vpop.f32.mrf.mxu3  ;;  %2307 = vmatpush.bf16.msra.mxu3 %v10934_v14  ;;  %v10951_v14 = vld [vmem:[#allocation2 + $0x1b8] sm:$0xf0]  ;;  %v14005_v36 = vld [vmem:[#allocation4 + $0x44c] sm:$0xf0] }
 0x208   :  { %3532 = vmatpush.bf16.msra.mxu0 %v11070_v25  ;;  %v11134_v25 = vor.u32 %v13905_v11, %v11133_v7  ;;  %v11693_v7 = vld [vmem:[#allocation4 + $0x580] sm:$0xf]  ;;  %v10962_v11 = vor.u32 %v13859_v6, %v10959_v58  ;;  %v10954_v24 = vor.u32 %v13857_v17, %v10951_v14  ;;  %v13957_v44 = vld [vmem:[#allocation4 + $0x2cc] sm:$0xf0]  ;;  %v13959_v6 = vld [vmem:[#allocation4 + $0x2e4] sm:$0xf] }
 0x209   :  { %3545 = vmatpush.bf16.msra.mxu1 %v11198_v27  ;;  %v10925_v27 = vld [vmem:[#allocation2 + $0x180] sm:$0xf]  ;;  %v14001_v52 = vld [vmem:[#allocation4 + $0x42c] sm:$0xf0]  ;;  %v11359_v58 = vld [vmem:[#allocation4 + $0x2f0] sm:$0xf0] }
 0x20a   :  { %2347 = vmatpush.bf16.msrb.mxu2 %v10866_v3  ;;  %v10926_v34 = vor.u32 %v13852_v28, %v10925_v27  ;;  %v11710_v3 = vor.u32 %v14049_v0, %v11709_v63  ;;  %v11357_v28 = vld [vmem:[#allocation4 + $0x2e0] sm:$0xf]  ;;  %v11518_v63 = vor.u32 %v14001_v52, %v11517_v50  ;;  %v13953_v0 = vld [vmem:[#allocation4 + $0x2ac] sm:$0xf0]  ;;  %v11362_v17 = vor.u32 %v13959_v6, %v11359_v58  ;;  %v11311_v50 = vld [vmem:[#allocation4 + $0x290] sm:$0xf0] }
 0x20b   :  { %v11309_v14 = vld [vmem:[#allocation4 + $0x280] sm:$0xf]  ;;  %v13895_v6 = vld [vmem:[#allocation4 + $0xe4] sm:$0xf] }
 0x20c   :  { %3533 = vmatpush.bf16.msra.mxu0 %v11054_v18  ;;  %v1718_v18 = vadd.f32 %v15717_v46, %v586_v15  ;;  %2308 = vmatpush.bf16.msra.mxu3 %v10926_v34  ;;  %v11549_v15 = vld [vmem:[#allocation4 + $0x460] sm:$0xf] }
 0x20d   :  { %3546 = vmatpush.bf16.msra.mxu1 %v11182_v41  ;;  %v11614_v41 = vor.u32 %v14025_v29, %v11613_v26  ;;  %v11550_v27 = vor.u32 %v14009_v16, %v11549_v15  ;;  %v13961_v29 = vld [vmem:[#allocation4 + $0x2ec] sm:$0xf0] }
 0x20e   :  { %v1745_v42 = vpop.f32.mrf.mxu2  ;;  %v1731_v55 = vadd.f32 %v15720_v51, %v1718_v18  ;;  %v14037_v18 = vld [vmem:[#allocation4 + $0x54c] sm:$0xf0] }
 0x20f   :  { %v1758_v53 = vpop.f32.mrf.mxu3 }
 0x210   :  { %3534 = vmatpush.bf16.msra.mxu0 %v11038_v54  ;;  %2353 = vmatpush.bf16.msrb.mxu3 %v10986_v38  ;;  %v10975_v54 = vld [vmem:[#allocation2 + $0x1e8] sm:$0xf0]  ;;  %v1744_v48 = vadd.f32 %v15722_v8, %v1731_v55  ;;  %v11694_v8 = vor.u32 %v14045_v9, %v11693_v7  ;;  %v11661_v38 = vld [vmem:[#allocation4 + $0x540] sm:$0xf]  ;;  %v14033_v55 = vld [vmem:[#allocation4 + $0x52c] sm:$0xf0] }
 0x211   :  { %3547 = vmatpush.bf16.msra.mxu1 %v11166_v45  ;;  %v10978_v46 = vor.u32 %v13863_v49, %v10975_v54  ;;  %v11581_v45 = vld [vmem:[#allocation4 + $0x4a0] sm:$0xf]  ;;  %v11662_v49 = vor.u32 %v14037_v18, %v11661_v38  ;;  %v13851_v7 = vld [vmem:[#allocation2 + $0x184] sm:$0xf]  ;;  %v10927_v9 = vld [vmem:[#allocation2 + $0x188] sm:$0xf0] }
 0x212   :  { %v11582_v51 = vor.u32 %v14017_v60, %v11581_v45  ;;  %v1757_v12 = vadd.f32 %v15725_v19, %v1744_v48  ;;  %v11533_v19 = vld [vmem:[#allocation4 + $0x440] sm:$0xf]  ;;  %v10935_v45 = vld [vmem:[#allocation2 + $0x198] sm:$0xf0]  ;;  %v13997_v48 = vld [vmem:[#allocation4 + $0x40c] sm:$0xf0] }
 0x213   :  { %v11534_v42 = vor.u32 %v14005_v36, %v11533_v19  ;;  %v11645_v53 = vld [vmem:[#allocation4 + $0x520] sm:$0xf]  ;;  %v587_v38 = vperm.slane %v15692_v56, 3  ;;  %v13983_v18 = vld [vmem:[#allocation4 + $0x3a4] sm:$0xf] }
 0x214   :  { %3535 = vmatpush.bf16.msra.mxu0 %v11022_v2  ;;  %2354 = vmatpush.bf16.msrb.mxu3 %v10978_v46  ;;  %v11565_v2 = vld [vmem:[#allocation4 + $0x480] sm:$0xf]  ;;  %v13979_v56 = vld [vmem:[#allocation4 + $0x384] sm:$0xf] }
 0x215   :  { %3548 = vmatpush.bf16.msra.mxu1 %v11150_v5  ;;  %v14013_v5 = vld [vmem:[#allocation4 + $0x48c] sm:$0xf0]  ;;  %v11325_v60 = vld [vmem:[#allocation4 + $0x2a0] sm:$0xf] }
 0x216   :  { %v11566_v13 = vor.u32 %v14013_v5, %v11565_v2  ;;  %v11646_v2 = vor.u32 %v14033_v55, %v11645_v53  ;;  %v14029_v5 = vld [vmem:[#allocation4 + $0x50c] sm:$0xf0]  ;;  %v11326_v15 = vor.u32 %v13953_v0, %v11325_v60  ;;  %v11439_v53 = vld [vmem:[#allocation4 + $0x390] sm:$0xf0]  ;;  %v13943_v60 = vld [vmem:[#allocation4 + $0x264] sm:$0xf] }
 0x217   :  { %v13975_v0 = vld [vmem:[#allocation4 + $0x364] sm:$0xf] }
 0x218   :  { %3536 = vmatpush.bf16.msra.mxu0 %v11006_v21  ;;  %2355 = vmatpush.bf16.msrb.mxu3 %v10970_v1  ;;  %v11501_v1 = vld [vmem:[#allocation4 + $0x400] sm:$0xf] }
 0x219   :  { %3549 = vmatpush.bf16.msra.mxu1 %v11134_v25 }
 0x21c   :  { %3537 = vmatpush.bf16.msra.mxu0 %v10990_v39  ;;  %2356 = vmatpush.bf16.msrb.mxu3 %v10962_v11  ;;  %v1769_v21 = vpop.f32.mrf.mxu0  ;;  %v10946_v39 = vor.u32 %v13855_v37, %v10943_v32  ;;  %v13991_v11 = vld [vmem:[#allocation4 + $0x3e4] sm:$0xf]  ;;  %v11327_v32 = vld [vmem:[#allocation4 + $0x2b0] sm:$0xf0] }
 0x21d   :  { %3550 = vmatpush.bf16.msra.mxu1 %v11118_v40  ;;  %v1770_v25 = vadd.f32 %v1769_v21, %v1757_v12  ;;  %v1782_v26 = vpop.f32.mrf.mxu1  ;;  %v11487_v12 = vld [vmem:[#allocation4 + $0x3f0] sm:$0xf0]  ;;  %v13949_v21 = vld [vmem:[#allocation4 + $0x28c] sm:$0xf0]  ;;  %v13951_v37 = vld [vmem:[#allocation4 + $0x2a4] sm:$0xf] }
 0x21e   :  { %v11490_v22 = vor.u32 %v13991_v11, %v11487_v12  ;;  %v11279_v11 = vld [vmem:[#allocation4 + $0x250] sm:$0xf0]  ;;  %v13971_v12 = vld [vmem:[#allocation4 + $0x344] sm:$0xf] }
 0x21f   :  { %3538 = vmatmul.bf16.vlgmr.msra.gmra.mxu0 %v15357_v4  ;;  %v1783_v34 = vadd.f32 %v1782_v26, %v1770_v25  ;;  %v13987_v26 = vld [vmem:[#allocation4 + $0x3c4] sm:$0xf] }
 0x220   :  { %3582 = vmatpush.bf16.msrb.mxu0 %v11614_v41  ;;  %3551 = vmatmul.bf16.vlgmr.msra.gmra.mxu1 %v15363_v10  ;;  %v11358_v41 = vor.u32 %v13961_v29, %v11357_v28  ;;  %v11310_v28 = vor.u32 %v13949_v21, %v11309_v14 }
 0x221   :  { %3595 = vmatpush.bf16.msrb.mxu1 %v11742_v43  ;;  %2357 = vmatpush.bf16.msrb.mxu3 %v10954_v24  ;;  %v1866_v40 = vmax.f32 %v1783_v34, 0.0  ;;  %v11341_v43 = vld [vmem:[#allocation4 + $0x2c0] sm:$0xf]  ;;  %v11343_v24 = vld [vmem:[#allocation4 + $0x2d0] sm:$0xf0] }
 0x222   :  { %v11342_v62 = vor.u32 %v13957_v44, %v11341_v43  ;;  %v11346_v19 = vor.u32 %v13955_v23, %v11343_v24  ;;  %v11293_v34 = vld [vmem:[#allocation4 + $0x260] sm:$0xf]  ;;  %v13941_v43 = vld [vmem:[#allocation4 + $0x24c] sm:$0xf0]  ;;  %v13935_v23 = vld [vmem:[#allocation4 + $0x224] sm:$0xf] }
 0x223   :  { %v15733_v47 = vpack.c.bf16 %v1866_v40, %v1866_v40  ;;  %v11263_v24 = vld [vmem:[#allocation4 + $0x230] sm:$0xf0] }
 0x224   :  { %3583 = vmatpush.bf16.msrb.mxu0 %v11598_v57  ;;  %v1771_v54 = vpop.f32.mrf.mxu0  ;;  %v13853_v57 = vld [vmem:[#allocation2 + $0x194] sm:$0xf] }
 0x225   :  { %3596 = vmatpush.bf16.msrb.mxu1 %v11726_v59  ;;  %2358 = vmatpush.bf16.msrb.mxu3 %v10946_v39  ;;  %v1784_v59 = vpop.f32.mrf.mxu1  ;;  %v10938_v61 = vor.u32 %v13853_v57, %v10935_v45  ;;  %v11455_v39 = vld [vmem:[#allocation4 + $0x3b0] sm:$0xf0]  ;;  %v11261_v57 = vld [vmem:[#allocation4 + $0x220] sm:$0xf]  ;;  %v13937_v45 = vld [vmem:[#allocation4 + $0x22c] sm:$0xf0] }
 0x226   :  { %v15735_v46 = vpop.f32.mrf.mxu2  ;;  %2296 = vmatmul.bf16.vlgmr.msra.gmra.mxu2 %v15733_v47  ;;  %v11458_v44 = vor.u32 %v13983_v18, %v11455_v39  ;;  %v11442_v59 = vor.u32 %v13979_v56, %v11439_v53  ;;  %v11071_v18 = vld [vmem:[#allocation4 + $0xb0] sm:$0xf0]  ;;  %v13931_v39 = vld [vmem:[#allocation4 + $0x204] sm:$0xf]  ;;  %v11237_v56 = vld [vmem:[#allocation4 + $0x1e8] sm:$0xf] }
 0x227   :  { %3556 = vmatpush.bf16.msra.mxu2 %v11358_v41  ;;  %v11330_v41 = vor.u32 %v13951_v37, %v11327_v32  ;;  %v1796_v52 = vadd.f32 %v15735_v46, %v587_v38  ;;  %v11266_v32 = vor.u32 %v13935_v23, %v11263_v24  ;;  %v13887_v38 = vld [vmem:[#allocation4 + $0xa4] sm:$0xf]  ;;  %v13930_v53 = vld [vmem:[#allocation4 + $0x1f4] sm:$0xf0] }
 0x228   :  { %3584 = vmatpush.bf16.msrb.mxu0 %v11582_v51  ;;  %v15738_v51 = vpop.f32.mrf.mxu3  ;;  %v13875_v24 = vld [vmem:[#allocation4 + $0x44] sm:$0xf] }
 0x229   :  { %3597 = vmatpush.bf16.msrb.mxu1 %v11710_v3  ;;  %v11629_v3 = vld [vmem:[#allocation4 + $0x500] sm:$0xf]  ;;  %2359 = vmatpush.bf16.msrb.mxu3 %v10938_v61  ;;  %v11295_v61 = vld [vmem:[#allocation4 + $0x270] sm:$0xf0] }
 0x22a   :  { %v11630_v16 = vor.u32 %v14029_v5, %v11629_v3  ;;  %v11245_v3 = vld [vmem:[#allocation4 + $0x200] sm:$0xf]  ;;  %v13933_v5 = vld [vmem:[#allocation4 + $0x20c] sm:$0xf0] }
 0x22b   :  { %3557 = vmatpush.bf16.msra.mxu2 %v11342_v62  ;;  %v1809_v62 = vadd.f32 %v15738_v51, %v1796_v52  ;;  %v11246_v51 = vor.u32 %v13933_v5, %v11245_v3  ;;  %v13926_v3 = vld [vmem:[#allocation4 + $0x1d4] sm:$0xf0] }
 0x22c   :  { %3585 = vmatpush.bf16.msrb.mxu0 %v11566_v13  ;;  %v10930_v13 = vor.u32 %v13851_v7, %v10927_v9  ;;  %v11103_v7 = vld [vmem:[#allocation4 + $0xf0] sm:$0xf0]  ;;  %v13939_v9 = vld [vmem:[#allocation4 + $0x244] sm:$0xf] }
 0x22d   :  { %3598 = vmatpush.bf16.msrb.mxu1 %v11694_v8  ;;  %v11502_v8 = vor.u32 %v13997_v48, %v11501_v1  ;;  %v11423_v1 = vld [vmem:[#allocation4 + $0x370] sm:$0xf0] }
 0x22e   :  { %2360 = vmatpush.bf16.msrb.mxu3 %v10930_v13  ;;  %v1797_v25 = vpop.f32.mrf.mxu2  ;;  %v11426_v58 = vor.u32 %v13975_v0, %v11423_v1  ;;  %v11407_v13 = vld [vmem:[#allocation4 + $0x350] sm:$0xf0]  ;;  %v11238_v1 = vor.u32 %v13930_v53, %v11237_v56  ;;  %v13973_v56 = vld [vmem:[#allocation4 + $0x34c] sm:$0xf0] }
 0x22f   :  { %3558 = vmatpush.bf16.msra.mxu2 %v11326_v15  ;;  %v11410_v21 = vor.u32 %v13971_v12, %v11407_v13  ;;  %v11039_v12 = vld [vmem:[#allocation4 + $0x70] sm:$0xf0] }
 0x230   :  { %3586 = vmatpush.bf16.msrb.mxu0 %v11550_v27  ;;  %v11471_v27 = vld [vmem:[#allocation4 + $0x3d0] sm:$0xf0]  ;;  %v1810_v29 = vpop.f32.mrf.mxu3 }
 0x231   :  { %3599 = vmatpush.bf16.msrb.mxu1 %v11678_v35  ;;  %v13945_v35 = vld [vmem:[#allocation4 + $0x26c] sm:$0xf0]  ;;  %v11474_v36 = vor.u32 %v13987_v26, %v11471_v27  ;;  %v13967_v26 = vld [vmem:[#allocation4 + $0x324] sm:$0xf]  ;;  %v11391_v27 = vld [vmem:[#allocation4 + $0x330] sm:$0xf0] }
 0x232   :  { %v11294_v40 = vor.u32 %v13945_v35, %v11293_v34  ;;  %v13993_v34 = vld [vmem:[#allocation4 + $0x3ec] sm:$0xf0] }
 0x233   :  { %3559 = vmatpush.bf16.msra.mxu2 %v11310_v28 }
 0x234   :  { %3587 = vmatpush.bf16.msrb.mxu0 %v11534_v42  ;;  %v11277_v42 = vld [vmem:[#allocation4 + $0x240] sm:$0xf] }
 0x235   :  { %3600 = vmatpush.bf16.msrb.mxu1 %v11662_v49  ;;  %v13947_v49 = vld [vmem:[#allocation4 + $0x284] sm:$0xf]  ;;  %v11278_v54 = vor.u32 %v13941_v43, %v11277_v42  ;;  %v11375_v43 = vld [vmem:[#allocation4 + $0x310] sm:$0xf0] }
 0x236   :  { %2348 = vmatmul.bf16.vlgmr.msrb.gmra.mxu2 %v15733_v47  ;;  %v11314_v55 = vor.u32 %v13947_v49, %v11311_v50  ;;  %v11262_v47 = vor.u32 %v13937_v45, %v11261_v57  ;;  %v13963_v42 = vld [vmem:[#allocation4 + $0x304] sm:$0xf]  ;;  %v11109_v49 = vld [vmem:[#allocation4 + $0xe8] sm:$0xf]  ;;  %v13898_v50 = vld [vmem:[#allocation4 + $0xf4] sm:$0xf0] }
 0x237   :  { %3560 = vmatpush.bf16.msra.mxu2 %v11294_v40  ;;  %v11394_v40 = vor.u32 %v13967_v26, %v11391_v27  ;;  %v11469_v45 = vld [vmem:[#allocation4 + $0x3c0] sm:$0xf]  ;;  %v11061_v27 = vld [vmem:[#allocation4 + $0x88] sm:$0xf] }
 0x238   :  { %3588 = vmatpush.bf16.msrb.mxu0 %v11518_v63 }
 0x239   :  { %3601 = vmatpush.bf16.msrb.mxu1 %v11646_v2  ;;  %v11298_v2 = vor.u32 %v13943_v60, %v11295_v61  ;;  %v11378_v60 = vor.u32 %v13963_v42, %v11375_v43  ;;  %v11110_v61 = vor.u32 %v13898_v50, %v11109_v49  ;;  %v11173_v43 = vld [vmem:[#allocation4 + $0x168] sm:$0xf] }
 0x23b   :  { %3561 = vmatpush.bf16.msra.mxu2 %v11278_v54 }
 0x23c   :  { %3589 = vmatpush.bf16.msrb.mxu0 %v11502_v8  ;;  %v1821_v63 = vpop.f32.mrf.mxu0  ;;  %v11106_v8 = vor.u32 %v13895_v6, %v11103_v7  ;;  %v13985_v7 = vld [vmem:[#allocation4 + $0x3ac] sm:$0xf0] }
 0x23d   :  { %3602 = vmatpush.bf16.msrb.mxu1 %v11630_v16  ;;  %v1834_v46 = vpop.f32.mrf.mxu1  ;;  %v1822_v48 = vadd.f32 %v1821_v63, %v1809_v62  ;;  %v11282_v16 = vor.u32 %v13939_v9, %v11279_v11  ;;  %v13883_v62 = vld [vmem:[#allocation4 + $0x84] sm:$0xf]  ;;  %v11055_v63 = vld [vmem:[#allocation4 + $0x90] sm:$0xf0] }
 0x23e   :  { %v11058_v6 = vor.u32 %v13883_v62, %v11055_v63  ;;  %v13879_v11 = vld [vmem:[#allocation4 + $0x64] sm:$0xf]  ;;  %v13878_v62 = vld [vmem:[#allocation4 + $0x54] sm:$0xf0] }
 0x23f   :  { %3590 = vmatmul.bf16.vlgmr.msrb.gmra.mxu0 %v15427_v30  ;;  %3562 = vmatpush.bf16.msra.mxu2 %v11262_v47  ;;  %v1835_v15 = vadd.f32 %v1834_v46, %v1822_v48  ;;  %v11093_v46 = vld [vmem:[#allocation4 + $0xc8] sm:$0xf]  ;;  %v13894_v47 = vld [vmem:[#allocation4 + $0xd4] sm:$0xf0] }
 0x240   :  { %3634 = vmatpush.bf16.msra.mxu0 %v11362_v17  ;;  %3603 = vmatmul.bf16.vlgmr.msrb.gmra.mxu1 %v15429_v33  ;;  %v13891_v17 = vld [vmem:[#allocation4 + $0xc4] sm:$0xf]  ;;  %v11094_v9 = vor.u32 %v13894_v47, %v11093_v46  ;;  %v11389_v47 = vld [vmem:[#allocation4 + $0x320] sm:$0xf] }
 0x241   :  { %3647 = vmatpush.bf16.msra.mxu1 %v11490_v22  ;;  %v11087_v22 = vld [vmem:[#allocation4 + $0xd0] sm:$0xf0] }
 0x242   :  { %v11090_v37 = vor.u32 %v13891_v17, %v11087_v22  ;;  %v13922_v17 = vld [vmem:[#allocation4 + $0x1b4] sm:$0xf0]  ;;  %v13981_v22 = vld [vmem:[#allocation4 + $0x38c] sm:$0xf0] }
 0x243   :  { %3563 = vmatpush.bf16.msra.mxu2 %v11246_v51  ;;  %v11077_v51 = vld [vmem:[#allocation4 + $0xa8] sm:$0xf] }
 0x244   :  { %3635 = vmatpush.bf16.msra.mxu0 %v11346_v19  ;;  %v1823_v28 = vpop.f32.mrf.mxu0  ;;  %v11485_v19 = vld [vmem:[#allocation4 + $0x3e0] sm:$0xf] }
 0x245   :  { %3648 = vmatpush.bf16.msra.mxu1 %v11474_v36  ;;  %v1847_v14 = vpop.f32.mrf.mxu2  ;;  %v1836_v35 = vpop.f32.mrf.mxu1  ;;  %v11486_v52 = vor.u32 %v13993_v34, %v11485_v19  ;;  %v13886_v28 = vld [vmem:[#allocation4 + $0x94] sm:$0xf0]  ;;  %v11189_v19 = vld [vmem:[#allocation4 + $0x188] sm:$0xf] }
 0x246   :  { %v1848_v25 = vadd.f32 %v1847_v14, %v1835_v15  ;;  %3564 = vmatmul.bf16.vlgmr.msra.gmra.mxu2 %v15373_v20  ;;  %v13890_v15 = vld [vmem:[#allocation4 + $0xb4] sm:$0xf0]  ;;  %v11042_v14 = vor.u32 %v13879_v11, %v11039_v12  ;;  %v11141_v11 = vld [vmem:[#allocation4 + $0x128] sm:$0xf] }
 0x247   :  { %v1860_v29 = vpop.f32.mrf.mxu3  ;;  %3608 = vmatpush.bf16.msrb.mxu2 %v11106_v8  ;;  %v11078_v23 = vor.u32 %v13890_v15, %v11077_v51  ;;  %v13918_v34 = vld [vmem:[#allocation4 + $0x194] sm:$0xf0]  ;;  %v11373_v51 = vld [vmem:[#allocation4 + $0x300] sm:$0xf]  ;;  %v13965_v15 = vld [vmem:[#allocation4 + $0x30c] sm:$0xf0] }
 0x248   :  { %3636 = vmatpush.bf16.msra.mxu0 %v11330_v41  ;;  %v1861_v36 = vadd.f32 %v1860_v29, %v1848_v25  ;;  %v11247_v41 = vld [vmem:[#allocation4 + $0x210] sm:$0xf0]  ;;  %v13906_v12 = vld [vmem:[#allocation4 + $0x134] sm:$0xf0] }
 0x249   :  { %3649 = vmatpush.bf16.msra.mxu1 %v11458_v44  ;;  %v11250_v57 = vor.u32 %v13931_v39, %v11247_v41  ;;  %v11023_v25 = vld [vmem:[#allocation4 + $0x50] sm:$0xf0]  ;;  %v11190_v39 = vor.u32 %v13918_v34, %v11189_v19  ;;  %v13882_v41 = vld [vmem:[#allocation4 + $0x74] sm:$0xf0] }
 0x24a   :  { %v1867_v44 = vmax.f32 %v1861_v36, 0.0  ;;  %v11026_v35 = vor.u32 %v13875_v24, %v11023_v25  ;;  %v11421_v36 = vld [vmem:[#allocation4 + $0x360] sm:$0xf]  ;;  %v10997_v24 = vld [vmem:[#allocation4 + $0x8] sm:$0xf] }
 0x24b   :  { %3609 = vmatpush.bf16.msrb.mxu2 %v11090_v37  ;;  %v13977_v37 = vld [vmem:[#allocation4 + $0x36c] sm:$0xf0]  ;;  %v13870_v25 = vld [vmem:[#allocation4 + $0x14] sm:$0xf0] }
 0x24c   :  { %3637 = vmatpush.bf16.msra.mxu0 %v11314_v55  ;;  %v15747_v54 = vpack.c.bf16 %v1867_v44, %v1867_v44  ;;  %v11074_v55 = vor.u32 %v13887_v38, %v11071_v18  ;;  %v13871_v38 = vld [vmem:[#allocation4 + $0x24] sm:$0xf]  ;;  %v11007_v18 = vld [vmem:[#allocation4 + $0x30] sm:$0xf0]  ;;  %v11422_v42 = vor.u32 %v13977_v37, %v11421_v36  ;;  %v13914_v44 = vld [vmem:[#allocation4 + $0x174] sm:$0xf0] }
 0x24d   :  { %3650 = vmatpush.bf16.msra.mxu1 %v11442_v59  ;;  %v13989_v59 = vld [vmem:[#allocation4 + $0x3cc] sm:$0xf0]  ;;  %v1849_v0 = vpop.f32.mrf.mxu2  ;;  %v11010_v50 = vor.u32 %v13871_v38, %v11007_v18  ;;  %v14026_v34 = vld [vmem:[#allocation4 + $0x4f4] sm:$0xf0]  ;;  %v13923_v38 = vld [vmem:[#allocation4 + $0x1c4] sm:$0xf] }
 0x24e   :  { %2309 = vmatmul.bf16.vlgmr.msra.gmra.mxu3 %v15747_v54  ;;  %v11470_v48 = vor.u32 %v13989_v59, %v11469_v45  ;;  %v14023_v45 = vld [vmem:[#allocation4 + $0x4e4] sm:$0xf]  ;;  %v11174_v59 = vor.u32 %v13914_v44, %v11173_v43  ;;  %v11157_v0 = vld [vmem:[#allocation4 + $0x148] sm:$0xf]  ;;  %v14058_v36 = vld [vmem:[#allocation4 + $0x5f4] sm:$0xf0] }
 0x24f   :  { %3569 = vmatpush.bf16.msra.mxu3 %v11486_v52  ;;  %v1862_v5 = vpop.f32.mrf.mxu3  ;;  %3610 = vmatpush.bf16.msrb.mxu2 %v11074_v55  ;;  %v11405_v52 = vld [vmem:[#allocation4 + $0x340] sm:$0xf]  ;;  %v13867_v55 = vld [vmem:[#allocation4 + $0x4] sm:$0xf]  ;;  %v11215_v18 = vld [vmem:[#allocation4 + $0x1d0] sm:$0xf0] }
 0x250   :  { %3638 = vmatpush.bf16.msra.mxu0 %v11298_v2  ;;  %v11221_v2 = vld [vmem:[#allocation4 + $0x1c8] sm:$0xf]  ;;  %v11406_v63 = vor.u32 %v13973_v56, %v11405_v52  ;;  %v14019_v5 = vld [vmem:[#allocation4 + $0x4c4] sm:$0xf]  ;;  %v11218_v52 = vor.u32 %v13923_v38, %v11215_v18  ;;  %v14022_v56 = vld [vmem:[#allocation4 + $0x4d4] sm:$0xf0] }
 0x251   :  { %3651 = vmatpush.bf16.msra.mxu1 %v11426_v58  ;;  %v11453_v58 = vld [vmem:[#allocation4 + $0x3a0] sm:$0xf]  ;;  %v11222_v13 = vor.u32 %v13926_v3, %v11221_v2  ;;  %v13995_v38 = vld [vmem:[#allocation4 + $0x404] sm:$0xf]  ;;  %v11503_v18 = vld [vmem:[#allocation4 + $0x410] sm:$0xf0] }
 0x252   :  { %v11454_v8 = vor.u32 %v13985_v7, %v11453_v58  ;;  %v11599_v58 = vld [vmem:[#allocation4 + $0x4d0] sm:$0xf0]  ;;  %v13874_v7 = vld [vmem:[#allocation4 + $0x34] sm:$0xf0] }
 0x253   :  { %3570 = vmatpush.bf16.msra.mxu3 %v11470_v48  ;;  %3611 = vmatpush.bf16.msrb.mxu2 %v11058_v6  ;;  %v13969_v48 = vld [vmem:[#allocation4 + $0x32c] sm:$0xf0] }
 0x254   :  { %3639 = vmatpush.bf16.msra.mxu0 %v11282_v16  ;;  %v11205_v16 = vld [vmem:[#allocation4 + $0x1a8] sm:$0xf] }
 0x255   :  { %3652 = vmatpush.bf16.msra.mxu1 %v11410_v21  ;;  %v11437_v21 = vld [vmem:[#allocation4 + $0x380] sm:$0xf]  ;;  %v11206_v26 = vor.u32 %v13922_v17, %v11205_v16  ;;  %v13927_v17 = vld [vmem:[#allocation4 + $0x1e4] sm:$0xf] }
 0x256   :  { %v11438_v29 = vor.u32 %v13981_v22, %v11437_v21  ;;  %v14015_v21 = vld [vmem:[#allocation4 + $0x4a4] sm:$0xf]  ;;  %v11142_v22 = vor.u32 %v13906_v12, %v11141_v11 }
 0x257   :  { %3571 = vmatpush.bf16.msra.mxu3 %v11454_v8  ;;  %3612 = vmatpush.bf16.msrb.mxu2 %v11042_v14  ;;  %v11602_v8 = vor.u32 %v14019_v5, %v11599_v58  ;;  %v11231_v14 = vld [vmem:[#allocation4 + $0x1f0] sm:$0xf0] }
 0x258   :  { %3640 = vmatpush.bf16.msra.mxu0 %v11266_v32  ;;  %v11062_v32 = vor.u32 %v13886_v28, %v11061_v27  ;;  %v11125_v27 = vld [vmem:[#allocation4 + $0x108] sm:$0xf]  ;;  %v13902_v28 = vld [vmem:[#allocation4 + $0x114] sm:$0xf0]  ;;  %v11234_v19 = vor.u32 %v13927_v17, %v11231_v14  ;;  %v11183_v58 = vld [vmem:[#allocation4 + $0x190] sm:$0xf0] }
 0x259   :  { %3653 = vmatpush.bf16.msra.mxu1 %v11394_v40  ;;  %v11045_v40 = vld [vmem:[#allocation4 + $0x68] sm:$0xf]  ;;  %v13911_v14 = vld [vmem:[#allocation4 + $0x164] sm:$0xf] }
 0x25a   :  { %v11046_v53 = vor.u32 %v13882_v41, %v11045_v40  ;;  %v11126_v40 = vor.u32 %v13902_v28, %v11125_v27  ;;  %v14011_v41 = vld [vmem:[#allocation4 + $0x484] sm:$0xf]  ;;  %v14010_v28 = vld [vmem:[#allocation4 + $0x474] sm:$0xf0] }
 0x25b   :  { %3572 = vmatpush.bf16.msra.mxu3 %v11438_v29  ;;  %3613 = vmatpush.bf16.msrb.mxu2 %v11026_v35  ;;  %v11621_v29 = vld [vmem:[#allocation4 + $0x4e8] sm:$0xf] }
 0x25c   :  { %3641 = vmatpush.bf16.msra.mxu0 %v11250_v57  ;;  %v15752_v49 = vpop.f32.mrf.mxu0  ;;  %v10991_v57 = vld [vmem:[#allocation4 + $0x10] sm:$0xf0]  ;;  %v11749_v35 = vld [vmem:[#allocation4 + $0x5e8] sm:$0xf]  ;;  %v11622_v43 = vor.u32 %v14026_v34, %v11621_v29 }
 0x25d   :  { %3654 = vmatpush.bf16.msra.mxu1 %v11378_v60  ;;  %v11615_v60 = vld [vmem:[#allocation4 + $0x4f0] sm:$0xf0]  ;;  %v10994_v46 = vor.u32 %v13867_v55, %v10991_v57  ;;  %v11750_v44 = vor.u32 %v14058_v36, %v11749_v35  ;;  %v14054_v55 = vld [vmem:[#allocation4 + $0x5d4] sm:$0xf0]  ;;  %v11685_v29 = vld [vmem:[#allocation4 + $0x568] sm:$0xf] }
 0x25e   :  { %2361 = vmatmul.bf16.vlgmr.msrb.gmra.mxu3 %v15747_v54  ;;  %v11618_v2 = vor.u32 %v14023_v45, %v11615_v60  ;;  %v11013_v54 = vld [vmem:[#allocation4 + $0x28] sm:$0xf]  ;;  %v11199_v60 = vld [vmem:[#allocation4 + $0x1b0] sm:$0xf0]  ;;  %v13907_v36 = vld [vmem:[#allocation4 + $0x144] sm:$0xf] }
 0x25f   :  { %3642 = vmatmul.bf16.vlgmr.msra.gmra.mxu0 %v15373_v20  ;;  %3573 = vmatpush.bf16.msra.mxu3 %v11422_v42  ;;  %v11014_v16 = vor.u32 %v13874_v7, %v11013_v54  ;;  %v11567_v42 = vld [vmem:[#allocation4 + $0x490] sm:$0xf0]  ;;  %v14003_v7 = vld [vmem:[#allocation4 + $0x444] sm:$0xf] }
 0x260   :  { %3686 = vmatpush.bf16.msrb.mxu0 %v11110_v61  ;;  %3655 = vmatmul.bf16.vlgmr.msra.gmra.mxu1 %v15384_v31  ;;  %v11029_v61 = vld [vmem:[#allocation4 + $0x48] sm:$0xf]  ;;  %v11570_v45 = vor.u32 %v14011_v41, %v11567_v42 }
 0x261   :  { %3699 = vmatpush.bf16.msrb.mxu1 %v11238_v1  ;;  %v13910_v1 = vld [vmem:[#allocation4 + $0x154] sm:$0xf0]  ;;  %3614 = vmatpush.bf16.msrb.mxu2 %v11010_v50  ;;  %v11030_v3 = vor.u32 %v13878_v62, %v11029_v61  ;;  %v11605_v50 = vld [vmem:[#allocation4 + $0x4c8] sm:$0xf]  ;;  %v14007_v61 = vld [vmem:[#allocation4 + $0x464] sm:$0xf] }
 0x262   :  { %v11158_v6 = vor.u32 %v13910_v1, %v11157_v0  ;;  %v11551_v62 = vld [vmem:[#allocation4 + $0x470] sm:$0xf0]  ;;  %v11589_v1 = vld [vmem:[#allocation4 + $0x4a8] sm:$0xf] }
 0x263   :  { %3574 = vmatpush.bf16.msra.mxu3 %v11406_v63  ;;  %v11606_v63 = vor.u32 %v14022_v56, %v11605_v50  ;;  %v11554_v5 = vor.u32 %v14007_v61, %v11551_v62  ;;  %v11365_v42 = vld [vmem:[#allocation4 + $0x2e8] sm:$0xf] }
 0x264   :  { %3687 = vmatpush.bf16.msrb.mxu0 %v11094_v9  ;;  %v11390_v9 = vor.u32 %v13969_v48, %v11389_v47  ;;  %v14018_v47 = vld [vmem:[#allocation4 + $0x4b4] sm:$0xf0]  ;;  %v11717_v48 = vld [vmem:[#allocation4 + $0x5a8] sm:$0xf] }
 0x265   :  { %3700 = vmatpush.bf16.msrb.mxu1 %v11222_v13  ;;  %v2273_v13 = vpop.f32.mrf.mxu0  ;;  %3615 = vmatpush.bf16.msrb.mxu2 %v10994_v46  ;;  %v11590_v12 = vor.u32 %v14018_v47, %v11589_v1  ;;  %v11669_v56 = vld [vmem:[#allocation4 + $0x548] sm:$0xf]  ;;  %v14002_v47 = vld [vmem:[#allocation4 + $0x434] sm:$0xf0] }
 0x266   :  { %v11525_v1 = vld [vmem:[#allocation4 + $0x428] sm:$0xf] }
 0x267   :  { %3575 = vmatpush.bf16.msra.mxu3 %v11390_v9  ;;  %v11535_v9 = vld [vmem:[#allocation4 + $0x450] sm:$0xf0] }
 0x268   :  { %3688 = vmatpush.bf16.msrb.mxu0 %v11078_v23  ;;  %v11583_v23 = vld [vmem:[#allocation4 + $0x4b0] sm:$0xf0]  ;;  %3616 = vmatmul.bf16.vlgmr.msrb.gmra.mxu2 %v15357_v4  ;;  %v11538_v17 = vor.u32 %v14003_v7, %v11535_v9  ;;  %v14055_v7 = vld [vmem:[#allocation4 + $0x5e4] sm:$0xf] }
 0x269   :  { %3701 = vmatpush.bf16.msrb.mxu1 %v11206_v26  ;;  %3660 = vmatpush.bf16.msra.mxu2 %v11618_v2  ;;  %v11374_v26 = vor.u32 %v13965_v15, %v11373_v51  ;;  %v11586_v37 = vor.u32 %v14015_v21, %v11583_v23  ;;  %v14050_v2 = vld [vmem:[#allocation4 + $0x5b4] sm:$0xf0]  ;;  %v11573_v51 = vld [vmem:[#allocation4 + $0x488] sm:$0xf]  ;;  %v11167_v21 = vld [vmem:[#allocation4 + $0x170] sm:$0xf0] }
 0x26a   :  { %v11718_v13 = vor.u32 %v14050_v2, %v11717_v48  ;;  %v11519_v23 = vld [vmem:[#allocation4 + $0x430] sm:$0xf0]  ;;  %v11170_v27 = vor.u32 %v13911_v14, %v11167_v21  ;;  %v11653_v48 = vld [vmem:[#allocation4 + $0x528] sm:$0xf]  ;;  %v14034_v2 = vld [vmem:[#allocation4 + $0x534] sm:$0xf0] }
 0x26b   :  { %3576 = vmatpush.bf16.msra.mxu3 %v11374_v26  ;;  %v11557_v26 = vld [vmem:[#allocation4 + $0x468] sm:$0xf]  ;;  %v11743_v9 = vld [vmem:[#allocation4 + $0x5f0] sm:$0xf0]  ;;  %v14030_v21 = vld [vmem:[#allocation4 + $0x514] sm:$0xf0] }
 0x26c   :  { %3689 = vmatpush.bf16.msrb.mxu0 %v11062_v32  ;;  %v10998_v32 = vor.u32 %v13870_v25, %v10997_v24  ;;  %v2284_v54 = vpop.f32.mrf.mxu1  ;;  %v11637_v14 = vld [vmem:[#allocation4 + $0x508] sm:$0xf] }
 0x26d   :  { %3702 = vmatpush.bf16.msrb.mxu1 %v11190_v39  ;;  %3661 = vmatpush.bf16.msra.mxu2 %v11602_v8  ;;  %v15757_v39 = vld [vmem:[%s18146_s21] sm:$0x3]  ;;  %v14014_v8 = vld [vmem:[#allocation4 + $0x494] sm:$0xf0] }
 0x26e   :  { %v1938_v57 = vperm.slane %v15757_v39, 0  ;;  %3577 = vmatmul.bf16.vlgmr.msra.gmra.mxu3 %v15384_v31  ;;  %v11574_v24 = vor.u32 %v14014_v8, %v11573_v51  ;;  %v11654_v51 = vor.u32 %v14034_v2, %v11653_v48  ;;  %v13954_v8 = vld [vmem:[#allocation4 + $0x2b4] sm:$0xf0] }
 0x26f   :  { %3621 = vmatpush.bf16.msrb.mxu3 %v11234_v19  ;;  %v14042_v19 = vld [vmem:[#allocation4 + $0x574] sm:$0xf0] }
 0x270   :  { %3690 = vmatpush.bf16.msrb.mxu0 %v11046_v53  ;;  %v11733_v53 = vld [vmem:[#allocation4 + $0x5c8] sm:$0xf]  ;;  %v11686_v41 = vor.u32 %v14042_v19, %v11685_v29  ;;  %v11727_v29 = vld [vmem:[#allocation4 + $0x5d0] sm:$0xf0] }
 0x271   :  { %3703 = vmatpush.bf16.msrb.mxu1 %v11174_v59  ;;  %3662 = vmatpush.bf16.msra.mxu2 %v11586_v37  ;;  %v13919_v59 = vld [vmem:[#allocation4 + $0x1a4] sm:$0xf]  ;;  %v11734_v0 = vor.u32 %v14054_v55, %v11733_v53  ;;  %v11151_v37 = vld [vmem:[#allocation4 + $0x150] sm:$0xf0]  ;;  %v14038_v53 = vld [vmem:[#allocation4 + $0x554] sm:$0xf0] }
 0x272   :  { %v11202_v46 = vor.u32 %v13919_v59, %v11199_v60  ;;  %v11154_v50 = vor.u32 %v13907_v36, %v11151_v37  ;;  %v1939_v55 = vperm.slane %v15757_v39, 1  ;;  %v11135_v59 = vld [vmem:[#allocation4 + $0x130] sm:$0xf0]  ;;  %v11670_v62 = vor.u32 %v14038_v53, %v11669_v56  ;;  %v13899_v39 = vld [vmem:[#allocation4 + $0x104] sm:$0xf] }
 0x273   :  { %3622 = vmatpush.bf16.msrb.mxu3 %v11218_v52  ;;  %v14006_v52 = vld [vmem:[#allocation4 + $0x454] sm:$0xf0]  ;;  %v11638_v36 = vor.u32 %v14030_v21, %v11637_v14  ;;  %v11301_v56 = vld [vmem:[#allocation4 + $0x268] sm:$0xf]  ;;  %v13976_v14 = vld [vmem:[#allocation4 + $0x36c] sm:$0xf] }
 0x274   :  { %3691 = vmatpush.bf16.msrb.mxu0 %v11030_v3  ;;  %v2272_v3 = vadd.f32 %v15752_v49, %v1938_v57  ;;  %v11701_v49 = vld [vmem:[#allocation4 + $0x588] sm:$0xf]  ;;  %v11506_v57 = vor.u32 %v13995_v38, %v11503_v18  ;;  %v13956_v18 = vld [vmem:[#allocation4 + $0x2cc] sm:$0xf]  ;;  %v13946_v53 = vld [vmem:[#allocation4 + $0x274] sm:$0xf0] }
 0x275   :  { %3704 = vmatpush.bf16.msrb.mxu1 %v11158_v6  ;;  %3663 = vmatpush.bf16.msra.mxu2 %v11570_v45  ;;  %v13915_v6 = vld [vmem:[#allocation4 + $0x184] sm:$0xf] }
 0x276   :  { %v15764_v11 = vadd.f32 %v2284_v54, %v2272_v3  ;;  %v11186_v15 = vor.u32 %v13915_v6, %v11183_v58  ;;  %v13903_v45 = vld [vmem:[#allocation4 + $0x124] sm:$0xf]  ;;  %v11119_v6 = vld [vmem:[#allocation4 + $0x110] sm:$0xf0] }
 0x277   :  { %3623 = vmatpush.bf16.msrb.mxu3 %v11202_v46  ;;  %v11138_v46 = vor.u32 %v13903_v45, %v11135_v59  ;;  %v13952_v59 = vld [vmem:[#allocation4 + $0x2ac] sm:$0xf] }
 0x278   :  { %3692 = vmatpush.bf16.msrb.mxu0 %v11014_v16  ;;  %v14046_v16 = vld [vmem:[#allocation4 + $0x594] sm:$0xf0] }
 0x279   :  { %3705 = vmatpush.bf16.msrb.mxu1 %v11142_v22  ;;  %3664 = vmatpush.bf16.msra.mxu2 %v11554_v5  ;;  %v13999_v22 = vld [vmem:[#allocation4 + $0x424] sm:$0xf]  ;;  %v11702_v25 = vor.u32 %v14046_v16, %v11701_v49  ;;  %v11509_v49 = vld [vmem:[#allocation4 + $0x408] sm:$0xf]  ;;  %v11122_v16 = vor.u32 %v13899_v39, %v11119_v6  ;;  %v11319_v39 = vld [vmem:[#allocation4 + $0x298] sm:$0xf0] }
 0x27a   :  { %v11522_v35 = vor.u32 %v13999_v22, %v11519_v23  ;;  %v11746_v22 = vor.u32 %v14055_v7, %v11743_v9  ;;  %v13960_v23 = vld [vmem:[#allocation4 + $0x2ec] sm:$0xf]  ;;  %v14039_v7 = vld [vmem:[#allocation4 + $0x564] sm:$0xf]  ;;  %v11679_v9 = vld [vmem:[#allocation4 + $0x570] sm:$0xf0] }
 0x27b   :  { %3624 = vmatpush.bf16.msrb.mxu3 %v11186_v15  ;;  %v11333_v15 = vld [vmem:[#allocation4 + $0x2a8] sm:$0xf]  ;;  %v13980_v6 = vld [vmem:[#allocation4 + $0x38c] sm:$0xf] }
 0x27c   :  { %3693 = vmatpush.bf16.msrb.mxu0 %v10998_v32  ;;  %v2323_v34 = vpop.f32.mrf.mxu0  ;;  %v2286_v32 = vpop.f32.mrf.mxu1 }
 0x27d   :  { %3706 = vmatpush.bf16.msrb.mxu1 %v11126_v40  ;;  %3665 = vmatpush.bf16.msra.mxu2 %v11538_v17  ;;  %v11558_v40 = vor.u32 %v14010_v28, %v11557_v26  ;;  %v2324_v3 = vadd.f32 %v2323_v34, %v1939_v55  ;;  %v13998_v17 = vld [vmem:[#allocation4 + $0x414] sm:$0xf0]  ;;  %v11334_v26 = vor.u32 %v13954_v8, %v11333_v15  ;;  %v14051_v28 = vld [vmem:[#allocation4 + $0x5c4] sm:$0xf]  ;;  %v11317_v34 = vld [vmem:[#allocation4 + $0x288] sm:$0xf] }
 0x27e   :  { %v11510_v19 = vor.u32 %v13998_v17, %v11509_v49  ;;  %v11730_v38 = vor.u32 %v14051_v28, %v11727_v29  ;;  %v11682_v49 = vor.u32 %v14039_v7, %v11679_v9  ;;  %v11303_v17 = vld [vmem:[#allocation4 + $0x278] sm:$0xf0]  ;;  %v13896_v28 = vld [vmem:[#allocation4 + $0xec] sm:$0xf]  ;;  %v14186_v9 = vld [vmem:[#allocation6 + $0xf4] sm:$0xf0] }
 0x27f   :  { %3694 = vmatmul.bf16.vlgmr.msrb.gmra.mxu0 %v15357_v4  ;;  %3625 = vmatpush.bf16.msrb.mxu3 %v11170_v27  ;;  %v11495_v27 = vld [vmem:[#allocation4 + $0x3f8] sm:$0xf0] }
 0x280   :  { %3738 = vmatpush.bf16.msra.mxu0 %v11622_v43  ;;  %3707 = vmatmul.bf16.vlgmr.msrb.gmra.mxu1 %v15363_v10  ;;  %v13962_v43 = vld [vmem:[#allocation4 + $0x2f4] sm:$0xf0]  ;;  %v11111_v29 = vld [vmem:[#allocation4 + $0xf8] sm:$0xf0] }
 0x281   :  { %3751 = vmatpush.bf16.msra.mxu1 %v11750_v44  ;;  %v11541_v44 = vld [vmem:[#allocation4 + $0x448] sm:$0xf]  ;;  %3666 = vmatpush.bf16.msra.mxu2 %v11522_v35  ;;  %v11366_v60 = vor.u32 %v13962_v43, %v11365_v42  ;;  %v13950_v35 = vld [vmem:[#allocation4 + $0x294] sm:$0xf0] }
 0x282   :  { %v11542_v61 = vor.u32 %v14006_v52, %v11541_v44  ;;  %v11318_v43 = vor.u32 %v13950_v35, %v11317_v34  ;;  %v11479_v44 = vld [vmem:[#allocation4 + $0x3d8] sm:$0xf0]  ;;  %v11711_v52 = vld [vmem:[#allocation4 + $0x5b0] sm:$0xf0]  ;;  %v13940_v35 = vld [vmem:[#allocation4 + $0x24c] sm:$0xf] }
 0x283   :  { %3626 = vmatpush.bf16.msrb.mxu3 %v11154_v50  ;;  %v14047_v50 = vld [vmem:[#allocation4 + $0x5a4] sm:$0xf] }
 0x284   :  { %3739 = vmatpush.bf16.msra.mxu0 %v11606_v63  ;;  %v11349_v63 = vld [vmem:[#allocation4 + $0x2c8] sm:$0xf]  ;;  %v2325_v5 = vpop.f32.mrf.mxu0  ;;  %v2336_v58 = vpop.f32.mrf.mxu1  ;;  %v11714_v45 = vor.u32 %v14047_v50, %v11711_v52 }
 0x285   :  { %3752 = vmatpush.bf16.msra.mxu1 %v11734_v0  ;;  %v13958_v0 = vld [vmem:[#allocation4 + $0x2d4] sm:$0xf0]  ;;  %3667 = vmatpush.bf16.msra.mxu2 %v11506_v57  ;;  %v13948_v5 = vld [vmem:[#allocation4 + $0x28c] sm:$0xf] }
 0x286   :  { %v11350_v54 = vor.u32 %v13958_v0, %v11349_v63  ;;  %v11463_v63 = vld [vmem:[#allocation4 + $0x3b8] sm:$0xf0]  ;;  %v14043_v0 = vld [vmem:[#allocation4 + $0x584] sm:$0xf]  ;;  %v11322_v15 = vor.u32 %v13948_v5, %v11319_v39 }
 0x287   :  { %3627 = vmatpush.bf16.msrb.mxu3 %v11138_v46  ;;  %v11285_v46 = vld [vmem:[#allocation4 + $0x248] sm:$0xf]  ;;  %v11383_v5 = vld [vmem:[#allocation4 + $0x318] sm:$0xf0] }
 0x288   :  { %3740 = vmatpush.bf16.msra.mxu0 %v11590_v12  ;;  %v15767_v12 = vadd.f32 %v2336_v58, %v2324_v3  ;;  %3668 = vmatmul.bf16.vlgmr.msra.gmra.mxu2 %v15427_v30 }
 0x289   :  { %3753 = vmatpush.bf16.msra.mxu1 %v11718_v13  ;;  %3712 = vmatpush.bf16.msrb.mxu2 %v11366_v60  ;;  %v11526_v13 = vor.u32 %v14002_v47, %v11525_v1  ;;  %v11335_v60 = vld [vmem:[#allocation4 + $0x2b8] sm:$0xf0]  ;;  %v11695_v1 = vld [vmem:[#allocation4 + $0x590] sm:$0xf0]  ;;  %v13942_v47 = vld [vmem:[#allocation4 + $0x254] sm:$0xf0] }
 0x28a   :  { %v11338_v48 = vor.u32 %v13952_v59, %v11335_v60  ;;  %v11698_v3 = vor.u32 %v14043_v0, %v11695_v1  ;;  %v11286_v58 = vor.u32 %v13942_v47, %v11285_v46  ;;  %v11631_v59 = vld [vmem:[#allocation4 + $0x510] sm:$0xf0]  ;;  %v13888_v0 = vld [vmem:[#allocation4 + $0xac] sm:$0xf]  ;;  %v11079_v1 = vld [vmem:[#allocation4 + $0xb8] sm:$0xf0] }
 0x28b   :  { %3628 = vmatpush.bf16.msrb.mxu3 %v11122_v16  ;;  %v13944_v16 = vld [vmem:[#allocation4 + $0x26c] sm:$0xf]  ;;  %v11082_v7 = vor.u32 %v13888_v0, %v11079_v1  ;;  %v11429_v0 = vld [vmem:[#allocation4 + $0x368] sm:$0xf]  ;;  %v13978_v1 = vld [vmem:[#allocation4 + $0x374] sm:$0xf0] }
 0x28c   :  { %3741 = vmatpush.bf16.msra.mxu0 %v11574_v24  ;;  %v11367_v24 = vld [vmem:[#allocation4 + $0x2f8] sm:$0xf0]  ;;  %v2338_v42 = vpop.f32.mrf.mxu1  ;;  %v13932_v46 = vld [vmem:[#allocation4 + $0x20c] sm:$0xf] }
 0x28d   :  { %3754 = vmatpush.bf16.msra.mxu1 %v11702_v25  ;;  %v13992_v25 = vld [vmem:[#allocation4 + $0x3ec] sm:$0xf]  ;;  %3713 = vmatpush.bf16.msrb.mxu2 %v11350_v54  ;;  %v11370_v37 = vor.u32 %v13960_v23, %v11367_v24  ;;  %v11447_v54 = vld [vmem:[#allocation4 + $0x398] sm:$0xf0]  ;;  %v14035_v23 = vld [vmem:[#allocation4 + $0x544] sm:$0xf] }
 0x28e   :  { %v11498_v32 = vor.u32 %v13992_v25, %v11495_v27  ;;  %3629 = vmatmul.bf16.vlgmr.msrb.gmra.mxu3 %v15363_v10  ;;  %v11450_v8 = vor.u32 %v13980_v6, %v11447_v54  ;;  %v11663_v24 = vld [vmem:[#allocation4 + $0x550] sm:$0xf0]  ;;  %v11253_v25 = vld [vmem:[#allocation4 + $0x208] sm:$0xf]  ;;  %v11306_v27 = vor.u32 %v13944_v16, %v11303_v17  ;;  %v11813_v6 = vld [vmem:[#allocation6 + $0x70] sm:$0xf] }
 0x28f   :  { %3673 = vmatpush.bf16.msra.mxu3 %v11746_v22  ;;  %v11431_v22 = vld [vmem:[#allocation4 + $0x378] sm:$0xf0]  ;;  %v11666_v34 = vor.u32 %v14035_v23, %v11663_v24  ;;  %v11877_v54 = vld [vmem:[#allocation6 + $0xf0] sm:$0xf]  ;;  %v14168_v23 = vld [vmem:[#allocation6 + $0x64] sm:$0xf0] }
 0x290   :  { %3742 = vmatpush.bf16.msra.mxu0 %v11558_v40  ;;  %v11351_v40 = vld [vmem:[#allocation4 + $0x2d8] sm:$0xf0]  ;;  %v11869_v24 = vld [vmem:[#allocation6 + $0xe0] sm:$0xf] }
 0x291   :  { %3755 = vmatpush.bf16.msra.mxu1 %v11686_v41  ;;  %v13988_v41 = vld [vmem:[#allocation4 + $0x3cc] sm:$0xf]  ;;  %3714 = vmatpush.bf16.msrb.mxu2 %v11334_v26  ;;  %v11354_v55 = vor.u32 %v13956_v18, %v11351_v40  ;;  %v13934_v26 = vld [vmem:[#allocation4 + $0x214] sm:$0xf0]  ;;  %v14031_v18 = vld [vmem:[#allocation4 + $0x524] sm:$0xf] }
 0x292   :  { %v11482_v57 = vor.u32 %v13988_v41, %v11479_v44  ;;  %v11647_v40 = vld [vmem:[#allocation4 + $0x530] sm:$0xf0]  ;;  %v11114_v41 = vor.u32 %v13896_v28, %v11111_v29  ;;  %v11095_v44 = vld [vmem:[#allocation4 + $0xd8] sm:$0xf0]  ;;  %v13986_v28 = vld [vmem:[#allocation4 + $0x3b4] sm:$0xf0] }
 0x293   :  { %3674 = vmatpush.bf16.msra.mxu3 %v11730_v38  ;;  %v11415_v38 = vld [vmem:[#allocation4 + $0x358] sm:$0xf0]  ;;  %v11650_v52 = vor.u32 %v14031_v18, %v11647_v40  ;;  %v13880_v29 = vld [vmem:[#allocation4 + $0x6c] sm:$0xf]  ;;  %v14182_v40 = vld [vmem:[#allocation6 + $0xd4] sm:$0xf0] }
 0x294   :  { %3743 = vmatpush.bf16.msra.mxu0 %v11542_v61  ;;  %v13984_v61 = vld [vmem:[#allocation4 + $0x3ac] sm:$0xf] }
 0x295   :  { %3756 = vmatpush.bf16.msra.mxu1 %v11670_v62  ;;  %3715 = vmatpush.bf16.msrb.mxu2 %v11318_v43  ;;  %v11302_v62 = vor.u32 %v13946_v53, %v11301_v56  ;;  %v11466_v2 = vor.u32 %v13984_v61, %v11463_v63  ;;  %v13892_v43 = vld [vmem:[#allocation4 + $0xcc] sm:$0xf]  ;;  %v11271_v53 = vld [vmem:[#allocation4 + $0x238] sm:$0xf0]  ;;  %v11493_v61 = vld [vmem:[#allocation4 + $0x3e8] sm:$0xf] }
 0x296   :  { %v13936_v56 = vld [vmem:[#allocation4 + $0x22c] sm:$0xf]  ;;  %v11098_v60 = vor.u32 %v13892_v43, %v11095_v44 }
 0x297   :  { %3675 = vmatpush.bf16.msra.mxu3 %v11714_v45  ;;  %v14027_v45 = vld [vmem:[#allocation4 + $0x504] sm:$0xf]  ;;  %v11274_v63 = vor.u32 %v13936_v56, %v11271_v53  ;;  %v13876_v44 = vld [vmem:[#allocation4 + $0x4c] sm:$0xf] }
 0x298   :  { %3744 = vmatpush.bf16.msra.mxu0 %v11526_v13  ;;  %v11269_v13 = vld [vmem:[#allocation4 + $0x228] sm:$0xf] }
 0x299   :  { %3757 = vmatpush.bf16.msra.mxu1 %v11654_v51  ;;  %3716 = vmatpush.bf16.msrb.mxu2 %v11302_v62  ;;  %v13938_v51 = vld [vmem:[#allocation4 + $0x234] sm:$0xf0] }
 0x29a   :  { %v11270_v21 = vor.u32 %v13938_v51, %v11269_v13  ;;  %v13994_v62 = vld [vmem:[#allocation4 + $0x3f4] sm:$0xf0]  ;;  %v11477_v13 = vld [vmem:[#allocation4 + $0x3c8] sm:$0xf] }
 0x29b   :  { %3676 = vmatpush.bf16.msra.mxu3 %v11698_v3  ;;  %v13964_v3 = vld [vmem:[#allocation4 + $0x30c] sm:$0xf]  ;;  %v11494_v39 = vor.u32 %v13994_v62, %v11493_v61  ;;  %v13990_v51 = vld [vmem:[#allocation4 + $0x3d4] sm:$0xf0]  ;;  %v11853_v61 = vld [vmem:[#allocation6 + $0xc0] sm:$0xf] }
 0x29c   :  { %3745 = vmatpush.bf16.msra.mxu0 %v11510_v19  ;;  %v11434_v19 = vor.u32 %v13976_v14, %v11431_v22  ;;  %v11386_v16 = vor.u32 %v13964_v3, %v11383_v5  ;;  %v11878_v14 = vor.u32 %v14186_v9, %v11877_v54  ;;  %v11805_v22 = vld [vmem:[#allocation6 + $0x60] sm:$0xf]  ;;  %v3539_v43 = vpop.f32.mrf.mxu0  ;;  %v14180_v62 = vld [vmem:[#allocation6 + $0xc4] sm:$0xf0]  ;;  %v11781_v5 = vld [vmem:[#allocation6 + $0x30] sm:$0xf] }
 0x29d   :  { %3758 = vmatpush.bf16.msra.mxu1 %v11638_v36  ;;  %3717 = vmatpush.bf16.msrb.mxu2 %v11286_v58  ;;  %v11287_v36 = vld [vmem:[#allocation4 + $0x258] sm:$0xf0]  ;;  %v14170_v58 = vld [vmem:[#allocation6 + $0x74] sm:$0xf0]  ;;  %v11854_v3 = vor.u32 %v14180_v62, %v11853_v61  ;;  %v11757_v62 = vld [vmem:[#allocation6] sm:$0xf] }
 0x29e   :  { %v11290_v42 = vor.u32 %v13940_v35, %v11287_v36  ;;  %v11814_v17 = vor.u32 %v14170_v58, %v11813_v6  ;;  %v11845_v6 = vld [vmem:[#allocation6 + $0xb0] sm:$0xf]  ;;  %v14178_v54 = vld [vmem:[#allocation6 + $0xb4] sm:$0xf0]  ;;  %v11591_v61 = vld [vmem:[#allocation4 + $0x4b8] sm:$0xf0] }
 0x29f   :  { %3746 = vmatmul.bf16.vlgmr.msra.gmra.mxu0 %v15427_v30  ;;  %3677 = vmatpush.bf16.msra.mxu3 %v11682_v49  ;;  %v11063_v49 = vld [vmem:[#allocation4 + $0x98] sm:$0xf0]  ;;  %v13974_v9 = vld [vmem:[#allocation4 + $0x354] sm:$0xf0] }
 0x2a0   :  { %3790 = vmatpush.bf16.msrb.mxu0 %v11370_v37  ;;  %3759 = vmatmul.bf16.vlgmr.msra.gmra.mxu1 %v15429_v33  ;;  %v13972_v37 = vld [vmem:[#allocation4 + $0x34c] sm:$0xf] }
 0x2a1   :  { %3803 = vmatpush.bf16.msrb.mxu1 %v11498_v32  ;;  %3718 = vmatpush.bf16.msrb.mxu2 %v11270_v21  ;;  %v11254_v32 = vor.u32 %v13934_v26, %v11253_v25  ;;  %v11418_v50 = vor.u32 %v13972_v37, %v11415_v38  ;;  %v11478_v21 = vor.u32 %v13990_v51, %v11477_v13  ;;  %v14184_v26 = vld [vmem:[#allocation6 + $0xe4] sm:$0xf0]  ;;  %v11797_v37 = vld [vmem:[#allocation6 + $0x50] sm:$0xf] }
 0x2a2   :  { %v11870_v35 = vor.u32 %v14184_v26, %v11869_v24  ;;  %v11861_v38 = vld [vmem:[#allocation6 + $0xd0] sm:$0xf]  ;;  %v14160_v24 = vld [vmem:[#allocation6 + $0x24] sm:$0xf0]  ;;  %v3552_v26 = vpop.f32.mrf.mxu1 }
 0x2a3   :  { %3678 = vmatpush.bf16.msra.mxu3 %v11666_v34  ;;  %v11806_v34 = vor.u32 %v14168_v23, %v11805_v22  ;;  %v11773_v23 = vld [vmem:[#allocation6 + $0x20] sm:$0xf] }
 0x2a4   :  { %3791 = vmatpush.bf16.msrb.mxu0 %v11354_v55  ;;  %v13968_v55 = vld [vmem:[#allocation4 + $0x32c] sm:$0xf]  ;;  %v3541_v51 = vpop.f32.mrf.mxu0 }
 0x2a5   :  { %3804 = vmatpush.bf16.msrb.mxu1 %v11482_v57  ;;  %3719 = vmatpush.bf16.msrb.mxu2 %v11254_v32  ;;  %v11399_v57 = vld [vmem:[#allocation4 + $0x338] sm:$0xf0]  ;;  %v14166_v32 = vld [vmem:[#allocation6 + $0x54] sm:$0xf0] }
 0x2a6   :  { %v11402_v47 = vor.u32 %v13968_v55, %v11399_v57  ;;  %v11798_v53 = vor.u32 %v14166_v32, %v11797_v37  ;;  %v11789_v55 = vld [vmem:[#allocation6 + $0x40] sm:$0xf]  ;;  %v14020_v37 = vld [vmem:[#allocation4 + $0x4cc] sm:$0xf]  ;;  %v11607_v32 = vld [vmem:[#allocation4 + $0x4d8] sm:$0xf0] }
 0x2a7   :  { %3679 = vmatpush.bf16.msra.mxu3 %v11650_v52  ;;  %v15778_v52 = vld [vmem:[%s18147_s1] sm:$0xf] }
 0x2a8   :  { %3792 = vmatpush.bf16.msrb.mxu0 %v11338_v48  ;;  %v11634_v48 = vor.u32 %v14027_v45, %v11631_v59  ;;  %3720 = vmatmul.bf16.vlgmr.msrb.gmra.mxu2 %v15373_v20  ;;  %v11862_v45 = vor.u32 %v14182_v40, %v11861_v38  ;;  %v11765_v40 = vld [vmem:[#allocation6 + $0x10] sm:$0xf] }
 0x2a9   :  { %3805 = vmatpush.bf16.msrb.mxu1 %v11466_v2  ;;  %3764 = vmatpush.bf16.msra.mxu2 %v11114_v41  ;;  %v11255_v2 = vld [vmem:[#allocation4 + $0x218] sm:$0xf0]  ;;  %v11445_v41 = vld [vmem:[#allocation4 + $0x388] sm:$0xf]  ;;  %v2297_v56 = vpop.f32.mrf.mxu2 }
 0x2aa   :  { %v15781_v57 = vadd.f32 %v2297_v56, %v15764_v11  ;;  %v11430_v11 = vor.u32 %v13978_v1, %v11429_v0  ;;  %v11610_v56 = vor.u32 %v14020_v37, %v11607_v32 }
 0x2ab   :  { %3680 = vmatpush.bf16.msra.mxu3 %v11634_v48  ;;  %v11015_v48 = vld [vmem:[#allocation4 + $0x38] sm:$0xf0] }
 0x2ac   :  { %3793 = vmatpush.bf16.msrb.mxu0 %v11322_v15  ;;  %v11258_v15 = vor.u32 %v13932_v46, %v11255_v2  ;;  %v2562_v46 = vperm.slane %v15778_v52, 0 }
 0x2ad   :  { %3806 = vmatpush.bf16.msrb.mxu1 %v11450_v8  ;;  %3765 = vmatpush.bf16.msra.mxu2 %v11098_v60  ;;  %v13884_v8 = vld [vmem:[#allocation4 + $0x8c] sm:$0xf]  ;;  %v14164_v60 = vld [vmem:[#allocation6 + $0x44] sm:$0xf0] }
 0x2ae   :  { %v11066_v25 = vor.u32 %v13884_v8, %v11063_v49  ;;  %3681 = vmatmul.bf16.vlgmr.msra.gmra.mxu3 %v15429_v33  ;;  %v11790_v2 = vor.u32 %v14164_v60, %v11789_v55  ;;  %v3540_v13 = vadd.f32 %v3539_v43, %v2562_v46  ;;  %v10999_v8 = vld [vmem:[#allocation4 + $0x18] sm:$0xf0]  ;;  %v14174_v43 = vld [vmem:[#allocation6 + $0x94] sm:$0xf0]  ;;  %v14016_v60 = vld [vmem:[#allocation4 + $0x4ac] sm:$0xf] }
 0x2af   :  { %3725 = vmatpush.bf16.msrb.mxu3 %v11494_v39  ;;  %v14162_v39 = vld [vmem:[#allocation6 + $0x34] sm:$0xf0]  ;;  %v11239_v55 = vld [vmem:[#allocation4 + $0x1f8] sm:$0xf0]  ;;  %v14156_v46 = vld [vmem:[#allocation6 + $0x4] sm:$0xf0] }
 0x2b0   :  { %3794 = vmatpush.bf16.msrb.mxu0 %v11306_v27  ;;  %v11461_v27 = vld [vmem:[#allocation4 + $0x3a8] sm:$0xf] }
 0x2b1   :  { %3807 = vmatpush.bf16.msrb.mxu1 %v11434_v19  ;;  %3766 = vmatpush.bf16.msra.mxu2 %v11082_v7  ;;  %v11047_v19 = vld [vmem:[#allocation4 + $0x78] sm:$0xf0]  ;;  %v11462_v36 = vor.u32 %v13986_v28, %v11461_v27  ;;  %v11413_v7 = vld [vmem:[#allocation4 + $0x348] sm:$0xf]  ;;  %v2299_v49 = vpop.f32.mrf.mxu2 }
 0x2b2   :  { %v11050_v18 = vor.u32 %v13880_v29, %v11047_v19  ;;  %v11414_v22 = vor.u32 %v13974_v9, %v11413_v7  ;;  %v14176_v28 = vld [vmem:[#allocation6 + $0xa4] sm:$0xf0]  ;;  %v13970_v19 = vld [vmem:[#allocation4 + $0x334] sm:$0xf0]  ;;  %v11758_v7 = vor.u32 %v14156_v46, %v11757_v62  ;;  %v14012_v9 = vld [vmem:[#allocation4 + $0x48c] sm:$0xf] }
 0x2b3   :  { %3726 = vmatpush.bf16.msrb.mxu3 %v11478_v21  ;;  %v11846_v21 = vor.u32 %v14178_v54, %v11845_v6  ;;  %v11397_v29 = vld [vmem:[#allocation4 + $0x328] sm:$0xf]  ;;  %v11594_v6 = vor.u32 %v14016_v60, %v11591_v61  ;;  %v13924_v54 = vld [vmem:[#allocation4 + $0x1cc] sm:$0xf]  ;;  %v12045_v60 = vld [vmem:[#allocation6 + $0x240] sm:$0xf] }
 0x2b4   :  { %3795 = vmatpush.bf16.msrb.mxu0 %v11290_v42  ;;  %v13982_v42 = vld [vmem:[#allocation4 + $0x394] sm:$0xf0]  ;;  %v379_v49 = vld [vmem:[%s18148_s28 + $0x8] sm:$0xff]  ;;  %v12109_v62 = vld [vmem:[#allocation6 + $0x2c0] sm:$0xf] }
 0x2b5   :  { %3808 = vmatpush.bf16.msrb.mxu1 %v11418_v50  ;;  %3767 = vmatpush.bf16.msra.mxu2 %v11066_v25  ;;  %v11031_v50 = vld [vmem:[#allocation4 + $0x58] sm:$0xf0]  ;;  %v11446_v59 = vor.u32 %v13982_v42, %v11445_v41  ;;  %v11837_v25 = vld [vmem:[#allocation6 + $0xa0] sm:$0xf]  ;;  %v14158_v41 = vld [vmem:[#allocation6 + $0x14] sm:$0xf0] }
 0x2b6   :  { %v11838_v38 = vor.u32 %v14176_v28, %v11837_v25  ;;  %v11829_v42 = vld [vmem:[#allocation6 + $0x90] sm:$0xf]  ;;  %v13920_v25 = vld [vmem:[#allocation4 + $0x1ac] sm:$0xf]  ;;  %v14228_v61 = vld [vmem:[#allocation6 + $0x244] sm:$0xf0] }
 0x2b7   :  { %3727 = vmatpush.bf16.msrb.mxu3 %v11462_v36  ;;  %v11774_v36 = vor.u32 %v14160_v24, %v11773_v23  ;;  %v11830_v0 = vor.u32 %v14174_v43, %v11829_v42  ;;  %v14248_v24 = vld [vmem:[#allocation6 + $0x2e4] sm:$0xf0]  ;;  %v14246_v42 = vld [vmem:[#allocation6 + $0x2d4] sm:$0xf0]  ;;  %v13916_v43 = vld [vmem:[#allocation4 + $0x18c] sm:$0xf] }
 0x2b8   :  { %3796 = vmatpush.bf16.msrb.mxu0 %v11274_v63  ;;  %v11034_v63 = vor.u32 %v13876_v44, %v11031_v50  ;;  %v11381_v44 = vld [vmem:[#allocation4 + $0x308] sm:$0xf]  ;;  %v13966_v50 = vld [vmem:[#allocation4 + $0x314] sm:$0xf0]  ;;  %v13912_v46 = vld [vmem:[#allocation4 + $0x16c] sm:$0xf] }
 0x2b9   :  { %3809 = vmatpush.bf16.msrb.mxu1 %v11402_v47  ;;  %3768 = vmatpush.bf16.msra.mxu2 %v11050_v18  ;;  %v13872_v47 = vld [vmem:[#allocation4 + $0x2c] sm:$0xf]  ;;  %v11398_v18 = vor.u32 %v13970_v19, %v11397_v29  ;;  %v11382_v1 = vor.u32 %v13966_v50, %v11381_v44  ;;  %v11559_v19 = vld [vmem:[#allocation4 + $0x478] sm:$0xf0] }
 0x2ba   :  { %v11018_v58 = vor.u32 %v13872_v47, %v11015_v48  ;;  %v11821_v47 = vld [vmem:[#allocation6 + $0x80] sm:$0xf]  ;;  %v14172_v48 = vld [vmem:[#allocation6 + $0x84] sm:$0xf0]  ;;  %v14008_v29 = vld [vmem:[#allocation4 + $0x46c] sm:$0xf] }
 0x2bb   :  { %3728 = vmatpush.bf16.msrb.mxu3 %v11446_v59  ;;  %v11766_v59 = vor.u32 %v14158_v41, %v11765_v40  ;;  %v11822_v51 = vor.u32 %v14172_v48, %v11821_v47  ;;  %v12117_v40 = vld [vmem:[#allocation6 + $0x2d0] sm:$0xf]  ;;  %v11562_v41 = vor.u32 %v14008_v29, %v11559_v19  ;;  %v11191_v44 = vld [vmem:[#allocation4 + $0x198] sm:$0xf0]  ;;  %v14000_v48 = vld [vmem:[#allocation4 + $0x42c] sm:$0xf] }
 0x2bc   :  { %3797 = vmatpush.bf16.msrb.mxu0 %v11258_v15  ;;  %v13868_v15 = vld [vmem:[#allocation4 + $0xc] sm:$0xf]  ;;  %v15798_v50 = vpop.f32.mrf.mxu0  ;;  %v11175_v47 = vld [vmem:[#allocation4 + $0x178] sm:$0xf0]  ;;  %v14240_v29 = vld [vmem:[#allocation6 + $0x2a4] sm:$0xf0] }
 0x2bd   :  { %3810 = vmatpush.bf16.msrb.mxu1 %v11386_v16  ;;  %3769 = vmatpush.bf16.msra.mxu2 %v11034_v63  ;;  %v11782_v16 = vor.u32 %v14162_v39, %v11781_v5  ;;  %v11002_v27 = vor.u32 %v13868_v15, %v10999_v8  ;;  %v14234_v5 = vld [vmem:[#allocation6 + $0x274] sm:$0xf0]  ;;  %v12133_v39 = vld [vmem:[#allocation6 + $0x2f0] sm:$0xf]  ;;  %v378_v8 = vld [vmem:[%s18148_s28] sm:$0xff] }
 0x2be   :  { %v13904_v19 = vld [vmem:[#allocation4 + $0x12c] sm:$0xf] }
 0x2bf   :  { %3798 = vmatmul.bf16.vlgmr.msrb.gmra.mxu0 %v15373_v20  ;;  %3729 = vmatpush.bf16.msrb.mxu3 %v11430_v11  ;;  %v12069_v11 = vld [vmem:[#allocation6 + $0x270] sm:$0xf] }
 0x2c0   :  { %4524 = vmatpush.bf16.msra.mxu0 %v11814_v17  ;;  %3811 = vmatmul.bf16.vlgmr.msrb.gmra.mxu1 %v15384_v31  ;;  %v14024_v17 = vld [vmem:[#allocation4 + $0x4ec] sm:$0xf]  ;;  %v12070_v15 = vor.u32 %v14234_v5, %v12069_v11  ;;  %v12046_v11 = vor.u32 %v14228_v61, %v12045_v60 }
 0x2c1   :  { %4537 = vmatpush.bf16.msra.mxu1 %v11878_v14  ;;  %v11623_v14 = vld [vmem:[#allocation4 + $0x4f8] sm:$0xf0]  ;;  %3770 = vmatpush.bf16.msra.mxu2 %v11018_v58  ;;  %v14250_v58 = vld [vmem:[#allocation6 + $0x2f4] sm:$0xf0]  ;;  %v14056_v61 = vld [vmem:[#allocation4 + $0x5ec] sm:$0xf] }
 0x2c3   :  { %3730 = vmatpush.bf16.msrb.mxu3 %v11414_v22  ;;  %v12125_v22 = vld [vmem:[#allocation6 + $0x2e0] sm:$0xf] }
 0x2c4   :  { %4525 = vmatpush.bf16.msra.mxu0 %v11806_v34  ;;  %v15784_v34 = vadd.f32 %v3552_v26, %v3540_v13  ;;  %v11575_v13 = vld [vmem:[#allocation4 + $0x498] sm:$0xf0]  ;;  %v12126_v37 = vor.u32 %v14248_v24, %v12125_v22  ;;  %v12029_v24 = vld [vmem:[#allocation6 + $0x220] sm:$0xf] }
 0x2c5   :  { %4538 = vmatpush.bf16.msra.mxu1 %v11870_v35  ;;  %v11626_v35 = vor.u32 %v14024_v17, %v11623_v14  ;;  %3771 = vmatpush.bf16.msra.mxu2 %v11002_v27  ;;  %v12061_v14 = vld [vmem:[#allocation6 + $0x260] sm:$0xf]  ;;  %v11578_v23 = vor.u32 %v14012_v9, %v11575_v13  ;;  %v11207_v26 = vld [vmem:[#allocation4 + $0x1b8] sm:$0xf0]  ;;  %v15792_v27 = vpack.c.bf16 %v378_v8, %v378_v8  ;;  %v14242_v9 = vld [vmem:[#allocation6 + $0x2b4] sm:$0xf0] }
 0x2c6   :  { %v11210_v32 = vor.u32 %v13920_v25, %v11207_v26  ;;  %v13908_v13 = vld [vmem:[#allocation4 + $0x14c] sm:$0xf]  ;;  %v14224_v25 = vld [vmem:[#allocation6 + $0x224] sm:$0xf0]  ;;  %v12093_v26 = vld [vmem:[#allocation6 + $0x2a0] sm:$0xf] }
 0x2c7   :  { %3731 = vmatpush.bf16.msrb.mxu3 %v11398_v18  ;;  %v14230_v18 = vld [vmem:[#allocation6 + $0x254] sm:$0xf0] }
 0x2c8   :  { %4526 = vmatpush.bf16.msra.mxu0 %v11798_v53  ;;  %v13928_v53 = vld [vmem:[#allocation4 + $0x1ec] sm:$0xf]  ;;  %3772 = vmatmul.bf16.vlgmr.msra.gmra.mxu2 %v15357_v4 }
 0x2c9   :  { %4539 = vmatpush.bf16.msra.mxu1 %v11862_v45  ;;  %3816 = vmatpush.bf16.msrb.mxu2 %v11626_v35  ;;  %v2349_v45 = vpop.f32.mrf.mxu2  ;;  %v15795_v35 = vpack.c.bf16 %v379_v49, %v379_v49  ;;  %v13996_v49 = vld [vmem:[#allocation4 + $0x40c] sm:$0xf] }
 0x2ca   :  { %v15787_v63 = vadd.f32 %v2349_v45, %v15767_v12  ;;  %v11223_v12 = vld [vmem:[#allocation4 + $0x1d8] sm:$0xf0]  ;;  %v12118_v45 = vor.u32 %v14246_v42, %v12117_v40  ;;  %v14200_v40 = vld [vmem:[#allocation6 + $0x164] sm:$0xf0] }
 0x2cb   :  { %3732 = vmatpush.bf16.msrb.mxu3 %v11382_v1  ;;  %v11226_v17 = vor.u32 %v13924_v54, %v11223_v12  ;;  %v14244_v1 = vld [vmem:[#allocation6 + $0x2c4] sm:$0xf0]  ;;  %v14226_v54 = vld [vmem:[#allocation6 + $0x234] sm:$0xf0]  ;;  %v12101_v12 = vld [vmem:[#allocation6 + $0x2b0] sm:$0xf] }
 0x2cc   :  { %4527 = vmatpush.bf16.msra.mxu0 %v11790_v2  ;;  %v3554_v2 = vpop.f32.mrf.mxu1  ;;  %v12102_v22 = vor.u32 %v14242_v9, %v12101_v12  ;;  %v14217_v12 = vld [vmem:[#allocation6 + $0x1f4] sm:$0xf] }
 0x2cd   :  { %4540 = vmatpush.bf16.msra.mxu1 %v11854_v3  ;;  %v11242_v3 = vor.u32 %v13928_v53, %v11239_v55  ;;  %3817 = vmatpush.bf16.msrb.mxu2 %v11610_v56  ;;  %v14004_v56 = vld [vmem:[#allocation4 + $0x44c] sm:$0xf]  ;;  %v11543_v53 = vld [vmem:[#allocation4 + $0x458] sm:$0xf0] }
 0x2ce   :  { %3733 = vmatmul.bf16.vlgmr.msrb.gmra.mxu3 %v15384_v31  ;;  %v11527_v2 = vld [vmem:[#allocation4 + $0x438] sm:$0xf0] }
 0x2cf   :  { %3777 = vmatpush.bf16.msra.mxu3 %v11242_v3 }
 0x2d0   :  { %4528 = vmatpush.bf16.msra.mxu0 %v11782_v16  ;;  %v12134_v16 = vor.u32 %v14250_v58, %v12133_v39  ;;  %v12110_v39 = vor.u32 %v14244_v1, %v12109_v62  ;;  %v12037_v58 = vld [vmem:[#allocation6 + $0x230] sm:$0xf]  ;;  %v11751_v62 = vld [vmem:[#allocation4 + $0x5f8] sm:$0xf0] }
 0x2d1   :  { %4541 = vmatpush.bf16.msra.mxu1 %v11846_v21  ;;  %v14232_v21 = vld [vmem:[#allocation6 + $0x264] sm:$0xf0]  ;;  %3818 = vmatpush.bf16.msrb.mxu2 %v11594_v6  ;;  %v2351_v28 = vpop.f32.mrf.mxu2  ;;  %v11178_v6 = vor.u32 %v13912_v46, %v11175_v47  ;;  %v2310_v8 = vpop.f32.mrf.mxu3  ;;  %v11925_v1 = vld [vmem:[#allocation6 + $0x150] sm:$0xf]  ;;  %v14198_v46 = vld [vmem:[#allocation6 + $0x154] sm:$0xf0] }
 0x2d2   :  { %v12013_v47 = vld [vmem:[#allocation6 + $0x200] sm:$0xf]  ;;  %v11926_v9 = vor.u32 %v14198_v46, %v11925_v1 }
 0x2d3   :  { %3778 = vmatpush.bf16.msra.mxu3 %v11226_v17  ;;  %v15805_v17 = vadd.f32 %v2310_v8, %v15781_v57  ;;  %v11901_v46 = vld [vmem:[#allocation6 + $0x120] sm:$0xf] }
 0x2d4   :  { %4529 = vmatpush.bf16.msra.mxu0 %v11774_v36  ;;  %v12062_v36 = vor.u32 %v14232_v21, %v12061_v14  ;;  %v11941_v14 = vld [vmem:[#allocation6 + $0x170] sm:$0xf]  ;;  %v14202_v21 = vld [vmem:[#allocation6 + $0x174] sm:$0xf0] }
 0x2d5   :  { %4542 = vmatpush.bf16.msra.mxu1 %v11838_v38  ;;  %v12053_v38 = vld [vmem:[#allocation6 + $0x250] sm:$0xf]  ;;  %3819 = vmatpush.bf16.msrb.mxu2 %v11578_v23  ;;  %v11942_v57 = vor.u32 %v14202_v21, %v11941_v14  ;;  %v382_v21 = vld [vmem:[%s18148_s28 + $0x20] sm:$0xff] }
 0x2d6   :  { %v12054_v55 = vor.u32 %v14230_v18, %v12053_v38  ;;  %v12030_v38 = vor.u32 %v14224_v25, %v12029_v24  ;;  %v11933_v18 = vld [vmem:[#allocation6 + $0x160] sm:$0xf]  ;;  %v14199_v25 = vld [vmem:[#allocation6 + $0x164] sm:$0xf] }
 0x2d7   :  { %3779 = vmatpush.bf16.msra.mxu3 %v11210_v32  ;;  %v11934_v60 = vor.u32 %v14200_v40, %v11933_v18  ;;  %v11909_v40 = vld [vmem:[#allocation6 + $0x130] sm:$0xf] }
 0x2d8   :  { %4530 = vmatpush.bf16.msra.mxu0 %v11766_v59  ;;  %v11194_v59 = vor.u32 %v13916_v43, %v11191_v44  ;;  %v12021_v43 = vld [vmem:[#allocation6 + $0x210] sm:$0xf]  ;;  %v14222_v44 = vld [vmem:[#allocation6 + $0x214] sm:$0xf0] }
 0x2d9   :  { %4543 = vmatpush.bf16.msra.mxu1 %v11830_v0  ;;  %3820 = vmatpush.bf16.msrb.mxu2 %v11562_v41  ;;  %v11546_v0 = vor.u32 %v14004_v56, %v11543_v53  ;;  %v3565_v3 = vpop.f32.mrf.mxu2  ;;  %v12094_v41 = vor.u32 %v14240_v29, %v12093_v26  ;;  %v12085_v56 = vld [vmem:[#allocation6 + $0x290] sm:$0xf]  ;;  %v14238_v53 = vld [vmem:[#allocation6 + $0x294] sm:$0xf0]  ;;  %v11935_v26 = vld [vmem:[#allocation6 + $0x168] sm:$0xf0] }
 0x2da   :  { %v15802_v5 = vadd.f32 %v3565_v3, %v15784_v34  ;;  %v12038_v34 = vor.u32 %v14226_v54, %v12037_v58  ;;  %v14220_v3 = vld [vmem:[#allocation6 + $0x204] sm:$0xf0]  ;;  %v14201_v58 = vld [vmem:[#allocation6 + $0x174] sm:$0xf]  ;;  %v11943_v54 = vld [vmem:[#allocation6 + $0x178] sm:$0xf0] }
 0x2db   :  { %3780 = vmatpush.bf16.msra.mxu3 %v11194_v59  ;;  %v2312_v59 = vpop.f32.mrf.mxu3  ;;  %v12014_v8 = vor.u32 %v14220_v3, %v12013_v47  ;;  %v11946_v14 = vor.u32 %v14201_v58, %v11943_v54  ;;  %v14192_v47 = vld [vmem:[#allocation6 + $0x124] sm:$0xf0] }
 0x2dc   :  { %4531 = vmatpush.bf16.msra.mxu0 %v11758_v7  ;;  %v11530_v7 = vor.u32 %v14000_v48, %v11527_v2  ;;  %v12086_v48 = vor.u32 %v14238_v53, %v12085_v56  ;;  %v15819_v56 = vmax.f32 %v15805_v17, 0.0  ;;  %v14213_v59 = vld [vmem:[#allocation6 + $0x1d4] sm:$0xf]  ;;  %v11902_v54 = vor.u32 %v14192_v47, %v11901_v46 }
 0x2dd   :  { %4544 = vmatpush.bf16.msra.mxu1 %v11822_v51  ;;  %3821 = vmatpush.bf16.msrb.mxu2 %v11546_v0  ;;  %v11159_v51 = vld [vmem:[#allocation4 + $0x158] sm:$0xf0]  ;;  %v12022_v0 = vor.u32 %v14222_v44, %v12021_v43  ;;  %v11938_v43 = vor.u32 %v14199_v25, %v11935_v26  ;;  %v14197_v44 = vld [vmem:[#allocation6 + $0x154] sm:$0xf] }
 0x2de   :  { %v11162_v23 = vor.u32 %v13908_v13, %v11159_v51  ;;  %v12007_v13 = vld [vmem:[#allocation6 + $0x1f8] sm:$0xf0]  ;;  %v14052_v51 = vld [vmem:[#allocation4 + $0x5cc] sm:$0xf]  ;;  %18149 = vst [vmem:[#allocation52_spill] sm:$0xff] %v15819_v56 }
 0x2df   :  { %4532 = vmatmul.bf16.vlgmr.msra.gmra.mxu0 %v15792_v27  ;;  %3781 = vmatpush.bf16.msra.mxu3 %v11178_v6  ;;  %v11754_v6 = vor.u32 %v14056_v61, %v11751_v62  ;;  %v11991_v61 = vld [vmem:[#allocation6 + $0x1d8] sm:$0xf0]  ;;  %v14044_v62 = vld [vmem:[#allocation4 + $0x58c] sm:$0xf] }
 0x2e0   :  { %4576 = vmatpush.bf16.msrb.mxu0 %v12070_v15  ;;  %4545 = vmatmul.bf16.vlgmr.msra.gmra.mxu1 %v15795_v35  ;;  %v3593_v15 = vpop.f32.mrf.mxu0  ;;  %v11671_v25 = vld [vmem:[#allocation4 + $0x558] sm:$0xf0] }
 0x2e1   :  { %4589 = vmatpush.bf16.msrb.mxu1 %v12134_v16  ;;  %v11511_v16 = vld [vmem:[#allocation4 + $0x418] sm:$0xf0]  ;;  %3822 = vmatpush.bf16.msrb.mxu2 %v11530_v7  ;;  %v3567_v32 = vpop.f32.mrf.mxu2 }
 0x2e2   :  { %v11514_v28 = vor.u32 %v13996_v49, %v11511_v16  ;;  %v11735_v15 = vld [vmem:[#allocation4 + $0x5d8] sm:$0xf0]  ;;  %v11917_v49 = vld [vmem:[#allocation6 + $0x140] sm:$0xf]  ;;  %v14196_v16 = vld [vmem:[#allocation6 + $0x144] sm:$0xf0] }
 0x2e3   :  { %3782 = vmatpush.bf16.msra.mxu3 %v11162_v23  ;;  %v12010_v23 = vor.u32 %v14217_v12, %v12007_v13  ;;  %v11738_v24 = vor.u32 %v14052_v51, %v11735_v15  ;;  %v2362_v29 = vpop.f32.mrf.mxu3  ;;  %v11719_v32 = vld [vmem:[#allocation4 + $0x5b8] sm:$0xf0]  ;;  %v11983_v12 = vld [vmem:[#allocation6 + $0x1c8] sm:$0xf0]  ;;  %v11893_v13 = vld [vmem:[#allocation6 + $0x110] sm:$0xf] }
 0x2e4   :  { %4577 = vmatpush.bf16.msrb.mxu0 %v12062_v36  ;;  %v11143_v36 = vld [vmem:[#allocation4 + $0x138] sm:$0xf0]  ;;  %v2363_v18 = vadd.f32 %v2362_v29, %v15787_v63  ;;  %v14190_v51 = vld [vmem:[#allocation6 + $0x114] sm:$0xf0]  ;;  %v14188_v29 = vld [vmem:[#allocation6 + $0x104] sm:$0xf0] }
 0x2e5   :  { %4590 = vmatpush.bf16.msrb.mxu1 %v12126_v37  ;;  %v15807_v37 = vpop.f32.mrf.mxu1  ;;  %v11146_v42 = vor.u32 %v13904_v19, %v11143_v36  ;;  %3823 = vmatpush.bf16.msrb.mxu2 %v11514_v28  ;;  %v14215_v28 = vld [vmem:[#allocation6 + $0x1e4] sm:$0xf]  ;;  %v11918_v19 = vor.u32 %v14196_v16, %v11917_v49  ;;  %v11999_v36 = vld [vmem:[#allocation6 + $0x1e8] sm:$0xf0] }
 0x2e6   :  { %v15821_v53 = vmax.f32 %v2363_v18, 0.0 }
 0x2e7   :  { %3783 = vmatpush.bf16.msra.mxu3 %v11146_v42 }
 0x2e8   :  { %4578 = vmatpush.bf16.msrb.mxu0 %v12054_v55  ;;  %v13900_v55 = vld [vmem:[#allocation4 + $0x10c] sm:$0xf]  ;;  %3824 = vmatmul.bf16.vlgmr.msrb.gmra.mxu2 %v15427_v30  ;;  %18150 = vst [vmem:[#allocation53_spill] sm:$0xff] %v15821_v53  ;;  %v15824_v1 = vpop.f32.mrf.mxu0  ;;  %v15828_v17 = vmax.f32 %v15819_v56, %v15821_v53 }
 0x2e9   :  { %4591 = vmatpush.bf16.msrb.mxu1 %v12118_v45  ;;  %v11127_v45 = vld [vmem:[#allocation4 + $0x118] sm:$0xf0]  ;;  %4550 = vmatpush.bf16.msra.mxu2 %v11942_v57  ;;  %v14048_v57 = vld [vmem:[#allocation4 + $0x5ac] sm:$0xf] }
 0x2ea   :  { %v11130_v2 = vor.u32 %v13900_v55, %v11127_v45  ;;  %v12002_v55 = vor.u32 %v14215_v28, %v11999_v36  ;;  %v11722_v63 = vor.u32 %v14048_v57, %v11719_v32  ;;  %v11927_v45 = vld [vmem:[#allocation6 + $0x158] sm:$0xf0]  ;;  %18151 = vst [vmem:[#allocation54_spill] sm:$0xff] %v15828_v17  ;;  %v11885_v28 = vld [vmem:[#allocation6 + $0x100] sm:$0xf]  ;;  %v5375_v17 = vld [vmem:[%s18156_s30 + $0x170] sm:$0xff] }
 0x2eb   :  { %v2364_v58 = vpop.f32.mrf.mxu3  ;;  %v15831_v15 = vpop.f32.mrf.mxu2  ;;  %v14169_v36 = vld [vmem:[#allocation6 + $0x74] sm:$0xf]  ;;  %v11815_v57 = vld [vmem:[#allocation6 + $0x78] sm:$0xf0] }
 0x2ec   :  { %4579 = vmatpush.bf16.msrb.mxu0 %v12046_v11  ;;  %v12077_v11 = vld [vmem:[#allocation6 + $0x280] sm:$0xf]  ;;  %3784 = vmatpush.bf16.msra.mxu3 %v11130_v2  ;;  %v11994_v2 = vor.u32 %v14213_v59, %v11991_v61  ;;  %v11655_v59 = vld [vmem:[#allocation4 + $0x538] sm:$0xf0] }
 0x2ed   :  { %4592 = vmatpush.bf16.msrb.mxu1 %v12110_v39  ;;  %v14236_v39 = vld [vmem:[#allocation6 + $0x284] sm:$0xf0]  ;;  %v3606_v7 = vpop.f32.mrf.mxu1  ;;  %4551 = vmatpush.bf16.msra.mxu2 %v11934_v60  ;;  %v11895_v58 = vld [vmem:[#allocation6 + $0x118] sm:$0xf0] }
 0x2ee   :  { %v14040_v7 = vld [vmem:[#allocation4 + $0x56c] sm:$0xf] }
 0x2ef   :  { %3785 = vmatmul.bf16.vlgmr.msra.gmra.mxu3 %v15363_v10 }
 0x2f0   :  { %4580 = vmatpush.bf16.msrb.mxu0 %v12038_v34  ;;  %v12078_v34 = vor.u32 %v14236_v39, %v12077_v11  ;;  %3829 = vmatpush.bf16.msrb.mxu3 %v11754_v6  ;;  %v14195_v11 = vld [vmem:[#allocation6 + $0x144] sm:$0xf]  ;;  %v11919_v39 = vld [vmem:[#allocation6 + $0x148] sm:$0xf0]  ;;  %v3645_v26 = vpop.f32.mrf.mxu0 }
 0x2f1   :  { %4593 = vmatpush.bf16.msrb.mxu1 %v12102_v22  ;;  %v383_v22 = vld [vmem:[%s18148_s28 + $0x28] sm:$0xff]  ;;  %4552 = vmatpush.bf16.msra.mxu2 %v11926_v9  ;;  %v14211_v6 = vld [vmem:[#allocation6 + $0x1c4] sm:$0xf]  ;;  %v11687_v9 = vld [vmem:[#allocation4 + $0x578] sm:$0xf0] }
 0x2f2   :  { %v15816_v42 = vpack.c.bf16 %v383_v22, %v383_v22  ;;  %v11986_v49 = vor.u32 %v14211_v6, %v11983_v12  ;;  %v11690_v16 = vor.u32 %v14040_v7, %v11687_v9  ;;  %v11894_v22 = vor.u32 %v14190_v51, %v11893_v13  ;;  %v14189_v6 = vld [vmem:[#allocation6 + $0x114] sm:$0xf]  ;;  %v11959_v12 = vld [vmem:[#allocation6 + $0x198] sm:$0xf0]  ;;  %v14028_v7 = vld [vmem:[#allocation4 + $0x50c] sm:$0xf] }
 0x2f3   :  { %v3619_v46 = vpop.f32.mrf.mxu2  ;;  %v12197_v26 = vld [vmem:[%s18153_s18 + $0x70] sm:$0xf] }
 0x2f4   :  { %4581 = vmatpush.bf16.msrb.mxu0 %v12030_v38  ;;  %v15812_v38 = vpack.c.bf16 %v382_v21, %v382_v21  ;;  %3830 = vmatpush.bf16.msrb.mxu3 %v11738_v24  ;;  %v14209_v21 = vld [vmem:[#allocation6 + $0x1b4] sm:$0xf]  ;;  %v14036_v24 = vld [vmem:[#allocation4 + $0x54c] sm:$0xf]  ;;  %v12253_v46 = vld [vmem:[%s18153_s18 + $0xe0] sm:$0xf] }
 0x2f5   :  { %4594 = vmatpush.bf16.msrb.mxu1 %v12094_v41  ;;  %v14194_v41 = vld [vmem:[#allocation6 + $0x134] sm:$0xf0]  ;;  %4553 = vmatpush.bf16.msra.mxu2 %v11918_v19  ;;  %v11674_v18 = vor.u32 %v14036_v24, %v11671_v25  ;;  %v11951_v24 = vld [vmem:[#allocation6 + $0x188] sm:$0xf0] }
 0x2f6   :  { %v11910_v60 = vor.u32 %v14194_v41, %v11909_v40  ;;  %v14191_v40 = vld [vmem:[#allocation6 + $0x124] sm:$0xf]  ;;  %v11903_v41 = vld [vmem:[#allocation6 + $0x128] sm:$0xf0] }
 0x2f7   :  { %v11906_v47 = vor.u32 %v14191_v40, %v11903_v41  ;;  %v14216_v40 = vld [vmem:[#allocation6 + $0x1e4] sm:$0xf0] }
 0x2f8   :  { %4582 = vmatpush.bf16.msrb.mxu0 %v12022_v0  ;;  %v11703_v0 = vld [vmem:[#allocation4 + $0x598] sm:$0xf0]  ;;  %3831 = vmatpush.bf16.msrb.mxu3 %v11722_v63  ;;  %v11967_v63 = vld [vmem:[#allocation6 + $0x1a8] sm:$0xf0] }
 0x2f9   :  { %4595 = vmatpush.bf16.msrb.mxu1 %v12086_v48  ;;  %v11930_v48 = vor.u32 %v14197_v44, %v11927_v45  ;;  %v11706_v3 = vor.u32 %v14044_v62, %v11703_v0  ;;  %4554 = vmatpush.bf16.msra.mxu2 %v11910_v60  ;;  %v3578_v44 = vpop.f32.mrf.mxu3  ;;  %v14032_v45 = vld [vmem:[#allocation4 + $0x52c] sm:$0xf]  ;;  %v15833_v60 = vpop.f32.mrf.mxu1  ;;  %v11818_v62 = vor.u32 %v14169_v36, %v11815_v57  ;;  %v380_v0 = vld [vmem:[%s18148_s28 + $0x10] sm:$0xff] }
 0x2fa   :  { %v3579_v61 = vadd.f32 %v3578_v44, %v15802_v5  ;;  %v11639_v5 = vld [vmem:[#allocation4 + $0x518] sm:$0xf0]  ;;  %v15838_v9 = vpack.c.bf16 %v380_v0, %v380_v0  ;;  %v11791_v44 = vld [vmem:[#allocation6 + $0x48] sm:$0xf0]  ;;  %v14072_v0 = vld [vmem:[%s18153_s18 + $0x64] sm:$0xf0] }
 0x2fc   :  { %4583 = vmatpush.bf16.msrb.mxu0 %v12014_v8  ;;  %v11922_v8 = vor.u32 %v14195_v11, %v11919_v39  ;;  %3832 = vmatpush.bf16.msrb.mxu3 %v11706_v3  ;;  %v3592_v3 = vadd.f32 %v15798_v50, %v3579_v61  ;;  %v11658_v39 = vor.u32 %v14032_v45, %v11655_v59  ;;  %v381_v45 = vld [vmem:[%s18148_s28 + $0x18] sm:$0xff] }
 0x2fd   :  { %4596 = vmatpush.bf16.msrb.mxu1 %v12078_v34  ;;  %v14193_v34 = vld [vmem:[#allocation6 + $0x134] sm:$0xf]  ;;  %4555 = vmatpush.bf16.msra.mxu2 %v11902_v54  ;;  %v11898_v50 = vor.u32 %v14189_v6, %v11895_v58  ;;  %v15854_v6 = vpack.c.bf16 %v381_v45, %v381_v45  ;;  %v2564_v45 = vperm.slane %v15778_v52, 2 }
 0x2fe   :  { %v14205_v54 = vld [vmem:[#allocation6 + $0x194] sm:$0xf]  ;;  %v15841_v13 = vadd.f32 %v15807_v37, %v3592_v3  ;;  %v14203_v37 = vld [vmem:[#allocation6 + $0x184] sm:$0xf]  ;;  %v14214_v3 = vld [vmem:[#allocation6 + $0x1d4] sm:$0xf0] }
 0x2ff   :  { %4584 = vmatmul.bf16.vlgmr.msrb.gmra.mxu0 %v15812_v38 }
 0x300   :  { %4628 = vmatpush.bf16.msra.mxu0 %v11946_v14  ;;  %4597 = vmatmul.bf16.vlgmr.msrb.gmra.mxu1 %v15816_v42  ;;  %v11911_v14 = vld [vmem:[#allocation6 + $0x138] sm:$0xf0]  ;;  %18152 = vst [vmem:[#allocation55_spill] sm:$0xff] %v15841_v13 }
 0x301   :  { %4641 = vmatpush.bf16.msra.mxu1 %v12010_v23  ;;  %v11975_v23 = vld [vmem:[#allocation6 + $0x1b8] sm:$0xf0]  ;;  %v11914_v19 = vor.u32 %v14193_v34, %v11911_v14  ;;  %3833 = vmatpush.bf16.msrb.mxu3 %v11690_v16  ;;  %v14165_v16 = vld [vmem:[#allocation6 + $0x54] sm:$0xf]  ;;  %v14187_v14 = vld [vmem:[#allocation6 + $0x104] sm:$0xf]  ;;  %v3658_v36 = vpop.f32.mrf.mxu1 }
 0x302   :  { %v11978_v32 = vor.u32 %v14209_v21, %v11975_v23  ;;  %4556 = vmatpush.bf16.msra.mxu2 %v11894_v22  ;;  %v11799_v34 = vld [vmem:[#allocation6 + $0x58] sm:$0xf0]  ;;  %v11962_v21 = vor.u32 %v14205_v54, %v11959_v12  ;;  %v11642_v22 = vor.u32 %v14028_v7, %v11639_v5  ;;  %v11887_v23 = vld [vmem:[#allocation6 + $0x108] sm:$0xf0]  ;;  %v12181_v7 = vld [vmem:[%s18153_s18 + $0x50] sm:$0xf] }
 0x303   :  { %v11802_v57 = vor.u32 %v14165_v16, %v11799_v34  ;;  %v11890_v41 = vor.u32 %v14187_v14, %v11887_v23  ;;  %v14070_v5 = vld [vmem:[%s18153_s18 + $0x54] sm:$0xf0]  ;;  %v14212_v16 = vld [vmem:[#allocation6 + $0x1c4] sm:$0xf0]  ;;  %v3695_v34 = vpop.f32.mrf.mxu0  ;;  %v14159_v14 = vld [vmem:[#allocation6 + $0x24] sm:$0xf] }
 0x304   :  { %4629 = vmatpush.bf16.msra.mxu0 %v11938_v43  ;;  %v14207_v43 = vld [vmem:[#allocation6 + $0x1a4] sm:$0xf]  ;;  %v2563_v36 = vperm.slane %v15778_v52, 1 }
 0x305   :  { %4642 = vmatpush.bf16.msra.mxu1 %v12002_v55  ;;  %v11886_v55 = vor.u32 %v14188_v29, %v11885_v28  ;;  %3834 = vmatpush.bf16.msrb.mxu3 %v11674_v18  ;;  %v11970_v11 = vor.u32 %v14207_v43, %v11967_v63  ;;  %v14074_v28 = vld [vmem:[%s18153_s18 + $0x74] sm:$0xf0]  ;;  %v12261_v29 = vld [vmem:[%s18153_s18 + $0xf0] sm:$0xf]  ;;  %v11997_v18 = vld [vmem:[#allocation6 + $0x1e0] sm:$0xf] }
 0x306   :  { %v14163_v43 = vld [vmem:[#allocation6 + $0x44] sm:$0xf]  ;;  %v12198_v63 = vor.u32 %v14074_v28, %v12197_v26  ;;  %v11998_v61 = vor.u32 %v14216_v40, %v11997_v18  ;;  %v12237_v26 = vld [vmem:[%s18153_s18 + $0xc0] sm:$0xf] }
 0x307   :  { %4557 = vmatpush.bf16.msra.mxu2 %v11886_v55  ;;  %v11954_v55 = vor.u32 %v14203_v37, %v11951_v24  ;;  %v12173_v24 = vld [vmem:[%s18153_s18 + $0x40] sm:$0xf] }
 0x308   :  { %4630 = vmatpush.bf16.msra.mxu0 %v11930_v48  ;;  %v14167_v48 = vld [vmem:[#allocation6 + $0x64] sm:$0xf] }
 0x309   :  { %4643 = vmatpush.bf16.msra.mxu1 %v11994_v2  ;;  %v11807_v2 = vld [vmem:[#allocation6 + $0x68] sm:$0xf0]  ;;  %3835 = vmatpush.bf16.msrb.mxu3 %v11658_v39  ;;  %v11783_v39 = vld [vmem:[#allocation6 + $0x38] sm:$0xf0] }
 0x30a   :  { %v11810_v51 = vor.u32 %v14167_v48, %v11807_v2  ;;  %4558 = vmatmul.bf16.vlgmr.msra.gmra.mxu2 %v15838_v9  ;;  %v14088_v48 = vld [vmem:[%s18153_s18 + $0xe4] sm:$0xf0]  ;;  %v11989_v2 = vld [vmem:[#allocation6 + $0x1d0] sm:$0xf] }
 0x30b   :  { %4602 = vmatpush.bf16.msrb.mxu2 %v11818_v62  ;;  %v12189_v62 = vld [vmem:[%s18153_s18 + $0x60] sm:$0xf]  ;;  %v12254_v54 = vor.u32 %v14088_v48, %v12253_v46  ;;  %v11990_v12 = vor.u32 %v14214_v3, %v11989_v2  ;;  %v15867_v18 = vpop.f32.mrf.mxu2  ;;  %v3697_v46 = vpop.f32.mrf.mxu0  ;;  %v14155_v48 = vld [vmem:[#allocation6 + $0x4] sm:$0xf]  ;;  %v11759_v2 = vld [vmem:[#allocation6 + $0x8] sm:$0xf0] }
 0x30c   :  { %4631 = vmatpush.bf16.msra.mxu0 %v11922_v8  ;;  %v12005_v8 = vld [vmem:[#allocation6 + $0x1f0] sm:$0xf]  ;;  %v12190_v58 = vor.u32 %v14072_v0, %v12189_v62  ;;  %v11965_v62 = vld [vmem:[#allocation6 + $0x1a0] sm:$0xf]  ;;  %v14208_v0 = vld [vmem:[#allocation6 + $0x1a4] sm:$0xf0] }
 0x30d   :  { %4644 = vmatpush.bf16.msra.mxu1 %v11986_v49  ;;  %v14218_v49 = vld [vmem:[#allocation6 + $0x1f4] sm:$0xf0]  ;;  %3836 = vmatpush.bf16.msrb.mxu3 %v11642_v22  ;;  %v12182_v22 = vor.u32 %v14070_v5, %v12181_v7  ;;  %v12221_v7 = vld [vmem:[%s18153_s18 + $0xa0] sm:$0xf]  ;;  %v14080_v5 = vld [vmem:[%s18153_s18 + $0xa4] sm:$0xf0] }
 0x30e   :  { %v12006_v25 = vor.u32 %v14218_v49, %v12005_v8  ;;  %v14086_v49 = vld [vmem:[%s18153_s18 + $0xd4] sm:$0xf0]  ;;  %v14076_v46 = vld [vmem:[%s18153_s18 + $0x84] sm:$0xf0] }
 0x30f   :  { %4603 = vmatpush.bf16.msrb.mxu2 %v11810_v51  ;;  %v12245_v51 = vld [vmem:[%s18153_s18 + $0xd0] sm:$0xf] }
 0x310   :  { %4632 = vmatpush.bf16.msra.mxu0 %v11914_v19  ;;  %v3580_v19 = vpop.f32.mrf.mxu3  ;;  %3837 = vmatmul.bf16.vlgmr.msrb.gmra.mxu3 %v15429_v33  ;;  %v12246_v23 = vor.u32 %v14086_v49, %v12245_v51  ;;  %v3696_v51 = vadd.f32 %v3695_v34, %v2564_v45  ;;  %v11762_v49 = vor.u32 %v14155_v48, %v11759_v2  ;;  %v12141_v45 = vld [vmem:[%s18153_s18] sm:$0xf]  ;;  %v12453_v48 = vld [vmem:[%s18153_s18 + $0x270] sm:$0xf]  ;;  %v14138_v2 = vld [vmem:[%s18153_s18 + $0x274] sm:$0xf0] }
 0x311   :  { %4645 = vmatpush.bf16.msra.mxu1 %v11978_v32  ;;  %v14090_v32 = vld [vmem:[%s18153_s18 + $0xf4] sm:$0xf0]  ;;  %4563 = vmatpush.bf16.msra.mxu3 %v12006_v25  ;;  %v14068_v25 = vld [vmem:[%s18153_s18 + $0x44] sm:$0xf0] }
 0x312   :  { %v12262_v59 = vor.u32 %v14090_v32, %v12261_v29  ;;  %v11973_v29 = vld [vmem:[#allocation6 + $0x1b0] sm:$0xf]  ;;  %v14210_v19 = vld [vmem:[#allocation6 + $0x1b4] sm:$0xf0]  ;;  %v11767_v32 = vld [vmem:[#allocation6 + $0x18] sm:$0xf0]  ;;  %v12174_v40 = vor.u32 %v14068_v25, %v12173_v24  ;;  %v3708_v25 = vpop.f32.mrf.mxu1 }
 0x313   :  { %4604 = vmatpush.bf16.msrb.mxu2 %v11802_v57  ;;  %v14157_v57 = vld [vmem:[#allocation6 + $0x14] sm:$0xf]  ;;  %v12063_v24 = vld [vmem:[#allocation6 + $0x268] sm:$0xf0] }
 0x314   :  { %4633 = vmatpush.bf16.msra.mxu0 %v11906_v47  ;;  %v11794_v47 = vor.u32 %v14163_v43, %v11791_v44  ;;  %v11974_v44 = vor.u32 %v14210_v19, %v11973_v29  ;;  %v12213_v29 = vld [vmem:[%s18153_s18 + $0x90] sm:$0xf]  ;;  %v15883_v19 = vadd.f32 %v3708_v25, %v3696_v51 }
 0x315   :  { %4646 = vmatpush.bf16.msra.mxu1 %v11970_v11  ;;  %v14161_v11 = vld [vmem:[#allocation6 + $0x34] sm:$0xf]  ;;  %4564 = vmatpush.bf16.msra.mxu3 %v11998_v61  ;;  %v14082_v61 = vld [vmem:[%s18153_s18 + $0xb4] sm:$0xf0] }
 0x316   :  { %v11786_v8 = vor.u32 %v14161_v11, %v11783_v39  ;;  %v14233_v11 = vld [vmem:[#allocation6 + $0x274] sm:$0xf]  ;;  %v12071_v39 = vld [vmem:[#allocation6 + $0x278] sm:$0xf0] }
 0x317   :  { %4605 = vmatpush.bf16.msrb.mxu2 %v11794_v47  ;;  %v3618_v47 = vadd.f32 %v15831_v15, %v2563_v36  ;;  %v11957_v15 = vld [vmem:[#allocation6 + $0x190] sm:$0xf]  ;;  %v14078_v36 = vld [vmem:[%s18153_s18 + $0x94] sm:$0xf0] }
 0x318   :  { %4634 = vmatpush.bf16.msra.mxu0 %v11898_v50  ;;  %v11981_v50 = vld [vmem:[#allocation6 + $0x1c0] sm:$0xf] }
 0x319   :  { %4647 = vmatpush.bf16.msra.mxu1 %v11962_v21  ;;  %v11775_v21 = vld [vmem:[#allocation6 + $0x28] sm:$0xf0]  ;;  %4565 = vmatpush.bf16.msra.mxu3 %v11990_v12  ;;  %v11982_v37 = vor.u32 %v14212_v16, %v11981_v50  ;;  %v14064_v12 = vld [vmem:[%s18153_s18 + $0x24] sm:$0xf0]  ;;  %v14206_v50 = vld [vmem:[#allocation6 + $0x194] sm:$0xf0] }
 0x31a   :  { %v11778_v28 = vor.u32 %v14159_v14, %v11775_v21  ;;  %v12074_v14 = vor.u32 %v14233_v11, %v12071_v39  ;;  %v3671_v21 = vpop.f32.mrf.mxu2 }
 0x31b   :  { %4606 = vmatpush.bf16.msrb.mxu2 %v11786_v8  ;;  %v3630_v8 = vpop.f32.mrf.mxu3  ;;  %v14152_v21 = vld [vmem:[%s18153_s18 + $0x2e4] sm:$0xf0] }
 0x31c   :  { %4635 = vmatpush.bf16.msra.mxu0 %v11890_v41  ;;  %v12165_v41 = vld [vmem:[%s18153_s18 + $0x30] sm:$0xf]  ;;  %v3631_v16 = vadd.f32 %v3630_v8, %v3618_v47  ;;  %v12454_v8 = vor.u32 %v14138_v2, %v12453_v48  ;;  %v12023_v48 = vld [vmem:[#allocation6 + $0x218] sm:$0xf0] }
 0x31d   :  { %4648 = vmatpush.bf16.msra.mxu1 %v11954_v55  ;;  %4566 = vmatpush.bf16.msra.mxu3 %v11982_v37  ;;  %v14066_v55 = vld [vmem:[%s18153_s18 + $0x34] sm:$0xf0]  ;;  %v14231_v37 = vld [vmem:[#allocation6 + $0x264] sm:$0xf] }
 0x31e   :  { %v12166_v3 = vor.u32 %v14066_v55, %v12165_v41  ;;  %v3644_v34 = vadd.f32 %v15824_v1, %v3631_v16  ;;  %v12066_v41 = vor.u32 %v14231_v37, %v12063_v24  ;;  %v11879_v1 = vld [vmem:[#allocation6 + $0xf8] sm:$0xf0]  ;;  %v14229_v55 = vld [vmem:[#allocation6 + $0x254] sm:$0xf]  ;;  %v12509_v16 = vld [vmem:[%s18153_s18 + $0x2e0] sm:$0xf] }
 0x31f   :  { %4636 = vmatmul.bf16.vlgmr.msra.gmra.mxu0 %v15838_v9  ;;  %v14084_v9 = vld [vmem:[%s18153_s18 + $0xc4] sm:$0xf0]  ;;  %4607 = vmatpush.bf16.msrb.mxu2 %v11778_v28  ;;  %v12149_v28 = vld [vmem:[%s18153_s18 + $0x10] sm:$0xf]  ;;  %v14225_v37 = vld [vmem:[#allocation6 + $0x234] sm:$0xf] }
 0x320   :  { %5160 = vmatpush.bf16.msrb.mxu0 %v12198_v63  ;;  %4649 = vmatmul.bf16.vlgmr.msra.gmra.mxu1 %v15854_v6  ;;  %v12238_v43 = vor.u32 %v14084_v9, %v12237_v26  ;;  %v12229_v63 = vld [vmem:[%s18153_s18 + $0xb0] sm:$0xf]  ;;  %v11958_v26 = vor.u32 %v14206_v50, %v11957_v15  ;;  %v14062_v9 = vld [vmem:[%s18153_s18 + $0x14] sm:$0xf0]  ;;  %v12445_v15 = vld [vmem:[%s18153_s18 + $0x260] sm:$0xf] }
 0x321   :  { %5173 = vmatpush.bf16.msrb.mxu1 %v12262_v59  ;;  %v11770_v59 = vor.u32 %v14157_v57, %v11767_v32  ;;  %4567 = vmatpush.bf16.msra.mxu3 %v11974_v44  ;;  %v12230_v52 = vor.u32 %v14082_v61, %v12229_v63  ;;  %v11949_v57 = vld [vmem:[#allocation6 + $0x180] sm:$0xf]  ;;  %v14204_v32 = vld [vmem:[#allocation6 + $0x184] sm:$0xf0]  ;;  %v12150_v44 = vor.u32 %v14062_v9, %v12149_v28  ;;  %v12055_v63 = vld [vmem:[#allocation6 + $0x258] sm:$0xf0] }
 0x322   :  { %v11950_v61 = vor.u32 %v14204_v32, %v11949_v57  ;;  %v12058_v39 = vor.u32 %v14229_v55, %v12055_v63  ;;  %v14136_v50 = vld [vmem:[%s18153_s18 + $0x264] sm:$0xf0]  ;;  %v12039_v24 = vld [vmem:[#allocation6 + $0x238] sm:$0xf0]  ;;  %v12437_v28 = vld [vmem:[%s18153_s18 + $0x250] sm:$0xf] }
 0x323   :  { %4608 = vmatpush.bf16.msrb.mxu2 %v11770_v59  ;;  %v3632_v11 = vpop.f32.mrf.mxu3  ;;  %v12446_v25 = vor.u32 %v14136_v50, %v12445_v15  ;;  %v14134_v9 = vld [vmem:[%s18153_s18 + $0x254] sm:$0xf0]  ;;  %v11855_v32 = vld [vmem:[#allocation6 + $0xc8] sm:$0xf0]  ;;  %v12429_v63 = vld [vmem:[%s18153_s18 + $0x240] sm:$0xf] }
 0x324   :  { %5161 = vmatpush.bf16.msrb.mxu0 %v12190_v58  ;;  %v12157_v58 = vld [vmem:[%s18153_s18 + $0x20] sm:$0xf]  ;;  %v14150_v57 = vld [vmem:[%s18153_s18 + $0x2d4] sm:$0xf0]  ;;  %v12325_v50 = vld [vmem:[%s18153_s18 + $0x170] sm:$0xf] }
 0x325   :  { %5174 = vmatpush.bf16.msrb.mxu1 %v12254_v54  ;;  %v11966_v54 = vor.u32 %v14208_v0, %v11965_v62  ;;  %v14060_v62 = vld [vmem:[%s18153_s18 + $0x4] sm:$0xf0]  ;;  %v12205_v0 = vld [vmem:[%s18153_s18 + $0x80] sm:$0xf] }
 0x326   :  { %v12206_v51 = vor.u32 %v14076_v46, %v12205_v0  ;;  %v14177_v0 = vld [vmem:[#allocation6 + $0xb4] sm:$0xf]  ;;  %v11847_v46 = vld [vmem:[#allocation6 + $0xb8] sm:$0xf0] }
 0x327   :  { %4568 = vmatpush.bf16.msra.mxu3 %v11966_v54  ;;  %4609 = vmatpush.bf16.msrb.mxu2 %v11762_v49  ;;  %v12142_v54 = vor.u32 %v14060_v62, %v12141_v45  ;;  %v14132_v45 = vld [vmem:[%s18153_s18 + $0x244] sm:$0xf0] }
 0x328   :  { %5162 = vmatpush.bf16.msrb.mxu0 %v12182_v22  ;;  %v12158_v22 = vor.u32 %v14064_v12, %v12157_v58  ;;  %v14183_v58 = vld [vmem:[#allocation6 + $0xe4] sm:$0xf]  ;;  %v14148_v62 = vld [vmem:[%s18153_s18 + $0x2c4] sm:$0xf0]  ;;  %v12430_v2 = vor.u32 %v14132_v45, %v12429_v63  ;;  %v14142_v63 = vld [vmem:[%s18153_s18 + $0x294] sm:$0xf0] }
 0x329   :  { %5175 = vmatpush.bf16.msrb.mxu1 %v12246_v23  ;;  %v12222_v23 = vor.u32 %v14080_v5, %v12221_v7  ;;  %v14227_v12 = vld [vmem:[#allocation6 + $0x244] sm:$0xf]  ;;  %v12047_v7 = vld [vmem:[#allocation6 + $0x248] sm:$0xf0]  ;;  %v3710_v5 = vpop.f32.mrf.mxu1 }
 0x32a   :  { %4610 = vmatmul.bf16.vlgmr.msrb.gmra.mxu2 %v15792_v27  ;;  %v14175_v5 = vld [vmem:[#allocation6 + $0xa4] sm:$0xf]  ;;  %v11823_v45 = vld [vmem:[#allocation6 + $0x88] sm:$0xf0] }
 0x32b   :  { %4654 = vmatpush.bf16.msra.mxu2 %v12074_v14  ;;  %4569 = vmatpush.bf16.msra.mxu3 %v11958_v26  ;;  %v12050_v14 = vor.u32 %v14227_v12, %v12047_v7  ;;  %v14146_v7 = vld [vmem:[%s18153_s18 + $0x2b4] sm:$0xf0] }
 0x32c   :  { %5163 = vmatpush.bf16.msrb.mxu0 %v12174_v40  ;;  %v3657_v40 = vadd.f32 %v15833_v60, %v3644_v34  ;;  %v12214_v60 = vor.u32 %v14078_v36, %v12213_v29  ;;  %v12510_v34 = vor.u32 %v14152_v21, %v12509_v16  ;;  %v12501_v29 = vld [vmem:[%s18153_s18 + $0x2d0] sm:$0xf]  ;;  %v12042_v36 = vor.u32 %v14225_v37, %v12039_v24  ;;  %v14106_v16 = vld [vmem:[%s18153_s18 + $0x174] sm:$0xf0]  ;;  %v12413_v21 = vld [vmem:[%s18153_s18 + $0x220] sm:$0xf] }
 0x32d   :  { %5176 = vmatpush.bf16.msrb.mxu1 %v12238_v43  ;;  %v14185_v43 = vld [vmem:[#allocation6 + $0xf4] sm:$0xf] }
 0x32e   :  { %v15889_v59 = vadd.f32 %v15867_v18, %v3657_v40  ;;  %v11882_v47 = vor.u32 %v14185_v43, %v11879_v1  ;;  %v14154_v18 = vld [vmem:[%s18153_s18 + $0x2f4] sm:$0xf0]  ;;  %v15909_v40 = vpop.f32.mrf.mxu0  ;;  %v12031_v43 = vld [vmem:[#allocation6 + $0x228] sm:$0xf0]  ;;  %v12438_v1 = vor.u32 %v14134_v9, %v12437_v28 }
 0x32f   :  { %4655 = vmatpush.bf16.msra.mxu2 %v12066_v41  ;;  %4570 = vmatpush.bf16.msra.mxu3 %v11950_v61  ;;  %v14223_v41 = vld [vmem:[#allocation6 + $0x224] sm:$0xf] }
 0x330   :  { %5164 = vmatpush.bf16.msrb.mxu0 %v12166_v3  ;;  %v12517_v3 = vld [vmem:[%s18153_s18 + $0x2f0] sm:$0xf]  ;;  %v12034_v61 = vor.u32 %v14223_v41, %v12031_v43 }
 0x331   :  { %5177 = vmatpush.bf16.msrb.mxu1 %v12230_v52  ;;  %v11871_v52 = vld [vmem:[#allocation6 + $0xe8] sm:$0xf0]  ;;  %v12518_v27 = vor.u32 %v14154_v18, %v12517_v3  ;;  %v3721_v3 = vpop.f32.mrf.mxu2  ;;  %v12421_v18 = vld [vmem:[%s18153_s18 + $0x230] sm:$0xf]  ;;  %v3682_v37 = vpop.f32.mrf.mxu3 }
 0x332   :  { %v11874_v49 = vor.u32 %v14183_v58, %v11871_v52  ;;  %4571 = vmatmul.bf16.vlgmr.msra.gmra.mxu3 %v15854_v6  ;;  %v14179_v6 = vld [vmem:[#allocation6 + $0xc4] sm:$0xf]  ;;  %v14130_v58 = vld [vmem:[%s18153_s18 + $0x234] sm:$0xf0]  ;;  %v12485_v52 = vld [vmem:[%s18153_s18 + $0x2b0] sm:$0xf]  ;;  %v15929_v28 = vpop.f32.mrf.mxu1  ;;  %v15932_v9 = vadd.f32 %v3682_v37, %v15889_v59 }
 0x333   :  { %4615 = vmatpush.bf16.msrb.mxu3 %v11882_v47  ;;  %4656 = vmatpush.bf16.msra.mxu2 %v12058_v39  ;;  %v11858_v55 = vor.u32 %v14179_v6, %v11855_v32  ;;  %v14221_v47 = vld [vmem:[#allocation6 + $0x214] sm:$0xf]  ;;  %v11850_v39 = vor.u32 %v14177_v0, %v11847_v46  ;;  %v12422_v15 = vor.u32 %v14130_v58, %v12421_v18  ;;  %v14104_v6 = vld [vmem:[%s18153_s18 + $0x164] sm:$0xf0]  ;;  %v14171_v59 = vld [vmem:[#allocation6 + $0x84] sm:$0xf] }
 0x334   :  { %5165 = vmatpush.bf16.msrb.mxu0 %v12158_v22  ;;  %v14181_v22 = vld [vmem:[#allocation6 + $0xd4] sm:$0xf]  ;;  %v12026_v12 = vor.u32 %v14221_v47, %v12023_v48  ;;  %v12309_v46 = vld [vmem:[%s18153_s18 + $0x150] sm:$0xf]  ;;  %v14102_v47 = vld [vmem:[%s18153_s18 + $0x154] sm:$0xf0] }
 0x335   :  { %5178 = vmatpush.bf16.msrb.mxu1 %v12222_v23  ;;  %v11863_v23 = vld [vmem:[#allocation6 + $0xd8] sm:$0xf0]  ;;  %v12397_v48 = vld [vmem:[%s18153_s18 + $0x200] sm:$0xf]  ;;  %v14140_v18 = vld [vmem:[%s18153_s18 + $0x284] sm:$0xf0] }
 0x336   :  { %v11866_v26 = vor.u32 %v14181_v22, %v11863_v23  ;;  %v14128_v22 = vld [vmem:[%s18153_s18 + $0x224] sm:$0xf0]  ;;  %v12477_v23 = vld [vmem:[%s18153_s18 + $0x2a0] sm:$0xf]  ;;  %v12319_v37 = vld [vmem:[%s18153_s18 + $0x168] sm:$0xf0] }
 0x337   :  { %4616 = vmatpush.bf16.msrb.mxu3 %v11874_v49  ;;  %4657 = vmatpush.bf16.msra.mxu2 %v12050_v14  ;;  %v12015_v49 = vld [vmem:[#allocation6 + $0x208] sm:$0xf0] }
 0x338   :  { %5166 = vmatpush.bf16.msrb.mxu0 %v12150_v44  ;;  %v12502_v44 = vor.u32 %v14150_v57, %v12501_v29  ;;  %v12326_v29 = vor.u32 %v14106_v16, %v12325_v50  ;;  %v12317_v57 = vld [vmem:[%s18153_s18 + $0x160] sm:$0xf] }
 0x339   :  { %5179 = vmatpush.bf16.msrb.mxu1 %v12214_v60  ;;  %v12493_v60 = vld [vmem:[%s18153_s18 + $0x2c0] sm:$0xf]  ;;  %v3723_v32 = vpop.f32.mrf.mxu2 }
 0x33a   :  { %v12494_v11 = vor.u32 %v14148_v62, %v12493_v60  ;;  %v12318_v60 = vor.u32 %v14104_v6, %v12317_v57  ;;  %v12135_v62 = vld [vmem:[#allocation6 + $0x2f8] sm:$0xf0]  ;;  %v12301_v16 = vld [vmem:[%s18153_s18 + $0x140] sm:$0xf]  ;;  %v14098_v57 = vld [vmem:[%s18153_s18 + $0x134] sm:$0xf0] }
 0x33b   :  { %4617 = vmatpush.bf16.msrb.mxu3 %v11866_v26  ;;  %4658 = vmatpush.bf16.msra.mxu2 %v12042_v36  ;;  %v11831_v26 = vld [vmem:[#allocation6 + $0x98] sm:$0xf0]  ;;  %v12414_v36 = vor.u32 %v14128_v22, %v12413_v21 }
 0x33c   :  { %5167 = vmatpush.bf16.msrb.mxu0 %v12142_v54  ;;  %v15920_v54 = vadd.f32 %v3721_v3, %v15883_v19  ;;  %v12486_v19 = vor.u32 %v14146_v7, %v12485_v52  ;;  %v11826_v3 = vor.u32 %v14171_v59, %v11823_v45  ;;  %v14105_v52 = vld [vmem:[%s18153_s18 + $0x174] sm:$0xf]  ;;  %v14243_v59 = vld [vmem:[#allocation6 + $0x2c4] sm:$0xf]  ;;  %v12111_v45 = vld [vmem:[#allocation6 + $0x2c8] sm:$0xf0] }
 0x33d   :  { %5180 = vmatpush.bf16.msrb.mxu1 %v12206_v51  ;;  %v11839_v51 = vld [vmem:[#allocation6 + $0xa8] sm:$0xf0]  ;;  %v14121_v7 = vld [vmem:[%s18153_s18 + $0x1f4] sm:$0xf] }
 0x33e   :  { %v11842_v14 = vor.u32 %v14175_v5, %v11839_v51  ;;  %v3684_v5 = vpop.f32.mrf.mxu3  ;;  %v3762_v51 = vpop.f32.mrf.mxu1 }
 0x33f   :  { %5168 = vmatmul.bf16.vlgmr.msrb.gmra.mxu0 %v15357_v4  ;;  %4618 = vmatpush.bf16.msrb.mxu3 %v11858_v55  ;;  %v12469_v55 = vld [vmem:[%s18153_s18 + $0x290] sm:$0xf] }
 0x340   :  { %5212 = vmatpush.bf16.msra.mxu0 %v12454_v8  ;;  %5181 = vmatmul.bf16.vlgmr.msrb.gmra.mxu1 %v15363_v10  ;;  %v3749_v8 = vpop.f32.mrf.mxu0 }
 0x341   :  { %5225 = vmatpush.bf16.msra.mxu1 %v12518_v27  ;;  %4659 = vmatpush.bf16.msra.mxu2 %v12034_v61  ;;  %v14219_v27 = vld [vmem:[#allocation6 + $0x204] sm:$0xf]  ;;  %v14249_v61 = vld [vmem:[#allocation6 + $0x2f4] sm:$0xf]  ;;  %v12310_v8 = vor.u32 %v14102_v47, %v12309_v46  ;;  %v12114_v46 = vor.u32 %v14243_v59, %v12111_v45  ;;  %v12191_v45 = vld [vmem:[%s18153_s18 + $0x68] sm:$0xf0] }
 0x342   :  { %v12018_v24 = vor.u32 %v14219_v27, %v12015_v49  ;;  %v12138_v58 = vor.u32 %v14249_v61, %v12135_v62  ;;  %v12391_v27 = vld [vmem:[%s18153_s18 + $0x1f8] sm:$0xf0]  ;;  %v14247_v49 = vld [vmem:[#allocation6 + $0x2e4] sm:$0xf]  ;;  %v14096_v61 = vld [vmem:[%s18153_s18 + $0x124] sm:$0xf0] }
 0x343   :  { %4619 = vmatpush.bf16.msrb.mxu3 %v11850_v39  ;;  %v12461_v39 = vld [vmem:[%s18153_s18 + $0x280] sm:$0xf]  ;;  %v12394_v21 = vor.u32 %v14121_v7, %v12391_v27  ;;  %v14099_v47 = vld [vmem:[%s18153_s18 + $0x144] sm:$0xf]  ;;  %v14097_v27 = vld [vmem:[%s18153_s18 + $0x134] sm:$0xf] }
 0x344   :  { %5213 = vmatpush.bf16.msra.mxu0 %v12446_v25  ;;  %v14144_v25 = vld [vmem:[%s18153_s18 + $0x2a4] sm:$0xf0]  ;;  %v14071_v59 = vld [vmem:[%s18153_s18 + $0x64] sm:$0xf] }
 0x345   :  { %5226 = vmatpush.bf16.msra.mxu1 %v12510_v34  ;;  %4660 = vmatpush.bf16.msra.mxu2 %v12026_v12  ;;  %v14173_v34 = vld [vmem:[#allocation6 + $0x94] sm:$0xf]  ;;  %v12478_v41 = vor.u32 %v14144_v25, %v12477_v23  ;;  %v12327_v12 = vld [vmem:[%s18153_s18 + $0x178] sm:$0xf0]  ;;  %v14103_v23 = vld [vmem:[%s18153_s18 + $0x164] sm:$0xf] }
 0x346   :  { %v11834_v43 = vor.u32 %v14173_v34, %v11831_v26  ;;  %v12383_v34 = vld [vmem:[%s18153_s18 + $0x1e8] sm:$0xf0]  ;;  %v14245_v26 = vld [vmem:[#allocation6 + $0x2d4] sm:$0xf]  ;;  %v12322_v6 = vor.u32 %v14103_v23, %v12319_v37  ;;  %v12199_v37 = vld [vmem:[%s18153_s18 + $0x78] sm:$0xf0] }
 0x347   :  { %4620 = vmatpush.bf16.msrb.mxu3 %v11842_v14  ;;  %v12462_v14 = vor.u32 %v14140_v18, %v12461_v39  ;;  %v14241_v39 = vld [vmem:[#allocation6 + $0x2b4] sm:$0xf]  ;;  %v12103_v18 = vld [vmem:[#allocation6 + $0x2b8] sm:$0xf0] }
 0x348   :  { %5214 = vmatpush.bf16.msra.mxu0 %v12438_v1  ;;  %v12405_v1 = vld [vmem:[%s18153_s18 + $0x210] sm:$0xf]  ;;  %v15960_v32 = vpop.f32.mrf.mxu0  ;;  %v14073_v23 = vld [vmem:[%s18153_s18 + $0x74] sm:$0xf] }
 0x349   :  { %5227 = vmatpush.bf16.msra.mxu1 %v12502_v44  ;;  %v14126_v44 = vld [vmem:[%s18153_s18 + $0x214] sm:$0xf0]  ;;  %4661 = vmatpush.bf16.msra.mxu2 %v12018_v24  ;;  %v14119_v24 = vld [vmem:[%s18153_s18 + $0x1e4] sm:$0xf] }
 0x34a   :  { %v12406_v0 = vor.u32 %v14126_v44, %v12405_v1  ;;  %v14101_v1 = vld [vmem:[%s18153_s18 + $0x154] sm:$0xf]  ;;  %v12311_v44 = vld [vmem:[%s18153_s18 + $0x158] sm:$0xf0] }
 0x34b   :  { %4621 = vmatpush.bf16.msrb.mxu3 %v11834_v43  ;;  %v12314_v62 = vor.u32 %v14101_v1, %v12311_v44  ;;  %v15976_v7 = vpop.f32.mrf.mxu2  ;;  %v15990_v1 = vpop.f32.mrf.mxu1 }
 0x34c   :  { %5215 = vmatpush.bf16.msra.mxu0 %v12430_v2  ;;  %v12470_v2 = vor.u32 %v14142_v63, %v12469_v55  ;;  %4662 = vmatmul.bf16.vlgmr.msra.gmra.mxu2 %v15812_v38  ;;  %v12330_v38 = vor.u32 %v14105_v52, %v12327_v12  ;;  %v14117_v55 = vld [vmem:[%s18153_s18 + $0x1d4] sm:$0xf]  ;;  %v12375_v63 = vld [vmem:[%s18153_s18 + $0x1d8] sm:$0xf0]  ;;  %v14094_v52 = vld [vmem:[%s18153_s18 + $0x114] sm:$0xf0] }
 0x34d   :  { %5228 = vmatpush.bf16.msra.mxu1 %v12494_v11  ;;  %5186 = vmatpush.bf16.msrb.mxu2 %v12326_v29  ;;  %v14124_v11 = vld [vmem:[%s18153_s18 + $0x204] sm:$0xf0]  ;;  %v12119_v29 = vld [vmem:[#allocation6 + $0x2d8] sm:$0xf0] }
 0x34e   :  { %v12398_v50 = vor.u32 %v14124_v11, %v12397_v48  ;;  %v12122_v43 = vor.u32 %v14245_v26, %v12119_v29  ;;  %v12303_v48 = vld [vmem:[%s18153_s18 + $0x148] sm:$0xf0]  ;;  %v14111_v29 = vld [vmem:[%s18153_s18 + $0x1a4] sm:$0xf] }
 0x34f   :  { %4622 = vmatpush.bf16.msrb.mxu3 %v11826_v3  ;;  %v12367_v11 = vld [vmem:[%s18153_s18 + $0x1c8] sm:$0xf0]  ;;  %v12306_v12 = vor.u32 %v14099_v47, %v12303_v48  ;;  %v12279_v47 = vld [vmem:[%s18153_s18 + $0x118] sm:$0xf0] }
 0x350   :  { %5216 = vmatpush.bf16.msra.mxu0 %v12422_v15  ;;  %v12127_v15 = vld [vmem:[#allocation6 + $0x2e8] sm:$0xf0]  ;;  %v3801_v5 = vpop.f32.mrf.mxu0  ;;  %v12343_v48 = vld [vmem:[%s18153_s18 + $0x198] sm:$0xf0] }
 0x351   :  { %5229 = vmatpush.bf16.msra.mxu1 %v12486_v19  ;;  %5187 = vmatpush.bf16.msrb.mxu2 %v12318_v60  ;;  %v14100_v19 = vld [vmem:[%s18153_s18 + $0x144] sm:$0xf0]  ;;  %v12130_v22 = vor.u32 %v14247_v49, %v12127_v15  ;;  %v12285_v60 = vld [vmem:[%s18153_s18 + $0x120] sm:$0xf]  ;;  %v12295_v49 = vld [vmem:[%s18153_s18 + $0x138] sm:$0xf0] }
 0x352   :  { %v12302_v25 = vor.u32 %v14100_v19, %v12301_v16  ;;  %4623 = vmatmul.bf16.vlgmr.msrb.gmra.mxu3 %v15795_v35  ;;  %v12286_v3 = vor.u32 %v14096_v61, %v12285_v60  ;;  %v14113_v15 = vld [vmem:[%s18153_s18 + $0x1b4] sm:$0xf]  ;;  %v12359_v16 = vld [vmem:[%s18153_s18 + $0x1b8] sm:$0xf0]  ;;  %v14239_v19 = vld [vmem:[#allocation6 + $0x2a4] sm:$0xf] }
 0x353   :  { %4667 = vmatpush.bf16.msra.mxu3 %v12138_v58  ;;  %v12277_v58 = vld [vmem:[%s18153_s18 + $0x110] sm:$0xf]  ;;  %v12287_v26 = vld [vmem:[%s18153_s18 + $0x128] sm:$0xf0]  ;;  %v3775_v60 = vpop.f32.mrf.mxu2  ;;  %v14069_v5 = vld [vmem:[%s18153_s18 + $0x54] sm:$0xf] }
 0x354   :  { %5217 = vmatpush.bf16.msra.mxu0 %v12414_v36  ;;  %v12293_v36 = vld [vmem:[%s18153_s18 + $0x130] sm:$0xf]  ;;  %v14116_v60 = vld [vmem:[%s18153_s18 + $0x1c4] sm:$0xf0] }
 0x355   :  { %5230 = vmatpush.bf16.msra.mxu1 %v12478_v41  ;;  %5188 = vmatpush.bf16.msrb.mxu2 %v12310_v8  ;;  %v12386_v41 = vor.u32 %v14119_v24, %v12383_v34  ;;  %v12294_v35 = vor.u32 %v14098_v57, %v12293_v36  ;;  %v12106_v8 = vor.u32 %v14241_v39, %v12103_v18  ;;  %v14095_v34 = vld [vmem:[%s18153_s18 + $0x124] sm:$0xf]  ;;  %v3734_v36 = vpop.f32.mrf.mxu3 }
 0x356   :  { %v12362_v24 = vor.u32 %v14113_v15, %v12359_v16  ;;  %v3735_v44 = vadd.f32 %v3734_v36, %v15920_v54  ;;  %v14109_v54 = vld [vmem:[%s18153_s18 + $0x194] sm:$0xf]  ;;  %v12194_v18 = vor.u32 %v14071_v59, %v12191_v45  ;;  %v12335_v16 = vld [vmem:[%s18153_s18 + $0x188] sm:$0xf0] }
 0x357   :  { %4668 = vmatpush.bf16.msra.mxu3 %v12130_v22  ;;  %v12298_v22 = vor.u32 %v14097_v27, %v12295_v49  ;;  %v14091_v49 = vld [vmem:[%s18153_s18 + $0x104] sm:$0xf] }
 0x358   :  { %5218 = vmatpush.bf16.msra.mxu0 %v12406_v0  ;;  %v12378_v0 = vor.u32 %v14117_v55, %v12375_v63  ;;  %v12202_v55 = vor.u32 %v14073_v23, %v12199_v37  ;;  %v12290_v63 = vor.u32 %v14095_v34, %v12287_v26  ;;  %v3748_v61 = vadd.f32 %v15909_v40, %v3735_v44  ;;  %v12389_v40 = vld [vmem:[%s18153_s18 + $0x1f0] sm:$0xf]  ;;  %v14120_v23 = vld [vmem:[%s18153_s18 + $0x1e4] sm:$0xf0]  ;;  %v12175_v34 = vld [vmem:[%s18153_s18 + $0x48] sm:$0xf0] }
 0x359   :  { %5231 = vmatpush.bf16.msra.mxu1 %v12470_v2  ;;  %5189 = vmatpush.bf16.msrb.mxu2 %v12302_v25  ;;  %v14115_v2 = vld [vmem:[%s18153_s18 + $0x1c4] sm:$0xf] }
 0x35a   :  { %v12370_v51 = vor.u32 %v14115_v2, %v12367_v11  ;;  %v14235_v2 = vld [vmem:[#allocation6 + $0x284] sm:$0xf]  ;;  %v16002_v39 = vadd.f32 %v15929_v28, %v3748_v61  ;;  %v12271_v28 = vld [vmem:[%s18153_s18 + $0x108] sm:$0xf0] }
 0x35b   :  { %4669 = vmatpush.bf16.msra.mxu3 %v12122_v43  ;;  %v12087_v43 = vld [vmem:[#allocation6 + $0x298] sm:$0xf0] }
 0x35c   :  { %5219 = vmatpush.bf16.msra.mxu0 %v12398_v50  ;;  %v12278_v50 = vor.u32 %v14094_v52, %v12277_v58  ;;  %18155 = vst [vmem:[#allocation56_spill] sm:$0xff] %v16002_v39  ;;  %v14122_v58 = vld [vmem:[%s18153_s18 + $0x1f4] sm:$0xf0] }
 0x35d   :  { %5232 = vmatpush.bf16.msra.mxu1 %v12462_v14  ;;  %5190 = vmatpush.bf16.msrb.mxu2 %v12294_v35  ;;  %v12095_v14 = vld [vmem:[#allocation6 + $0x2a8] sm:$0xf0]  ;;  %v5425_v35 = vld [vmem:[%s18154_s12] sm:$0xff]  ;;  %v12390_v15 = vor.u32 %v14122_v58, %v12389_v40  ;;  %v5376_v39 = vld [vmem:[%s18156_s30 + $0x178] sm:$0xff] }
 0x35e   :  { %v12098_v25 = vor.u32 %v14239_v19, %v12095_v14  ;;  %v5439_v11 = vunpack.c.l.b16 %v5425_v35  ;;  %v5440_v52 = vunpack.c.h.b16 %v5425_v35  ;;  %v3736_v19 = vpop.f32.mrf.mxu3  ;;  %v12167_v35 = vld [vmem:[%s18153_s18 + $0x38] sm:$0xf0] }
 0x35f   :  { %5220 = vmatmul.bf16.vlgmr.msra.gmra.mxu0 %v15427_v30  ;;  %4670 = vmatpush.bf16.msra.mxu3 %v12114_v46  ;;  %v14093_v46 = vld [vmem:[%s18153_s18 + $0x114] sm:$0xf] }
 0x360   :  { %5264 = vmatpush.bf16.msrb.mxu0 %v12330_v38  ;;  %5233 = vmatmul.bf16.vlgmr.msra.gmra.mxu1 %v15429_v33  ;;  %v12269_v38 = vld [vmem:[%s18153_s18 + $0x100] sm:$0xf]  ;;  %v5443_v14 = vpack.c.b16 %v5439_v11, %v5439_v11  ;;  %v5444_v37 = vpack.c.b16 %v5440_v52, %v5440_v52  ;;  %v14061_v11 = vld [vmem:[%s18153_s18 + $0x14] sm:$0xf] }
 0x361   :  { %5277 = vmatpush.bf16.msrb.mxu1 %v12394_v21  ;;  %5191 = vmatpush.bf16.msrb.mxu2 %v12286_v3  ;;  %v14092_v21 = vld [vmem:[%s18153_s18 + $0x104] sm:$0xf0]  ;;  %v12079_v3 = vld [vmem:[#allocation6 + $0x288] sm:$0xf0] }
 0x362   :  { %v12270_v57 = vor.u32 %v14092_v21, %v12269_v38  ;;  %v12082_v27 = vor.u32 %v14235_v2, %v12079_v3  ;;  %v3814_v38 = vpop.f32.mrf.mxu1  ;;  %v5549_v44 = vsel %vm5544_vm0, %v5444_v37, 0  ;;  %v14536_v2 = vld [vmem:[%s18147_s1] sm:$0xf] }
 0x363   :  { %4671 = vmatpush.bf16.msra.mxu3 %v12106_v8  ;;  %v12346_v8 = vor.u32 %v14109_v54, %v12343_v48  ;;  %v12357_v54 = vld [vmem:[%s18153_s18 + $0x1b0] sm:$0xf]  ;;  %v14114_v48 = vld [vmem:[%s18153_s18 + $0x1b4] sm:$0xf0]  ;;  %v2565_v3 = vperm.slane %v14536_v2, 3 }
 0x364   :  { %5265 = vmatpush.bf16.msrb.mxu0 %v12322_v6  ;;  %v12351_v6 = vld [vmem:[%s18153_s18 + $0x1a8] sm:$0xf0]  ;;  %v12358_v58 = vor.u32 %v14114_v48, %v12357_v54  ;;  %v14085_v54 = vld [vmem:[%s18153_s18 + $0xd4] sm:$0xf] }
 0x365   :  { %5278 = vmatpush.bf16.msrb.mxu1 %v12386_v41  ;;  %5192 = vmatpush.bf16.msrb.mxu2 %v12278_v50  ;;  %v14237_v41 = vld [vmem:[#allocation6 + $0x294] sm:$0xf]  ;;  %v14107_v50 = vld [vmem:[%s18153_s18 + $0x184] sm:$0xf] }
 0x366   :  { %v12338_v26 = vor.u32 %v14107_v50, %v12335_v16  ;;  %v14137_v50 = vld [vmem:[%s18153_s18 + $0x274] sm:$0xf]  ;;  %v12455_v16 = vld [vmem:[%s18153_s18 + $0x278] sm:$0xf0] }
 0x367   :  { %4672 = vmatpush.bf16.msra.mxu3 %v12098_v25  ;;  %v14067_v25 = vld [vmem:[%s18153_s18 + $0x44] sm:$0xf] }
 0x368   :  { %5266 = vmatpush.bf16.msrb.mxu0 %v12314_v62  ;;  %v12354_v62 = vor.u32 %v14111_v29, %v12351_v6  ;;  %v4533_v29 = vpop.f32.mrf.mxu0  ;;  %v12178_v6 = vor.u32 %v14067_v25, %v12175_v34  ;;  %v12447_v25 = vld [vmem:[%s18153_s18 + $0x268] sm:$0xf0] }
 0x369   :  { %5279 = vmatpush.bf16.msrb.mxu1 %v12378_v0  ;;  %v12090_v0 = vor.u32 %v14237_v41, %v12087_v43  ;;  %5193 = vmatpush.bf16.msrb.mxu2 %v12270_v57  ;;  %v5546_v57 = vsel %vm5544_vm0, %v5443_v14, 0  ;;  %v12373_v41 = vld [vmem:[%s18153_s18 + $0x1d0] sm:$0xf]  ;;  %v14118_v43 = vld [vmem:[%s18153_s18 + $0x1d4] sm:$0xf0] }
 0x36a   :  { %v4546_v59 = vpop.f32.mrf.mxu1 }
 0x36b   :  { %4673 = vmatpush.bf16.msra.mxu3 %v12090_v0  ;;  %v16027_v61 = vadd.f32 %v4546_v59, %v4533_v29  ;;  %v12159_v0 = vld [vmem:[%s18153_s18 + $0x28] sm:$0xf0]  ;;  %v3825_v40 = vpop.f32.mrf.mxu2 }
 0x36c   :  { %5267 = vmatpush.bf16.msrb.mxu0 %v12306_v12  ;;  %v12282_v12 = vor.u32 %v14093_v46, %v12279_v47  ;;  %5194 = vmatmul.bf16.vlgmr.msrb.gmra.mxu2 %v15373_v20 }
 0x36d   :  { %5280 = vmatpush.bf16.msrb.mxu1 %v12370_v51  ;;  %5238 = vmatpush.bf16.msra.mxu2 %v12202_v55  ;;  %v12183_v51 = vld [vmem:[%s18153_s18 + $0x58] sm:$0xf0]  ;;  %v14065_v55 = vld [vmem:[%s18153_s18 + $0x34] sm:$0xf] }
 0x36e   :  { %v12186_v21 = vor.u32 %v14069_v5, %v12183_v51  ;;  %v12170_v45 = vor.u32 %v14065_v55, %v12167_v35  ;;  %v12349_v5 = vld [vmem:[%s18153_s18 + $0x1a0] sm:$0xf]  ;;  %v14112_v51 = vld [vmem:[%s18153_s18 + $0x1a4] sm:$0xf0]  ;;  %v12263_v55 = vld [vmem:[%s18153_s18 + $0xf8] sm:$0xf0] }
 0x36f   :  { %4674 = vmatpush.bf16.msra.mxu3 %v12082_v27  ;;  %v3774_v27 = vadd.f32 %v15976_v7, %v2565_v3  ;;  %v12350_v19 = vor.u32 %v14112_v51, %v12349_v5  ;;  %v12458_v7 = vor.u32 %v14137_v50, %v12455_v16  ;;  %v14133_v35 = vld [vmem:[%s18153_s18 + $0x254] sm:$0xf]  ;;  %v12247_v3 = vld [vmem:[%s18153_s18 + $0xd8] sm:$0xf0]  ;;  %v14083_v51 = vld [vmem:[%s18153_s18 + $0xc4] sm:$0xf] }
 0x370   :  { %5268 = vmatpush.bf16.msrb.mxu0 %v12298_v22  ;;  %v12381_v22 = vld [vmem:[%s18153_s18 + $0x1e0] sm:$0xf]  ;;  %v4535_v46 = vpop.f32.mrf.mxu0  ;;  %v14081_v50 = vld [vmem:[%s18153_s18 + $0xb4] sm:$0xf]  ;;  %v12231_v16 = vld [vmem:[%s18153_s18 + $0xb8] sm:$0xf0] }
 0x371   :  { %5281 = vmatpush.bf16.msrb.mxu1 %v12362_v24  ;;  %5239 = vmatpush.bf16.msra.mxu2 %v12194_v18  ;;  %v12274_v24 = vor.u32 %v14091_v49, %v12271_v28  ;;  %v12382_v36 = vor.u32 %v14120_v23, %v12381_v22  ;;  %v12151_v18 = vld [vmem:[%s18153_s18 + $0x18] sm:$0xf0]  ;;  %v5330_v49 = vld [vmem:[%s18156_s30 + $0x8] sm:$0xff]  ;;  %v14059_v28 = vld [vmem:[%s18153_s18 + $0x4] sm:$0xf] }
 0x372   :  { %4675 = vmatmul.bf16.vlgmr.msra.gmra.mxu3 %v15816_v42  ;;  %v12365_v42 = vld [vmem:[%s18153_s18 + $0x1c0] sm:$0xf]  ;;  %v4548_v52 = vpop.f32.mrf.mxu1  ;;  %v3786_v14 = vpop.f32.mrf.mxu3  ;;  %v12341_v22 = vld [vmem:[%s18153_s18 + $0x190] sm:$0xf]  ;;  %v14110_v23 = vld [vmem:[%s18153_s18 + $0x194] sm:$0xf0] }
 0x373   :  { %5199 = vmatpush.bf16.msrb.mxu3 %v12390_v15  ;;  %v12366_v47 = vor.u32 %v14116_v60, %v12365_v42  ;;  %v12143_v15 = vld [vmem:[%s18153_s18 + $0x8] sm:$0xf0]  ;;  %v3787_v37 = vadd.f32 %v3786_v14, %v3774_v27  ;;  %v3827_v34 = vpop.f32.mrf.mxu2  ;;  %v12342_v29 = vor.u32 %v14110_v23, %v12341_v22  ;;  %v14131_v46 = vld [vmem:[%s18153_s18 + $0x244] sm:$0xf]  ;;  %v12250_v52 = vor.u32 %v14085_v54, %v12247_v3  ;;  %v12407_v14 = vld [vmem:[%s18153_s18 + $0x218] sm:$0xf0] }
 0x374   :  { %5269 = vmatpush.bf16.msrb.mxu0 %v12290_v63  ;;  %v12374_v63 = vor.u32 %v14118_v43, %v12373_v41  ;;  %v14127_v27 = vld [vmem:[%s18153_s18 + $0x224] sm:$0xf]  ;;  %v12234_v23 = vor.u32 %v14081_v50, %v12231_v16  ;;  %v14153_v54 = vld [vmem:[%s18153_s18 + $0x2f4] sm:$0xf]  ;;  %v12487_v16 = vld [vmem:[%s18153_s18 + $0x2b8] sm:$0xf0] }
 0x375   :  { %5282 = vmatpush.bf16.msrb.mxu1 %v12354_v62  ;;  %5240 = vmatpush.bf16.msra.mxu2 %v12186_v21  ;;  %v14063_v62 = vld [vmem:[%s18153_s18 + $0x24] sm:$0xf]  ;;  %v12146_v21 = vor.u32 %v14059_v28, %v12143_v15  ;;  %v16091_v28 = vld [vmem:[%s18154_s12 + $0x8] sm:$0xff]  ;;  %v14145_v50 = vld [vmem:[%s18153_s18 + $0x2b4] sm:$0xf] }
 0x376   :  { %v5441_v22 = vunpack.c.l.b16 %v16091_v28  ;;  %v14123_v34 = vld [vmem:[%s18153_s18 + $0x204] sm:$0xf] }
 0x377   :  { %5200 = vmatpush.bf16.msrb.mxu3 %v12382_v36  ;;  %v12333_v36 = vld [vmem:[%s18153_s18 + $0x180] sm:$0xf] }
 0x378   :  { %5270 = vmatpush.bf16.msrb.mxu0 %v12282_v12  ;;  %v12154_v12 = vor.u32 %v14061_v11, %v12151_v18  ;;  %v5331_v11 = vld [vmem:[%s18156_s30 + $0x10] sm:$0xff]  ;;  %v5332_v18 = vld [vmem:[%s18156_s30 + $0x18] sm:$0xff] }
 0x379   :  { %5283 = vmatpush.bf16.msrb.mxu1 %v12346_v8  ;;  %5241 = vmatpush.bf16.msra.mxu2 %v12178_v6  ;;  %v5329_v8 = vld [vmem:[%s18156_s30] sm:$0xff] }
 0x37a   :  { %v16046_v38 = vpack.c.bf16 %v5330_v49, %v5329_v8  ;;  %v3788_v42 = vpop.f32.mrf.mxu3  ;;  %v12239_v8 = vld [vmem:[%s18153_s18 + $0xc8] sm:$0xf0] }
 0x37b   :  { %5201 = vmatpush.bf16.msrb.mxu3 %v12374_v63  ;;  %v12439_v63 = vld [vmem:[%s18153_s18 + $0x258] sm:$0xf0]  ;;  %v12415_v49 = vld [vmem:[%s18153_s18 + $0x228] sm:$0xf0] }
 0x37c   :  { %5271 = vmatpush.bf16.msrb.mxu0 %v12274_v24  ;;  %v14135_v24 = vld [vmem:[%s18153_s18 + $0x264] sm:$0xf]  ;;  %v16057_v6 = vpop.f32.mrf.mxu0  ;;  %v12442_v60 = vor.u32 %v14133_v35, %v12439_v63  ;;  %v12418_v15 = vor.u32 %v14127_v27, %v12415_v49  ;;  %v5334_v63 = vld [vmem:[%s18156_s30 + $0x28] sm:$0xff] }
 0x37d   :  { %5284 = vmatpush.bf16.msrb.mxu1 %v12338_v26  ;;  %5242 = vmatpush.bf16.msra.mxu2 %v12170_v45  ;;  %v3800_v26 = vadd.f32 %v15960_v32, %v3787_v37  ;;  %v16059_v41 = vpop.f32.mrf.mxu1  ;;  %v12450_v32 = vor.u32 %v14135_v24, %v12447_v25  ;;  %v14079_v24 = vld [vmem:[%s18153_s18 + $0xa4] sm:$0xf]  ;;  %v12223_v25 = vld [vmem:[%s18153_s18 + $0xa8] sm:$0xf0] }
 0x37e   :  { %v5333_v35 = vld [vmem:[%s18156_s30 + $0x20] sm:$0xff]  ;;  %v12495_v49 = vld [vmem:[%s18153_s18 + $0x2c8] sm:$0xf0] }
 0x37f   :  { %5272 = vmatmul.bf16.vlgmr.msrb.gmra.mxu0 %v15373_v20  ;;  %v12162_v20 = vor.u32 %v14063_v62, %v12159_v0  ;;  %5202 = vmatpush.bf16.msrb.mxu3 %v12366_v47  ;;  %v3813_v43 = vadd.f32 %v15990_v1, %v3800_v26  ;;  %v14087_v62 = vld [vmem:[%s18153_s18 + $0xe4] sm:$0xf]  ;;  %v12255_v0 = vld [vmem:[%s18153_s18 + $0xe8] sm:$0xf0] }
 0x380   :  { %5564 = vmatpush.bf16.msra.mxu0 %v5546_v57  ;;  %5285 = vmatmul.bf16.vlgmr.msrb.gmra.mxu1 %v15384_v31  ;;  %v14108_v57 = vld [vmem:[%s18153_s18 + $0x184] sm:$0xf0]  ;;  %v12431_v47 = vld [vmem:[%s18153_s18 + $0x248] sm:$0xf0]  ;;  %v14147_v27 = vld [vmem:[%s18153_s18 + $0x2c4] sm:$0xf] }
 0x381   :  { %5733 = vmatpush.bf16.msra.mxu1 %v5549_v44  ;;  %5243 = vmatpush.bf16.msra.mxu2 %v12162_v20  ;;  %v14089_v44 = vld [vmem:[%s18153_s18 + $0xf4] sm:$0xf]  ;;  %v16068_v59 = vadd.f32 %v3825_v40, %v3813_v43  ;;  %v12334_v1 = vor.u32 %v14108_v57, %v12333_v36  ;;  %v12258_v20 = vor.u32 %v14087_v62, %v12255_v0  ;;  %v12399_v26 = vld [vmem:[%s18153_s18 + $0x208] sm:$0xf0] }
 0x382   :  { %v12266_v45 = vor.u32 %v14089_v44, %v12263_v55  ;;  %v12434_v2 = vor.u32 %v14131_v46, %v12431_v47  ;;  %v14129_v40 = vld [vmem:[%s18153_s18 + $0x234] sm:$0xf]  ;;  %v5445_v57 = vpack.c.b16 %v5441_v22, %v5441_v22  ;;  %v12226_v43 = vor.u32 %v14079_v24, %v12223_v25  ;;  %v12215_v55 = vld [vmem:[%s18153_s18 + $0x98] sm:$0xf0]  ;;  %v14075_v47 = vld [vmem:[%s18153_s18 + $0x84] sm:$0xf] }
 0x383   :  { %5203 = vmatpush.bf16.msrb.mxu3 %v12358_v58  ;;  %v12423_v58 = vld [vmem:[%s18153_s18 + $0x238] sm:$0xf0]  ;;  %v12402_v44 = vor.u32 %v14123_v34, %v12399_v26  ;;  %v16122_v46 = vpack.c.bf16 %v5334_v63, %v5333_v35  ;;  %v14141_v25 = vld [vmem:[%s18153_s18 + $0x294] sm:$0xf]  ;;  %v14139_v35 = vld [vmem:[%s18153_s18 + $0x284] sm:$0xf] }
 0x384   :  { %v12426_v5 = vor.u32 %v14129_v40, %v12423_v58  ;;  %v5552_v42 = vsel %vm5544_vm0, %v5445_v57, 0  ;;  %v12511_v40 = vld [vmem:[%s18153_s18 + $0x2e8] sm:$0xf0]  ;;  %v12471_v34 = vld [vmem:[%s18153_s18 + $0x298] sm:$0xf0]  ;;  %v5442_v57 = vunpack.c.h.b16 %v16091_v28 }
 0x385   :  { %5244 = vmatpush.bf16.msra.mxu2 %v12154_v12  ;;  %v4600_v48 = vpop.f32.mrf.mxu1  ;;  %v16082_v12 = vpack.c.bf16 %v5332_v18, %v5331_v11  ;;  %v14151_v18 = vld [vmem:[%s18153_s18 + $0x2e4] sm:$0xf]  ;;  %v12463_v63 = vld [vmem:[%s18153_s18 + $0x288] sm:$0xf0] }
 0x386   :  { %v12514_v58 = vor.u32 %v14151_v18, %v12511_v40  ;;  %v12466_v28 = vor.u32 %v14139_v35, %v12463_v63 }
 0x387   :  { %5204 = vmatpush.bf16.msrb.mxu3 %v12350_v19  ;;  %v14125_v19 = vld [vmem:[%s18153_s18 + $0x214] sm:$0xf] }
 0x389   :  { %5245 = vmatpush.bf16.msra.mxu2 %v12146_v21 }
 0x38b   :  { %5205 = vmatpush.bf16.msrb.mxu3 %v12342_v29 }
 0x38c   :  { %5246 = vmatmul.bf16.vlgmr.msra.gmra.mxu2 %v15357_v4  ;;  %v4587_v4 = vpop.f32.mrf.mxu0 }
 0x38d   :  { %5290 = vmatpush.bf16.msrb.mxu2 %v12458_v7  ;;  %v4559_v21 = vpop.f32.mrf.mxu2  ;;  %v12410_v7 = vor.u32 %v14125_v19, %v12407_v14  ;;  %v12519_v4 = vld [vmem:[%s18153_s18 + $0x2f8] sm:$0xf0]  ;;  %v12490_v19 = vor.u32 %v14145_v50, %v12487_v16  ;;  %v14143_v14 = vld [vmem:[%s18153_s18 + $0x2a4] sm:$0xf] }
 0x38e   :  { %v16101_v37 = vadd.f32 %v4559_v21, %v16027_v61  ;;  %v12522_v3 = vor.u32 %v14153_v54, %v12519_v4  ;;  %v12479_v21 = vld [vmem:[%s18153_s18 + $0x2a8] sm:$0xf0]  ;;  %v5340_v4 = vld [vmem:[%s18156_s30 + $0x58] sm:$0xff] }
 0x38f   :  { %12523 = vmatmul.msk.bf16.vlgmr.msra.gmra.mxu0 %vm5447_vm1, %v16046_v38  ;;  %5206 = vmatpush.bf16.msrb.mxu3 %v12334_v1 }
 0x390   :  { %12555 = vmatmul.msk.bf16.vlgmr.msra.gmra.mxu1 %vm5447_vm1, %v16046_v38 }
 0x391   :  { %5291 = vmatpush.bf16.msrb.mxu2 %v12450_v32  ;;  %v14077_v32 = vld [vmem:[%s18153_s18 + $0x94] sm:$0xf] }
 0x392   :  { %5207 = vmatmul.bf16.vlgmr.msrb.gmra.mxu3 %v15384_v31  ;;  %v12242_v31 = vor.u32 %v14083_v51, %v12239_v8  ;;  %v12218_v0 = vor.u32 %v14077_v32, %v12215_v55  ;;  %v5335_v8 = vld [vmem:[%s18156_s30 + $0x30] sm:$0xff]  ;;  %v5338_v55 = vld [vmem:[%s18156_s30 + $0x48] sm:$0xff] }
 0x393   :  { %5251 = vmatpush.bf16.msra.mxu3 %v12266_v45  ;;  %v3838_v61 = vpop.f32.mrf.mxu3 }
 0x394   :  { %v3839_v1 = vadd.f32 %v3838_v61, %v16068_v59  ;;  %v12474_v61 = vor.u32 %v14141_v25, %v12471_v34 }
 0x395   :  { %5292 = vmatpush.bf16.msrb.mxu2 %v12442_v60  ;;  %v4561_v45 = vpop.f32.mrf.mxu2  ;;  %v16118_v60 = vmax.f32 %v15932_v9, 0.0 }
 0x396   :  { %v16120_v62 = vmax.f32 %v3839_v1, 0.0  ;;  %v5446_v45 = vpack.c.b16 %v5442_v57, %v5442_v57 }
 0x397   :  { %5252 = vmatpush.bf16.msra.mxu3 %v12258_v20  ;;  %18157 = vst [vmem:[#allocation57_spill] sm:$0xff] %v16118_v60  ;;  %v12207_v20 = vld [vmem:[%s18153_s18 + $0x88] sm:$0xf0] }
 0x398   :  { %18158 = vst [vmem:[#allocation58_spill] sm:$0xff] %v16120_v62  ;;  %v16128_v59 = vmax.f32 %v16118_v60, %v16120_v62  ;;  %v5555_v54 = vsel %vm5544_vm0, %v5446_v45, 0 }
 0x399   :  { %5293 = vmatpush.bf16.msrb.mxu2 %v12434_v2  ;;  %v12210_v2 = vor.u32 %v14075_v47, %v12207_v20 }
 0x39a   :  { %18159 = vst [vmem:[#allocation59_spill] sm:$0xff] %v16128_v59 }
 0x39b   :  { %5253 = vmatpush.bf16.msra.mxu3 %v12250_v52  ;;  %v3840_v11 = vpop.f32.mrf.mxu3  ;;  %v14149_v52 = vld [vmem:[%s18153_s18 + $0x2d4] sm:$0xf] }
 0x39c   :  { %v16107_v29 = vpop.f32.mrf.mxu0 }
 0x39d   :  { %5294 = vmatpush.bf16.msrb.mxu2 %v12426_v5  ;;  %v16109_v36 = vpop.f32.mrf.mxu1  ;;  %v12503_v5 = vld [vmem:[%s18153_s18 + $0x2d8] sm:$0xf0] }
 0x39e   :  { %v12506_v51 = vor.u32 %v14149_v52, %v12503_v5  ;;  %v5341_v5 = vld [vmem:[%s18156_s30 + $0x60] sm:$0xff] }
 0x39f   :  { %12524 = vmatmul.msk.bf16.gmra.mxu0 %vm5447_vm1, %v16082_v12  ;;  %5254 = vmatpush.bf16.msra.mxu3 %v12242_v31 }
 0x3a0   :  { %12556 = vmatmul.msk.bf16.gmra.mxu1 %vm5447_vm1, %v16082_v12 }
 0x3a1   :  { %5295 = vmatpush.bf16.msrb.mxu2 %v12418_v15  ;;  %v12498_v15 = vor.u32 %v14147_v27, %v12495_v49 }
 0x3a3   :  { %5255 = vmatpush.bf16.msra.mxu3 %v12234_v23 }
 0x3a4   :  { %v4639_v9 = vpop.f32.mrf.mxu0 }
 0x3a5   :  { %5296 = vmatpush.bf16.msrb.mxu2 %v12410_v7  ;;  %v4652_v48 = vpop.f32.mrf.mxu1  ;;  %v12482_v7 = vor.u32 %v14143_v14, %v12479_v21 }
 0x3a7   :  { %5256 = vmatpush.bf16.msra.mxu3 %v12226_v43 }
 0x3a9   :  { %5297 = vmatpush.bf16.msrb.mxu2 %v12402_v44  ;;  %v5337_v44 = vld [vmem:[%s18156_s30 + $0x40] sm:$0xff] }
 0x3ab   :  { %5257 = vmatpush.bf16.msra.mxu3 %v12218_v0  ;;  %v16168_v0 = vpack.c.bf16 %v5338_v55, %v5337_v44 }
 0x3ac   :  { %5298 = vmatmul.bf16.vlgmr.msrb.gmra.mxu2 %v15427_v30  ;;  %v5336_v30 = vld [vmem:[%s18156_s30 + $0x38] sm:$0xff] }
 0x3ad   :  { %5902 = vmatpush.bf16.msra.mxu2 %v5552_v42  ;;  %v16146_v31 = vpack.c.bf16 %v5336_v30, %v5335_v8 }
 0x3af   :  { %12525 = vmatmul.msk.bf16.gmra.mxu0 %vm5447_vm1, %v16122_v46  ;;  %5258 = vmatpush.bf16.msra.mxu3 %v12210_v2 }
 0x3b0   :  { %12557 = vmatmul.msk.bf16.gmra.mxu1 %vm5447_vm1, %v16122_v46 }
 0x3b2   :  { %5259 = vmatmul.bf16.vlgmr.msra.gmra.mxu3 %v15363_v10  ;;  %v4611_v10 = vpop.f32.mrf.mxu2 }
 0x3b3   :  { %5303 = vmatpush.bf16.msrb.mxu3 %v12522_v3 }
 0x3b5   :  { %v4572_v24 = vpop.f32.mrf.mxu3 }
 0x3b6   :  { %v4573_v26 = vadd.f32 %v4572_v24, %v16101_v37  ;;  %v5346_v24 = vld [vmem:[%s18156_s30 + $0x88] sm:$0xff] }
 0x3b7   :  { %5304 = vmatpush.bf16.msrb.mxu3 %v12514_v58 }
 0x3b8   :  { %v4586_v32 = vadd.f32 %v16057_v6, %v4573_v26 }
 0x3ba   :  { %v4613_v43 = vpop.f32.mrf.mxu2  ;;  %v4599_v1 = vadd.f32 %v16059_v41, %v4586_v32  ;;  %v5339_v41 = vld [vmem:[%s18156_s30 + $0x50] sm:$0xff] }
 0x3bb   :  { %5305 = vmatpush.bf16.msrb.mxu3 %v12506_v51  ;;  %v16180_v9 = vpack.c.bf16 %v5340_v4, %v5339_v41  ;;  %v5342_v51 = vld [vmem:[%s18156_s30 + $0x68] sm:$0xff]  ;;  %v5347_v32 = vld [vmem:[%s18156_s30 + $0x90] sm:$0xff] }
 0x3bc   :  { %12587 = vmatmul.msk.bf16.vlgmr.msra.gmra.mxu2 %vm5447_vm1, %v16046_v38  ;;  %v5169_v22 = vpop.f32.mrf.mxu0  ;;  %v16194_v49 = vpack.c.bf16 %v5342_v51, %v5341_v5 }
 0x3bd   :  { %v5182_v23 = vpop.f32.mrf.mxu1  ;;  %v5170_v47 = vadd.f32 %v5169_v22, %v4599_v1  ;;  %v4574_v20 = vpop.f32.mrf.mxu3 }
 0x3be   :  { %v5349_v20 = vld [vmem:[%s18156_s30 + $0xa0] sm:$0xff] }
 0x3bf   :  { %12526 = vmatmul.msk.bf16.gmra.mxu0 %vm5447_vm1, %v16146_v31  ;;  %5306 = vmatpush.bf16.msrb.mxu3 %v12498_v15  ;;  %v5183_v6 = vadd.f32 %v5182_v23, %v5170_v47 }
 0x3c0   :  { %12558 = vmatmul.msk.bf16.gmra.mxu1 %vm5447_vm1, %v16146_v31 }
 0x3c3   :  { %5307 = vmatpush.bf16.msrb.mxu3 %v12490_v19 }
 0x3c4   :  { %v5171_v42 = vpop.f32.mrf.mxu0 }
 0x3c5   :  { %v5184_v37 = vpop.f32.mrf.mxu1 }
 0x3c7   :  { %5308 = vmatpush.bf16.msrb.mxu3 %v12482_v7  ;;  %v5345_v7 = vld [vmem:[%s18156_s30 + $0x80] sm:$0xff] }
 0x3c8   :  { %v16218_v25 = vpack.c.bf16 %v5346_v24, %v5345_v7 }
 0x3cb   :  { %5309 = vmatpush.bf16.msrb.mxu3 %v12474_v61  ;;  %v5348_v61 = vld [vmem:[%s18156_s30 + $0x98] sm:$0xff] }
 0x3cc   :  { %12588 = vmatmul.msk.bf16.gmra.mxu2 %vm5447_vm1, %v16082_v12  ;;  %v16238_v44 = vpack.c.bf16 %v5348_v61, %v5347_v32  ;;  %v5353_v61 = vld [vmem:[%s18156_s30 + $0xc0] sm:$0xff] }
 0x3cf   :  { %12527 = vmatmul.msk.bf16.gmra.mxu0 %vm5447_vm1, %v16168_v0  ;;  %5310 = vmatpush.bf16.msrb.mxu3 %v12466_v28  ;;  %v4663_v48 = vpop.f32.mrf.mxu2 }
 0x3d0   :  { %12559 = vmatmul.msk.bf16.gmra.mxu1 %vm5447_vm1, %v16168_v0 }
 0x3d2   :  { %5311 = vmatmul.bf16.vlgmr.msrb.gmra.mxu3 %v15429_v33 }
 0x3d3   :  { %6071 = vmatpush.bf16.msra.mxu3 %v5555_v54 }
 0x3d5   :  { %v4624_v11 = vpop.f32.mrf.mxu3 }
 0x3d6   :  { %v4625_v33 = vadd.f32 %v4624_v11, %v4611_v10  ;;  %v5351_v11 = vld [vmem:[%s18156_s30 + $0xb0] sm:$0xff] }
 0x3d7   :  { %v4665_v18 = vpop.f32.mrf.mxu2 }
 0x3d8   :  { %v4638_v40 = vadd.f32 %v16107_v29, %v4625_v33  ;;  %v5344_v29 = vld [vmem:[%s18156_s30 + $0x78] sm:$0xff] }
 0x3d9   :  { %v5352_v33 = vld [vmem:[%s18156_s30 + $0xb8] sm:$0xff] }
 0x3da   :  { %v4651_v58 = vadd.f32 %v16109_v36, %v4638_v40 }
 0x3dc   :  { %v5221_v2 = vpop.f32.mrf.mxu0  ;;  %12589 = vmatmul.msk.bf16.gmra.mxu2 %vm5447_vm1, %v16122_v46  ;;  %v4664_v30 = vadd.f32 %v4663_v48, %v4651_v58 }
 0x3dd   :  { %v5234_v3 = vpop.f32.mrf.mxu1  ;;  %v4626_v27 = vpop.f32.mrf.mxu3 }
 0x3de   :  { %v16277_v27 = vld [vmem:[%s18160_s29] sm:$0xf] }
 0x3df   :  { %12528 = vmatmul.msk.bf16.gmra.mxu0 %vm5447_vm1, %v16180_v9 }
 0x3e0   :  { %12560 = vmatmul.msk.bf16.gmra.mxu1 %vm5447_vm1, %v16180_v9 }
 0x3e2   :  { %12619 = vmatmul.msk.bf16.vlgmr.msra.gmra.mxu3 %vm5447_vm1, %v16046_v38  ;;  %v5343_v38 = vld [vmem:[%s18156_s30 + $0x70] sm:$0xff] }
 0x3e3   :  { %v16206_v50 = vpack.c.bf16 %v5344_v29, %v5343_v38  ;;  %v16287_v29 = vperm.slane %v16277_v27, 1 }
 0x3e4   :  { %v5223_v52 = vpop.f32.mrf.mxu0 }
 0x3e5   :  { %v5236_v8 = vpop.f32.mrf.mxu1  ;;  %v16270_v52 = vpack.c.bf16 %v5352_v33, %v5351_v11 }
 0x3ec   :  { %12590 = vmatmul.msk.bf16.gmra.mxu2 %vm5447_vm1, %v16146_v31 }
 0x3ef   :  { %12529 = vmatmul.msk.bf16.gmra.mxu0 %vm5447_vm1, %v16194_v49  ;;  %v5195_v36 = vpop.f32.mrf.mxu2 }
 0x3f0   :  { %12561 = vmatmul.msk.bf16.gmra.mxu1 %vm5447_vm1, %v16194_v49  ;;  %v5196_v15 = vadd.f32 %v5195_v36, %v5183_v6  ;;  %v5350_v6 = vld [vmem:[%s18156_s30 + $0xa8] sm:$0xff] }
 0x3f1   :  { %v16256_v54 = vpack.c.bf16 %v5350_v6, %v5349_v20 }
 0x3f2   :  { %12620 = vmatmul.msk.bf16.gmra.mxu3 %vm5447_vm1, %v16082_v12 }
 0x3f5   :  { %v4676_v19 = vpop.f32.mrf.mxu3 }
 0x3f6   :  { %v4677_v14 = vadd.f32 %v4676_v19, %v4664_v30 }
 0x3f7   :  { %v5197_v12 = vpop.f32.mrf.mxu2 }
 0x3fc   :  { %v5273_v16 = vpop.f32.mrf.mxu0  ;;  %12591 = vmatmul.msk.bf16.gmra.mxu2 %vm5447_vm1, %v16168_v0 }
 0x3fd   :  { %v5286_v10 = vpop.f32.mrf.mxu1  ;;  %v4678_v23 = vpop.f32.mrf.mxu3 }
 0x3ff   :  { %12530 = vmatmul.msk.bf16.gmra.mxu0 %vm5447_vm1, %v16206_v50 }
 0x400   :  { %12562 = vmatmul.msk.bf16.gmra.mxu1 %vm5447_vm1, %v16206_v50 }
 0x402   :  { %12621 = vmatmul.msk.bf16.gmra.mxu3 %vm5447_vm1, %v16122_v46 }
 0x404   :  { %v5275_v21 = vpop.f32.mrf.mxu0 }
 0x405   :  { %v5288_v22 = vpop.f32.mrf.mxu1 }
 0x40c   :  { %v16220_v34 = vpop.f32.mrf.mxu0  ;;  %12592 = vmatmul.msk.bf16.gmra.mxu2 %vm5447_vm1, %v16180_v9 }
 0x40d   :  { %v16222_v26 = vpop.f32.mrf.mxu1 }
 0x40f   :  { %12531 = vmatmul.msk.bf16.gmra.mxu0 %vm5447_vm1, %v16218_v25  ;;  %v5247_v43 = vpop.f32.mrf.mxu2 }
 0x410   :  { %12563 = vmatmul.msk.bf16.gmra.mxu1 %vm5447_vm1, %v16218_v25 }
 0x412   :  { %12622 = vmatmul.msk.bf16.gmra.mxu3 %vm5447_vm1, %v16146_v31 }
 0x414   :  { %v16232_v46 = vpop.f32.mrf.mxu0 }
 0x415   :  { %v16234_v57 = vpop.f32.mrf.mxu1  ;;  %v5208_v55 = vpop.f32.mrf.mxu3 }
 0x416   :  { %v5209_v63 = vadd.f32 %v5208_v55, %v5196_v15  ;;  %v5354_v55 = vld [vmem:[%s18156_s30 + $0xc8] sm:$0xff] }
 0x417   :  { %v5249_v45 = vpop.f32.mrf.mxu2  ;;  %v16305_v6 = vpack.c.bf16 %v5354_v55, %v5353_v61 }
 0x418   :  { %v5222_v42 = vadd.f32 %v5221_v2, %v5209_v63 }
 0x41a   :  { %v16248_v31 = vadd.f32 %v5234_v3, %v5222_v42  ;;  %v5248_v3 = vadd.f32 %v5247_v43, %v4677_v14 }
 0x41c   :  { %v16240_v35 = vpop.f32.mrf.mxu0  ;;  %12593 = vmatmul.msk.bf16.gmra.mxu2 %vm5447_vm1, %v16194_v49 }
 0x41d   :  { %v16242_v1 = vpop.f32.mrf.mxu1  ;;  %v5210_v47 = vpop.f32.mrf.mxu3 }
 0x41f   :  { %12532 = vmatmul.msk.bf16.gmra.mxu0 %vm5447_vm1, %v16238_v44 }
 0x420   :  { %12564 = vmatmul.msk.bf16.gmra.mxu1 %vm5447_vm1, %v16238_v44 }
 0x422   :  { %12623 = vmatmul.msk.bf16.gmra.mxu3 %vm5447_vm1, %v16168_v0 }
 0x424   :  { %v5573_v37 = vpop.f32.mrf.mxu0 }
 0x425   :  { %v5742_v28 = vpop.f32.mrf.mxu1 }
 0x426   :  { %v5743_v42 = vadd.f32 %v5742_v28, %v16287_v29 }
 0x428   :  { %v6246_v33 = vmax.f32 %v5743_v42, 0.0 }
 0x42c   :  { %v5576_v41 = vpop.f32.mrf.mxu0  ;;  %12594 = vmatmul.msk.bf16.gmra.mxu2 %vm5447_vm1, %v16206_v50 }
 0x42d   :  { %v5745_v4 = vpop.f32.mrf.mxu1 }
 0x42f   :  { %12533 = vmatmul.msk.bf16.gmra.mxu0 %vm5447_vm1, %v16256_v54  ;;  %v16264_v0 = vpop.f32.mrf.mxu2 }
 0x430   :  { %12565 = vmatmul.msk.bf16.gmra.mxu1 %vm5447_vm1, %v16256_v54 }
 0x432   :  { %12624 = vmatmul.msk.bf16.gmra.mxu3 %vm5447_vm1, %v16180_v9  ;;  %v16282_v9 = vperm.slane %v16277_v27, 0 }
 0x434   :  { %v5578_v48 = vpop.f32.mrf.mxu0  ;;  %v5577_v23 = vadd.f32 %v5576_v41, %v16282_v9  ;;  %v5574_v63 = vadd.f32 %v5573_v37, %v16282_v9  ;;  %v5572_v41 = vadd.f32 %v16240_v35, %v16282_v9  ;;  %v5741_v37 = vadd.f32 %v16242_v1, %v16287_v29 }
 0x435   :  { %v5747_v2 = vpop.f32.mrf.mxu1  ;;  %v5260_v18 = vpop.f32.mrf.mxu3  ;;  %v5579_v19 = vadd.f32 %v5578_v48, %v16282_v9  ;;  %v5569_v11 = vadd.f32 %v16232_v46, %v16282_v9  ;;  %v5738_v35 = vadd.f32 %v16234_v57, %v16287_v29  ;;  %v5567_v1 = vadd.f32 %v16220_v34, %v16282_v9 }
 0x436   :  { %v5261_v40 = vadd.f32 %v5260_v18, %v5248_v3  ;;  %v5748_v21 = vadd.f32 %v5747_v2, %v16287_v29  ;;  %v6249_v20 = vmax.f32 %v5577_v23, 0.0  ;;  %v6245_v28 = vmax.f32 %v5574_v63, 0.0 }
 0x437   :  { %v5301_v58 = vpop.f32.mrf.mxu2  ;;  %v6253_v45 = vmax.f32 %v5579_v19, 0.0  ;;  %v6241_v18 = vmax.f32 %v5572_v41, 0.0  ;;  %v5736_v46 = vadd.f32 %v16222_v26, %v16287_v29  ;;  %v6237_v57 = vmax.f32 %v5569_v11, 0.0 }
 0x438   :  { %v5274_v5 = vadd.f32 %v5273_v16, %v5261_v40  ;;  %v6254_v47 = vmax.f32 %v5748_v21, 0.0  ;;  %v6242_v40 = vmax.f32 %v5741_v37, 0.0  ;;  %v5316_v58 = vld [vmem:[%s18161_s27] sm:$0x3]  ;;  %v6233_v34 = vmax.f32 %v5567_v1, 0.0 }
 0x439   :  { %v6234_v26 = vmax.f32 %v5736_v46, 0.0  ;;  %v5360_v46 = vld [vmem:[%s18156_s30 + $0xf8] sm:$0xff] }
 0x43a   :  { %v16272_v30 = vadd.f32 %v5286_v10, %v5274_v5  ;;  %v6238_v5 = vmax.f32 %v5738_v35, 0.0 }
 0x43c   :  { %v5581_v51 = vpop.f32.mrf.mxu0  ;;  %12595 = vmatmul.msk.bf16.gmra.mxu2 %vm5447_vm1, %v16218_v25 }
 0x43d   :  { %v5750_v8 = vpop.f32.mrf.mxu1  ;;  %v5262_v38 = vpop.f32.mrf.mxu3  ;;  %v5582_v36 = vadd.f32 %v5581_v51, %v16282_v9 }
 0x43e   :  { %v5751_v15 = vadd.f32 %v5750_v8, %v16287_v29 }
 0x43f   :  { %12534 = vmatmul.msk.bf16.gmra.mxu0 %vm5447_vm1, %v16270_v52  ;;  %v16293_v16 = vpop.f32.mrf.mxu2  ;;  %v6257_v7 = vmax.f32 %v5582_v36, 0.0  ;;  %v5300_v36 = vadd.f32 %v16264_v0, %v16272_v30 }
 0x440   :  { %12566 = vmatmul.msk.bf16.gmra.mxu1 %vm5447_vm1, %v16270_v52  ;;  %v6258_v43 = vmax.f32 %v5751_v15, 0.0  ;;  %v5318_v15 = vperm.slane %v5316_v58, 0 }
 0x442   :  { %12625 = vmatmul.msk.bf16.gmra.mxu3 %vm5447_vm1, %v16194_v49  ;;  %v5746_v49 = vadd.f32 %v5745_v4, %v16287_v29  ;;  %v5322_v21 = vadd.f32 %v5318_v15, %v16248_v31 }
 0x444   :  { %v5583_v10 = vpop.f32.mrf.mxu0  ;;  %v6250_v4 = vmax.f32 %v5746_v49, 0.0 }
 0x445   :  { %v5584_v14 = vadd.f32 %v5583_v10, %v16282_v9  ;;  %v5752_v12 = vpop.f32.mrf.mxu1  ;;  %v5319_v10 = vperm.slane %v5316_v58, 1 }
 0x446   :  { %v5753_v22 = vadd.f32 %v5752_v12, %v16287_v29  ;;  %v5356_v12 = vld [vmem:[%s18156_s30 + $0xd8] sm:$0xff] }
 0x447   :  { %v6261_v24 = vmax.f32 %v5584_v14, 0.0  ;;  %v16309_v48 = vpop.f32.mrf.mxu2  ;;  %v5355_v14 = vld [vmem:[%s18156_s30 + $0xd0] sm:$0xff] }
 0x448   :  { %v6262_v32 = vmax.f32 %v5753_v22, 0.0 }
 0x449   :  { %6531 = vmatpush.msrb.mxu3 %v6261_v24 }
 0x44a   :  { %6557 = vmatpush.msrb.mxu0 %v6262_v32  ;;  %14467 = vmatpush.msrb.mxu1 %v6262_v32 }
 0x44b   :  { %6532 = vmatpush.msrb.mxu3 %v6257_v7  ;;  %v16345_v7 = vpack.c.bf16 %v5356_v12, %v5355_v14 }
 0x44c   :  { %v16311_v2 = vpop.f32.mrf.mxu0  ;;  %6558 = vmatpush.msrb.mxu0 %v6258_v43  ;;  %14468 = vmatpush.msrb.mxu1 %v6258_v43 }
 0x44d   :  { %v16315_v3 = vpop.f32.mrf.mxu1  ;;  %6533 = vmatpush.msrb.mxu3 %v6253_v45  ;;  %12596 = vmatmul.msk.bf16.gmra.mxu2 %vm5447_vm1, %v16238_v44 }
 0x44e   :  { %6559 = vmatpush.msrb.mxu0 %v6254_v47  ;;  %14469 = vmatpush.msrb.mxu1 %v6254_v47  ;;  %v5357_v47 = vld [vmem:[%s18156_s30 + $0xe0] sm:$0xff] }
 0x44f   :  { %12535 = vmatmul.msk.bf16.gmra.mxu0 %vm5447_vm1, %v16305_v6  ;;  %6534 = vmatpush.msrb.mxu3 %v6249_v20  ;;  %v16334_v51 = vpop.f32.mrf.mxu2  ;;  %v5358_v20 = vld [vmem:[%s18156_s30 + $0xe8] sm:$0xff] }
 0x450   :  { %12567 = vmatmul.msk.bf16.gmra.mxu1 %vm5447_vm1, %v16305_v6  ;;  %6560 = vmatpush.msrb.mxu0 %v6250_v4  ;;  %v16375_v41 = vpack.c.bf16 %v5358_v20, %v5357_v47 }
 0x451   :  { %6535 = vmatpush.msrb.mxu3 %v6245_v28  ;;  %14470 = vmatpush.msrb.mxu1 %v6250_v4 }
 0x452   :  { %6561 = vmatpush.msrb.mxu0 %v6246_v33  ;;  %12626 = vmatmul.msk.bf16.gmra.mxu3 %vm5447_vm1, %v16206_v50 }
 0x453   :  { %6536 = vmatpush.msrb.mxu3 %v6241_v18  ;;  %14471 = vmatpush.msrb.mxu1 %v6246_v33  ;;  %v5359_v18 = vld [vmem:[%s18156_s30 + $0xf0] sm:$0xff] }
 0x454   :  { %v16336_v8 = vpop.f32.mrf.mxu0  ;;  %6562 = vmatpush.msrb.mxu0 %v6242_v40 }
 0x455   :  { %v16338_v38 = vpop.f32.mrf.mxu1  ;;  %6537 = vmatpush.msrb.mxu3 %v6237_v57  ;;  %v5312_v50 = vpop.f32.mrf.mxu3  ;;  %14472 = vmatpush.msrb.mxu1 %v6242_v40  ;;  %v16392_v40 = vperm.slane %v16277_v27, 2  ;;  %v16394_v57 = vpack.c.bf16 %v5360_v46, %v5359_v18 }
 0x456   :  { %v5313_v19 = vadd.f32 %v5312_v50, %v5300_v36  ;;  %6563 = vmatpush.msrb.mxu0 %v6238_v5 }
 0x457   :  { %6538 = vmatpush.msrb.mxu3 %v6233_v34  ;;  %14473 = vmatpush.msrb.mxu1 %v6238_v5  ;;  %v5911_v30 = vpop.f32.mrf.mxu2  ;;  %v5907_v46 = vadd.f32 %v16309_v48, %v16392_v40 }
 0x458   :  { %v5323_v22 = vadd.f32 %v5319_v10, %v5313_v19  ;;  %6564 = vmatpush.msrb.mxu0 %v6234_v26  ;;  %v5912_v14 = vadd.f32 %v5911_v30, %v16392_v40 }
 0x459   :  { %14474 = vmatpush.msrb.mxu1 %v6234_v26 }
 0x45a   :  { %v5326_v23 = vadd.f32 %v5323_v22, %v5322_v21  ;;  %v5324_v0 = vmax.f32 %v5322_v21, %v5323_v22  ;;  %v5910_v22 = vadd.f32 %v16334_v51, %v16392_v40  ;;  %v6247_v20 = vmax.f32 %v5912_v14, 0.0 }
 0x45b   :  { %v6239_v14 = vmax.f32 %v5907_v46, 0.0 }
 0x45c   :  { %v16347_v24 = vpop.f32.mrf.mxu0  ;;  %v16351_v43 = vmax.f32 %v5324_v0, 0.0  ;;  %v5327_v31 = vmul.f32 0.5, %v5326_v23 }
 0x45d   :  { %v16349_v49 = vpop.f32.mrf.mxu1  ;;  %v5314_v32 = vpop.f32.mrf.mxu3  ;;  %12597 = vmatmul.msk.bf16.gmra.mxu2 %vm5447_vm1, %v16256_v54 }
 0x45e   :  { %18162 = vst [vmem:[#allocation60_spill] sm:$0xff] %v16351_v43  ;;  %8953 = vrot.lane.b32.xlu0 %v16351_v43, %s14939_s8  ;;  %v16367_v45 = vmax.f32 %v5327_v31, 0.0  ;;  %v16657_v43 = vpack.c.bf16 %v5376_v39, %v5375_v17 }
 0x45f   :  { %12536 = vmatmul.msk.bf16.gmra.mxu0 %vm5447_vm1, %v16345_v7  ;;  %v5914_v61 = vpop.f32.mrf.mxu2 }
 0x460   :  { %12568 = vmatmul.msk.bf16.gmra.mxu1 %vm5447_vm1, %v16345_v7  ;;  %18163 = vst [vmem:[#allocation61_spill] sm:$0xff] %v16367_v45  ;;  %v5915_v50 = vadd.f32 %v5914_v61, %v16392_v40 }
 0x462   :  { %12627 = vmatmul.msk.bf16.gmra.mxu3 %vm5447_vm1, %v16218_v25  ;;  %v6251_v23 = vmax.f32 %v5915_v50, 0.0 }
 0x464   :  { %v16363_v55 = vpop.f32.mrf.mxu0 }
 0x465   :  { %v16365_v63 = vpop.f32.mrf.mxu1  ;;  %v16369_v42 = vpop.f32.mrf.mxu3 }
 0x466   :  { %8956 = vrot.lane.b32.xlu0 %v16367_v45, %s14939_s8  ;;  %v5763_v48 = vadd.f32 %v16365_v63, %v16287_v29  ;;  %s18232_s8 = sld [smem:[#allocation35_spill]] }
 0x467   :  { %v5916_v4 = vpop.f32.mrf.mxu2 }
 0x46c   :  { %v5596_v25 = vpop.f32.mrf.mxu0 }
 0x46d   :  { %v5765_v37 = vpop.f32.mrf.mxu1  ;;  %v16377_v28 = vpop.f32.mrf.mxu3  ;;  %12598 = vmatmul.msk.bf16.gmra.mxu2 %vm5447_vm1, %v16270_v52 }
 0x46f   :  { %12537 = vmatmul.msk.bf16.gmra.mxu0 %vm5447_vm1, %v16375_v41  ;;  %v5919_v11 = vpop.f32.mrf.mxu2 }
 0x470   :  { %12569 = vmatmul.msk.bf16.gmra.mxu1 %vm5447_vm1, %v16375_v41  ;;  %v5920_v58 = vadd.f32 %v5919_v11, %v16392_v40 }
 0x472   :  { %12628 = vmatmul.msk.bf16.gmra.mxu3 %vm5447_vm1, %v16238_v44  ;;  %v5917_v44 = vadd.f32 %v5916_v4, %v16392_v40  ;;  %v6259_v19 = vmax.f32 %v5920_v58, 0.0  ;;  %v6243_v58 = vmax.f32 %v5910_v22, 0.0 }
 0x474   :  { %v5598_v33 = vpop.f32.mrf.mxu0  ;;  %v6255_v12 = vmax.f32 %v5917_v44, 0.0 }
 0x475   :  { %v5767_v35 = vpop.f32.mrf.mxu1  ;;  %v16387_v1 = vpop.f32.mrf.mxu3  ;;  %v5599_v30 = vadd.f32 %v5598_v33, %v16282_v9 }
 0x477   :  { %v5921_v5 = vpop.f32.mrf.mxu2  ;;  %v6285_v44 = vmax.f32 %v5599_v30, 0.0  ;;  %v6278_v30 = vmax.f32 %v5763_v48, 0.0 }
 0x478   :  { %v5922_v26 = vadd.f32 %v5921_v5, %v16392_v40 }
 0x47a   :  { %v6263_v10 = vmax.f32 %v5922_v26, 0.0  ;;  %v5362_v26 = vld [vmem:[%s18156_s30 + $0x108] sm:$0xff] }
 0x47c   :  { %v5601_v34 = vpop.f32.mrf.mxu0  ;;  %6583 = vmatpush.msrb.mxu2 %v6263_v10  ;;  %v5597_v10 = vadd.f32 %v5596_v25, %v16282_v9 }
 0x47d   :  { %v5770_v36 = vpop.f32.mrf.mxu1  ;;  %v16399_v15 = vpop.f32.mrf.mxu3  ;;  %12599 = vmatmul.msk.bf16.gmra.mxu2 %vm5447_vm1, %v16305_v6  ;;  %v5602_v21 = vadd.f32 %v5601_v34, %v16282_v9  ;;  %v5361_v34 = vld [vmem:[%s18156_s30 + $0x100] sm:$0xff] }
 0x47e   :  { %v5771_v0 = vadd.f32 %v5770_v36, %v16287_v29  ;;  %6584 = vmatpush.msrb.mxu2 %v6259_v19  ;;  %v5766_v36 = vadd.f32 %v5765_v37, %v16287_v29  ;;  %v16433_v19 = vpack.c.bf16 %v5362_v26, %v5361_v34  ;;  %v5594_v37 = vadd.f32 %v16363_v55, %v16282_v9 }
 0x47f   :  { %12538 = vmatmul.msk.bf16.gmra.mxu0 %vm5447_vm1, %v16394_v57  ;;  %v16415_v32 = vpop.f32.mrf.mxu2  ;;  %v6289_v11 = vmax.f32 %v5602_v21, 0.0  ;;  %v16478_v26 = vperm.slane %v16277_v27, 3 }
 0x480   :  { %12570 = vmatmul.msk.bf16.gmra.mxu1 %vm5447_vm1, %v16394_v57  ;;  %6585 = vmatpush.msrb.mxu2 %v6255_v12  ;;  %v6290_v5 = vmax.f32 %v5771_v0, 0.0  ;;  %v6282_v25 = vmax.f32 %v5766_v36, 0.0  ;;  %v6281_v0 = vmax.f32 %v5597_v10, 0.0 }
 0x481   :  { %18164 = vst [vmem:[#allocation62_spill] sm:$0xff] %v16478_v26 }
 0x482   :  { %12629 = vmatmul.msk.bf16.gmra.mxu3 %vm5447_vm1, %v16256_v54  ;;  %v5768_v54 = vadd.f32 %v5767_v35, %v16287_v29  ;;  %6586 = vmatpush.msrb.mxu2 %v6251_v23  ;;  %v5905_v35 = vadd.f32 %v16293_v16, %v16392_v40  ;;  %v5761_v16 = vadd.f32 %v16349_v49, %v16287_v29 }
 0x483   :  { %v5592_v23 = vadd.f32 %v16347_v24, %v16282_v9  ;;  %v5589_v49 = vadd.f32 %v16336_v8, %v16282_v9  ;;  %v5756_v24 = vadd.f32 %v16315_v3, %v16287_v29 }
 0x484   :  { %v5603_v31 = vpop.f32.mrf.mxu0  ;;  %v6286_v50 = vmax.f32 %v5768_v54, 0.0  ;;  %6587 = vmatpush.msrb.mxu2 %v6247_v20  ;;  %v6235_v63 = vmax.f32 %v5905_v35, 0.0 }
 0x485   :  { %v5604_v61 = vadd.f32 %v5603_v31, %v16282_v9  ;;  %v5772_v47 = vpop.f32.mrf.mxu1  ;;  %v16421_v51 = vpop.f32.mrf.mxu3  ;;  %v5758_v31 = vadd.f32 %v16338_v38, %v16287_v29  ;;  %v5587_v38 = vadd.f32 %v16311_v2, %v16282_v9  ;;  %v6273_v20 = vmax.f32 %v5592_v23, 0.0 }
 0x486   :  { %v5773_v4 = vadd.f32 %v5772_v47, %v16287_v29  ;;  %6588 = vmatpush.msrb.mxu2 %v6243_v58  ;;  %v6274_v47 = vmax.f32 %v5761_v16, 0.0  ;;  %v6269_v54 = vmax.f32 %v5589_v49, 0.0  ;;  %v5363_v58 = vld [vmem:[%s18156_s30 + $0x110] sm:$0xff]  ;;  %v6084_v48 = vadd.f32 %v16421_v51, %v16478_v26  ;;  %v5366_v51 = vld [vmem:[%s18156_s30 + $0x128] sm:$0xff] }
 0x487   :  { %v6293_v18 = vmax.f32 %v5604_v61, 0.0  ;;  %v16437_v12 = vpop.f32.mrf.mxu2  ;;  %v6277_v61 = vmax.f32 %v5594_v37, 0.0  ;;  %v6270_v8 = vmax.f32 %v5758_v31, 0.0  ;;  %v6265_v2 = vmax.f32 %v5587_v38, 0.0  ;;  %v5365_v31 = vld [vmem:[%s18156_s30 + $0x120] sm:$0xff] }
 0x488   :  { %v6294_v33 = vmax.f32 %v5773_v4, 0.0  ;;  %6589 = vmatpush.msrb.mxu2 %v6239_v14 }
 0x489   :  { %6644 = vmatpush.msra.mxu0 %v6293_v18 }
 0x48a   :  { %6670 = vmatpush.msra.mxu1 %v6294_v33  ;;  %6590 = vmatpush.msrb.mxu2 %v6235_v63  ;;  %v6081_v63 = vadd.f32 %v16399_v15, %v16478_v26  ;;  %v6074_v15 = vadd.f32 %v16369_v42, %v16478_v26 }
 0x48b   :  { %6645 = vmatpush.msra.mxu0 %v6289_v11  ;;  %v6266_v11 = vmax.f32 %v5756_v24, 0.0 }
 0x48c   :  { %v16439_v21 = vpop.f32.mrf.mxu0  ;;  %6671 = vmatpush.msra.mxu1 %v6290_v5  ;;  %v5364_v5 = vld [vmem:[%s18156_s30 + $0x118] sm:$0xff]  ;;  %v6248_v49 = vmax.f32 %v6081_v63, 0.0 }
 0x48d   :  { %v16443_v22 = vpop.f32.mrf.mxu1  ;;  %6646 = vmatpush.msra.mxu0 %v6285_v44  ;;  %v6085_v55 = vpop.f32.mrf.mxu3  ;;  %12600 = vmatmul.msk.bf16.gmra.mxu2 %vm5447_vm1, %v16345_v7 }
 0x48e   :  { %6672 = vmatpush.msra.mxu1 %v6286_v50  ;;  %v6086_v27 = vadd.f32 %v6085_v55, %v16478_v26  ;;  %v6252_v55 = vmax.f32 %v6084_v48, 0.0 }
 0x48f   :  { %12539 = vmatmul.msk.bf16.gmra.mxu0 %vm5447_vm1, %v16433_v19  ;;  %v16463_v4 = vpop.f32.mrf.mxu2 }
 0x490   :  { %12571 = vmatmul.msk.bf16.gmra.mxu1 %vm5447_vm1, %v16433_v19  ;;  %6647 = vmatpush.msra.mxu0 %v6281_v0  ;;  %v6256_v23 = vmax.f32 %v6086_v27, 0.0 }
 0x491   :  { %6673 = vmatpush.msra.mxu1 %v6282_v25 }
 0x492   :  { %12630 = vmatmul.msk.bf16.gmra.mxu3 %vm5447_vm1, %v16270_v52  ;;  %6648 = vmatpush.msra.mxu0 %v6277_v61  ;;  %v16471_v52 = vpack.c.bf16 %v5364_v5, %v5363_v58  ;;  %v16509_v61 = vpack.c.bf16 %v5366_v51, %v5365_v31  ;;  %v5368_v58 = vld [vmem:[%s18156_s30 + $0x138] sm:$0xff] }
 0x493   :  { %6674 = vmatpush.msra.mxu1 %v6278_v30  ;;  %v6076_v30 = vadd.f32 %v16377_v28, %v16478_v26  ;;  %v6236_v28 = vmax.f32 %v6074_v15, 0.0 }
 0x494   :  { %v16465_v3 = vpop.f32.mrf.mxu0  ;;  %6649 = vmatpush.msra.mxu0 %v6273_v20 }
 0x495   :  { %v16467_v18 = vpop.f32.mrf.mxu1  ;;  %6675 = vmatpush.msra.mxu1 %v6274_v47  ;;  %v6088_v46 = vpop.f32.mrf.mxu3  ;;  %v6240_v20 = vmax.f32 %v6076_v30, 0.0 }
 0x496   :  { %6650 = vmatpush.msra.mxu0 %v6269_v54  ;;  %v6089_v10 = vadd.f32 %v6088_v46, %v16478_v26  ;;  %v5367_v46 = vld [vmem:[%s18156_s30 + $0x130] sm:$0xff] }
 0x497   :  { %6676 = vmatpush.msra.mxu1 %v6270_v8  ;;  %v16473_v33 = vpop.f32.mrf.mxu2  ;;  %v16535_v5 = vpack.c.bf16 %v5368_v58, %v5367_v46 }
 0x498   :  { %6651 = vmatpush.msra.mxu0 %v6265_v2  ;;  %v6260_v14 = vmax.f32 %v6089_v10, 0.0 }
 0x499   :  { %6677 = vmatpush.msra.mxu1 %v6266_v11 }
 0x49c   :  { %v16475_v34 = vpop.f32.mrf.mxu0 }
 0x49d   :  { %v16480_v36 = vpop.f32.mrf.mxu1  ;;  %v6090_v44 = vpop.f32.mrf.mxu3  ;;  %12601 = vmatmul.msk.bf16.gmra.mxu2 %vm5447_vm1, %v16375_v41 }
 0x49e   :  { %v6091_v35 = vadd.f32 %v6090_v44, %v16478_v26 }
 0x49f   :  { %12540 = vmatmul.msk.bf16.gmra.mxu0 %vm5447_vm1, %v16471_v52  ;;  %v5934_v37 = vpop.f32.mrf.mxu2 }
 0x4a0   :  { %12572 = vmatmul.msk.bf16.gmra.mxu1 %vm5447_vm1, %v16471_v52  ;;  %v6264_v50 = vmax.f32 %v6091_v35, 0.0  ;;  %v5935_v63 = vadd.f32 %v5934_v37, %v16392_v40  ;;  %v5930_v37 = vadd.f32 %v16463_v4, %v16392_v40  ;;  %v5925_v4 = vadd.f32 %v16415_v32, %v16392_v40 }
 0x4a2   :  { %12631 = vmatmul.msk.bf16.gmra.mxu3 %vm5447_vm1, %v16305_v6  ;;  %v6079_v6 = vadd.f32 %v16387_v1, %v16478_v26  ;;  %v6283_v31 = vmax.f32 %v5935_v63, 0.0  ;;  %v5371_v63 = vld [vmem:[%s18156_s30 + $0x150] sm:$0xff] }
 0x4a3   :  { %6609 = vmatpush.msra.mxu3 %v6264_v50 }
 0x4a4   :  { %v16495_v16 = vpop.f32.mrf.mxu0  ;;  %v6244_v24 = vmax.f32 %v6079_v6, 0.0  ;;  %v5932_v6 = vadd.f32 %v16473_v33, %v16392_v40  ;;  %v5927_v33 = vadd.f32 %v16437_v12, %v16392_v40  ;;  %v6267_v12 = vmax.f32 %v5925_v4, 0.0  ;;  %v5374_v4 = vld [vmem:[%s18156_s30 + $0x168] sm:$0xff] }
 0x4a5   :  { %v16497_v25 = vpop.f32.mrf.mxu1  ;;  %v16501_v0 = vpop.f32.mrf.mxu3  ;;  %6610 = vmatpush.msra.mxu3 %v6260_v14 }
 0x4a6   :  { %18165 = vst [vmem:[#allocation63_spill] sm:$0xff] %v16501_v0  ;;  %v6279_v15 = vmax.f32 %v5932_v6, 0.0 }
 0x4a7   :  { %6611 = vmatpush.msra.mxu3 %v6256_v23  ;;  %v5936_v47 = vpop.f32.mrf.mxu2 }
 0x4a9   :  { %6612 = vmatpush.msra.mxu3 %v6252_v55 }
 0x4ab   :  { %6613 = vmatpush.msra.mxu3 %v6248_v49 }
 0x4ac   :  { %v16513_v38 = vpop.f32.mrf.mxu0 }
 0x4ad   :  { %v16515_v1 = vpop.f32.mrf.mxu1  ;;  %v16517_v8 = vpop.f32.mrf.mxu3  ;;  %6614 = vmatpush.msra.mxu3 %v6244_v24  ;;  %12602 = vmatmul.msk.bf16.gmra.mxu2 %vm5447_vm1, %v16394_v57 }
 0x4ae   :  { %18166 = vst [vmem:[#allocation64_spill] sm:$0xff] %v16517_v8 }
 0x4af   :  { %12541 = vmatmul.msk.bf16.gmra.mxu0 %vm5447_vm1, %v16509_v61  ;;  %6615 = vmatpush.msra.mxu3 %v6240_v20  ;;  %v5939_v42 = vpop.f32.mrf.mxu2  ;;  %v5370_v20 = vld [vmem:[%s18156_s30 + $0x148] sm:$0xff] }
 0x4b0   :  { %12573 = vmatmul.msk.bf16.gmra.mxu1 %vm5447_vm1, %v16509_v61  ;;  %v5940_v44 = vadd.f32 %v5939_v42, %v16392_v40  ;;  %v6271_v42 = vmax.f32 %v5927_v33, 0.0 }
 0x4b1   :  { %6616 = vmatpush.msra.mxu3 %v6236_v28 }
 0x4b2   :  { %12632 = vmatmul.msk.bf16.gmra.mxu3 %vm5447_vm1, %v16345_v7  ;;  %v5937_v7 = vadd.f32 %v5936_v47, %v16392_v40  ;;  %v6291_v23 = vmax.f32 %v5940_v44, 0.0  ;;  %v6275_v47 = vmax.f32 %v5930_v37, 0.0 }
 0x4b4   :  { %v16527_v54 = vpop.f32.mrf.mxu0  ;;  %v6287_v55 = vmax.f32 %v5937_v7, 0.0 }
 0x4b5   :  { %v16529_v11 = vpop.f32.mrf.mxu1  ;;  %v16531_v2 = vpop.f32.mrf.mxu3 }
 0x4b6   :  { %18167 = vst [vmem:[#allocation65_spill] sm:$0xff] %v16531_v2 }
 0x4b7   :  { %v5941_v35 = vpop.f32.mrf.mxu2 }
 0x4b8   :  { %v5942_v50 = vadd.f32 %v5941_v35, %v16392_v40 }
 0x4ba   :  { %v6295_v14 = vmax.f32 %v5942_v50, 0.0 }
 0x4bc   :  { %v16538_v10 = vpop.f32.mrf.mxu0  ;;  %6696 = vmatpush.msra.mxu2 %v6295_v14 }
 0x4bd   :  { %v16541_v27 = vpop.f32.mrf.mxu1  ;;  %v16544_v48 = vpop.f32.mrf.mxu3  ;;  %12603 = vmatmul.msk.bf16.gmra.mxu2 %vm5447_vm1, %v16433_v19 }
 0x4be   :  { %18168 = vst [vmem:[#allocation66_spill] sm:$0xff] %v16544_v48  ;;  %6697 = vmatpush.msra.mxu2 %v6291_v23  ;;  %v5372_v23 = vld [vmem:[%s18156_s30 + $0x158] sm:$0xff] }
 0x4bf   :  { %12542 = vmatmul.msk.bf16.gmra.mxu0 %vm5447_vm1, %v16535_v5  ;;  %v16559_v51 = vpop.f32.mrf.mxu2  ;;  %v16601_v6 = vpack.c.bf16 %v5372_v23, %v5371_v63  ;;  %v5380_v48 = vld [vmem:[%s18156_s30 + $0x198] sm:$0xff] }
 0x4c0   :  { %12574 = vmatmul.msk.bf16.gmra.mxu1 %vm5447_vm1, %v16535_v5  ;;  %18169 = vst [vmem:[#allocation67_spill] sm:$0xff] %v16559_v51  ;;  %6698 = vmatpush.msra.mxu2 %v6287_v55 }
 0x4c2   :  { %12633 = vmatmul.msk.bf16.gmra.mxu3 %vm5447_vm1, %v16375_v41  ;;  %v5369_v41 = vld [vmem:[%s18156_s30 + $0x140] sm:$0xff]  ;;  %6699 = vmatpush.msra.mxu2 %v6283_v31 }
 0x4c3   :  { %v16573_v28 = vpack.c.bf16 %v5370_v20, %v5369_v41  ;;  %v5373_v20 = vld [vmem:[%s18156_s30 + $0x160] sm:$0xff] }
 0x4c4   :  { %v16561_v30 = vpop.f32.mrf.mxu0  ;;  %6700 = vmatpush.msra.mxu2 %v6279_v15 }
 0x4c5   :  { %v16563_v49 = vpop.f32.mrf.mxu1  ;;  %v16565_v24 = vpop.f32.mrf.mxu3 }
 0x4c6   :  { %18170 = vst [vmem:[#allocation68_spill] sm:$0xff] %v16565_v24  ;;  %6701 = vmatpush.msra.mxu2 %v6275_v47 }
 0x4c7   :  { %v16575_v46 = vpop.f32.mrf.mxu2 }
 0x4c8   :  { %18171 = vst [vmem:[#allocation69_spill] sm:$0xff] %v16575_v46  ;;  %6702 = vmatpush.msra.mxu2 %v6271_v42  ;;  %v16629_v42 = vpack.c.bf16 %v5374_v4, %v5373_v20 }
 0x4ca   :  { %6703 = vmatpush.msra.mxu2 %v6267_v12 }
 0x4cc   :  { %v16577_v58 = vpop.f32.mrf.mxu0 }
 0x4cd   :  { %v16579_v44 = vpop.f32.mrf.mxu1  ;;  %v16581_v35 = vpop.f32.mrf.mxu3  ;;  %12604 = vmatmul.msk.bf16.gmra.mxu2 %vm5447_vm1, %v16471_v52 }
 0x4ce   :  { %18172 = vst [vmem:[#allocation70_spill] sm:$0xff] %v16581_v35 }
 0x4cf   :  { %12543 = vmatmul.msk.bf16.gmra.mxu0 %vm5447_vm1, %v16573_v28 }
 0x4d0   :  { %12575 = vmatmul.msk.bf16.gmra.mxu1 %vm5447_vm1, %v16573_v28  ;;  %v16591_v32 = vpop.f32.mrf.mxu2 }
 0x4d1   :  { %18173 = vst [vmem:[#allocation71_spill] sm:$0xff] %v16591_v32 }
 0x4d2   :  { %12634 = vmatmul.msk.bf16.gmra.mxu3 %vm5447_vm1, %v16394_v57 }
 0x4d4   :  { %v16593_v50 = vpop.f32.mrf.mxu0 }
 0x4d5   :  { %v16595_v7 = vpop.f32.mrf.mxu1  ;;  %v16597_v14 = vpop.f32.mrf.mxu3 }
 0x4d6   :  { %18174 = vst [vmem:[#allocation72_spill] sm:$0xff] %v16597_v14 }
 0x4d8   :  { %v16603_v55 = vpop.f32.mrf.mxu2 }
 0x4d9   :  { %18175 = vst [vmem:[#allocation73_spill] sm:$0xff] %v16603_v55 }
 0x4dc   :  { %v16605_v37 = vpop.f32.mrf.mxu0 }
 0x4dd   :  { %v16607_v31 = vpop.f32.mrf.mxu1  ;;  %v16609_v57 = vpop.f32.mrf.mxu3  ;;  %12605 = vmatmul.msk.bf16.gmra.mxu2 %vm5447_vm1, %v16509_v61 }
 0x4de   :  { %18176 = vst [vmem:[#allocation74_spill] sm:$0xff] %v16609_v57 }
 0x4df   :  { %12544 = vmatmul.msk.bf16.gmra.mxu0 %vm5447_vm1, %v16601_v6 }
 0x4e0   :  { %12576 = vmatmul.msk.bf16.gmra.mxu1 %vm5447_vm1, %v16601_v6  ;;  %v16619_v15 = vpop.f32.mrf.mxu2 }
 0x4e1   :  { %18177 = vst [vmem:[#allocation75_spill] sm:$0xff] %v16619_v15 }
 0x4e2   :  { %12635 = vmatmul.msk.bf16.gmra.mxu3 %vm5447_vm1, %v16433_v19 }
 0x4e4   :  { %v16621_v33 = vpop.f32.mrf.mxu0 }
 0x4e5   :  { %v16623_v47 = vpop.f32.mrf.mxu1  ;;  %v16625_v41 = vpop.f32.mrf.mxu3 }
 0x4e6   :  { %18178 = vst [vmem:[#allocation76_spill] sm:$0xff] %v16625_v41  ;;  %v5377_v41 = vld [vmem:[%s18156_s30 + $0x180] sm:$0xff] }
 0x4e8   :  { %v16631_v12 = vpop.f32.mrf.mxu2 }
 0x4e9   :  { %18179 = vst [vmem:[#allocation77_spill] sm:$0xff] %v16631_v12 }
 0x4ec   :  { %v16633_v63 = vpop.f32.mrf.mxu0 }
 0x4ed   :  { %v16635_v23 = vpop.f32.mrf.mxu1  ;;  %v16637_v19 = vpop.f32.mrf.mxu3  ;;  %12606 = vmatmul.msk.bf16.gmra.mxu2 %vm5447_vm1, %v16535_v5 }
 0x4ee   :  { %18180 = vst [vmem:[#allocation78_spill] sm:$0xff] %v16637_v19  ;;  %v5378_v19 = vld [vmem:[%s18156_s30 + $0x188] sm:$0xff] }
 0x4ef   :  { %12545 = vmatmul.msk.bf16.gmra.mxu0 %vm5447_vm1, %v16629_v42 }
 0x4f0   :  { %12577 = vmatmul.msk.bf16.gmra.mxu1 %vm5447_vm1, %v16629_v42  ;;  %v16647_v20 = vpop.f32.mrf.mxu2 }
 0x4f1   :  { %18181 = vst [vmem:[#allocation79_spill] sm:$0xff] %v16647_v20 }
 0x4f2   :  { %12636 = vmatmul.msk.bf16.gmra.mxu3 %vm5447_vm1, %v16471_v52 }
 0x4f4   :  { %v16649_v4 = vpop.f32.mrf.mxu0 }
 0x4f5   :  { %v16651_v59 = vpop.f32.mrf.mxu1  ;;  %v16653_v60 = vpop.f32.mrf.mxu3 }
 0x4f6   :  { %18182 = vst [vmem:[#allocation80_spill] sm:$0xff] %v16653_v60  ;;  %v16685_v60 = vpack.c.bf16 %v5378_v19, %v5377_v41 }
 0x4f8   :  { %v16659_v62 = vpop.f32.mrf.mxu2 }
 0x4f9   :  { %18183 = vst [vmem:[#allocation81_spill] sm:$0xff] %v16659_v62 }
 0x4fc   :  { %v16661_v13 = vpop.f32.mrf.mxu0 }
 0x4fd   :  { %v16663_v45 = vpop.f32.mrf.mxu1  ;;  %v16665_v52 = vpop.f32.mrf.mxu3  ;;  %12607 = vmatmul.msk.bf16.gmra.mxu2 %vm5447_vm1, %v16573_v28 }
 0x4fe   :  { %18184 = vst [vmem:[#allocation82_spill] sm:$0xff] %v16665_v52 }
 0x4ff   :  { %12546 = vmatmul.msk.bf16.gmra.mxu0 %vm5447_vm1, %v16657_v43 }
 0x500   :  { %12578 = vmatmul.msk.bf16.gmra.mxu1 %vm5447_vm1, %v16657_v43  ;;  %v16675_v17 = vpop.f32.mrf.mxu2 }
 0x501   :  { %18185 = vst [vmem:[#allocation83_spill] sm:$0xff] %v16675_v17 }
 0x502   :  { %12637 = vmatmul.msk.bf16.gmra.mxu3 %vm5447_vm1, %v16509_v61 }
 0x504   :  { %v16677_v39 = vpop.f32.mrf.mxu0 }
 0x505   :  { %v16679_v53 = vpop.f32.mrf.mxu1  ;;  %v16681_v56 = vpop.f32.mrf.mxu3 }
 0x506   :  { %18186 = vst [vmem:[#allocation84_spill] sm:$0xff] %v16681_v56 }
 0x508   :  { %v16687_v52 = vpop.f32.mrf.mxu2 }
 0x509   :  { %18187 = vst [vmem:[#allocation85_spill] sm:$0xff] %v16687_v52 }
 0x50c   :  { %v16689_v0 = vpop.f32.mrf.mxu0 }
 0x50d   :  { %v16691_v8 = vpop.f32.mrf.mxu1  ;;  %v16693_v61 = vpop.f32.mrf.mxu3  ;;  %12608 = vmatmul.msk.bf16.gmra.mxu2 %vm5447_vm1, %v16601_v6 }
 0x50e   :  { %18188 = vst [vmem:[#allocation86_spill] sm:$0xff] %v16691_v8 }
 0x50f   :  { %18189 = vst [vmem:[#allocation87_spill] sm:$0xff] %v16693_v61  ;;  %12547 = vmatmul.msk.bf16.gmra.mxu0 %vm5447_vm1, %v16685_v60  ;;  %v5379_v61 = vld [vmem:[%s18156_s30 + $0x190] sm:$0xff] }
 0x510   :  { %12579 = vmatmul.msk.bf16.gmra.mxu1 %vm5447_vm1, %v16685_v60  ;;  %v16703_v41 = vpop.f32.mrf.mxu2  ;;  %v16713_v24 = vpack.c.bf16 %v5380_v48, %v5379_v61 }
 0x511   :  { %18190 = vst [vmem:[#allocation88_spill] sm:$0xff] %v16703_v41  ;;  %v5382_v41 = vld [vmem:[%s18156_s30 + $0x1a8] sm:$0xff] }
 0x512   :  { %12638 = vmatmul.msk.bf16.gmra.mxu3 %vm5447_vm1, %v16535_v5 }
 0x514   :  { %v16705_v19 = vpop.f32.mrf.mxu0 }
 0x515   :  { %v16707_v56 = vpop.f32.mrf.mxu1  ;;  %v16709_v2 = vpop.f32.mrf.mxu3 }
 0x516   :  { %18191 = vst [vmem:[#allocation89_spill] sm:$0xff] %v16707_v56 }
 0x517   :  { %18192 = vst [vmem:[#allocation90_spill] sm:$0xff] %v16709_v2 }
 0x518   :  { %v16715_v17 = vpop.f32.mrf.mxu2 }
 0x519   :  { %18193 = vst [vmem:[#allocation91_spill] sm:$0xff] %v16715_v17 }
 0x51c   :  { %v16717_v35 = vpop.f32.mrf.mxu0 }
 0x51d   :  { %v16719_v52 = vpop.f32.mrf.mxu1  ;;  %v16721_v5 = vpop.f32.mrf.mxu3  ;;  %12609 = vmatmul.msk.bf16.gmra.mxu2 %vm5447_vm1, %v16629_v42 }
 0x51e   :  { %18194 = vst [vmem:[#allocation92_spill] sm:$0xff] %v16719_v52 }
 0x51f   :  { %18195 = vst [vmem:[#allocation93_spill] sm:$0xff] %v16721_v5  ;;  %12548 = vmatmul.msk.bf16.gmra.mxu0 %vm5447_vm1, %v16713_v24  ;;  %v5381_v5 = vld [vmem:[%s18156_s30 + $0x1a0] sm:$0xff] }
 0x520   :  { %12580 = vmatmul.msk.bf16.gmra.mxu1 %vm5447_vm1, %v16713_v24  ;;  %v16731_v48 = vpop.f32.mrf.mxu2  ;;  %v16741_v57 = vpack.c.bf16 %v5382_v41, %v5381_v5 }
 0x521   :  { %18196 = vst [vmem:[#allocation94_spill] sm:$0xff] %v16731_v48 }
 0x522   :  { %12639 = vmatmul.msk.bf16.gmra.mxu3 %vm5447_vm1, %v16573_v28 }
 0x524   :  { %v16733_v61 = vpop.f32.mrf.mxu0 }
 0x525   :  { %v16735_v2 = vpop.f32.mrf.mxu1  ;;  %v16737_v14 = vpop.f32.mrf.mxu3 }
 0x526   :  { %18197 = vst [vmem:[#allocation95_spill] sm:$0xff] %v16737_v14 }
 0x528   :  { %v16743_v26 = vpop.f32.mrf.mxu2 }
 0x529   :  { %18198 = vst [vmem:[#allocation96_spill] sm:$0xff] %v16743_v26  ;;  %v5384_v26 = vld [vmem:[%s18156_s30 + $0x1b8] sm:$0xff] }
 0x52c   :  { %v16745_v17 = vpop.f32.mrf.mxu0 }
 0x52d   :  { %v16747_v51 = vpop.f32.mrf.mxu1  ;;  %v16749_v28 = vpop.f32.mrf.mxu3  ;;  %12610 = vmatmul.msk.bf16.gmra.mxu2 %vm5447_vm1, %v16657_v43 }
 0x52e   :  { %18199 = vst [vmem:[#allocation97_spill] sm:$0xff] %v16749_v28  ;;  %v5383_v28 = vld [vmem:[%s18156_s30 + $0x1b0] sm:$0xff] }
 0x52f   :  { %12549 = vmatmul.msk.bf16.gmra.mxu0 %vm5447_vm1, %v16741_v57  ;;  %v16769_v46 = vpack.c.bf16 %v5384_v26, %v5383_v28 }
 0x530   :  { %12581 = vmatmul.msk.bf16.gmra.mxu1 %vm5447_vm1, %v16741_v57  ;;  %v16759_v41 = vpop.f32.mrf.mxu2 }
 0x531   :  { %18200 = vst [vmem:[#allocation98_spill] sm:$0xff] %v16759_v41 }
 0x532   :  { %12640 = vmatmul.msk.bf16.gmra.mxu3 %vm5447_vm1, %v16601_v6 }
 0x534   :  { %v16761_v5 = vpop.f32.mrf.mxu0 }
 0x535   :  { %v16763_v14 = vpop.f32.mrf.mxu1  ;;  %v16765_v48 = vpop.f32.mrf.mxu3 }
 0x536   :  { %18201 = vst [vmem:[#allocation99_spill] sm:$0xff] %v16765_v48 }
 0x538   :  { %v16771_v32 = vpop.f32.mrf.mxu2 }
 0x539   :  { %18202 = vst [vmem:[#allocation100_spill] sm:$0xff] %v16771_v32  ;;  %v5386_v32 = vld [vmem:[%s18156_s30 + $0x1c8] sm:$0xff] }
 0x53c   :  { %v16773_v55 = vpop.f32.mrf.mxu0 }
 0x53d   :  { %v16775_v15 = vpop.f32.mrf.mxu1  ;;  %v16777_v6 = vpop.f32.mrf.mxu3  ;;  %12611 = vmatmul.msk.bf16.gmra.mxu2 %vm5447_vm1, %v16685_v60 }
 0x53e   :  { %18203 = vst [vmem:[#allocation101_spill] sm:$0xff] %v16777_v6  ;;  %v5385_v6 = vld [vmem:[%s18156_s30 + $0x1c0] sm:$0xff] }
 0x53f   :  { %12550 = vmatmul.msk.bf16.gmra.mxu0 %vm5447_vm1, %v16769_v46  ;;  %v16797_v8 = vpack.c.bf16 %v5386_v32, %v5385_v6 }
 0x540   :  { %12582 = vmatmul.msk.bf16.gmra.mxu1 %vm5447_vm1, %v16769_v46  ;;  %v16787_v26 = vpop.f32.mrf.mxu2 }
 0x541   :  { %18204 = vst [vmem:[#allocation102_spill] sm:$0xff] %v16787_v26 }
 0x542   :  { %12641 = vmatmul.msk.bf16.gmra.mxu3 %vm5447_vm1, %v16629_v42 }
 0x544   :  { %v16789_v28 = vpop.f32.mrf.mxu0 }
 0x545   :  { %v16791_v48 = vpop.f32.mrf.mxu1  ;;  %v16793_v41 = vpop.f32.mrf.mxu3 }
 0x546   :  { %18205 = vst [vmem:[#allocation103_spill] sm:$0xff] %v16793_v41 }
 0x548   :  { %v16799_v12 = vpop.f32.mrf.mxu2 }
 0x549   :  { %18206 = vst [vmem:[#allocation104_spill] sm:$0xff] %v16799_v12  ;;  %v5388_v12 = vld [vmem:[%s18156_s30 + $0x1d8] sm:$0xff] }
 0x54c   :  { %v16801_v56 = vpop.f32.mrf.mxu0 }
 0x54d   :  { %18207 = vst [vmem:[#allocation105_spill] sm:$0xff] %v16801_v56  ;;  %v16803_v20 = vpop.f32.mrf.mxu1  ;;  %v16805_v42 = vpop.f32.mrf.mxu3  ;;  %12612 = vmatmul.msk.bf16.gmra.mxu2 %vm5447_vm1, %v16713_v24 }
 0x54e   :  { %18208 = vst [vmem:[#allocation106_spill] sm:$0xff] %v16803_v20 }
 0x54f   :  { %18209 = vst [vmem:[#allocation107_spill] sm:$0xff] %v16805_v42  ;;  %12551 = vmatmul.msk.bf16.gmra.mxu0 %vm5447_vm1, %v16797_v8  ;;  %v5387_v42 = vld [vmem:[%s18156_s30 + $0x1d0] sm:$0xff] }
 0x550   :  { %12583 = vmatmul.msk.bf16.gmra.mxu1 %vm5447_vm1, %v16797_v8  ;;  %v16815_v32 = vpop.f32.mrf.mxu2  ;;  %v16825_v20 = vpack.c.bf16 %v5388_v12, %v5387_v42 }
 0x551   :  { %18210 = vst [vmem:[#allocation108_spill] sm:$0xff] %v16815_v32 }
 0x552   :  { %12642 = vmatmul.msk.bf16.gmra.mxu3 %vm5447_vm1, %v16657_v43 }
 0x554   :  { %v16817_v6 = vpop.f32.mrf.mxu0 }
 0x555   :  { %18211 = vst [vmem:[#allocation109_spill] sm:$0xff] %v16817_v6  ;;  %v16819_v41 = vpop.f32.mrf.mxu1  ;;  %v16821_v26 = vpop.f32.mrf.mxu3 }
 0x556   :  { %18212 = vst [vmem:[#allocation110_spill] sm:$0xff] %v16819_v41 }
 0x557   :  { %18213 = vst [vmem:[#allocation111_spill] sm:$0xff] %v16821_v26 }
 0x558   :  { %v16827_v56 = vpop.f32.mrf.mxu2 }
 0x559   :  { %18214 = vst [vmem:[#allocation112_spill] sm:$0xff] %v16827_v56  ;;  %v5390_v56 = vld [vmem:[%s18156_s30 + $0x1e8] sm:$0xff] }
 0x55c   :  { %v16829_v52 = vpop.f32.mrf.mxu0 }
 0x55d   :  { %18215 = vst [vmem:[#allocation113_spill] sm:$0xff] %v16829_v52  ;;  %v16831_v62 = vpop.f32.mrf.mxu1  ;;  %v16833_v43 = vpop.f32.mrf.mxu3  ;;  %12613 = vmatmul.msk.bf16.gmra.mxu2 %vm5447_vm1, %v16741_v57 }
 0x55e   :  { %18216 = vst [vmem:[#allocation114_spill] sm:$0xff] %v16831_v62 }
 0x55f   :  { %18217 = vst [vmem:[#allocation115_spill] sm:$0xff] %v16833_v43  ;;  %12552 = vmatmul.msk.bf16.gmra.mxu0 %vm5447_vm1, %v16825_v20  ;;  %v5389_v43 = vld [vmem:[%s18156_s30 + $0x1e0] sm:$0xff] }
 0x560   :  { %12584 = vmatmul.msk.bf16.gmra.mxu1 %vm5447_vm1, %v16825_v20  ;;  %v16843_v12 = vpop.f32.mrf.mxu2  ;;  %v16853_v41 = vpack.c.bf16 %v5390_v56, %v5389_v43 }
 0x561   :  { %18218 = vst [vmem:[#allocation116_spill] sm:$0xff] %v16843_v12 }
 0x562   :  { %12643 = vmatmul.msk.bf16.gmra.mxu3 %vm5447_vm1, %v16685_v60 }
 0x564   :  { %v16845_v42 = vpop.f32.mrf.mxu0 }
 0x565   :  { %18219 = vst [vmem:[#allocation117_spill] sm:$0xff] %v16845_v42  ;;  %v16847_v26 = vpop.f32.mrf.mxu1  ;;  %v16849_v32 = vpop.f32.mrf.mxu3 }
 0x566   :  { %18220 = vst [vmem:[#allocation118_spill] sm:$0xff] %v16847_v26 }
 0x567   :  { %18221 = vst [vmem:[#allocation119_spill] sm:$0xff] %v16849_v32 }
 0x568   :  { %v16855_v62 = vpop.f32.mrf.mxu2 }
 0x569   :  { %18222 = vst [vmem:[#allocation120_spill] sm:$0xff] %v16855_v62  ;;  %v5392_v62 = vld [vmem:[%s18156_s30 + $0x1f8] sm:$0xff] }
 0x56c   :  { %v16857_v6 = vpop.f32.mrf.mxu0 }
 0x56d   :  { %18223 = vst [vmem:[#allocation121_spill] sm:$0xff] %v16857_v6  ;;  %v16859_v52 = vpop.f32.mrf.mxu1  ;;  %v16861_v60 = vpop.f32.mrf.mxu3  ;;  %12614 = vmatmul.msk.bf16.gmra.mxu2 %vm5447_vm1, %v16769_v46 }
 0x56e   :  { %18224 = vst [vmem:[#allocation122_spill] sm:$0xff] %v16859_v52 }
 0x56f   :  { %18225 = vst [vmem:[#allocation123_spill] sm:$0xff] %v16861_v60  ;;  %12553 = vmatmul.msk.bf16.gmra.mxu0 %vm5447_vm1, %v16853_v41  ;;  %v5391_v60 = vld [vmem:[%s18156_s30 + $0x1f0] sm:$0xff] }
 0x570   :  { %12585 = vmatmul.msk.bf16.gmra.mxu1 %vm5447_vm1, %v16853_v41  ;;  %v16871_v56 = vpop.f32.mrf.mxu2  ;;  %v16881_v26 = vpack.c.bf16 %v5392_v62, %v5391_v60 }
 0x571   :  { %18226 = vst [vmem:[#allocation124_spill] sm:$0xff] %v16871_v56  ;;  %v5624_v56 = vadd.f32 %v16561_v30, %v16282_v9  ;;  %v5619_v30 = vadd.f32 %v16527_v54, %v16282_v9  ;;  %v5786_v54 = vadd.f32 %v16515_v1, %v16287_v29  ;;  %v5612_v1 = vadd.f32 %v16475_v34, %v16282_v9 }
 0x572   :  { %12644 = vmatmul.msk.bf16.gmra.mxu3 %vm5447_vm1, %v16713_v24  ;;  %v5609_v34 = vadd.f32 %v16465_v3, %v16282_v9  ;;  %v5776_v3 = vadd.f32 %v16443_v22, %v16287_v29 }
 0x574   :  { %v16873_v43 = vpop.f32.mrf.mxu0 }
 0x575   :  { %18227 = vst [vmem:[#allocation125_spill] sm:$0xff] %v16873_v43  ;;  %v16875_v32 = vpop.f32.mrf.mxu1  ;;  %v16877_v12 = vpop.f32.mrf.mxu3  ;;  %v16925_v43 = vld [vmem:[%s18232_s8 + $0x8] sm:$0xff] }
 0x576   :  { %18228 = vst [vmem:[#allocation126_spill] sm:$0xff] %v16875_v32  ;;  %v5622_v32 = vadd.f32 %v16538_v10, %v16282_v9  ;;  %v5788_v10 = vadd.f32 %v16529_v11, %v16287_v29  ;;  %v5614_v11 = vadd.f32 %v16495_v16, %v16282_v9  ;;  %v16956_v16 = vld [vmem:[%s18232_s8 + $0x18] sm:$0xff] }
 0x577   :  { %18229 = vst [vmem:[#allocation127_spill] sm:$0xff] %v16877_v12 }
 0x578   :  { %v16883_v52 = vpop.f32.mrf.mxu2 }
 0x579   :  { %18230 = vst [vmem:[#allocation128_spill] sm:$0xff] %v16883_v52  ;;  %v5793_v52 = vadd.f32 %v16563_v49, %v16287_v29  ;;  %v6325_v49 = vmax.f32 %v5624_v56, 0.0 }
 0x57c   :  { %v16885_v42 = vpop.f32.mrf.mxu0 }
 0x57d   :  { %18231 = vst [vmem:[#allocation129_spill] sm:$0xff] %v16885_v42  ;;  %v16887_v6 = vpop.f32.mrf.mxu1  ;;  %v16889_v24 = vpop.f32.mrf.mxu3  ;;  %12615 = vmatmul.msk.bf16.gmra.mxu2 %vm5447_vm1, %v16797_v8 }
 0x57e   :  { %18233 = vst [vmem:[#allocation130_spill] sm:$0xff] %v16887_v6 }
 0x57f   :  { %18234 = vst [vmem:[#allocation131_spill] sm:$0xff] %v16889_v24  ;;  %12554 = vmatmul.msk.bf16.gmra.mxu0 %vm5447_vm1, %v16881_v26 }
 0x580   :  { %12586 = vmatmul.msk.bf16.gmra.mxu1 %vm5447_vm1, %v16881_v26  ;;  %v16899_v62 = vpop.f32.mrf.mxu2 }
 0x581   :  { %18235 = vst [vmem:[#allocation132_spill] sm:$0xff] %v16899_v62  ;;  %v16918_v62 = vld [vmem:[%s18232_s8] sm:$0xff] }
 0x582   :  { %12645 = vmatmul.msk.bf16.gmra.mxu3 %vm5447_vm1, %v16741_v57 }
 0x584   :  { %v16901_v60 = vpop.f32.mrf.mxu0 }
 0x585   :  { %v16903_v12 = vpop.f32.mrf.mxu1  ;;  %v16905_v24 = vpop.f32.mrf.mxu3 }
 0x586   :  { %18236 = vst [vmem:[#allocation133_spill] sm:$0xff] %v16903_v12  ;;  %v5791_v12 = vadd.f32 %v16541_v27, %v16287_v29  ;;  %v5617_v27 = vadd.f32 %v16513_v38, %v16282_v9  ;;  %v5783_v38 = vadd.f32 %v16497_v25, %v16287_v29  ;;  %v6314_v25 = vmax.f32 %v5786_v54, 0.0 }
 0x587   :  { %18237 = vst [vmem:[#allocation134_spill] sm:$0xff] %v16905_v24  ;;  %v6305_v54 = vmax.f32 %v5612_v1, 0.0 }
 0x588   :  { %v16913_v6 = vpop.f32.mrf.mxu2  ;;  %v6322_v56 = vmax.f32 %v5791_v12, 0.0 }
 0x589   :  { %18238 = vst [vmem:[#allocation135_spill] sm:$0xff] %v16913_v6  ;;  %v6326_v6 = vmax.f32 %v5793_v52, 0.0  ;;  %v6317_v52 = vmax.f32 %v5619_v30, 0.0 }
 0x58c   :  { %v16915_v57 = vpop.f32.mrf.mxu0 }
 0x58d   :  { %18239 = vst [vmem:[#allocation136_spill] sm:$0xff] %v16915_v57  ;;  %v16922_v24 = vpop.f32.mrf.mxu1  ;;  %v16929_v42 = vpop.f32.mrf.mxu3  ;;  %v6321_v57 = vmax.f32 %v5622_v32, 0.0  ;;  %12616 = vmatmul.msk.bf16.gmra.mxu2 %vm5447_vm1, %v16825_v20  ;;  %v6318_v32 = vmax.f32 %v5788_v10, 0.0  ;;  %v16963_v10 = vld [vmem:[%s18232_s8 + $0x10] sm:$0x3] }
 0x58e   :  { %18240 = vst [vmem:[#allocation137_spill] sm:$0xff] %v16929_v42 }
 0x58f   :  { %12654 = vmatmul.msk.f32.vlgmr.msrb.gmra.mxu0 %vm6513_vm2, %v16918_v62 }
 0x590   :  { %12655 = vmatmul.msk.f32.vlgmr.msrb.gmra.mxu1 %vm6513_vm2, %v16925_v43  ;;  %6757 = vmatpush.msrb.mxu0 %v6325_v49  ;;  %v16951_v12 = vpop.f32.mrf.mxu2 }
 0x591   :  { %6783 = vmatpush.msrb.mxu1 %v6326_v6  ;;  %v6313_v6 = vmax.f32 %v5617_v27, 0.0 }
 0x592   :  { %6758 = vmatpush.msrb.mxu0 %v6321_v57  ;;  %12646 = vmatmul.msk.bf16.gmra.mxu3 %vm5447_vm1, %v16769_v46  ;;  %v5781_v57 = vadd.f32 %v16480_v36, %v16287_v29  ;;  %v6309_v46 = vmax.f32 %v5614_v11, 0.0  ;;  %v5607_v36 = vadd.f32 %v16439_v21, %v16282_v9  ;;  %v5813_v21 = vadd.f32 %v16679_v53, %v16287_v29 }
 0x593   :  { %6784 = vmatpush.msrb.mxu1 %v6322_v56  ;;  %v5778_v56 = vadd.f32 %v16467_v18, %v16287_v29  ;;  %v6301_v18 = vmax.f32 %v5609_v34, 0.0  ;;  %v6298_v34 = vmax.f32 %v5776_v3, 0.0  ;;  %v5639_v53 = vadd.f32 %v16649_v4, %v16282_v9 }
 0x594   :  { %6759 = vmatpush.msrb.mxu0 %v6317_v52  ;;  %v16953_v49 = vpop.f32.mrf.mxu0  ;;  %v6310_v52 = vmax.f32 %v5783_v38, 0.0  ;;  %v6306_v11 = vmax.f32 %v5781_v57, 0.0  ;;  %v5644_v38 = vadd.f32 %v16677_v39, %v16282_v9  ;;  %v6297_v1 = vmax.f32 %v5607_v36, 0.0  ;;  %v16990_v57 = vld [vmem:[%s18232_s8 + $0x20] sm:$0xff] }
 0x595   :  { %6785 = vmatpush.msrb.mxu1 %v6318_v32  ;;  %v16960_v30 = vpop.f32.mrf.mxu1  ;;  %v16967_v27 = vpop.f32.mrf.mxu3  ;;  %v6302_v32 = vmax.f32 %v5778_v56, 0.0  ;;  %v5811_v39 = vadd.f32 %v16663_v45, %v16287_v29  ;;  %v6358_v36 = vmax.f32 %v5813_v21, 0.0  ;;  %v5637_v45 = vadd.f32 %v16633_v63, %v16282_v9 }
 0x596   :  { %6760 = vmatpush.msrb.mxu0 %v6313_v6  ;;  %v5642_v6 = vadd.f32 %v16661_v13, %v16282_v9  ;;  %v6357_v56 = vmax.f32 %v5644_v38, 0.0  ;;  %v5806_v4 = vadd.f32 %v16635_v23, %v16287_v29  ;;  %v5803_v63 = vadd.f32 %v16623_v47, %v16287_v29 }
 0x597   :  { %6786 = vmatpush.msrb.mxu1 %v6314_v25  ;;  %12663 = vmatmul.msk.f32.vlgmr.msra.gmra.mxu0 %vm6513_vm2, %v16956_v16  ;;  %v6354_v3 = vmax.f32 %v5811_v39, 0.0  ;;  %v5632_v23 = vadd.f32 %v16605_v37, %v16282_v9  ;;  %v6345_v38 = vmax.f32 %v5637_v45, 0.0  ;;  %v5798_v39 = vadd.f32 %v16595_v7, %v16287_v29 }
 0x598   :  { %12656 = vmatmul.msk.f32.gmra.mxu1 %vm6513_vm2, %v16963_v10  ;;  %6761 = vmatpush.msrb.mxu0 %v6309_v46  ;;  %v16985_v25 = vpop.f32.mrf.mxu2  ;;  %v6346_v47 = vmax.f32 %v5806_v4, 0.0  ;;  %v5662_v45 = vadd.f32 %v16773_v55, %v16282_v9  ;;  %v5657_v55 = vadd.f32 %v16745_v17, %v16282_v9  ;;  %v5654_v17 = vadd.f32 %v16733_v61, %v16282_v9 }
 0x599   :  { %6787 = vmatpush.msrb.mxu1 %v6310_v52  ;;  %v5808_v52 = vadd.f32 %v16651_v59, %v16287_v29  ;;  %v5634_v59 = vadd.f32 %v16621_v33, %v16282_v9  ;;  %v5801_v33 = vadd.f32 %v16607_v31, %v16287_v29  ;;  %v5627_v31 = vadd.f32 %v16577_v58, %v16282_v9 }
 0x59a   :  { %6762 = vmatpush.msrb.mxu0 %v6305_v54  ;;  %v6353_v54 = vmax.f32 %v5642_v6, 0.0  ;;  %v6334_v58 = vmax.f32 %v5798_v39, 0.0  ;;  %v17085_v39 = vld [vmem:[%s18232_s8 + $0x38] sm:$0xff] }
 0x59b   :  { %6788 = vmatpush.msrb.mxu1 %v6306_v11  ;;  %v6349_v11 = vmax.f32 %v5639_v53, 0.0  ;;  %v6342_v53 = vmax.f32 %v5803_v63, 0.0  ;;  %v6338_v7 = vmax.f32 %v5801_v33, 0.0  ;;  %v6377_v33 = vmax.f32 %v5657_v55, 0.0 }
 0x59c   :  { %6763 = vmatpush.msrb.mxu0 %v6301_v18  ;;  %v16987_v22 = vpop.f32.mrf.mxu0  ;;  %v6350_v18 = vmax.f32 %v5808_v52, 0.0  ;;  %v5664_v52 = vadd.f32 %v16789_v28, %v16282_v9  ;;  %v5659_v28 = vadd.f32 %v16761_v5, %v16282_v9 }
 0x59d   :  { %6789 = vmatpush.msrb.mxu1 %v6302_v32  ;;  %v16994_v46 = vpop.f32.mrf.mxu1  ;;  %v16998_v13 = vpop.f32.mrf.mxu3  ;;  %12617 = vmatmul.msk.bf16.gmra.mxu2 %vm5447_vm1, %v16853_v41 }
 0x59e   :  { %6764 = vmatpush.msrb.mxu0 %v6297_v1  ;;  %v17025_v1 = vld [vmem:[%s18232_s8 + $0x28] sm:$0x3]  ;;  %v6389_v4 = vmax.f32 %v5664_v52, 0.0  ;;  %v6381_v5 = vmax.f32 %v5659_v28, 0.0  ;;  %v5647_v52 = vadd.f32 %v16689_v0, %v16282_v9 }
 0x59f   :  { %6790 = vmatpush.msrb.mxu1 %v6298_v34  ;;  %12664 = vmatmul.msk.f32.gmra.mxu0 %vm6513_vm2, %v16990_v57  ;;  %v6341_v34 = vmax.f32 %v5634_v59, 0.0 }
 0x5a0   :  { %12666 = vmatmul.msk.f32.vlgmr.msra.gmra.mxu1 %vm6513_vm2, %v16956_v16  ;;  %6870 = vmatpush.msra.mxu0 %v6357_v56  ;;  %v17020_v32 = vpop.f32.mrf.mxu2  ;;  %v6337_v56 = vmax.f32 %v5632_v23, 0.0  ;;  %v6361_v0 = vmax.f32 %v5647_v52, 0.0  ;;  %v5684_v52 = vadd.f32 %v16901_v60, %v16282_v9 }
 0x5a1   :  { %6896 = vmatpush.msra.mxu1 %v6358_v36 }
 0x5a2   :  { %6871 = vmatpush.msra.mxu0 %v6353_v54  ;;  %12647 = vmatmul.msk.bf16.gmra.mxu3 %vm5447_vm1, %v16797_v8  ;;  %v5629_v8 = vadd.f32 %v16593_v50, %v16282_v9  ;;  %v5796_v50 = vadd.f32 %v16579_v44, %v16287_v29  ;;  %v6329_v54 = vmax.f32 %v5627_v31, 0.0  ;;  %v5649_v31 = vadd.f32 %v16705_v19, %v16282_v9 }
 0x5a3   :  { %6897 = vmatpush.msra.mxu1 %v6354_v3  ;;  %v5826_v19 = vadd.f32 %v16747_v51, %v16287_v29  ;;  %v18245_v51 = vld [vmem:[#allocation92_spill] sm:$0xff] }
 0x5a4   :  { %v17022_v21 = vpop.f32.mrf.mxu0  ;;  %6872 = vmatpush.msra.mxu0 %v6349_v11  ;;  %v6333_v36 = vmax.f32 %v5629_v8, 0.0  ;;  %v17056_v11 = vld [vmem:[%s18232_s8 + $0x30] sm:$0xff]  ;;  %v6330_v44 = vmax.f32 %v5796_v50, 0.0  ;;  %v5652_v8 = vadd.f32 %v16717_v35, %v16282_v9  ;;  %v5828_v35 = vadd.f32 %v16763_v14, %v16287_v29 }
 0x5a5   :  { %v17029_v6 = vpop.f32.mrf.mxu1  ;;  %6898 = vmatpush.msra.mxu1 %v6350_v18  ;;  %v17033_v37 = vpop.f32.mrf.mxu3  ;;  %v6385_v18 = vmax.f32 %v5662_v45, 0.0  ;;  %v5823_v14 = vadd.f32 %v16735_v2, %v16287_v29  ;;  %v18244_v45 = vld [vmem:[#allocation81_spill] sm:$0xff]  ;;  %v6378_v55 = vmax.f32 %v5826_v19, 0.0  ;;  %v18246_v2 = vld [vmem:[#allocation79_spill] sm:$0xff] }
 0x5a6   :  { %18241 = vst [vmem:[#allocation138_spill] sm:$0xff] %v17033_v37  ;;  %6873 = vmatpush.msra.mxu0 %v6345_v38  ;;  %v5833_v38 = vadd.f32 %v16791_v48, %v16287_v29  ;;  %v6369_v50 = vmax.f32 %v5652_v8, 0.0  ;;  %v18249_v8 = vld [vmem:[#allocation77_spill] sm:$0xff] }
 0x5a7   :  { %12665 = vmatmul.msk.f32.gmra.mxu0 %vm6513_vm2, %v17025_v1  ;;  %6899 = vmatpush.msra.mxu1 %v6346_v47  ;;  %v5831_v47 = vadd.f32 %v16775_v15, %v16287_v29  ;;  %v6373_v15 = vmax.f32 %v5654_v17, 0.0  ;;  %v18248_v17 = vld [vmem:[#allocation89_spill] sm:$0xff] }
 0x5a8   :  { %12667 = vmatmul.msk.f32.gmra.mxu1 %vm6513_vm2, %v16990_v57  ;;  %6874 = vmatpush.msra.mxu0 %v6341_v34  ;;  %v17051_v3 = vpop.f32.mrf.mxu2  ;;  %v18268_v37 = vld [vmem:[#allocation109_spill] sm:$0xff] }
 0x5a9   :  { %6900 = vmatpush.msra.mxu1 %v6342_v53  ;;  %v6390_v53 = vmax.f32 %v5833_v38, 0.0 }
 0x5aa   :  { %6875 = vmatpush.msra.mxu0 %v6337_v56 }
 0x5ab   :  { %6901 = vmatpush.msra.mxu1 %v6338_v7  ;;  %v6365_v7 = vmax.f32 %v5649_v31, 0.0 }
 0x5ac   :  { %v17053_v59 = vpop.f32.mrf.mxu0  ;;  %6876 = vmatpush.msra.mxu0 %v6333_v36  ;;  %v6382_v36 = vmax.f32 %v5828_v35, 0.0 }
 0x5ad   :  { %v17058_v63 = vpop.f32.mrf.mxu1  ;;  %6902 = vmatpush.msra.mxu1 %v6334_v58  ;;  %v17062_v23 = vpop.f32.mrf.mxu3  ;;  %12618 = vmatmul.msk.bf16.gmra.mxu2 %vm5447_vm1, %v16881_v26  ;;  %v5962_v58 = vadd.f32 %v18244_v45, %v16392_v40 }
 0x5ae   :  { %18242 = vst [vmem:[#allocation139_spill] sm:$0xff] %v17062_v23  ;;  %6877 = vmatpush.msra.mxu0 %v6329_v54  ;;  %v5669_v23 = vadd.f32 %v18268_v37, %v16282_v9  ;;  %v18271_v37 = vld [vmem:[#allocation118_spill] sm:$0xff] }
 0x5af   :  { %12675 = vmatmul.msk.f32.vlgmr.msrb.gmra.mxu0 %vm6513_vm2, %v17056_v11  ;;  %6903 = vmatpush.msra.mxu1 %v6330_v44  ;;  %v5821_v44 = vadd.f32 %v18245_v51, %v16287_v29  ;;  %v6327_v31 = vmax.f32 %v5962_v58, 0.0  ;;  %v18253_v58 = vld [vmem:[#allocation73_spill] sm:$0xff] }
 0x5b0   :  { %12668 = vmatmul.msk.f32.gmra.mxu1 %vm6513_vm2, %v17025_v1  ;;  %6983 = vmatpush.msrb.mxu0 %v6389_v4  ;;  %v17080_v34 = vpop.f32.mrf.mxu2  ;;  %v17112_v4 = vld [vmem:[%s18232_s8 + $0x40] sm:$0x3]  ;;  %v5952_v60 = vadd.f32 %v18253_v58, %v16392_v40  ;;  %v18261_v58 = vld [vmem:[#allocation133_spill] sm:$0xff] }
 0x5b2   :  { %6984 = vmatpush.msrb.mxu0 %v6385_v18  ;;  %12648 = vmatmul.msk.bf16.gmra.mxu3 %vm5447_vm1, %v16825_v20  ;;  %v6386_v20 = vmax.f32 %v5831_v47, 0.0  ;;  %v6374_v47 = vmax.f32 %v5823_v14, 0.0 }
 0x5b4   :  { %v17082_v48 = vpop.f32.mrf.mxu0  ;;  %6985 = vmatpush.msrb.mxu0 %v6381_v5  ;;  %v5960_v5 = vadd.f32 %v18246_v2, %v16392_v40 }
 0x5b5   :  { %v17087_v61 = vpop.f32.mrf.mxu1  ;;  %v17091_v56 = vpop.f32.mrf.mxu3 }
 0x5b6   :  { %18243 = vst [vmem:[#allocation140_spill] sm:$0xff] %v17091_v56  ;;  %6986 = vmatpush.msrb.mxu0 %v6377_v33  ;;  %v5818_v33 = vadd.f32 %v18248_v17, %v16287_v29 }
 0x5b7   :  { %12676 = vmatmul.msk.f32.gmra.mxu0 %vm6513_vm2, %v17085_v39 }
 0x5b8   :  { %12678 = vmatmul.msk.f32.vlgmr.msrb.gmra.mxu1 %vm6513_vm2, %v17056_v11  ;;  %6987 = vmatpush.msrb.mxu0 %v6373_v15  ;;  %v17107_v54 = vpop.f32.mrf.mxu2  ;;  %v18250_v15 = vld [vmem:[#allocation86_spill] sm:$0xff]  ;;  %v6366_v14 = vmax.f32 %v5818_v33, 0.0  ;;  %v6421_v33 = vmax.f32 %v5684_v52, 0.0  ;;  %v18259_v52 = vld [vmem:[#allocation121_spill] sm:$0xff] }
 0x5b9   :  { %7009 = vmatpush.msrb.mxu1 %v6390_v53  ;;  %v5957_v53 = vadd.f32 %v18249_v8, %v16392_v40  ;;  %v5816_v35 = vadd.f32 %v18250_v15, %v16287_v29 }
 0x5ba   :  { %6988 = vmatpush.msrb.mxu0 %v6369_v50  ;;  %v18251_v50 = vld [vmem:[#allocation75_spill] sm:$0xff] }
 0x5bb   :  { %7010 = vmatpush.msrb.mxu1 %v6386_v20  ;;  %v6370_v20 = vmax.f32 %v5821_v44, 0.0  ;;  %v5955_v19 = vadd.f32 %v18251_v50, %v16392_v40  ;;  %v6362_v2 = vmax.f32 %v5816_v35, 0.0  ;;  %v18258_v35 = vld [vmem:[#allocation69_spill] sm:$0xff]  ;;  %v6311_v50 = vmax.f32 %v5952_v60, 0.0 }
 0x5bc   :  { %v17109_v28 = vpop.f32.mrf.mxu0  ;;  %6989 = vmatpush.msrb.mxu0 %v6365_v7  ;;  %v6323_v7 = vmax.f32 %v5960_v5, 0.0  ;;  %v18255_v5 = vld [vmem:[#allocation125_spill] sm:$0xff]  ;;  %v5853_v60 = vadd.f32 %v18261_v58, %v16287_v29 }
 0x5bd   :  { %v17116_v18 = vpop.f32.mrf.mxu1  ;;  %7011 = vmatpush.msrb.mxu1 %v6382_v36  ;;  %v17120_v38 = vpop.f32.mrf.mxu3  ;;  %12657 = vmatmul.msk.f32.vlgmr.msrb.gmra.mxu2 %vm6513_vm2, %v16918_v62  ;;  %v18252_v36 = vld [vmem:[#allocation129_spill] sm:$0xff]  ;;  %v5679_v17 = vadd.f32 %v18255_v5, %v16282_v9 }
 0x5be   :  { %18247 = vst [vmem:[#allocation81_spill] sm:$0xff] %v17120_v38  ;;  %6990 = vmatpush.msrb.mxu0 %v6361_v0  ;;  %6809 = vmatpush.msrb.mxu2 %v6327_v31  ;;  %v5682_v45 = vadd.f32 %v18252_v36, %v16282_v9  ;;  %v6319_v0 = vmax.f32 %v5957_v53, 0.0  ;;  %v6315_v31 = vmax.f32 %v5955_v19, 0.0  ;;  %v5677_v19 = vadd.f32 %v18259_v52, %v16282_v9 }
 0x5bf   :  { %12677 = vmatmul.msk.f32.gmra.mxu0 %vm6513_vm2, %v17112_v4  ;;  %7012 = vmatpush.msrb.mxu1 %v6378_v55  ;;  %v17149_v55 = vld [vmem:[%s18232_s8 + $0x48] sm:$0xff] }
 0x5c0   :  { %12679 = vmatmul.msk.f32.gmra.mxu1 %vm6513_vm2, %v17085_v39  ;;  %6810 = vmatpush.msrb.mxu2 %v6323_v7  ;;  %v17144_v51 = vpop.f32.mrf.mxu2  ;;  %v6417_v15 = vmax.f32 %v5682_v45, 0.0  ;;  %v6413_v7 = vmax.f32 %v5679_v17, 0.0 }
 0x5c1   :  { %7013 = vmatpush.msrb.mxu1 %v6374_v47  ;;  %18254 = vst [vmem:[#allocation92_spill] sm:$0xff] %v17144_v51 }
 0x5c2   :  { %12649 = vmatmul.msk.bf16.gmra.mxu3 %vm5447_vm1, %v16853_v41  ;;  %v18256_v41 = vld [vmem:[#allocation71_spill] sm:$0xff]  ;;  %6811 = vmatpush.msrb.mxu2 %v6319_v0  ;;  %v18262_v0 = vld [vmem:[#allocation117_spill] sm:$0xff] }
 0x5c3   :  { %7014 = vmatpush.msrb.mxu1 %v6370_v20  ;;  %v5950_v8 = vadd.f32 %v18256_v41, %v16392_v40  ;;  %v5947_v20 = vadd.f32 %v18258_v35, %v16392_v40  ;;  %v18263_v41 = vld [vmem:[#allocation130_spill] sm:$0xff] }
 0x5c4   :  { %v17146_v44 = vpop.f32.mrf.mxu0  ;;  %6812 = vmatpush.msrb.mxu2 %v6315_v31  ;;  %v5851_v17 = vadd.f32 %v18263_v41, %v16287_v29  ;;  %v17182_v35 = vld [vmem:[%s18232_s8 + $0x50] sm:$0xff] }
 0x5c5   :  { %v17153_v47 = vpop.f32.mrf.mxu1  ;;  %7015 = vmatpush.msrb.mxu1 %v6366_v14  ;;  %v17157_v53 = vpop.f32.mrf.mxu3  ;;  %12658 = vmatmul.msk.f32.gmra.mxu2 %vm6513_vm2, %v16925_v43  ;;  %v18260_v14 = vld [vmem:[#allocation67_spill] sm:$0xff]  ;;  %v6307_v45 = vmax.f32 %v5950_v8, 0.0  ;;  %v6303_v5 = vmax.f32 %v5947_v20, 0.0  ;;  %v18265_v8 = vld [vmem:[#allocation113_spill] sm:$0xff] }
 0x5c6   :  { %18257 = vst [vmem:[#allocation79_spill] sm:$0xff] %v17157_v53  ;;  %v5945_v36 = vadd.f32 %v18260_v14, %v16392_v40  ;;  %6813 = vmatpush.msrb.mxu2 %v6311_v50  ;;  %v5672_v52 = vadd.f32 %v18265_v8, %v16282_v9  ;;  %v6409_v14 = vmax.f32 %v5677_v19, 0.0  ;;  %v6418_v8 = vmax.f32 %v5851_v17, 0.0 }
 0x5c7   :  { %12687 = vmatmul.msk.f32.vlgmr.msra.gmra.mxu0 %vm6513_vm2, %v17149_v55  ;;  %7016 = vmatpush.msrb.mxu1 %v6362_v2  ;;  %v5674_v2 = vadd.f32 %v18262_v0, %v16282_v9  ;;  %v6422_v0 = vmax.f32 %v5853_v60, 0.0  ;;  %v18270_v60 = vld [vmem:[#allocation105_spill] sm:$0xff]  ;;  %v5843_v17 = vadd.f32 %v18271_v37, %v16287_v29 }
 0x5c8   :  { %12680 = vmatmul.msk.f32.gmra.mxu1 %vm6513_vm2, %v17112_v4  ;;  %7096 = vmatpush.msra.mxu0 %v6421_v33  ;;  %v17177_v31 = vpop.f32.mrf.mxu2  ;;  %v6299_v58 = vmax.f32 %v5945_v36, 0.0  ;;  %v6401_v19 = vmax.f32 %v5672_v52, 0.0  ;;  %v18272_v52 = vld [vmem:[#allocation100_spill] sm:$0xff] }
 0x5c9   :  { %6814 = vmatpush.msrb.mxu2 %v6307_v45  ;;  %18264 = vst [vmem:[#allocation89_spill] sm:$0xff] %v17177_v31  ;;  %v6405_v41 = vmax.f32 %v5674_v2, 0.0  ;;  %v5667_v2 = vadd.f32 %v18270_v60, %v16282_v9 }
 0x5ca   :  { %7097 = vmatpush.msra.mxu0 %v6417_v15  ;;  %v18266_v15 = vld [vmem:[#allocation126_spill] sm:$0xff] }
 0x5cb   :  { %v5848_v20 = vadd.f32 %v18266_v15, %v16287_v29  ;;  %6815 = vmatpush.msrb.mxu2 %v6303_v5  ;;  %v6397_v15 = vmax.f32 %v5669_v23, 0.0  ;;  %v6393_v38 = vmax.f32 %v5667_v2, 0.0  ;;  %v6406_v23 = vmax.f32 %v5843_v17, 0.0 }
 0x5cc   :  { %v17179_v33 = vpop.f32.mrf.mxu0  ;;  %7098 = vmatpush.msra.mxu0 %v6413_v7  ;;  %v18269_v7 = vld [vmem:[#allocation122_spill] sm:$0xff] }
 0x5cd   :  { %v17186_v50 = vpop.f32.mrf.mxu1  ;;  %v17190_v45 = vpop.f32.mrf.mxu3  ;;  %6816 = vmatpush.msrb.mxu2 %v6299_v58  ;;  %v5846_v36 = vadd.f32 %v18269_v7, %v16287_v29  ;;  %v6414_v5 = vmax.f32 %v5848_v20, 0.0  ;;  %v5982_v58 = vadd.f32 %v18272_v52, %v16392_v40  ;;  %v18273_v20 = vld [vmem:[#allocation114_spill] sm:$0xff] }
 0x5ce   :  { %18267 = vst [vmem:[#allocation77_spill] sm:$0xff] %v17190_v45  ;;  %12659 = vmatmul.msk.f32.gmra.mxu2 %vm6513_vm2, %v16963_v10  ;;  %7099 = vmatpush.msra.mxu0 %v6409_v14  ;;  %v17215_v14 = vld [vmem:[%s18232_s8 + $0x58] sm:$0x3] }
 0x5cf   :  { %12688 = vmatmul.msk.f32.gmra.mxu0 %vm6513_vm2, %v17182_v35  ;;  %v6410_v60 = vmax.f32 %v5846_v36, 0.0  ;;  %v6359_v45 = vmax.f32 %v5982_v58, 0.0  ;;  %v5704_v58 = vadd.f32 %v17146_v44, %v16282_v9  ;;  %v5702_v44 = vadd.f32 %v17109_v28, %v16282_v9  ;;  %v18284_v28 = vld [vmem:[#allocation72_spill] sm:$0xff] }
 0x5d0   :  { %12690 = vmatmul.msk.f32.vlgmr.msra.gmra.mxu1 %vm6513_vm2, %v17149_v55  ;;  %7100 = vmatpush.msra.mxu0 %v6405_v41  ;;  %v17210_v7 = vpop.f32.mrf.mxu2 }
 0x5d1   :  { %7122 = vmatpush.msra.mxu1 %v6422_v0  ;;  %v5841_v0 = vadd.f32 %v18273_v20, %v16287_v29 }
 0x5d2   :  { %12650 = vmatmul.msk.bf16.gmra.mxu3 %vm5447_vm1, %v16881_v26  ;;  %7101 = vmatpush.msra.mxu0 %v6401_v19  ;;  %v18274_v26 = vld [vmem:[#allocation98_spill] sm:$0xff] }
 0x5d3   :  { %7123 = vmatpush.msra.mxu1 %v6418_v8  ;;  %v5980_v41 = vadd.f32 %v18274_v26, %v16392_v40  ;;  %v18276_v8 = vld [vmem:[#allocation96_spill] sm:$0xff]  ;;  %v18277_v19 = vld [vmem:[#allocation110_spill] sm:$0xff]  ;;  %v6402_v2 = vmax.f32 %v5841_v0, 0.0 }
 0x5d4   :  { %v17212_v56 = vpop.f32.mrf.mxu0  ;;  %v5977_v53 = vadd.f32 %v18276_v8, %v16392_v40  ;;  %7102 = vmatpush.msra.mxu0 %v6397_v15  ;;  %v5838_v36 = vadd.f32 %v18277_v19, %v16287_v29  ;;  %v18279_v15 = vld [vmem:[#allocation106_spill] sm:$0xff]  ;;  %v18280_v8 = vld [vmem:[#allocation91_spill] sm:$0xff] }
 0x5d5   :  { %v17219_v37 = vpop.f32.mrf.mxu1  ;;  %v17223_v52 = vpop.f32.mrf.mxu3  ;;  %7124 = vmatpush.msra.mxu1 %v6414_v5  ;;  %v18278_v5 = vld [vmem:[#allocation94_spill] sm:$0xff]  ;;  %v6355_v20 = vmax.f32 %v5980_v41, 0.0  ;;  %v5836_v26 = vadd.f32 %v18279_v15, %v16287_v29  ;;  %v5972_v0 = vadd.f32 %v18280_v8, %v16392_v40  ;;  %v18283_v8 = vld [vmem:[#allocation88_spill] sm:$0xff] }
 0x5d6   :  { %18275 = vst [vmem:[#allocation86_spill] sm:$0xff] %v17223_v52  ;;  %12669 = vmatmul.msk.f32.vlgmr.msra.gmra.mxu2 %vm6513_vm2, %v16956_v16  ;;  %v5975_v17 = vadd.f32 %v18278_v5, %v16392_v40  ;;  %7103 = vmatpush.msra.mxu0 %v6393_v38  ;;  %v6351_v19 = vmax.f32 %v5977_v53, 0.0  ;;  %v17248_v5 = vld [vmem:[%s18232_s8 + $0x60] sm:$0xff]  ;;  %v6398_v41 = vmax.f32 %v5838_v36, 0.0  ;;  %v5970_v53 = vadd.f32 %v18283_v8, %v16392_v40 }
 0x5d7   :  { %12689 = vmatmul.msk.f32.gmra.mxu0 %vm6513_vm2, %v17215_v14  ;;  %7125 = vmatpush.msra.mxu1 %v6410_v60  ;;  %v6453_v52 = vmax.f32 %v5704_v58, 0.0  ;;  %v6394_v42 = vmax.f32 %v5836_v26, 0.0 }
 0x5d8   :  { %12691 = vmatmul.msk.f32.gmra.mxu1 %vm6513_vm2, %v17182_v35  ;;  %6922 = vmatpush.msra.mxu2 %v6359_v45  ;;  %v17243_v16 = vpop.f32.mrf.mxu2  ;;  %v18281_v45 = vld [vmem:[#allocation62_spill] sm:$0xff] }
 0x5d9   :  { %7126 = vmatpush.msra.mxu1 %v6406_v23  ;;  %v18282_v23 = vld [vmem:[#allocation74_spill] sm:$0xff]  ;;  %v6109_v36 = vadd.f32 %v18284_v28, %v18281_v45  ;;  %v6339_v28 = vmax.f32 %v5970_v53, 0.0 }
 0x5da   :  { %6923 = vmatpush.msra.mxu2 %v6355_v20  ;;  %v6111_v15 = vadd.f32 %v18282_v23, %v18281_v45  ;;  %v6347_v20 = vmax.f32 %v5975_v17, 0.0  ;;  %v6343_v23 = vmax.f32 %v5972_v0, 0.0  ;;  %v18286_v17 = vld [vmem:[#allocation70_spill] sm:$0xff]  ;;  %v5699_v0 = vadd.f32 %v17082_v48, %v16282_v9 }
 0x5db   :  { %7127 = vmatpush.msra.mxu1 %v6402_v2  ;;  %v18285_v2 = vld [vmem:[#allocation85_spill] sm:$0xff]  ;;  %v6106_v58 = vadd.f32 %v18286_v17, %v18281_v45  ;;  %v5871_v17 = vadd.f32 %v17116_v18, %v16287_v29 }
 0x5dc   :  { %v17245_v60 = vpop.f32.mrf.mxu0  ;;  %6924 = vmatpush.msra.mxu2 %v6351_v19  ;;  %v5967_v31 = vadd.f32 %v18285_v2, %v16392_v40  ;;  %v6449_v19 = vmax.f32 %v5702_v44, 0.0  ;;  %v6296_v26 = vmax.f32 %v6111_v15, 0.0  ;;  %v6292_v44 = vmax.f32 %v6109_v36, 0.0  ;;  %v18290_v18 = vld [vmem:[#allocation65_spill] sm:$0xff] }
 0x5dd   :  { %v17252_v38 = vpop.f32.mrf.mxu1  ;;  %v17258_v51 = vpop.f32.mrf.mxu3  ;;  %7128 = vmatpush.msra.mxu1 %v6398_v41  ;;  %v18287_v41 = vld [vmem:[#allocation83_spill] sm:$0xff]  ;;  %v5697_v2 = vadd.f32 %v17053_v59, %v16282_v9  ;;  %v5694_v59 = vadd.f32 %v17022_v21, %v16282_v9 }
 0x5de   :  { %6925 = vmatpush.msra.mxu2 %v6347_v20  ;;  %v5965_v8 = vadd.f32 %v18287_v41, %v16392_v40  ;;  %v5873_v20 = vadd.f32 %v17153_v47, %v16287_v29  ;;  %v6335_v15 = vmax.f32 %v5967_v31, 0.0  ;;  %v18289_v47 = vld [vmem:[#allocation66_spill] sm:$0xff]  ;;  %v6288_v31 = vmax.f32 %v6106_v58, 0.0 }
 0x5df   :  { %12699 = vmatmul.msk.f32.vlgmr.msrb.gmra.mxu0 %vm6513_vm2, %v17248_v5  ;;  %12670 = vmatmul.msk.f32.gmra.mxu2 %vm6513_vm2, %v16990_v57  ;;  %v18288_v57 = vld [vmem:[#allocation68_spill] sm:$0xff]  ;;  %v6441_v21 = vmax.f32 %v5697_v2, 0.0  ;;  %v5689_v2 = vadd.f32 %v16953_v49, %v16282_v9 }
 0x5e0   :  { %12692 = vmatmul.msk.f32.gmra.mxu1 %vm6513_vm2, %v17215_v14  ;;  %6926 = vmatpush.msra.mxu2 %v6343_v23  ;;  %v17284_v53 = vpop.f32.mrf.mxu2  ;;  %v6101_v23 = vadd.f32 %v18289_v47, %v18281_v45  ;;  %v6331_v36 = vmax.f32 %v5965_v8, 0.0  ;;  %v6454_v47 = vmax.f32 %v5873_v20, 0.0  ;;  %v5692_v8 = vadd.f32 %v16987_v22, %v16282_v9  ;;  %v18292_v22 = vld [vmem:[#allocation63_spill] sm:$0xff]  ;;  %v18294_v49 = vld [vmem:[#allocation136_spill] sm:$0xff] }
 0x5e1   :  { %7129 = vmatpush.msra.mxu1 %v6394_v42  ;;  %7209 = vmatpush.msrb.mxu0 %v6453_v52  ;;  %v6104_v42 = vadd.f32 %v18288_v57, %v18281_v45  ;;  %v17289_v52 = vld [vmem:[%s18232_s8 + $0x68] sm:$0xff]  ;;  %v5868_v57 = vadd.f32 %v17087_v61, %v16287_v29  ;;  %v18291_v61 = vld [vmem:[#allocation64_spill] sm:$0xff] }
 0x5e2   :  { %12651 = vmatmul.msk.f32.vlgmr.msrb.gmra.mxu3 %vm6513_vm2, %v16918_v62  ;;  %6927 = vmatpush.msra.mxu2 %v6339_v28  ;;  %v6445_v28 = vmax.f32 %v5699_v0, 0.0  ;;  %v6450_v0 = vmax.f32 %v5871_v17, 0.0  ;;  %v6096_v20 = vadd.f32 %v18291_v61, %v18281_v45 }
 0x5e3   :  { %6722 = vmatpush.msrb.mxu3 %v6296_v26  ;;  %7210 = vmatpush.msrb.mxu0 %v6449_v19  ;;  %v6099_v19 = vadd.f32 %v18290_v18, %v18281_v45  ;;  %v6284_v58 = vmax.f32 %v6104_v42, 0.0  ;;  %v6094_v42 = vadd.f32 %v18292_v22, %v18281_v45  ;;  %v6446_v17 = vmax.f32 %v5868_v57, 0.0 }
 0x5e4   :  { %v17286_v48 = vpop.f32.mrf.mxu0  ;;  %6928 = vmatpush.msra.mxu2 %v6335_v15  ;;  %v6437_v15 = vmax.f32 %v5694_v59, 0.0  ;;  %v5866_v59 = vadd.f32 %v17058_v63, %v16287_v29  ;;  %v5687_v57 = vadd.f32 %v18294_v49, %v16282_v9  ;;  %v5863_v63 = vadd.f32 %v17029_v6, %v16287_v29 }
 0x5e5   :  { %v17295_v41 = vpop.f32.mrf.mxu1  ;;  %6723 = vmatpush.msrb.mxu3 %v6292_v44  ;;  %v17299_v26 = vpop.f32.mrf.mxu3  ;;  %v6280_v44 = vmax.f32 %v6101_v23, 0.0  ;;  %7211 = vmatpush.msrb.mxu0 %v6445_v28  ;;  %v6433_v23 = vmax.f32 %v5692_v8, 0.0  ;;  %v18295_v8 = vld [vmem:[#allocation124_spill] sm:$0xff]  ;;  %v6268_v22 = vmax.f32 %v6094_v42, 0.0  ;;  %v5861_v49 = vadd.f32 %v16994_v46, %v16287_v29 }
 0x5e6   :  { %6929 = vmatpush.msra.mxu2 %v6331_v36  ;;  %v6000_v61 = vadd.f32 %v18295_v8, %v16392_v40  ;;  %v6442_v8 = vmax.f32 %v5866_v59, 0.0  ;;  %v6425_v6 = vmax.f32 %v5687_v57, 0.0  ;;  %v18298_v46 = vld [vmem:[#allocation112_spill] sm:$0xff] }
 0x5e7   :  { %12700 = vmatmul.msk.f32.gmra.mxu0 %vm6513_vm2, %v17289_v52  ;;  %6724 = vmatpush.msrb.mxu3 %v6288_v31  ;;  %v18293_v31 = vld [vmem:[#allocation128_spill] sm:$0xff]  ;;  %v6434_v59 = vmax.f32 %v5861_v49, 0.0 }
 0x5e8   :  { %12702 = vmatmul.msk.f32.vlgmr.msrb.gmra.mxu1 %vm6513_vm2, %v17248_v5  ;;  %12671 = vmatmul.msk.f32.gmra.mxu2 %vm6513_vm2, %v17025_v1  ;;  %v6276_v1 = vmax.f32 %v6099_v19, 0.0  ;;  %v6002_v36 = vadd.f32 %v18293_v31, %v16392_v40  ;;  %v17325_v28 = vpop.f32.mrf.mxu2  ;;  %v6272_v19 = vmax.f32 %v6096_v20, 0.0  ;;  %v6429_v31 = vmax.f32 %v5689_v2, 0.0 }
 0x5e9   :  { %6725 = vmatpush.msrb.mxu3 %v6284_v58  ;;  %7235 = vmatpush.msrb.mxu1 %v6454_v47  ;;  %v17330_v58 = vld [vmem:[%s18232_s8 + $0x70] sm:$0x3]  ;;  %v6387_v2 = vmax.f32 %v6000_v61, 0.0 }
 0x5ea   :  { %12652 = vmatmul.msk.f32.gmra.mxu3 %vm6513_vm2, %v16925_v43  ;;  %7212 = vmatpush.msrb.mxu0 %v6441_v21  ;;  %v18296_v21 = vld [vmem:[#allocation120_spill] sm:$0xff]  ;;  %v6391_v20 = vmax.f32 %v6002_v36, 0.0  ;;  %v5992_v36 = vadd.f32 %v18298_v46, %v16392_v40 }
 0x5eb   :  { %6726 = vmatpush.msrb.mxu3 %v6280_v44  ;;  %7236 = vmatpush.msrb.mxu1 %v6450_v0  ;;  %v5997_v0 = vadd.f32 %v18296_v21, %v16392_v40 }
 0x5ec   :  { %v17327_v18 = vpop.f32.mrf.mxu0  ;;  %7213 = vmatpush.msrb.mxu0 %v6437_v15  ;;  %v18297_v15 = vld [vmem:[#allocation116_spill] sm:$0xff] }
 0x5ed   :  { %v17334_v47 = vpop.f32.mrf.mxu1  ;;  %6727 = vmatpush.msrb.mxu3 %v6276_v1  ;;  %v17340_v44 = vpop.f32.mrf.mxu3  ;;  %7237 = vmatpush.msrb.mxu1 %v6446_v17  ;;  %v5995_v42 = vadd.f32 %v18297_v15, %v16392_v40  ;;  %v5858_v17 = vadd.f32 %v16960_v30, %v16287_v29  ;;  %v6438_v1 = vmax.f32 %v5863_v63, 0.0  ;;  %v5856_v30 = vadd.f32 %v16922_v24, %v16287_v29  ;;  %v18299_v63 = vld [vmem:[#allocation93_spill] sm:$0xff]  ;;  %v18301_v24 = vld [vmem:[#allocation90_spill] sm:$0xff] }
 0x5ee   :  { %7214 = vmatpush.msrb.mxu0 %v6433_v23  ;;  %v6383_v23 = vmax.f32 %v5997_v0, 0.0 }
 0x5ef   :  { %12701 = vmatmul.msk.f32.gmra.mxu0 %vm6513_vm2, %v17330_v58  ;;  %6728 = vmatpush.msrb.mxu3 %v6272_v19  ;;  %v17365_v19 = vld [vmem:[%s18232_s8 + $0x78] sm:$0xff]  ;;  %v6379_v0 = vmax.f32 %v5995_v42, 0.0  ;;  %v6426_v46 = vmax.f32 %v5856_v30, 0.0 }
 0x5f0   :  { %12703 = vmatmul.msk.f32.gmra.mxu1 %vm6513_vm2, %v17289_v52  ;;  %12681 = vmatmul.msk.f32.vlgmr.msrb.gmra.mxu2 %vm6513_vm2, %v17056_v11  ;;  %v17360_v11 = vpop.f32.mrf.mxu2  ;;  %v18303_v42 = vld [vmem:[#allocation87_spill] sm:$0xff] }
 0x5f1   :  { %6729 = vmatpush.msrb.mxu3 %v6268_v22  ;;  %7035 = vmatpush.msrb.mxu2 %v6391_v20  ;;  %v6131_v22 = vadd.f32 %v18299_v63, %v18281_v45  ;;  %v6430_v20 = vmax.f32 %v5858_v17, 0.0  ;;  %v6126_v17 = vadd.f32 %v18303_v42, %v18281_v45 }
 0x5f2   :  { %12653 = vmatmul.msk.f32.gmra.mxu3 %vm6513_vm2, %v16963_v10  ;;  %7215 = vmatpush.msrb.mxu0 %v6429_v31  ;;  %v18300_v31 = vld [vmem:[#allocation108_spill] sm:$0xff] }
 0x5f3   :  { %7036 = vmatpush.msrb.mxu2 %v6387_v2  ;;  %7238 = vmatpush.msrb.mxu1 %v6442_v8  ;;  %v5990_v21 = vadd.f32 %v18300_v31, %v16392_v40  ;;  %v6129_v8 = vadd.f32 %v18301_v24, %v18281_v45  ;;  %v6375_v2 = vmax.f32 %v5992_v36, 0.0  ;;  %v18305_v36 = vld [vmem:[#allocation84_spill] sm:$0xff] }
 0x5f4   :  { %v17362_v57 = vpop.f32.mrf.mxu0  ;;  %7216 = vmatpush.msrb.mxu0 %v6425_v6  ;;  %v18302_v6 = vld [vmem:[#allocation104_spill] sm:$0xff] }
 0x5f5   :  { %v17369_v61 = vpop.f32.mrf.mxu1  ;;  %v17375_v49 = vpop.f32.mrf.mxu3  ;;  %7037 = vmatpush.msrb.mxu2 %v6383_v23  ;;  %7239 = vmatpush.msrb.mxu1 %v6438_v1  ;;  %v5987_v15 = vadd.f32 %v18302_v6, %v16392_v40  ;;  %v6328_v1 = vmax.f32 %v6131_v22, 0.0  ;;  %v18304_v23 = vld [vmem:[#allocation102_spill] sm:$0xff]  ;;  %v6371_v31 = vmax.f32 %v5990_v21, 0.0  ;;  %v6324_v30 = vmax.f32 %v6129_v8, 0.0  ;;  %v17398_v6 = vld [vmem:[%s18232_s8 + $0x80] sm:$0xff] }
 0x5f6   :  { %v5985_v63 = vadd.f32 %v18304_v23, %v16392_v40  ;;  %v18306_v21 = vld [vmem:[#allocation82_spill] sm:$0xff]  ;;  %v18307_v8 = vld [vmem:[#allocation80_spill] sm:$0xff] }
 0x5f7   :  { %12711 = vmatmul.msk.f32.vlgmr.msra.gmra.mxu0 %vm6513_vm2, %v17365_v19  ;;  %7038 = vmatpush.msrb.mxu2 %v6379_v0  ;;  %v6367_v0 = vmax.f32 %v5987_v15, 0.0  ;;  %v6119_v15 = vadd.f32 %v18307_v8, %v18281_v45  ;;  %v6022_v8 = vadd.f32 %v17107_v54, %v16392_v40  ;;  %v5717_v54 = vadd.f32 %v17327_v18, %v16282_v9 }
 0x5f8   :  { %7240 = vmatpush.msrb.mxu1 %v6434_v59  ;;  %12682 = vmatmul.msk.f32.gmra.mxu2 %vm6513_vm2, %v17085_v39  ;;  %v6124_v59 = vadd.f32 %v18305_v36, %v18281_v45  ;;  %v17395_v24 = vpop.f32.mrf.mxu2  ;;  %v6363_v42 = vmax.f32 %v5985_v63, 0.0  ;;  %v18309_v63 = vld [vmem:[#allocation76_spill] sm:$0xff]  ;;  %v5886_v18 = vadd.f32 %v17334_v47, %v16287_v29  ;;  %v18310_v47 = vld [vmem:[#allocation115_spill] sm:$0xff] }
 0x5f9   :  { %12704 = vmatmul.msk.f32.gmra.mxu1 %vm6513_vm2, %v17330_v58  ;;  %7039 = vmatpush.msrb.mxu2 %v6375_v2  ;;  %v6320_v2 = vmax.f32 %v6126_v17, 0.0  ;;  %v6308_v36 = vmax.f32 %v6119_v15, 0.0 }
 0x5fa   :  { %7241 = vmatpush.msrb.mxu1 %v6430_v20  ;;  %12660 = vmatmul.msk.f32.vlgmr.msra.gmra.mxu3 %vm6513_vm2, %v16918_v62  ;;  %v6121_v20 = vadd.f32 %v18306_v21, %v18281_v45  ;;  %v17422_v21 = vld [vmem:[%s18232_s8 + $0x88] sm:$0x3] }
 0x5fb   :  { %6835 = vmatpush.msra.mxu3 %v6328_v1  ;;  %7040 = vmatpush.msrb.mxu2 %v6371_v31  ;;  %v6316_v1 = vmax.f32 %v6124_v59, 0.0  ;;  %v6114_v31 = vadd.f32 %v18309_v63, %v18281_v45  ;;  %v6017_v63 = vadd.f32 %v17051_v3, %v16392_v40 }
 0x5fc   :  { %v5721_v39 = vpop.f32.mrf.mxu0  ;;  %7242 = vmatpush.msrb.mxu1 %v6426_v46  ;;  %v18308_v46 = vld [vmem:[#allocation78_spill] sm:$0xff]  ;;  %v6312_v23 = vmax.f32 %v6121_v20, 0.0 }
 0x5fd   :  { %v5890_v22 = vpop.f32.mrf.mxu1  ;;  %6836 = vmatpush.msra.mxu3 %v6324_v30  ;;  %v17402_v62 = vpop.f32.mrf.mxu3  ;;  %7041 = vmatpush.msrb.mxu2 %v6367_v0  ;;  %v6116_v17 = vadd.f32 %v18308_v46, %v18281_v45  ;;  %v5722_v59 = vadd.f32 %v5721_v39, %v16282_v9  ;;  %v5888_v46 = vadd.f32 %v17369_v61, %v16287_v29  ;;  %v6423_v61 = vmax.f32 %v6022_v8, 0.0 }
 0x5ff   :  { %12712 = vmatmul.msk.f32.gmra.mxu0 %vm6513_vm2, %v17398_v6  ;;  %6837 = vmatpush.msra.mxu3 %v6320_v2 }
 0x600   :  { %7042 = vmatpush.msrb.mxu2 %v6363_v42  ;;  %v17419_v30 = vpop.f32.mrf.mxu2  ;;  %v6304_v42 = vmax.f32 %v6116_v17, 0.0  ;;  %v6020_v17 = vadd.f32 %v17080_v34, %v16392_v40  ;;  %v5714_v34 = vadd.f32 %v17286_v48, %v16282_v9  ;;  %v17460_v48 = vld [vmem:[%s18232_s8 + $0x90] sm:$0xff] }
 0x601   :  { %12714 = vmatmul.msk.f32.vlgmr.msra.gmra.mxu1 %vm6513_vm2, %v17365_v19  ;;  %12683 = vmatmul.msk.f32.gmra.mxu2 %vm6513_vm2, %v17112_v4  ;;  %v5891_v4 = vadd.f32 %v5890_v22, %v16287_v29 }
 0x602   :  { %6838 = vmatpush.msra.mxu3 %v6316_v1  ;;  %v6300_v1 = vmax.f32 %v6114_v31, 0.0  ;;  %v6419_v3 = vmax.f32 %v6020_v17, 0.0 }
 0x603   :  { %12661 = vmatmul.msk.f32.gmra.mxu3 %vm6513_vm2, %v16925_v43  ;;  %v5719_v43 = vadd.f32 %v17362_v57, %v16282_v9  ;;  %v6481_v57 = vmax.f32 %v5722_v59, 0.0  ;;  %v6482_v31 = vmax.f32 %v5891_v4, 0.0  ;;  %v6478_v59 = vmax.f32 %v5888_v46, 0.0 }
 0x604   :  { %6839 = vmatpush.msra.mxu3 %v6312_v23  ;;  %v5723_v0 = vpop.f32.mrf.mxu0 }
 0x605   :  { %v5724_v20 = vadd.f32 %v5723_v0, %v16282_v9  ;;  %v5892_v2 = vpop.f32.mrf.mxu1  ;;  %v17431_v15 = vpop.f32.mrf.mxu3  ;;  %v5712_v0 = vadd.f32 %v17245_v60, %v16282_v9  ;;  %v6415_v60 = vmax.f32 %v6017_v63, 0.0 }
 0x606   :  { %v5893_v39 = vadd.f32 %v5892_v2, %v16287_v29  ;;  %6840 = vmatpush.msra.mxu3 %v6308_v36  ;;  %v6477_v36 = vmax.f32 %v5719_v43, 0.0  ;;  %v6151_v2 = vadd.f32 %v18310_v47, %v18281_v45  ;;  %v5709_v43 = vadd.f32 %v17212_v56, %v16282_v9  ;;  %v17502_v47 = vld [vmem:[%s18232_s8 + $0x98] sm:$0xff] }
 0x607   :  { %v6485_v22 = vmax.f32 %v5724_v20, 0.0  ;;  %12713 = vmatmul.msk.f32.gmra.mxu0 %vm6513_vm2, %v17422_v21  ;;  %v5707_v56 = vadd.f32 %v17179_v33, %v16282_v9  ;;  %v5878_v9 = vadd.f32 %v17219_v37, %v16287_v29 }
 0x608   :  { %v6486_v23 = vmax.f32 %v5893_v39, 0.0  ;;  %6841 = vmatpush.msra.mxu3 %v6304_v42  ;;  %v17455_v4 = vpop.f32.mrf.mxu2  ;;  %v5883_v42 = vadd.f32 %v17295_v41, %v16287_v29  ;;  %v6469_v39 = vmax.f32 %v5714_v34, 0.0  ;;  %v18311_v41 = vld [vmem:[#allocation111_spill] sm:$0xff]  ;;  %v6360_v63 = vmax.f32 %v6151_v2, 0.0 }
 0x609   :  { %12715 = vmatmul.msk.f32.gmra.mxu1 %vm6513_vm2, %v17398_v6  ;;  %12693 = vmatmul.msk.f32.vlgmr.msra.gmra.mxu2 %vm6513_vm2, %v17149_v55  ;;  %v6473_v55 = vmax.f32 %v5717_v54, 0.0  ;;  %v6149_v17 = vadd.f32 %v18311_v41, %v18281_v45  ;;  %v6465_v54 = vmax.f32 %v5712_v0, 0.0  ;;  %v5876_v0 = vadd.f32 %v17186_v50, %v16287_v29 }
 0x60a   :  { %6842 = vmatpush.msra.mxu3 %v6300_v1  ;;  %7322 = vmatpush.msra.mxu0 %v6485_v22  ;;  %v6474_v1 = vmax.f32 %v5886_v18, 0.0  ;;  %v6012_v22 = vadd.f32 %v16985_v25, %v16392_v40  ;;  %v18312_v25 = vld [vmem:[#allocation107_spill] sm:$0xff] }
 0x60b   :  { %12662 = vmatmul.msk.f32.gmra.mxu3 %vm6513_vm2, %v16963_v10  ;;  %7348 = vmatpush.msra.mxu1 %v6486_v23  ;;  %v6015_v10 = vadd.f32 %v17020_v32, %v16392_v40  ;;  %v5881_v32 = vadd.f32 %v17252_v38, %v16287_v29  ;;  %v6470_v23 = vmax.f32 %v5883_v42, 0.0  ;;  %v6146_v38 = vadd.f32 %v18312_v25, %v18281_v45  ;;  %v14537_v18 = vld [vmem:[%s18232_s8 + $0x18] sm:$0xff] }
 0x60c   :  { %v17457_v20 = vpop.f32.mrf.mxu0  ;;  %7323 = vmatpush.msra.mxu0 %v6481_v57  ;;  %7148 = vmatpush.msra.mxu2 %v6423_v61  ;;  %v6407_v33 = vmax.f32 %v6012_v22, 0.0  ;;  %v6462_v29 = vmax.f32 %v5878_v9, 0.0  ;;  %v6458_v41 = vmax.f32 %v5876_v0, 0.0  ;;  %v18319_v9 = vld [vmem:[#allocation95_spill] sm:$0xff] }
 0x60d   :  { %v6569_v8 = vpop.f32.mrf.mxu1  ;;  %7349 = vmatpush.msra.mxu1 %v6482_v31  ;;  %v17470_v46 = vpop.f32.mrf.mxu3  ;;  %v6411_v57 = vmax.f32 %v6015_v10, 0.0  ;;  %v6461_v31 = vmax.f32 %v5709_v43, 0.0  ;;  %v6466_v61 = vmax.f32 %v5881_v32, 0.0  ;;  %v18314_v10 = vld [vmem:[#allocation101_spill] sm:$0xff]  ;;  %v18315_v43 = vld [vmem:[#allocation135_spill] sm:$0xff] }
 0x60e   :  { %7324 = vmatpush.msra.mxu0 %v6477_v36  ;;  %7149 = vmatpush.msra.mxu2 %v6419_v3  ;;  %v7428_v34 = vmax.f32 %v17457_v20, %v6569_v8  ;;  %v6457_v3 = vmax.f32 %v5707_v56, 0.0  ;;  %v6010_v20 = vadd.f32 %v16951_v12, %v16392_v40  ;;  %v6141_v42 = vadd.f32 %v18314_v10, %v18281_v45  ;;  %v18316_v12 = vld [vmem:[#allocation99_spill] sm:$0xff] }
 0x60f   :  { %12723 = vmatmul.msk.f32.vlgmr.msrb.gmra.mxu0 %vm6513_vm2, %v17460_v48  ;;  %7350 = vmatpush.msra.mxu1 %v6478_v59  ;;  %v6356_v59 = vmax.f32 %v6149_v17, 0.0  ;;  %v6352_v8 = vmax.f32 %v6146_v38, 0.0  ;;  %v6139_v22 = vadd.f32 %v18316_v12, %v18281_v45  ;;  %v18317_v17 = vld [vmem:[#allocation132_spill] sm:$0xff]  ;;  %v6042_v38 = vadd.f32 %v17395_v24, %v16392_v40 }
 0x610   :  { %7325 = vmatpush.msra.mxu0 %v6473_v55  ;;  %7150 = vmatpush.msra.mxu2 %v6415_v60  ;;  %v17497_v37 = vpop.f32.mrf.mxu2  ;;  %v6005_v56 = vadd.f32 %v18317_v17, %v16392_v40  ;;  %v6344_v25 = vmax.f32 %v6141_v42, 0.0  ;;  %v17538_v24 = vld [vmem:[%s18232_s8 + $0xa0] sm:$0x3]  ;;  %v6035_v42 = vadd.f32 %v17284_v53, %v16392_v40  ;;  %v6171_v53 = vadd.f32 %v16998_v13, %v18281_v45 }
 0x611   :  { %12716 = vmatmul.msk.f32.gmra.mxu1 %vm6513_vm2, %v17422_v21  ;;  %12694 = vmatmul.msk.f32.gmra.mxu2 %vm6513_vm2, %v17182_v35  ;;  %v18313_v35 = vld [vmem:[#allocation103_spill] sm:$0xff] }
 0x612   :  { %7326 = vmatpush.msra.mxu0 %v6469_v39  ;;  %7351 = vmatpush.msra.mxu1 %v6474_v1  ;;  %v6144_v36 = vadd.f32 %v18313_v35, %v18281_v45  ;;  %v6007_v39 = vadd.f32 %v18315_v43, %v16392_v40  ;;  %v6395_v35 = vmax.f32 %v6005_v56, 0.0 }
 0x613   :  { %12672 = vmatmul.msk.f32.vlgmr.msrb.gmra.mxu3 %vm6513_vm2, %v14537_v18  ;;  %7151 = vmatpush.msra.mxu2 %v6411_v57  ;;  %v18318_v57 = vld [vmem:[#allocation97_spill] sm:$0xff] }
 0x614   :  { %6948 = vmatpush.msrb.mxu3 %v6360_v63  ;;  %v17499_v55 = vpop.f32.mrf.mxu0  ;;  %7327 = vmatpush.msra.mxu0 %v6465_v54  ;;  %v6348_v32 = vmax.f32 %v6144_v36, 0.0  ;;  %v6403_v54 = vmax.f32 %v6010_v20, 0.0  ;;  %v6399_v63 = vmax.f32 %v6007_v39, 0.0  ;;  %v6037_v20 = vadd.f32 %v17325_v28, %v16392_v40  ;;  %v17563_v39 = vld [vmem:[%s18232_s8 + $0xa8] sm:$0xff] }
 0x615   :  { %v6572_v2 = vpop.f32.mrf.mxu1  ;;  %7352 = vmatpush.msra.mxu1 %v6470_v23  ;;  %7152 = vmatpush.msra.mxu2 %v6407_v33  ;;  %v17509_v60 = vpop.f32.mrf.mxu3  ;;  %v6136_v23 = vadd.f32 %v18318_v57, %v18281_v45  ;;  %v6134_v33 = vadd.f32 %v18319_v9, %v18281_v45  ;;  %v6032_v28 = vadd.f32 %v17243_v16, %v16392_v40  ;;  %v18323_v9 = vld [vmem:[#allocation134_spill] sm:$0xff] }
 0x616   :  { %v7429_v50 = vsel %vm7419_vm3, %v6572_v2, -inf  ;;  %6949 = vmatpush.msrb.mxu3 %v6356_v59  ;;  %7328 = vmatpush.msra.mxu0 %v6461_v31  ;;  %v14538_v31 = vld [vmem:[%s18232_s8 + $0x20] sm:$0xff]  ;;  %v6169_v16 = vadd.f32 %v16967_v27, %v18281_v45 }
 0x617   :  { %v7430_v1 = vmax.f32 %v7428_v34, %v7429_v50  ;;  %12724 = vmatmul.msk.f32.gmra.mxu0 %vm6513_vm2, %v17502_v47  ;;  %7353 = vmatpush.msra.mxu1 %v6466_v61  ;;  %v6340_v61 = vmax.f32 %v6139_v22, 0.0  ;;  %v6336_v59 = vmax.f32 %v6136_v23, 0.0  ;;  %v6392_v23 = vmax.f32 %v6171_v53, 0.0 }
 0x618   :  { %6950 = vmatpush.msrb.mxu3 %v6352_v8  ;;  %7329 = vmatpush.msra.mxu0 %v6457_v3  ;;  %v17533_v34 = vpop.f32.mrf.mxu2  ;;  %v6455_v3 = vmax.f32 %v6042_v38, 0.0  ;;  %v14539_v8 = vld [vmem:[%s18232_s8 + $0x28] sm:$0x3] }
 0x619   :  { %12726 = vmatmul.msk.f32.vlgmr.msrb.gmra.mxu1 %vm6513_vm2, %v17460_v48  ;;  %12695 = vmatmul.msk.f32.gmra.mxu2 %vm6513_vm2, %v17215_v14  ;;  %v6040_v14 = vadd.f32 %v17360_v11, %v16392_v40  ;;  %v6332_v11 = vmax.f32 %v6134_v33, 0.0  ;;  %v7431_v10 = vrot.slane %v7430_v1, 4  ;;  %v6164_v33 = vadd.f32 %v18323_v9, %v18281_v45 }
 0x61a   :  { %6951 = vmatpush.msrb.mxu3 %v6348_v32  ;;  %7354 = vmatpush.msra.mxu1 %v6462_v29  ;;  %v6447_v29 = vmax.f32 %v6037_v20, 0.0  ;;  %v6030_v32 = vadd.f32 %v17210_v7, %v16392_v40  ;;  %v18321_v7 = vld [vmem:[#allocation137_spill] sm:$0xff] }
 0x61b   :  { %12673 = vmatmul.msk.f32.gmra.mxu3 %vm6513_vm2, %v14538_v31  ;;  %7153 = vmatpush.msra.mxu2 %v6403_v54  ;;  %v6451_v2 = vmax.f32 %v6040_v14, 0.0  ;;  %v7432_v12 = vmax.f32 %v7430_v1, %v7431_v10  ;;  %v18320_v1 = vld [vmem:[#allocation89_spill] sm:$0xff]  ;;  %v6439_v54 = vmax.f32 %v6032_v28, 0.0  ;;  %v6166_v57 = vadd.f32 %v18321_v7, %v18281_v45  ;;  %v14540_v31 = vld [vmem:[%s18232_s8 + $0x30] sm:$0xff]  ;;  %v18327_v7 = vld [vmem:[#allocation119_spill] sm:$0xff] }
 0x61c   :  { %6952 = vmatpush.msrb.mxu3 %v6344_v25  ;;  %v17535_v18 = vpop.f32.mrf.mxu0  ;;  %7355 = vmatpush.msra.mxu1 %v6458_v41  ;;  %v6443_v41 = vmax.f32 %v6035_v42, 0.0  ;;  %v6027_v56 = vadd.f32 %v18320_v1, %v16392_v40  ;;  %v18322_v25 = vld [vmem:[#allocation92_spill] sm:$0xff]  ;;  %v6435_v38 = vmax.f32 %v6030_v32, 0.0  ;;  %v6380_v53 = vmax.f32 %v6164_v33, 0.0 }
 0x61d   :  { %v17540_v36 = vpop.f32.mrf.mxu1  ;;  %7154 = vmatpush.msra.mxu2 %v6399_v63  ;;  %v17542_v0 = vpop.f32.mrf.mxu3  ;;  %v7433_v13 = vrot.slane %v7432_v12, 2  ;;  %v6025_v27 = vadd.f32 %v18322_v25, %v16392_v40  ;;  %v6384_v10 = vmax.f32 %v6166_v57, 0.0  ;;  %v6154_v57 = vadd.f32 %v18327_v7, %v18281_v45 }
 0x61e   :  { %6953 = vmatpush.msrb.mxu3 %v6340_v61  ;;  %v6388_v61 = vmax.f32 %v6169_v16, 0.0  ;;  %v6431_v14 = vmax.f32 %v6027_v56, 0.0  ;;  %v18326_v16 = vld [vmem:[#allocation123_spill] sm:$0xff] }
 0x61f   :  { %12725 = vmatmul.msk.f32.gmra.mxu0 %vm6513_vm2, %v17538_v24  ;;  %7155 = vmatpush.msra.mxu2 %v6395_v35  ;;  %v6427_v42 = vmax.f32 %v6025_v27, 0.0  ;;  %v6156_v1 = vadd.f32 %v18326_v16, %v18281_v45 }
 0x620   :  { %6954 = vmatpush.msrb.mxu3 %v6336_v59  ;;  %v17558_v50 = vpop.f32.mrf.mxu2 }
 0x621   :  { %12727 = vmatmul.msk.f32.gmra.mxu1 %vm6513_vm2, %v17502_v47  ;;  %12705 = vmatmul.msk.f32.vlgmr.msrb.gmra.mxu2 %vm6513_vm2, %v17248_v5  ;;  %v6368_v33 = vmax.f32 %v6156_v1, 0.0  ;;  %v6191_v1 = vadd.f32 %v17258_v51, %v18281_v45 }
 0x622   :  { %6955 = vmatpush.msrb.mxu3 %v6332_v11  ;;  %7261 = vmatpush.msrb.mxu2 %v6455_v3  ;;  %v17595_v3 = vld [vmem:[%s18232_s8 + $0xb0] sm:$0xff]  ;;  %v7434_v11 = vmax.f32 %v7432_v12, %v7433_v13  ;;  %v14541_v13 = vld [vmem:[%s18232_s8 + $0x38] sm:$0xff] }
 0x623   :  { %12674 = vmatmul.msk.f32.gmra.mxu3 %vm6513_vm2, %v14539_v8 }
 0x624   :  { %v17560_v43 = vpop.f32.mrf.mxu0  ;;  %7262 = vmatpush.msrb.mxu2 %v6451_v2  ;;  %v7435_v32 = vrot.slane %v7434_v11, 1 }
 0x625   :  { %v6682_v22 = vpop.f32.mrf.mxu1  ;;  %v17569_v17 = vpop.f32.mrf.mxu3 }
 0x626   :  { %7263 = vmatpush.msrb.mxu2 %v6447_v29  ;;  %v7464_v63 = vmax.f32 %v17540_v36, %v6682_v22  ;;  %v18324_v36 = vld [vmem:[#allocation131_spill] sm:$0xff] }
 0x627   :  { %12735 = vmatmul.msk.f32.vlgmr.msra.gmra.mxu0 %vm6513_vm2, %v17563_v39  ;;  %v6161_v2 = vadd.f32 %v18324_v36, %v18281_v45  ;;  %v18325_v22 = vld [vmem:[#allocation127_spill] sm:$0xff] }
 0x628   :  { %7264 = vmatpush.msrb.mxu2 %v6443_v41  ;;  %v17590_v35 = vpop.f32.mrf.mxu2  ;;  %v6159_v12 = vadd.f32 %v18325_v22, %v18281_v45 }
 0x629   :  { %12728 = vmatmul.msk.f32.gmra.mxu1 %vm6513_vm2, %v17538_v24  ;;  %12706 = vmatmul.msk.f32.gmra.mxu2 %vm6513_vm2, %v17289_v52  ;;  %v6376_v56 = vmax.f32 %v6161_v2, 0.0 }
 0x62a   :  { %7265 = vmatpush.msrb.mxu2 %v6439_v54 }
 0x62b   :  { %12684 = vmatmul.msk.f32.vlgmr.msra.gmra.mxu3 %vm6513_vm2, %v14540_v31 }
 0x62c   :  { %7061 = vmatpush.msra.mxu3 %v6392_v23  ;;  %v17592_v59 = vpop.f32.mrf.mxu0  ;;  %7266 = vmatpush.msrb.mxu2 %v6435_v38  ;;  %v6372_v23 = vmax.f32 %v6159_v12, 0.0  ;;  %v17617_v38 = vld [vmem:[%s18232_s8 + $0xb8] sm:$0x3] }
 0x62d   :  { %v6685_v20 = vpop.f32.mrf.mxu1  ;;  %v17600_v28 = vpop.f32.mrf.mxu3 }
 0x62e   :  { %v7465_v8 = vsel %vm7419_vm3, %v6685_v20, -inf  ;;  %7062 = vmatpush.msra.mxu3 %v6388_v61  ;;  %7267 = vmatpush.msrb.mxu2 %v6431_v14  ;;  %v6364_v20 = vmax.f32 %v6154_v57, 0.0  ;;  %v18328_v57 = vld [vmem:[#allocation86_spill] sm:$0xff] }
 0x62f   :  { %v7466_v29 = vmax.f32 %v7464_v63, %v7465_v8  ;;  %12736 = vmatmul.msk.f32.gmra.mxu0 %vm6513_vm2, %v17595_v3  ;;  %v7436_v63 = vmax.f32 %v7434_v11, %v7435_v32 }
 0x630   :  { %7063 = vmatpush.msra.mxu3 %v6384_v10  ;;  %7268 = vmatpush.msrb.mxu2 %v6427_v42  ;;  %v6059_v25 = vpop.f32.mrf.mxu2  ;;  %v14542_v42 = vld [vmem:[%s18232_s8 + $0x40] sm:$0x3] }
 0x631   :  { %v7467_v41 = vrot.slane %v7466_v29, 4  ;;  %12738 = vmatmul.msk.f32.vlgmr.msra.gmra.mxu1 %vm6513_vm2, %v17563_v39  ;;  %12707 = vmatmul.msk.f32.gmra.mxu2 %vm6513_vm2, %v17330_v58  ;;  %v7708_v36 = vpack.c.bf16 %v7436_v63, %v7436_v63  ;;  %v6060_v8 = vadd.f32 %v6059_v25, %v16392_v40  ;;  %v6055_v25 = vadd.f32 %v17558_v50, %v16392_v40 }
 0x632   :  { %7064 = vmatpush.msra.mxu3 %v6380_v53 }
 0x633   :  { %v7468_v54 = vmax.f32 %v7466_v29, %v7467_v41  ;;  %12685 = vmatmul.msk.f32.gmra.mxu3 %vm6513_vm2, %v14541_v13  ;;  %v7836_v12 = vunpack.c.l.b16 %v7708_v36  ;;  %v18330_v36 = vld [vmem:[#allocation79_spill] sm:$0xff] }
 0x634   :  { %7065 = vmatpush.msra.mxu3 %v6376_v56  ;;  %v6769_v27 = vpop.f32.mrf.mxu0 }
 0x635   :  { %v7469_v31 = vrot.slane %v7468_v54, 2  ;;  %v17619_v9 = vpop.f32.mrf.mxu1  ;;  %v17621_v61 = vpop.f32.mrf.mxu3  ;;  %v7491_v11 = vmax.f32 %v17592_v59, %v6769_v27  ;;  %v6057_v59 = vadd.f32 %v17590_v35, %v16392_v40  ;;  %v6483_v27 = vmax.f32 %v6060_v8, 0.0  ;;  %v18329_v35 = vld [vmem:[#allocation77_spill] sm:$0xff] }
 0x636   :  { %7066 = vmatpush.msra.mxu3 %v6372_v23  ;;  %v6189_v23 = vadd.f32 %v18328_v57, %v18281_v45  ;;  %v6186_v63 = vadd.f32 %v18329_v35, %v18281_v45  ;;  %v6045_v35 = vadd.f32 %v17419_v30, %v16392_v40 }
 0x637   :  { %v7470_v14 = vmax.f32 %v7468_v54, %v7469_v31  ;;  %12737 = vmatmul.msk.f32.gmra.mxu0 %vm6513_vm2, %v17617_v38  ;;  %v6424_v31 = vmax.f32 %v6191_v1, 0.0 }
 0x638   :  { %7067 = vmatpush.msra.mxu3 %v6368_v33  ;;  %v6061_v29 = vpop.f32.mrf.mxu2  ;;  %v6052_v33 = vadd.f32 %v17533_v34, %v16392_v40  ;;  %v6459_v30 = vmax.f32 %v6045_v35, 0.0 }
 0x639   :  { %v7471_v2 = vrot.slane %v7470_v14, 1  ;;  %12739 = vmatmul.msk.f32.gmra.mxu1 %vm6513_vm2, %v17595_v3  ;;  %12717 = vmatmul.msk.f32.vlgmr.msra.gmra.mxu2 %vm6513_vm2, %v17365_v19  ;;  %v6062_v32 = vadd.f32 %v6061_v29, %v16392_v40 }
 0x63a   :  { %7068 = vmatpush.msra.mxu3 %v6364_v20  ;;  %v14543_v20 = vld [vmem:[%s18232_s8 + $0x48] sm:$0xff] }
 0x63b   :  { %v7472_v10 = vmax.f32 %v7470_v14, %v7471_v2  ;;  %12686 = vmatmul.msk.f32.gmra.mxu3 %vm6513_vm2, %v14542_v42  ;;  %v6487_v7 = vmax.f32 %v6062_v32, 0.0  ;;  %v6479_v14 = vmax.f32 %v6057_v59, 0.0  ;;  %v6184_v2 = vadd.f32 %v18330_v36, %v18281_v45 }
 0x63c   :  { %v6772_v22 = vpop.f32.mrf.mxu0  ;;  %v6475_v42 = vmax.f32 %v6055_v25, 0.0 }
 0x63d   :  { %v7712_v53 = vpack.c.bf16 %v7472_v10, %v7472_v10  ;;  %v7492_v41 = vsel %vm7419_vm3, %v6772_v22, -inf  ;;  %v6795_v16 = vpop.f32.mrf.mxu1  ;;  %v17641_v54 = vpop.f32.mrf.mxu3  ;;  %7374 = vmatpush.msra.mxu2 %v6487_v7  ;;  %v6050_v10 = vadd.f32 %v17497_v37, %v16392_v40  ;;  %v18331_v22 = vld [vmem:[#allocation81_spill] sm:$0xff]  ;;  %v6412_v59 = vmax.f32 %v6184_v2, 0.0 }
 0x63e   :  { %v17639_v56 = vmax.f32 %v7491_v11, %v7492_v41  ;;  %v7500_v50 = vmax.f32 %v17619_v9, %v6795_v16  ;;  %v6420_v11 = vmax.f32 %v6189_v23, 0.0  ;;  %v6181_v9 = vadd.f32 %v18331_v22, %v18281_v45  ;;  %v18332_v16 = vld [vmem:[#allocation140_spill] sm:$0xff]  ;;  %v18333_v23 = vld [vmem:[#allocation139_spill] sm:$0xff] }
 0x63f   :  { %v7840_v13 = vunpack.c.l.b16 %v7712_v53  ;;  %7375 = vmatpush.msra.mxu2 %v6483_v27  ;;  %v6471_v53 = vmax.f32 %v6052_v33, 0.0  ;;  %v6179_v1 = vadd.f32 %v18332_v16, %v18281_v45  ;;  %v6467_v7 = vmax.f32 %v6050_v10, 0.0 }
 0x640   :  { %v6592_v8 = vpop.f32.mrf.mxu2  ;;  %v6176_v25 = vadd.f32 %v18333_v23, %v18281_v45  ;;  %v6408_v27 = vmax.f32 %v6181_v9, 0.0 }
 0x641   :  { %v17648_v51 = vsel %vm7867_vm4, %v7840_v13, %v7836_v12  ;;  %12740 = vmatmul.msk.f32.gmra.mxu1 %vm6513_vm2, %v17617_v38  ;;  %12718 = vmatmul.msk.f32.gmra.mxu2 %vm6513_vm2, %v17398_v6  ;;  %v6416_v12 = vmax.f32 %v6186_v63, 0.0  ;;  %v6047_v13 = vadd.f32 %v17455_v4, %v16392_v40  ;;  %v18334_v4 = vld [vmem:[#allocation138_spill] sm:$0xff] }
 0x642   :  { %7376 = vmatpush.msra.mxu2 %v6479_v14  ;;  %v6174_v33 = vadd.f32 %v18334_v4, %v18281_v45  ;;  %v6404_v14 = vmax.f32 %v6179_v1, 0.0  ;;  %v6400_v40 = vmax.f32 %v6176_v25, 0.0 }
 0x643   :  { %12696 = vmatmul.msk.f32.vlgmr.msrb.gmra.mxu3 %vm6513_vm2, %v14543_v20 }
 0x644   :  { %7174 = vmatpush.msrb.mxu3 %v6424_v31  ;;  %v17665_v29 = vpop.f32.mrf.mxu0  ;;  %7377 = vmatpush.msra.mxu2 %v6475_v42  ;;  %v14544_v31 = vld [vmem:[%s18232_s8 + $0x50] sm:$0xff] }
 0x645   :  { %v6798_v34 = vpop.f32.mrf.mxu1  ;;  %v17670_v41 = vpop.f32.mrf.mxu3 }
 0x646   :  { %v7501_v32 = vsel %vm7419_vm3, %v6798_v34, -inf  ;;  %7175 = vmatpush.msrb.mxu3 %v6420_v11  ;;  %7378 = vmatpush.msra.mxu2 %v6471_v53  ;;  %v6396_v34 = vmax.f32 %v6174_v33, 0.0  ;;  %v14545_v53 = vld [vmem:[%s18232_s8 + $0x58] sm:$0x3]  ;;  %v6201_v33 = vadd.f32 %v17402_v62, %v18281_v45  ;;  %v6196_v62 = vadd.f32 %v17340_v44, %v18281_v45 }
 0x647   :  { %v7502_v37 = vmax.f32 %v7500_v50, %v7501_v32  ;;  %v6463_v50 = vmax.f32 %v6047_v13, 0.0  ;;  %v6211_v13 = vadd.f32 %v17542_v0, %v18281_v45 }
 0x648   :  { %7176 = vmatpush.msrb.mxu3 %v6416_v12  ;;  %v6595_v20 = vpop.f32.mrf.mxu2  ;;  %7379 = vmatpush.msra.mxu2 %v6467_v7 }
 0x649   :  { %v7503_v57 = vrot.slane %v7502_v37, 4  ;;  %12719 = vmatmul.msk.f32.gmra.mxu2 %vm6513_vm2, %v17422_v21  ;;  %v7437_v9 = vmax.f32 %v6592_v8, %v6595_v20  ;;  %v6209_v8 = vadd.f32 %v17509_v60, %v18281_v45  ;;  %v6456_v35 = vmax.f32 %v6211_v13, 0.0 }
 0x64a   :  { %7177 = vmatpush.msrb.mxu3 %v6412_v59  ;;  %7380 = vmatpush.msra.mxu2 %v6463_v50  ;;  %v7494_v13 = vrot.slane %v17639_v56, 4 }
 0x64b   :  { %v7504_v63 = vmax.f32 %v7502_v37, %v7503_v57  ;;  %12697 = vmatmul.msk.f32.gmra.mxu3 %vm6513_vm2, %v14544_v31  ;;  %v6452_v60 = vmax.f32 %v6209_v8, 0.0 }
 0x64c   :  { %7178 = vmatpush.msrb.mxu3 %v6408_v27  ;;  %v17686_v36 = vpop.f32.mrf.mxu0  ;;  %7381 = vmatpush.msra.mxu2 %v6459_v30  ;;  %v6206_v27 = vadd.f32 %v17470_v46, %v18281_v45 }
 0x64d   :  { %v7505_v2 = vrot.slane %v7504_v63, 2  ;;  %v6905_v11 = vpop.f32.mrf.mxu1  ;;  %v17688_v10 = vpop.f32.mrf.mxu3 }
 0x64e   :  { %7179 = vmatpush.msrb.mxu3 %v6404_v14  ;;  %v6448_v14 = vmax.f32 %v6206_v27, 0.0 }
 0x64f   :  { %v7506_v42 = vmax.f32 %v7504_v63, %v7505_v2  ;;  %v6204_v63 = vadd.f32 %v17431_v15, %v18281_v45  ;;  %v7455_v15 = vmax.f32 %v17499_v55, %v17535_v18  ;;  %v7527_v55 = vmax.f32 %v17665_v29, %v17686_v36 }
 0x650   :  { %7180 = vmatpush.msrb.mxu3 %v6400_v40  ;;  %v7456_v40 = vsel %vm7419_vm3, %v17560_v43, -inf }
 0x651   :  { %v7507_v22 = vrot.slane %v7506_v42, 1  ;;  %12729 = vmatmul.msk.f32.vlgmr.msrb.gmra.mxu2 %vm6513_vm2, %v17460_v48  ;;  %v6598_v32 = vpop.f32.mrf.mxu2  ;;  %v6444_v2 = vmax.f32 %v6204_v63, 0.0 }
 0x652   :  { %7181 = vmatpush.msrb.mxu3 %v6396_v34  ;;  %v7438_v1 = vsel %vm7419_vm3, %v6598_v32, -inf  ;;  %v7457_v34 = vmax.f32 %v7455_v15, %v7456_v40  ;;  %v6432_v32 = vmax.f32 %v6196_v62, 0.0 }
 0x653   :  { %v7508_v12 = vmax.f32 %v7506_v42, %v7507_v22  ;;  %12698 = vmatmul.msk.f32.gmra.mxu3 %vm6513_vm2, %v14545_v53  ;;  %v7439_v7 = vmax.f32 %v7437_v9, %v7438_v1  ;;  %v6440_v42 = vmax.f32 %v6201_v33, 0.0 }
 0x654   :  { %v6885_v37 = vpop.f32.mrf.mxu0 }
 0x655   :  { %v7716_v16 = vpack.c.bf16 %v7508_v12, %v7508_v12  ;;  %v6908_v59 = vpop.f32.mrf.mxu1  ;;  %v17697_v57 = vpop.f32.mrf.mxu3  ;;  %v7528_v9 = vsel %vm7419_vm3, %v6885_v37, -inf }
 0x656   :  { %v7536_v0 = vmax.f32 %v6905_v11, %v6908_v59  ;;  %v7440_v11 = vrot.slane %v7439_v7, 4  ;;  %v7529_v29 = vmax.f32 %v7527_v55, %v7528_v9  ;;  %v7458_v59 = vrot.slane %v7457_v34, 4 }
 0x657   :  { %v7844_v23 = vunpack.c.l.b16 %v7716_v16  ;;  %v6229_v40 = vadd.f32 %v17697_v57, %v18281_v45  ;;  %v6224_v57 = vadd.f32 %v17670_v41, %v18281_v45  ;;  %v6221_v41 = vadd.f32 %v17641_v54, %v18281_v45 }
 0x658   :  { %v7441_v22 = vmax.f32 %v7439_v7, %v7440_v11  ;;  %v7530_v8 = vrot.slane %v7529_v29, 4 }
 0x659   :  { %v17703_v25 = vsel %vm7869_vm5, %v7844_v23, %v17648_v51  ;;  %12730 = vmatmul.msk.f32.gmra.mxu2 %vm6513_vm2, %v17502_v47  ;;  %v6705_v31 = vpop.f32.mrf.mxu2  ;;  %v6484_v9 = vmax.f32 %v6229_v40, 0.0  ;;  %v14257_v40 = vld [vmem:[%s18335_s22 + $0x30] sm:$0xff] }
 0x65a   :  { %v7531_v15 = vmax.f32 %v7529_v29, %v7530_v8 }
 0x65b   :  { %12708 = vmatmul.msk.f32.vlgmr.msra.gmra.mxu3 %vm6513_vm2, %v17248_v5  ;;  %v6199_v5 = vadd.f32 %v17375_v49, %v18281_v45  ;;  %v6194_v49 = vadd.f32 %v17299_v26, %v18281_v45 }
 0x65c   :  { %v6992_v4 = vpop.f32.mrf.mxu0  ;;  %7287 = vmatpush.msra.mxu3 %v6456_v35  ;;  %v7459_v35 = vmax.f32 %v7457_v34, %v7458_v59  ;;  %v7532_v34 = vrot.slane %v7531_v15, 2 }
 0x65d   :  { %v6911_v51 = vpop.f32.mrf.mxu1  ;;  %v6230_v46 = vpop.f32.mrf.mxu3  ;;  %v6436_v43 = vmax.f32 %v6199_v5, 0.0  ;;  %v6428_v1 = vmax.f32 %v6194_v49, 0.0 }
 0x65e   :  { %v7537_v50 = vsel %vm7419_vm3, %v6911_v51, -inf  ;;  %7288 = vmatpush.msra.mxu3 %v6452_v60  ;;  %v7495_v51 = vmax.f32 %v17639_v56, %v7494_v13  ;;  %v7460_v62 = vrot.slane %v7459_v35, 2  ;;  %v6476_v13 = vmax.f32 %v6224_v57, 0.0 }
 0x65f   :  { %v7538_v20 = vmax.f32 %v7536_v0, %v7537_v50 }
 0x660   :  { %7289 = vmatpush.msra.mxu3 %v6448_v14 }
 0x661   :  { %v7539_v30 = vrot.slane %v7538_v20, 4  ;;  %12731 = vmatmul.msk.f32.gmra.mxu2 %vm6513_vm2, %v17538_v24 }
 0x662   :  { %7290 = vmatpush.msra.mxu3 %v6444_v2  ;;  %v6708_v12 = vpop.f32.mrf.mxu2 }
 0x663   :  { %v7540_v18 = vmax.f32 %v7538_v20, %v7539_v30  ;;  %12709 = vmatmul.msk.f32.gmra.mxu3 %vm6513_vm2, %v17289_v52  ;;  %v7442_v52 = vrot.slane %v7441_v22, 2  ;;  %v7473_v37 = vmax.f32 %v6705_v31, %v6708_v12  ;;  %v6231_v31 = vadd.f32 %v6230_v46, %v18281_v45 }
 0x664   :  { %v6995_v53 = vpop.f32.mrf.mxu0  ;;  %7291 = vmatpush.msra.mxu3 %v6440_v42  ;;  %v7496_v42 = vrot.slane %v7495_v51, 2  ;;  %v6226_v46 = vadd.f32 %v17688_v10, %v18281_v45  ;;  %v7461_v10 = vmax.f32 %v7459_v35, %v7460_v62  ;;  %v14258_v35 = vld [vmem:[%s18335_s22 + $0x38] sm:$0xff] }
 0x665   :  { %v7541_v44 = vrot.slane %v7540_v18, 2  ;;  %v17733_v16 = vpop.f32.mrf.mxu1  ;;  %v17735_v26 = vpop.f32.mrf.mxu3  ;;  %v7563_v23 = vmax.f32 %v6992_v4, %v6995_v53  ;;  %v7443_v0 = vmax.f32 %v7441_v22, %v7442_v52  ;;  %v6488_v55 = vmax.f32 %v6231_v31, 0.0  ;;  %8102 = vmatpush.bf16.msrb.mxu0 %v14258_v35 }
 0x666   :  { %7292 = vmatpush.msra.mxu3 %v6436_v43 }
 0x667   :  { %v7542_v36 = vmax.f32 %v7540_v18, %v7541_v44 }
 0x668   :  { %7293 = vmatpush.msra.mxu3 %v6432_v32  ;;  %v6219_v32 = vadd.f32 %v17621_v61, %v18281_v45 }
 0x669   :  { %v7543_v7 = vrot.slane %v7542_v36, 1  ;;  %12741 = vmatmul.msk.f32.vlgmr.msra.gmra.mxu2 %vm6513_vm2, %v17563_v39  ;;  %8103 = vmatpush.bf16.msrb.mxu0 %v14257_v40  ;;  %v14263_v40 = vld [vmem:[%s18335_s22 + $0x60] sm:$0xff] }
 0x66a   :  { %7294 = vmatpush.msra.mxu3 %v6428_v1  ;;  %v6468_v31 = vmax.f32 %v6219_v32, 0.0 }
 0x66b   :  { %v7544_v27 = vmax.f32 %v7542_v36, %v7543_v7  ;;  %12710 = vmatmul.msk.f32.gmra.mxu3 %vm6513_vm2, %v17330_v58  ;;  %v6711_v63 = vpop.f32.mrf.mxu2  ;;  %v7444_v58 = vrot.slane %v7443_v0, 1  ;;  %v6480_v36 = vmax.f32 %v6226_v46, 0.0  ;;  %v7533_v7 = vmax.f32 %v7531_v15, %v7532_v34 }
 0x66c   :  { %v6998_v60 = vpop.f32.mrf.mxu0  ;;  %v7474_v14 = vsel %vm7419_vm3, %v6711_v63, -inf  ;;  %v6216_v63 = vadd.f32 %v17600_v28, %v18281_v45 }
 0x66d   :  { %v7720_v33 = vpack.c.bf16 %v7544_v27, %v7544_v27  ;;  %v7564_v50 = vsel %vm7419_vm3, %v6998_v60, -inf  ;;  %v7475_v4 = vmax.f32 %v7473_v37, %v7474_v14  ;;  %v7021_v5 = vpop.f32.mrf.mxu1  ;;  %v6543_v2 = vpop.f32.mrf.mxu3  ;;  %v7445_v22 = vmax.f32 %v7443_v0, %v7444_v58 }
 0x66e   :  { %v7565_v20 = vmax.f32 %v7563_v23, %v7564_v50  ;;  %v7572_v12 = vmax.f32 %v17733_v16, %v7021_v5  ;;  %v7418_v59 = vmax.f32 %v17735_v26, %v6543_v2  ;;  %v7462_v0 = vrot.slane %v7461_v10, 1 }
 0x66f   :  { %v7848_v11 = vunpack.c.l.b16 %v7720_v33  ;;  %v7476_v30 = vrot.slane %v7475_v4, 4  ;;  %v7709_v61 = vpack.c.bf16 %v7445_v22, %v7445_v22  ;;  %v6472_v60 = vmax.f32 %v6221_v41, 0.0 }
 0x670   :  { %v7566_v56 = vrot.slane %v7565_v20, 4  ;;  %v6214_v50 = vadd.f32 %v17569_v17, %v18281_v45  ;;  %v7463_v62 = vmax.f32 %v7461_v10, %v7462_v0 }
 0x671   :  { %v17750_v49 = vsel %vm7871_vm6, %v7848_v11, %v17703_v25  ;;  %12742 = vmatmul.msk.f32.gmra.mxu2 %vm6513_vm2, %v17595_v3  ;;  %v7477_v18 = vmax.f32 %v7475_v4, %v7476_v30  ;;  %v7837_v28 = vunpack.c.l.b16 %v7709_v61  ;;  %v6464_v30 = vmax.f32 %v6216_v63, 0.0 }
 0x672   :  { %v7567_v43 = vmax.f32 %v7565_v20, %v7566_v56  ;;  %v7534_v20 = vrot.slane %v7533_v7, 1  ;;  %v7711_v10 = vpack.c.bf16 %v7463_v62, %v7463_v62 }
 0x673   :  { %12720 = vmatmul.msk.f32.vlgmr.msrb.gmra.mxu3 %vm6513_vm2, %v17365_v19  ;;  %v7478_v25 = vrot.slane %v7477_v18, 2  ;;  %v17761_v53 = vpop.f32.mrf.mxu2  ;;  %v7497_v19 = vmax.f32 %v7495_v51, %v7496_v42 }
 0x674   :  { %v17763_v44 = vpop.f32.mrf.mxu0  ;;  %7400 = vmatpush.msrb.mxu3 %v6488_v55  ;;  %v7568_v29 = vrot.slane %v7567_v43, 2  ;;  %v6460_v55 = vmax.f32 %v6214_v50, 0.0 }
 0x675   :  { %v7479_v1 = vmax.f32 %v7477_v18, %v7478_v25  ;;  %v6546_v52 = vpop.f32.mrf.mxu3  ;;  %v7498_v4 = vrot.slane %v7497_v19, 1 }
 0x676   :  { %v7024_v16 = vpop.f32.mrf.mxu1  ;;  %7401 = vmatpush.msrb.mxu3 %v6484_v9  ;;  %v7420_v23 = vsel %vm7419_vm3, %v6546_v52, -inf  ;;  %v7569_v26 = vmax.f32 %v7567_v43, %v7568_v29  ;;  %v7535_v43 = vmax.f32 %v7533_v7, %v7534_v20  ;;  %v14256_v9 = vld [vmem:[%s18335_s22 + $0x28] sm:$0xff] }
 0x677   :  { %v7573_v37 = vsel %vm7419_vm3, %v7024_v16, -inf  ;;  %v7480_v8 = vrot.slane %v7479_v1, 1  ;;  %v7421_v54 = vmax.f32 %v7418_v59, %v7420_v23  ;;  %v7499_v18 = vmax.f32 %v7497_v19, %v7498_v4  ;;  %8104 = vmatpush.bf16.msrb.mxu0 %v14256_v9  ;;  %v14265_v23 = vld [vmem:[%s18335_s22 + $0x70] sm:$0xff]  ;;  %v14251_v9 = vld [vmem:[%s18335_s22] sm:$0xff] }
 0x678   :  { %v7574_v27 = vmax.f32 %v7572_v12, %v7573_v37  ;;  %7402 = vmatpush.msrb.mxu3 %v6480_v36  ;;  %v7570_v56 = vrot.slane %v7569_v26, 1  ;;  %v14266_v12 = vld [vmem:[%s18335_s22 + $0x78] sm:$0xff]  ;;  %v7719_v36 = vpack.c.bf16 %v7535_v43, %v7535_v43 }
 0x679   :  { %12743 = vmatmul.msk.f32.gmra.mxu2 %vm6513_vm2, %v17617_v38  ;;  %v7481_v51 = vmax.f32 %v7479_v1, %v7480_v8  ;;  %v7422_v14 = vrot.slane %v7421_v54, 4  ;;  %v7715_v19 = vpack.c.bf16 %v7499_v18, %v7499_v18  ;;  %8115 = vmatpush.bf16.msrb.mxu1 %v14266_v12  ;;  %v14262_v18 = vld [vmem:[%s18335_s22 + $0x58] sm:$0xff] }
 0x67a   :  { %v7575_v33 = vrot.slane %v7574_v27, 4  ;;  %7403 = vmatpush.msrb.mxu3 %v6476_v13  ;;  %v7571_v25 = vmax.f32 %v7569_v26, %v7570_v56  ;;  %v14255_v13 = vld [vmem:[%s18335_s22 + $0x20] sm:$0xff]  ;;  %v7847_v0 = vunpack.c.l.b16 %v7719_v36  ;;  %v14298_v12 = vld [vmem:[%s18336_s23 + $0x38] sm:$0xff] }
 0x67b   :  { %12721 = vmatmul.msk.f32.gmra.mxu3 %vm6513_vm2, %v17398_v6  ;;  %v7713_v5 = vpack.c.bf16 %v7481_v51, %v7481_v51  ;;  %v7423_v15 = vmax.f32 %v7421_v54, %v7422_v14  ;;  %v6821_v11 = vpop.f32.mrf.mxu2  ;;  %8105 = vmatpush.bf16.msrb.mxu0 %v14255_v13  ;;  %v7843_v35 = vunpack.c.l.b16 %v7715_v19  ;;  %v14254_v51 = vld [vmem:[%s18335_s22 + $0x18] sm:$0xff]  ;;  %v14264_v14 = vld [vmem:[%s18335_s22 + $0x68] sm:$0xff]  ;;  %v14297_v19 = vld [vmem:[%s18336_s23 + $0x30] sm:$0xff] }
 0x67c   :  { %v7576_v2 = vmax.f32 %v7574_v27, %v7575_v33  ;;  %v17781_v58 = vpop.f32.mrf.mxu0  ;;  %7404 = vmatpush.msrb.mxu3 %v6472_v60  ;;  %v7509_v29 = vmax.f32 %v17761_v53, %v6821_v11  ;;  %v7723_v7 = vpack.c.bf16 %v7571_v25, %v7571_v25  ;;  %v7839_v53 = vunpack.c.l.b16 %v7711_v10  ;;  %v14253_v11 = vld [vmem:[%s18335_s22 + $0x10] sm:$0xff] }
 0x67d   :  { %v7841_v45 = vunpack.c.l.b16 %v7713_v5  ;;  %v7424_v42 = vrot.slane %v7423_v15, 2  ;;  %v17786_v6 = vpop.f32.mrf.mxu3  ;;  %8116 = vmatpush.bf16.msrb.mxu1 %v14265_v23  ;;  %v14261_v25 = vld [vmem:[%s18335_s22 + $0x50] sm:$0xff]  ;;  %v7599_v13 = vmax.f32 %v17763_v44, %v17781_v58  ;;  %v14295_v58 = vld [vmem:[%s18336_s23 + $0x20] sm:$0xff] }
 0x67e   :  { %v7577_v17 = vrot.slane %v7576_v2, 2  ;;  %v17784_v46 = vpop.f32.mrf.mxu1  ;;  %7405 = vmatpush.msrb.mxu3 %v6468_v31  ;;  %v7851_v33 = vunpack.c.l.b16 %v7723_v7 }
 0x67f   :  { %v17789_v57 = vsel %vm7867_vm4, %v7841_v45, %v7837_v28  ;;  %v7425_v22 = vmax.f32 %v7423_v15, %v7424_v42  ;;  %8106 = vmatpush.bf16.msrb.mxu0 %v14254_v51 }
 0x680   :  { %v7578_v34 = vmax.f32 %v7576_v2, %v7577_v17  ;;  %7406 = vmatpush.msrb.mxu3 %v6464_v30 }
 0x681   :  { %v7426_v41 = vrot.slane %v7425_v22, 1  ;;  %8117 = vmatpush.bf16.msrb.mxu1 %v14264_v14 }
 0x682   :  { %v7579_v32 = vrot.slane %v7578_v34, 1  ;;  %7407 = vmatpush.msrb.mxu3 %v6460_v55  ;;  %v14252_v55 = vld [vmem:[%s18335_s22 + $0x8] sm:$0xff] }
 0x683   :  { %12722 = vmatmul.msk.f32.gmra.mxu3 %vm6513_vm2, %v17422_v21  ;;  %v7427_v59 = vmax.f32 %v7425_v22, %v7426_v41  ;;  %8107 = vmatpush.bf16.msrb.mxu0 %v14253_v11 }
 0x684   :  { %v7580_v1 = vmax.f32 %v7578_v34, %v7579_v32  ;;  %v6824_v16 = vpop.f32.mrf.mxu2  ;;  %v17796_v52 = vpop.f32.mrf.mxu0 }
 0x685   :  { %v7510_v37 = vsel %vm7419_vm3, %v6824_v16, -inf  ;;  %v7707_v8 = vpack.c.bf16 %v7427_v59, %v7427_v59  ;;  %8118 = vmatpush.bf16.msrb.mxu1 %v14263_v40  ;;  %v7600_v23 = vsel %vm7419_vm3, %v17796_v52, -inf }
 0x686   :  { %v7724_v61 = vpack.c.bf16 %v7580_v1, %v7580_v1  ;;  %v7511_v27 = vmax.f32 %v7509_v29, %v7510_v37  ;;  %v17801_v54 = vpop.f32.mrf.mxu1  ;;  %v6621_v21 = vpop.f32.mrf.mxu3  ;;  %v14260_v29 = vld [vmem:[%s18335_s22 + $0x48] sm:$0xff]  ;;  %v7601_v44 = vmax.f32 %v7599_v13, %v7600_v23 }
 0x687   :  { %v7835_v26 = vunpack.c.l.b16 %v7707_v8  ;;  %v7446_v56 = vmax.f32 %v17786_v6, %v6621_v21  ;;  %8108 = vmatpush.bf16.msrb.mxu0 %v14252_v55  ;;  %v14296_v37 = vld [vmem:[%s18336_s23 + $0x28] sm:$0xff]  ;;  %v14306_v8 = vld [vmem:[%s18336_s23 + $0x78] sm:$0xff]  ;;  %v14293_v55 = vld [vmem:[%s18336_s23 + $0x10] sm:$0xff] }
 0x688   :  { %v7852_v63 = vunpack.c.l.b16 %v7724_v61  ;;  %v7512_v60 = vrot.slane %v7511_v27, 4 }
 0x689   :  { %v7868_v31 = vsel %vm7867_vm4, %v7839_v53, %v7835_v26  ;;  %8119 = vmatpush.bf16.msrb.mxu1 %v14262_v18  ;;  %v14305_v26 = vld [vmem:[%s18336_s23 + $0x70] sm:$0xff] }
 0x68a   :  { %v17807_v50 = vsel %vm7873_vm7, %v7852_v63, %v17750_v49  ;;  %v7513_v4 = vmax.f32 %v7511_v27, %v7512_v60  ;;  %v7870_v20 = vsel %vm7869_vm5, %v7843_v35, %v7868_v31  ;;  %v7602_v31 = vrot.slane %v7601_v44, 4 }
 0x68b   :  { %12732 = vmatmul.msk.f32.vlgmr.msra.gmra.mxu3 %vm6513_vm2, %v17460_v48  ;;  %v7872_v5 = vsel %vm7871_vm6, %v7847_v0, %v7870_v20  ;;  %8109 = vmatpush.bf16.msrb.mxu0 %v14251_v9 }
 0x68c   :  { %v7514_v28 = vrot.slane %v7513_v4, 2  ;;  %v6931_v2 = vpop.f32.mrf.mxu2  ;;  %v7218_v15 = vpop.f32.mrf.mxu0  ;;  %v17816_v49 = vsel %vm7873_vm7, %v7851_v33, %v7872_v5 }
 0x68d   :  { %8120 = vmatpush.bf16.msrb.mxu1 %v14261_v25 }
 0x68e   :  { %v7515_v30 = vmax.f32 %v7513_v4, %v7514_v28  ;;  %v17820_v62 = vpop.f32.mrf.mxu1  ;;  %v6624_v48 = vpop.f32.mrf.mxu3  ;;  %v14294_v4 = vld [vmem:[%s18336_s23 + $0x18] sm:$0xff] }
 0x68f   :  { %v7447_v45 = vsel %vm7419_vm3, %v6624_v48, -inf  ;;  %8301 = vmatpush.bf16.msra.mxu0 %v14298_v12 }
 0x690   :  { %v7516_v17 = vrot.slane %v7515_v30, 1  ;;  %v7448_v42 = vmax.f32 %v7446_v56, %v7447_v45 }
 0x691   :  { %8121 = vmatpush.bf16.msrb.mxu1 %v14260_v29 }
 0x692   :  { %v7517_v43 = vmax.f32 %v7515_v30, %v7516_v17  ;;  %v7449_v1 = vrot.slane %v7448_v42, 4  ;;  %v7609_v30 = vsel %vm7419_vm3, %v17820_v62, -inf  ;;  %v7603_v17 = vmax.f32 %v7601_v44, %v7602_v31 }
 0x693   :  { %12733 = vmatmul.msk.f32.gmra.mxu3 %vm6513_vm2, %v17502_v47  ;;  %8302 = vmatpush.bf16.msra.mxu0 %v14297_v19 }
 0x694   :  { %v7717_v6 = vpack.c.bf16 %v7517_v43, %v7517_v43  ;;  %v6934_v34 = vpop.f32.mrf.mxu2  ;;  %v7221_v22 = vpop.f32.mrf.mxu0  ;;  %v7450_v21 = vmax.f32 %v7448_v42, %v7449_v1 }
 0x695   :  { %v7545_v36 = vmax.f32 %v6931_v2, %v6934_v34  ;;  %v7635_v27 = vmax.f32 %v7218_v15, %v7221_v22  ;;  %v14304_v15 = vld [vmem:[%s18336_s23 + $0x68] sm:$0xff] }
 0x696   :  { %v7845_v10 = vunpack.c.l.b16 %v7717_v6  ;;  %v17830_v32 = vpop.f32.mrf.mxu1  ;;  %v6731_v41 = vpop.f32.mrf.mxu3  ;;  %v7451_v52 = vrot.slane %v7450_v21, 2 }
 0x697   :  { %8303 = vmatpush.bf16.msra.mxu0 %v14296_v37 }
 0x698   :  { %v17834_v47 = vsel %vm7869_vm5, %v7845_v10, %v17789_v57  ;;  %v14259_v57 = vld [vmem:[%s18335_s22 + $0x40] sm:$0xff]  ;;  %v7452_v56 = vmax.f32 %v7450_v21, %v7451_v52  ;;  %v7604_v10 = vrot.slane %v7603_v17, 2 }
 0x699   :  { %8122 = vmatpush.bf16.msrb.mxu1 %v14259_v57 }
 0x69a   :  { %v7453_v62 = vrot.slane %v7452_v56, 1  ;;  %v7605_v37 = vmax.f32 %v7603_v17, %v7604_v10 }
 0x69b   :  { %12734 = vmatmul.msk.f32.gmra.mxu3 %vm6513_vm2, %v17538_v24  ;;  %8304 = vmatpush.bf16.msra.mxu0 %v14295_v58 }
 0x69c   :  { %v6937_v59 = vpop.f32.mrf.mxu2  ;;  %v7224_v16 = vpop.f32.mrf.mxu0  ;;  %v7454_v13 = vmax.f32 %v7452_v56, %v7453_v62 }
 0x69d   :  { %v7546_v7 = vsel %vm7419_vm3, %v6937_v59, -inf  ;;  %v7636_v0 = vsel %vm7419_vm3, %v7224_v16, -inf  ;;  %8314 = vmatpush.bf16.msra.mxu1 %v14306_v8  ;;  %v14302_v59 = vld [vmem:[%s18336_s23 + $0x58] sm:$0xff] }
 0x69e   :  { %v7547_v53 = vmax.f32 %v7545_v36, %v7546_v7  ;;  %v7247_v61 = vpop.f32.mrf.mxu1  ;;  %v6734_v24 = vpop.f32.mrf.mxu3  ;;  %v7637_v60 = vmax.f32 %v7635_v27, %v7636_v0  ;;  %v14301_v27 = vld [vmem:[%s18336_s23 + $0x50] sm:$0xff] }
 0x69f   :  { %v7482_v28 = vmax.f32 %v6731_v41, %v6734_v24  ;;  %8305 = vmatpush.bf16.msra.mxu0 %v14294_v4  ;;  %v7644_v42 = vmax.f32 %v17830_v32, %v7247_v61  ;;  %v14292_v41 = vld [vmem:[%s18336_s23 + $0x8] sm:$0xff] }
 0x6a0   :  { %v7548_v35 = vrot.slane %v7547_v53, 4  ;;  %v7638_v11 = vrot.slane %v7637_v60, 4 }
 0x6a1   :  { %8315 = vmatpush.bf16.msra.mxu1 %v14305_v26 }
 0x6a2   :  { %v7549_v63 = vmax.f32 %v7547_v53, %v7548_v35  ;;  %v7639_v34 = vmax.f32 %v7637_v60, %v7638_v11  ;;  %v14291_v53 = vld [vmem:[%s18336_s23] sm:$0xff] }
 0x6a3   :  { %12744 = vmatmul.msk.f32.vlgmr.msrb.gmra.mxu3 %vm6513_vm2, %v17563_v39  ;;  %v7608_v39 = vmax.f32 %v17784_v46, %v17801_v54  ;;  %v14303_v54 = vld [vmem:[%s18336_s23 + $0x60] sm:$0xff]  ;;  %8306 = vmatpush.bf16.msra.mxu0 %v14293_v55 }
 0x6a4   :  { %v7550_v51 = vrot.slane %v7549_v63, 2  ;;  %v17853_v33 = vpop.f32.mrf.mxu2  ;;  %v17855_v14 = vpop.f32.mrf.mxu0  ;;  %v7640_v16 = vrot.slane %v7639_v34, 2 }
 0x6a5   :  { %8316 = vmatpush.bf16.msra.mxu1 %v14304_v15  ;;  %v7610_v6 = vmax.f32 %v7608_v39, %v7609_v30 }
 0x6a6   :  { %v7551_v20 = vmax.f32 %v7549_v63, %v7550_v51  ;;  %v7250_v5 = vpop.f32.mrf.mxu1  ;;  %v6737_v2 = vpop.f32.mrf.mxu3  ;;  %v7641_v35 = vmax.f32 %v7639_v34, %v7640_v16  ;;  %v7606_v63 = vrot.slane %v7605_v37, 1 }
 0x6a7   :  { %v7483_v40 = vsel %vm7419_vm3, %v6737_v2, -inf  ;;  %v7645_v43 = vsel %vm7419_vm3, %v7250_v5, -inf  ;;  %8307 = vmatpush.bf16.msra.mxu0 %v14292_v41 }
 0x6a8   :  { %v7552_v48 = vrot.slane %v7551_v20, 1  ;;  %v7484_v45 = vmax.f32 %v7482_v28, %v7483_v40  ;;  %v7646_v32 = vmax.f32 %v7644_v42, %v7645_v43  ;;  %v7642_v28 = vrot.slane %v7641_v35, 1 }
 0x6a9   :  { %8317 = vmatpush.bf16.msra.mxu1 %v14303_v54  ;;  %v7607_v11 = vmax.f32 %v7605_v37, %v7606_v63 }
 0x6aa   :  { %v7553_v18 = vmax.f32 %v7551_v20, %v7552_v48  ;;  %v7485_v46 = vrot.slane %v7484_v45, 4  ;;  %v7647_v23 = vrot.slane %v7646_v32, 4  ;;  %v7643_v42 = vmax.f32 %v7641_v35, %v7642_v28 }
 0x6ab   :  { %12745 = vmatmul.msk.f32.gmra.mxu3 %vm6513_vm2, %v17595_v3  ;;  %v7611_v3 = vrot.slane %v7610_v6, 4  ;;  %8308 = vmatpush.bf16.msra.mxu0 %v14291_v53  ;;  %v7727_v54 = vpack.c.bf16 %v7607_v11, %v7607_v11  ;;  %v14321_v11 = vld [vmem:[#allocation10 + $0x30] sm:$0xff] }
 0x6ac   :  { %v7721_v22 = vpack.c.bf16 %v7553_v18, %v7553_v18  ;;  %v7486_v9 = vmax.f32 %v7484_v45, %v7485_v46  ;;  %v7047_v25 = vpop.f32.mrf.mxu2  ;;  %v7334_v12 = vpop.f32.mrf.mxu0  ;;  %v7648_v26 = vmax.f32 %v7646_v32, %v7647_v23  ;;  %v14299_v45 = vld [vmem:[%s18336_s23 + $0x40] sm:$0xff]  ;;  %v7731_v10 = vpack.c.bf16 %v7643_v42, %v7643_v42 }
 0x6ad   :  { %8318 = vmatpush.bf16.msra.mxu1 %v14302_v59  ;;  %v7581_v24 = vmax.f32 %v17853_v33, %v7047_v25  ;;  %v7671_v8 = vmax.f32 %v17855_v14, %v7334_v12  ;;  %v7612_v21 = vmax.f32 %v7610_v6, %v7611_v3  ;;  %v7855_v3 = vunpack.c.l.b16 %v7727_v54 }
 0x6ae   :  { %v7849_v29 = vunpack.c.l.b16 %v7721_v22  ;;  %v7487_v19 = vrot.slane %v7486_v9, 2  ;;  %v17871_v36 = vpop.f32.mrf.mxu1  ;;  %v17873_v1 = vpop.f32.mrf.mxu3  ;;  %v7649_v40 = vrot.slane %v7648_v26, 2  ;;  %v7859_v53 = vunpack.c.l.b16 %v7731_v10 }
 0x6af   :  { %v7613_v20 = vrot.slane %v7612_v21, 2  ;;  %v7876_v35 = vsel %vm7875_vm8, %v7855_v3, %v17816_v49 }
 0x6b0   :  { %v17878_v7 = vsel %vm7871_vm6, %v7849_v29, %v17834_v47  ;;  %v7488_v57 = vmax.f32 %v7486_v9, %v7487_v19  ;;  %v7710_v47 = vpack.c.bf16 %v7454_v13, %v7454_v13  ;;  %v7650_v6 = vmax.f32 %v7648_v26, %v7649_v40 }
 0x6b1   :  { %8319 = vmatpush.bf16.msra.mxu1 %v14301_v27  ;;  %v7614_v17 = vmax.f32 %v7612_v21, %v7613_v20 }
 0x6b2   :  { %v7489_v61 = vrot.slane %v7488_v57, 1  ;;  %v7838_v5 = vunpack.c.l.b16 %v7710_v47  ;;  %v7651_v16 = vrot.slane %v7650_v6, 1 }
 0x6b3   :  { %12746 = vmatmul.msk.f32.gmra.mxu3 %vm6513_vm2, %v17617_v38  ;;  %v14300_v38 = vld [vmem:[%s18336_s23 + $0x48] sm:$0xff]  ;;  %v7615_v12 = vrot.slane %v7614_v17, 1 }
 0x6b4   :  { %v7490_v0 = vmax.f32 %v7488_v57, %v7489_v61  ;;  %v7050_v44 = vpop.f32.mrf.mxu2  ;;  %v7337_v58 = vpop.f32.mrf.mxu0  ;;  %v7652_v47 = vmax.f32 %v7650_v6, %v7651_v16  ;;  %v14330_v6 = vld [vmem:[#allocation12 + $0x38] sm:$0xff]  ;;  %v14317_v16 = vld [vmem:[#allocation10 + $0x10] sm:$0xff] }
 0x6b5   :  { %v7582_v60 = vsel %vm7419_vm3, %v7050_v44, -inf  ;;  %v7672_v52 = vsel %vm7419_vm3, %v7337_v58, -inf  ;;  %8320 = vmatpush.bf16.msra.mxu1 %v14300_v38 }
 0x6b6   :  { %v7714_v51 = vpack.c.bf16 %v7490_v0, %v7490_v0  ;;  %v7583_v33 = vmax.f32 %v7581_v24, %v7582_v60  ;;  %v7673_v14 = vmax.f32 %v7671_v8, %v7672_v52  ;;  %v7360_v31 = vpop.f32.mrf.mxu1  ;;  %v6847_v4 = vpop.f32.mrf.mxu3  ;;  %v7878_v52 = vsel %vm7877_vm9, %v7859_v53, %v7876_v35  ;;  %v14316_v53 = vld [vmem:[#allocation10 + $0x8] sm:$0xff] }
 0x6b7   :  { %v7680_v43 = vmax.f32 %v17871_v36, %v7360_v31  ;;  %v7518_v22 = vmax.f32 %v17873_v1, %v6847_v4  ;;  %v7616_v1 = vmax.f32 %v7614_v17, %v7615_v12  ;;  %v14322_v4 = vld [vmem:[#allocation10 + $0x38] sm:$0xff]  ;;  %v7732_v49 = vpack.c.bf16 %v7652_v47, %v7652_v47 }
 0x6b8   :  { %v7842_v2 = vunpack.c.l.b16 %v7714_v51  ;;  %v7584_v15 = vrot.slane %v7583_v33, 4  ;;  %v7674_v39 = vrot.slane %v7673_v14, 4 }
 0x6b9   :  { %8321 = vmatpush.bf16.msra.mxu1 %v14299_v45  ;;  %v7728_v60 = vpack.c.bf16 %v7616_v1, %v7616_v1  ;;  %v7860_v40 = vunpack.c.l.b16 %v7732_v49 }
 0x6ba   :  { %v17890_v30 = vsel %vm7867_vm4, %v7842_v2, %v7838_v5  ;;  %v7585_v56 = vmax.f32 %v7583_v33, %v7584_v15  ;;  %v7675_v48 = vmax.f32 %v7673_v14, %v7674_v39 }
 0x6bb   :  { %v7856_v5 = vunpack.c.l.b16 %v7728_v60 }
 0x6bc   :  { %v7586_v55 = vrot.slane %v7585_v56, 2  ;;  %v7676_v18 = vrot.slane %v7675_v48, 2  ;;  %v17894_v46 = vpop.f32.mrf.mxu2 }
 0x6bd   :  { %v7885_v45 = vsel %vm7875_vm8, %v7856_v5, %v17807_v50 }
 0x6be   :  { %v7587_v34 = vmax.f32 %v7585_v56, %v7586_v55  ;;  %v7677_v62 = vmax.f32 %v7675_v48, %v7676_v18  ;;  %v7363_v9 = vpop.f32.mrf.mxu1  ;;  %v6850_v25 = vpop.f32.mrf.mxu3  ;;  %v14320_v55 = vld [vmem:[#allocation10 + $0x28] sm:$0xff]  ;;  %v7886_v18 = vsel %vm7877_vm9, %v7860_v40, %v7885_v45  ;;  %v14269_v45 = vld [vmem:[%s18335_s22 + $0x90] sm:$0xff] }
 0x6bf   :  { %v7681_v32 = vsel %vm7419_vm3, %v7363_v9, -inf  ;;  %v7519_v41 = vsel %vm7419_vm3, %v6850_v25, -inf  ;;  %v14329_v25 = vld [vmem:[#allocation12 + $0x30] sm:$0xff]  ;;  %v14352_v40 = vld [vmem:[#allocation12 + $0xe8] sm:$0xff] }
 0x6c0   :  { %v7588_v29 = vrot.slane %v7587_v34, 1  ;;  %v7678_v19 = vrot.slane %v7677_v62, 1  ;;  %v7682_v36 = vmax.f32 %v7680_v43, %v7681_v32  ;;  %v7520_v59 = vmax.f32 %v7518_v22, %v7519_v41  ;;  %v14319_v22 = vld [vmem:[#allocation10 + $0x20] sm:$0xff] }
 0x6c1   :  { %v18337_v32 = vld [vmem:[#allocation52_spill] sm:$0xff] }
 0x6c2   :  { %v7589_v13 = vmax.f32 %v7587_v34, %v7588_v29  ;;  %v7679_v57 = vmax.f32 %v7677_v62, %v7678_v19  ;;  %v7683_v37 = vrot.slane %v7682_v36, 4  ;;  %v7521_v23 = vrot.slane %v7520_v59, 4  ;;  %v14328_v19 = vld [vmem:[#allocation12 + $0x28] sm:$0xff] }
 0x6c3   :  { %v8171_v41 = vpack.c.bf16 %v18337_v32, %v18337_v32 }
 0x6c4   :  { %v7725_v61 = vpack.c.bf16 %v7589_v13, %v7589_v13  ;;  %v7735_v24 = vpack.c.bf16 %v7679_v57, %v7679_v57  ;;  %v7684_v8 = vmax.f32 %v7682_v36, %v7683_v37  ;;  %v7522_v27 = vmax.f32 %v7520_v59, %v7521_v23  ;;  %v17899_v21 = vpop.f32.mrf.mxu2  ;;  %v14274_v36 = vld [vmem:[%s18335_s22 + $0xb8] sm:$0xff]  ;;  %v14327_v37 = vld [vmem:[#allocation12 + $0x20] sm:$0xff]  ;;  %v14273_v23 = vld [vmem:[%s18335_s22 + $0xb0] sm:$0xff] }
 0x6c5   :  { %8128 = vmatpush.bf16.msrb.mxu2 %v14274_v36  ;;  %v14349_v36 = vld [vmem:[#allocation12 + $0xd0] sm:$0xff] }
 0x6c6   :  { %v7853_v0 = vunpack.c.l.b16 %v7725_v61  ;;  %v7863_v44 = vunpack.c.l.b16 %v7735_v24  ;;  %v7685_v58 = vrot.slane %v7684_v8, 2  ;;  %v7523_v63 = vrot.slane %v7522_v27, 2  ;;  %v6957_v26 = vpop.f32.mrf.mxu3  ;;  %v14326_v24 = vld [vmem:[#allocation12 + $0x18] sm:$0xff] }
 0x6c8   :  { %v17906_v51 = vsel %vm7873_vm7, %v7853_v0, %v17878_v7  ;;  %v7686_v33 = vmax.f32 %v7684_v8, %v7685_v58  ;;  %v7524_v14 = vmax.f32 %v7522_v27, %v7523_v63  ;;  %v7880_v31 = vsel %vm7879_vm10, %v7863_v44, %v7878_v52  ;;  %v14272_v8 = vld [vmem:[%s18335_s22 + $0xa8] sm:$0xff]  ;;  %v14315_v44 = vld [vmem:[#allocation10] sm:$0xff]  ;;  %v14354_v58 = vld [vmem:[#allocation12 + $0xf8] sm:$0xff] }
 0x6c9   :  { %v7902_v38 = vpack.c.b16 %v7880_v31, %v7880_v31  ;;  %8129 = vmatpush.bf16.msrb.mxu2 %v14273_v23  ;;  %v18338_v27 = vld [vmem:[#allocation53_spill] sm:$0xff]  ;;  %v7617_v63 = vmax.f32 %v17894_v46, %v17899_v21  ;;  %v14325_v52 = vld [vmem:[#allocation12 + $0x10] sm:$0xff] }
 0x6ca   :  { %v7687_v20 = vrot.slane %v7686_v33, 1  ;;  %v7525_v28 = vrot.slane %v7524_v14, 1  ;;  %v8172_v35 = vpack.c.bf16 %v18338_v27, %v18338_v27  ;;  %v14353_v21 = vld [vmem:[#allocation12 + $0xf0] sm:$0xff] }
 0x6cb   :  { %8110 = vmatmul.bf16.vlgmr.msrb.gmra.mxu0 %v7902_v38 }
 0x6cc   :  { %v7688_v2 = vmax.f32 %v7686_v33, %v7687_v20  ;;  %v7526_v15 = vmax.f32 %v7524_v14, %v7525_v28  ;;  %v17909_v39 = vpop.f32.mrf.mxu2  ;;  %8532 = vmatpush.bf16.msrb.mxu0 %v14322_v4  ;;  %v14271_v33 = vld [vmem:[%s18335_s22 + $0xa0] sm:$0xff]  ;;  %v18339_v20 = vld [vmem:[#allocation61_spill] sm:$0xff] }
 0x6cd   :  { %8130 = vmatpush.bf16.msrb.mxu2 %v14272_v8  ;;  %v7618_v14 = vsel %vm7419_vm3, %v17909_v39, -inf  ;;  %v8467_v46 = vpack.c.bf16 %v18339_v20, %v18339_v20 }
 0x6ce   :  { %v7736_v7 = vpack.c.bf16 %v7688_v2, %v7688_v2  ;;  %v7718_v56 = vpack.c.bf16 %v7526_v15, %v7526_v15  ;;  %v6960_v48 = vpop.f32.mrf.mxu3  ;;  %v7619_v28 = vmax.f32 %v7617_v63, %v7618_v14  ;;  %v14324_v2 = vld [vmem:[#allocation12 + $0x8] sm:$0xff]  ;;  %v14270_v15 = vld [vmem:[%s18335_s22 + $0x98] sm:$0xff]  ;;  %v14347_v63 = vld [vmem:[#allocation12 + $0xc0] sm:$0xff] }
 0x6cf   :  { %v7554_v50 = vmax.f32 %v6957_v26, %v6960_v48  ;;  %v14323_v48 = vld [vmem:[#allocation12] sm:$0xff] }
 0x6d0   :  { %v7864_v17 = vunpack.c.l.b16 %v7736_v7  ;;  %v7846_v42 = vunpack.c.l.b16 %v7718_v56  ;;  %8533 = vmatpush.bf16.msrb.mxu0 %v14321_v11  ;;  %v7620_v7 = vrot.slane %v7619_v28, 4 }
 0x6d1   :  { %8131 = vmatpush.bf16.msrb.mxu2 %v14271_v33  ;;  %v14386_v33 = vld [vmem:[#allocation18 + $0x38] sm:$0xff] }
 0x6d2   :  { %v17916_v43 = vsel %vm7869_vm5, %v7846_v42, %v17890_v30  ;;  %v7887_v54 = vsel %vm7879_vm10, %v7864_v17, %v7886_v18  ;;  %v14318_v30 = vld [vmem:[#allocation10 + $0x18] sm:$0xff] }
 0x6d3   :  { %v7903_v34 = vpack.c.b16 %v7887_v54, %v7887_v54  ;;  %v18340_v17 = vld [vmem:[#allocation55_spill] sm:$0xff]  ;;  %v14351_v54 = vld [vmem:[#allocation12 + $0xe0] sm:$0xff] }
 0x6d4   :  { %v17919_v62 = vpop.f32.mrf.mxu2  ;;  %8534 = vmatpush.bf16.msrb.mxu0 %v14320_v55  ;;  %v17945_v42 = vmax.f32 %v18340_v17, 0.0 }
 0x6d5   :  { %8123 = vmatmul.bf16.vlgmr.msrb.gmra.mxu1 %v7903_v34  ;;  %8132 = vmatpush.bf16.msrb.mxu2 %v14270_v15 }
 0x6d6   :  { %8806 = vmatpush.bf16.msrb.mxu1 %v14330_v6  ;;  %v6963_v9 = vpop.f32.mrf.mxu3  ;;  %v7621_v6 = vmax.f32 %v7619_v28, %v7620_v7  ;;  %v14385_v28 = vld [vmem:[#allocation18 + $0x30] sm:$0xff]  ;;  %v14278_v7 = vld [vmem:[%s18335_s22 + $0xd8] sm:$0xff] }
 0x6d7   :  { %v7555_v12 = vsel %vm7419_vm3, %v6963_v9, -inf }
 0x6d8   :  { %v7556_v10 = vmax.f32 %v7554_v50, %v7555_v12  ;;  %8535 = vmatpush.bf16.msrb.mxu0 %v14319_v22  ;;  %v8546_v22 = vpack.c.bf16 %v17945_v42, %v17945_v42  ;;  %v14350_v12 = vld [vmem:[#allocation12 + $0xd8] sm:$0xff] }
 0x6d9   :  { %8133 = vmatpush.bf16.msrb.mxu2 %v14269_v45 }
 0x6da   :  { %v7557_v29 = vrot.slane %v7556_v10, 4  ;;  %8807 = vmatpush.bf16.msrb.mxu1 %v14329_v25 }
 0x6db   :  { %8309 = vmatmul.bf16.vlgmr.msra.gmra.mxu0 %v8171_v41  ;;  %v14267_v41 = vld [vmem:[%s18335_s22 + $0x80] sm:$0xff] }
 0x6dc   :  { %v7558_v59 = vmax.f32 %v7556_v10, %v7557_v29  ;;  %v7273_v3 = vpop.f32.mrf.mxu2  ;;  %8536 = vmatpush.bf16.msrb.mxu0 %v14318_v30  ;;  %v7622_v10 = vrot.slane %v7621_v6, 2 }
 0x6dd   :  { %v7653_v31 = vmax.f32 %v17919_v62, %v7273_v3  ;;  %v14268_v62 = vld [vmem:[%s18335_s22 + $0x88] sm:$0xff] }
 0x6de   :  { %v7559_v13 = vrot.slane %v7558_v59, 2  ;;  %8808 = vmatpush.bf16.msrb.mxu1 %v14328_v19  ;;  %v7070_v57 = vpop.f32.mrf.mxu3  ;;  %8134 = vmatpush.bf16.msrb.mxu2 %v14268_v62  ;;  %v17973_v62 = vpop.permute.xlu0 %8953 }
 0x6e0   :  { %v7560_v1 = vmax.f32 %v7558_v59, %v7559_v13  ;;  %8537 = vmatpush.bf16.msrb.mxu0 %v14317_v16  ;;  %v7623_v59 = vmax.f32 %v7621_v6, %v7622_v10  ;;  %v14282_v13 = vld [vmem:[%s18335_s22 + $0xf8] sm:$0xff]  ;;  %v14313_v10 = vld [vmem:[#allocation9 + $0x30] sm:$0xff] }
 0x6e1   :  { %8141 = vmatpush.bf16.msra.mxu3 %v14282_v13 }
 0x6e2   :  { %v7561_v61 = vrot.slane %v7560_v1, 1  ;;  %8809 = vmatpush.bf16.msrb.mxu1 %v14327_v37  ;;  %8135 = vmatpush.bf16.msrb.mxu2 %v14267_v41 }
 0x6e4   :  { %v7562_v47 = vmax.f32 %v7560_v1, %v7561_v61  ;;  %v7276_v0 = vpop.f32.mrf.mxu2  ;;  %8538 = vmatpush.bf16.msrb.mxu0 %v14316_v53  ;;  %v14281_v1 = vld [vmem:[%s18335_s22 + $0xf0] sm:$0xff]  ;;  %v14348_v61 = vld [vmem:[#allocation12 + $0xc8] sm:$0xff] }
 0x6e5   :  { %8322 = vmatmul.bf16.vlgmr.msra.gmra.mxu1 %v8172_v35  ;;  %v7654_v38 = vsel %vm7419_vm3, %v7276_v0, -inf  ;;  %8142 = vmatpush.bf16.msra.mxu3 %v14281_v1 }
 0x6e6   :  { %v7722_v26 = vpack.c.bf16 %v7562_v47, %v7562_v47  ;;  %8810 = vmatpush.bf16.msrb.mxu1 %v14326_v24  ;;  %v7073_v60 = vpop.f32.mrf.mxu3  ;;  %v7655_v39 = vmax.f32 %v7653_v31, %v7654_v38  ;;  %v7624_v24 = vrot.slane %v7623_v59, 1  ;;  %v8957_v41 = vpop.permute.xlu0 %8956 }
 0x6e7   :  { %v7590_v4 = vmax.f32 %v7070_v57, %v7073_v60 }
 0x6e8   :  { %v7850_v49 = vunpack.c.l.b16 %v7722_v26  ;;  %8539 = vmatpush.bf16.msrb.mxu0 %v14315_v44  ;;  %v7656_v55 = vrot.slane %v7655_v39, 4  ;;  %v7625_v26 = vmax.f32 %v7623_v59, %v7624_v24  ;;  %v14312_v59 = vld [vmem:[#allocation9 + $0x28] sm:$0xff]  ;;  %v14310_v24 = vld [vmem:[#allocation9 + $0x18] sm:$0xff] }
 0x6ea   :  { %v17940_v5 = vsel %vm7871_vm6, %v7850_v49, %v17916_v43  ;;  %8811 = vmatpush.bf16.msrb.mxu1 %v14325_v52  ;;  %v7657_v50 = vmax.f32 %v7655_v39, %v7656_v55  ;;  %v7729_v38 = vpack.c.bf16 %v7625_v26, %v7625_v26 }
 0x6eb   :  { %8540 = vmatmul.bf16.vlgmr.msrb.gmra.mxu0 %v8467_v46 }
 0x6ec   :  { %8845 = vmatpush.bf16.msra.mxu0 %v14354_v58  ;;  %v7383_v11 = vpop.f32.mrf.mxu2  ;;  %v7658_v29 = vrot.slane %v7657_v50, 2  ;;  %v14280_v58 = vld [vmem:[%s18335_s22 + $0xe8] sm:$0xff] }
 0x6ed   :  { %8143 = vmatpush.bf16.msra.mxu3 %v14280_v58 }
 0x6ee   :  { %8812 = vmatpush.bf16.msrb.mxu1 %v14324_v2  ;;  %v7076_v56 = vpop.f32.mrf.mxu3  ;;  %v7659_v57 = vmax.f32 %v7657_v50, %v7658_v29  ;;  %v14279_v2 = vld [vmem:[%s18335_s22 + $0xe0] sm:$0xff]  ;;  %v14276_v50 = vld [vmem:[%s18335_s22 + $0xc8] sm:$0xff] }
 0x6ef   :  { %v7591_v18 = vsel %vm7419_vm3, %v7076_v56, -inf }
 0x6f0   :  { %8846 = vmatpush.bf16.msra.mxu0 %v14353_v21  ;;  %v7592_v43 = vmax.f32 %v7590_v4, %v7591_v18  ;;  %v7660_v47 = vrot.slane %v7659_v57, 1  ;;  %v18341_v4 = vld [vmem:[#allocation58_spill] sm:$0xff]  ;;  %v14383_v18 = vld [vmem:[#allocation18 + $0x20] sm:$0xff] }
 0x6f1   :  { %v8549_v49 = vpack.c.bf16 %v18341_v4, %v18341_v4  ;;  %8144 = vmatpush.bf16.msra.mxu3 %v14279_v2 }
 0x6f2   :  { %v7593_v34 = vrot.slane %v7592_v43, 4  ;;  %8813 = vmatpush.bf16.msrb.mxu1 %v14323_v48  ;;  %v7661_v14 = vmax.f32 %v7659_v57, %v7660_v47 }
 0x6f4   :  { %8847 = vmatpush.bf16.msra.mxu0 %v14352_v40  ;;  %v7594_v9 = vmax.f32 %v7592_v43, %v7593_v34  ;;  %v7386_v25 = vpop.f32.mrf.mxu2  ;;  %v7733_v15 = vpack.c.bf16 %v7661_v14, %v7661_v14  ;;  %v14384_v40 = vld [vmem:[#allocation18 + $0x28] sm:$0xff]  ;;  %v14277_v43 = vld [vmem:[%s18335_s22 + $0xd0] sm:$0xff] }
 0x6f5   :  { %8814 = vmatmul.bf16.vlgmr.msrb.gmra.mxu1 %v8546_v22  ;;  %v7689_v16 = vmax.f32 %v7383_v11, %v7386_v25  ;;  %8145 = vmatpush.bf16.msra.mxu3 %v14278_v7  ;;  %v14382_v22 = vld [vmem:[#allocation18 + $0x18] sm:$0xff] }
 0x6f6   :  { %v7595_v30 = vrot.slane %v7594_v9, 2  ;;  %v17951_v32 = vpop.f32.mrf.mxu3  ;;  %v7861_v56 = vunpack.c.l.b16 %v7733_v15 }
 0x6f8   :  { %8848 = vmatpush.bf16.msra.mxu0 %v14351_v54  ;;  %v7596_v19 = vmax.f32 %v7594_v9, %v7595_v30  ;;  %v14314_v9 = vld [vmem:[#allocation9 + $0x38] sm:$0xff]  ;;  %v14380_v30 = vld [vmem:[#allocation18 + $0x8] sm:$0xff] }
 0x6f9   :  { %8146 = vmatpush.bf16.msra.mxu3 %v14277_v43 }
 0x6fa   :  { %v7597_v3 = vrot.slane %v7596_v19, 1 }
 0x6fc   :  { %8849 = vmatpush.bf16.msra.mxu0 %v14350_v12  ;;  %v7598_v37 = vmax.f32 %v7596_v19, %v7597_v3  ;;  %v7389_v23 = vpop.f32.mrf.mxu2  ;;  %v14381_v12 = vld [vmem:[#allocation18 + $0x10] sm:$0xff]  ;;  %v14379_v19 = vld [vmem:[#allocation18] sm:$0xff] }
 0x6fd   :  { %v7690_v53 = vsel %vm7419_vm3, %v7389_v23, -inf  ;;  %8147 = vmatpush.bf16.msra.mxu3 %v14276_v50  ;;  %v14311_v23 = vld [vmem:[#allocation9 + $0x20] sm:$0xff] }
 0x6fe   :  { %v7726_v8 = vpack.c.bf16 %v7598_v37, %v7598_v37  ;;  %v7691_v27 = vmax.f32 %v7689_v16, %v7690_v53  ;;  %v17957_v35 = vpop.f32.mrf.mxu3 }
 0x6ff   :  { %v7626_v16 = vmax.f32 %v17951_v32, %v17957_v35  ;;  %v14308_v32 = vld [vmem:[#allocation9 + $0x8] sm:$0xff] }
 0x700   :  { %8850 = vmatpush.bf16.msra.mxu0 %v14349_v36  ;;  %v7854_v0 = vunpack.c.l.b16 %v7726_v8  ;;  %v7692_v44 = vrot.slane %v7691_v27, 4  ;;  %v8958_v36 = vmax.f32 %v18339_v20, %v8957_v41  ;;  %v18342_v41 = vld [vmem:[#allocation60_spill] sm:$0xff] }
 0x702   :  { %v17962_v60 = vsel %vm7873_vm7, %v7854_v0, %v17940_v5  ;;  %v7693_v52 = vmax.f32 %v7691_v27, %v7692_v44  ;;  %v7857_v5 = vunpack.c.l.b16 %v7729_v38  ;;  %v9115_v57 = vpack.c.bf16 %v8958_v36, %v8958_v36  ;;  %v14309_v27 = vld [vmem:[#allocation9 + $0x10] sm:$0xff] }
 0x704   :  { %8851 = vmatpush.bf16.msra.mxu0 %v14348_v61  ;;  %v7694_v31 = vrot.slane %v7693_v52, 2  ;;  %v7892_v45 = vsel %vm7875_vm8, %v7857_v5, %v17906_v51  ;;  %v14275_v51 = vld [vmem:[%s18335_s22 + $0xc0] sm:$0xff] }
 0x705   :  { %v7893_v54 = vsel %vm7877_vm9, %v7861_v56, %v7892_v45  ;;  %8148 = vmatpush.bf16.msra.mxu3 %v14275_v51 }
 0x706   :  { %v7695_v46 = vmax.f32 %v7693_v52, %v7694_v31  ;;  %v7189_v21 = vpop.f32.mrf.mxu3 }
 0x707   :  { %v7627_v3 = vsel %vm7419_vm3, %v7189_v21, -inf }
 0x708   :  { %8852 = vmatpush.bf16.msra.mxu0 %v14347_v63  ;;  %v7696_v39 = vrot.slane %v7695_v46, 1  ;;  %v7628_v1 = vmax.f32 %v7626_v16, %v7627_v3  ;;  %v14307_v63 = vld [vmem:[#allocation9] sm:$0xff]  ;;  %v14340_v3 = vld [vmem:[#allocation12 + $0x88] sm:$0xff] }
 0x709   :  { %8453 = vmatpush.bf16.msrb.mxu3 %v14314_v9  ;;  %v14344_v9 = vld [vmem:[#allocation12 + $0xa8] sm:$0xff] }
 0x70a   :  { %v7697_v11 = vmax.f32 %v7695_v46, %v7696_v39  ;;  %v7629_v20 = vrot.slane %v7628_v1, 4 }
 0x70b   :  { %8853 = vmatmul.bf16.vlgmr.msra.gmra.mxu0 %v8549_v49 }
 0x70c   :  { %9180 = vmatpush.bf16.msrb.mxu0 %v14386_v33  ;;  %v7737_v48 = vpack.c.bf16 %v7697_v11, %v7697_v11  ;;  %v7630_v47 = vmax.f32 %v7628_v1, %v7629_v20  ;;  %v14368_v20 = vld [vmem:[#allocation15 + $0x28] sm:$0xff] }
 0x70d   :  { %8454 = vmatpush.bf16.msrb.mxu3 %v14313_v10 }
 0x70e   :  { %v7865_v17 = vunpack.c.l.b16 %v7737_v48  ;;  %v7296_v55 = vpop.f32.mrf.mxu3  ;;  %v7631_v44 = vrot.slane %v7630_v47, 2 }
 0x710   :  { %9181 = vmatpush.bf16.msrb.mxu0 %v14385_v28  ;;  %v7894_v6 = vsel %vm7879_vm10, %v7865_v17, %v7893_v54  ;;  %v7632_v26 = vmax.f32 %v7630_v47, %v7631_v44  ;;  %v14367_v47 = vld [vmem:[#allocation15 + $0x20] sm:$0xff]  ;;  %v14365_v44 = vld [vmem:[#allocation15 + $0x10] sm:$0xff] }
 0x711   :  { %v7904_v34 = vpack.c.b16 %v7894_v6, %v7894_v6  ;;  %8455 = vmatpush.bf16.msrb.mxu3 %v14312_v59  ;;  %v14346_v6 = vld [vmem:[#allocation12 + $0xb8] sm:$0xff] }
 0x712   :  { %v7633_v4 = vrot.slane %v7632_v26, 1 }
 0x713   :  { %8136 = vmatmul.bf16.vlgmr.msrb.gmra.mxu2 %v7904_v34 }
 0x714   :  { %9182 = vmatpush.bf16.msrb.mxu0 %v14384_v40  ;;  %v7634_v21 = vmax.f32 %v7632_v26, %v7633_v4  ;;  %v14288_v26 = vld [vmem:[#allocation7 + $0x28] sm:$0xff] }
 0x715   :  { %8456 = vmatpush.bf16.msrb.mxu3 %v14311_v23  ;;  %v18343_v23 = vld [vmem:[#allocation56_spill] sm:$0xff] }
 0x716   :  { %v7299_v25 = vpop.f32.mrf.mxu3  ;;  %v7730_v39 = vpack.c.bf16 %v7634_v21, %v7634_v21  ;;  %v17996_v1 = vmax.f32 %v18343_v23, 0.0  ;;  %v14284_v21 = vld [vmem:[#allocation7 + $0x8] sm:$0xff]  ;;  %v14401_v23 = vld [vmem:[%s18345_s4 + $0x70] sm:$0xff] }
 0x717   :  { %v7662_v37 = vmax.f32 %v7296_v55, %v7299_v25 }
 0x718   :  { %9183 = vmatpush.bf16.msrb.mxu0 %v14383_v18  ;;  %v7858_v7 = vunpack.c.l.b16 %v7730_v39  ;;  %v14337_v39 = vld [vmem:[#allocation12 + $0x70] sm:$0xff] }
 0x719   :  { %8457 = vmatpush.bf16.msrb.mxu3 %v14310_v24  ;;  %v14369_v24 = vld [vmem:[#allocation15 + $0x30] sm:$0xff] }
 0x71a   :  { %v7899_v17 = vsel %vm7875_vm8, %v7858_v7, %v17962_v60 }
 0x71c   :  { %9184 = vmatpush.bf16.msrb.mxu0 %v14382_v22  ;;  %v14345_v22 = vld [vmem:[#allocation12 + $0xb0] sm:$0xff] }
 0x71d   :  { %8458 = vmatpush.bf16.msrb.mxu3 %v14309_v27 }
 0x71e   :  { %v7302_v29 = vpop.f32.mrf.mxu3 }
 0x71f   :  { %v7663_v13 = vsel %vm7419_vm3, %v7302_v29, -inf  ;;  %v8388_v29 = vpack.c.bf16 %v18342_v41, %v18342_v41 }
 0x720   :  { %9185 = vmatpush.bf16.msrb.mxu0 %v14381_v12  ;;  %v7664_v53 = vmax.f32 %v7662_v37, %v7663_v13  ;;  %v14343_v12 = vld [vmem:[#allocation12 + $0xa0] sm:$0xff] }
 0x721   :  { %8459 = vmatpush.bf16.msrb.mxu3 %v14308_v32  ;;  %v14339_v13 = vld [vmem:[#allocation12 + $0x80] sm:$0xff]  ;;  %v14290_v32 = vld [vmem:[#allocation7 + $0x38] sm:$0xff] }
 0x722   :  { %v7665_v8 = vrot.slane %v7664_v53, 4  ;;  %8375 = vmatpush.bf16.msra.mxu2 %v14290_v32 }
 0x724   :  { %9186 = vmatpush.bf16.msrb.mxu0 %v14380_v30  ;;  %v7666_v0 = vmax.f32 %v7664_v53, %v7665_v8  ;;  %v14342_v30 = vld [vmem:[#allocation12 + $0x98] sm:$0xff] }
 0x725   :  { %8460 = vmatpush.bf16.msrb.mxu3 %v14307_v63  ;;  %v14364_v63 = vld [vmem:[#allocation15 + $0x8] sm:$0xff] }
 0x726   :  { %v7409_v61 = vpop.f32.mrf.mxu3  ;;  %v7667_v58 = vrot.slane %v7666_v0, 2 }
 0x728   :  { %9187 = vmatpush.bf16.msrb.mxu0 %v14379_v19  ;;  %v7668_v52 = vmax.f32 %v7666_v0, %v7667_v58  ;;  %v14341_v19 = vld [vmem:[#allocation12 + $0x90] sm:$0xff]  ;;  %v14366_v0 = vld [vmem:[#allocation15 + $0x18] sm:$0xff] }
 0x729   :  { %v14289_v58 = vld [vmem:[#allocation7 + $0x30] sm:$0xff] }
 0x72a   :  { %v7669_v38 = vrot.slane %v7668_v52, 1  ;;  %8376 = vmatpush.bf16.msra.mxu2 %v14289_v58  ;;  %v13471_v58 = vld [vmem:[%s18347_s6 + $0x68] sm:$0xf0] }
 0x72b   :  { %9188 = vmatmul.bf16.vlgmr.msrb.gmra.mxu0 %v9115_v57  ;;  %v14370_v57 = vld [vmem:[#allocation15 + $0x38] sm:$0xff] }
 0x72c   :  { %v7670_v2 = vmax.f32 %v7668_v52, %v7669_v38  ;;  %v14363_v52 = vld [vmem:[#allocation15] sm:$0xff]  ;;  %v14285_v38 = vld [vmem:[#allocation7 + $0x10] sm:$0xff] }
 0x72e   :  { %v7412_v35 = vpop.f32.mrf.mxu3  ;;  %v7734_v11 = vpack.c.bf16 %v7670_v2, %v7670_v2  ;;  %8377 = vmatpush.bf16.msra.mxu2 %v14288_v26  ;;  %v14338_v2 = vld [vmem:[#allocation12 + $0x78] sm:$0xff] }
 0x72f   :  { %v7698_v33 = vmax.f32 %v7409_v61, %v7412_v35  ;;  %v8548_v61 = vpack.c.bf16 %v17996_v1, %v17996_v1  ;;  %v18348_v26 = vld [vmem:[#allocation59_spill] sm:$0xff] }
 0x730   :  { %v7862_v48 = vunpack.c.l.b16 %v7734_v11 }
 0x732   :  { %v7900_v43 = vsel %vm7877_vm9, %v7862_v48, %v7899_v17  ;;  %v14333_v48 = vld [vmem:[#allocation12 + $0x50] sm:$0xff]  ;;  %v14332_v17 = vld [vmem:[#allocation12 + $0x48] sm:$0xff] }
 0x736   :  { %v7415_v14 = vpop.f32.mrf.mxu3 }
 0x737   :  { %v7699_v31 = vsel %vm7419_vm3, %v7415_v14, -inf }
 0x738   :  { %v7700_v49 = vmax.f32 %v7698_v33, %v7699_v31  ;;  %v14287_v33 = vld [vmem:[#allocation7 + $0x20] sm:$0xff]  ;;  %v18344_v31 = vld [vmem:[#allocation54_spill] sm:$0xff] }
 0x739   :  { %v8959_v4 = vpack.c.bf16 %v18344_v31, %v18344_v31  ;;  %8378 = vmatpush.bf16.msra.mxu2 %v14287_v33  ;;  %v14413_v31 = vld [vmem:[%s18347_s6 + $0x54] sm:$0xf] }
 0x73a   :  { %v7701_v46 = vrot.slane %v7700_v49, 4 }
 0x73c   :  { %v7702_v28 = vmax.f32 %v7700_v49, %v7701_v46  ;;  %v14286_v49 = vld [vmem:[#allocation7 + $0x18] sm:$0xff] }
 0x73d   :  { %8379 = vmatpush.bf16.msra.mxu2 %v14286_v49  ;;  %v14361_v49 = vld [vmem:[#allocation13 + $0x30] sm:$0xff] }
 0x73e   :  { %v7703_v15 = vrot.slane %v7702_v28, 2 }
 0x740   :  { %v7704_v5 = vmax.f32 %v7702_v28, %v7703_v15  ;;  %v14283_v28 = vld [vmem:[#allocation7] sm:$0xff] }
 0x741   :  { %8380 = vmatpush.bf16.msra.mxu2 %v14285_v38 }
 0x742   :  { %v7705_v40 = vrot.slane %v7704_v5, 1 }
 0x744   :  { %v7706_v56 = vmax.f32 %v7704_v5, %v7705_v40  ;;  %v14336_v5 = vld [vmem:[#allocation12 + $0x68] sm:$0xff]  ;;  %v14335_v40 = vld [vmem:[#allocation12 + $0x60] sm:$0xff] }
 0x745   :  { %8381 = vmatpush.bf16.msra.mxu2 %v14284_v21  ;;  %v14411_v21 = vld [vmem:[%s18347_s6 + $0x44] sm:$0xf] }
 0x746   :  { %v7738_v45 = vpack.c.bf16 %v7706_v56, %v7706_v56  ;;  %v14334_v56 = vld [vmem:[#allocation12 + $0x58] sm:$0xff] }
 0x748   :  { %v7866_v55 = vunpack.c.l.b16 %v7738_v45  ;;  %v8111_v18 = vpop.f32.mrf.mxu0 }
 0x749   :  { %8382 = vmatpush.bf16.msra.mxu2 %v14283_v28  ;;  %v13455_v28 = vld [vmem:[%s18347_s6 + $0x48] sm:$0xf0] }
 0x74a   :  { %v7901_v54 = vsel %vm7879_vm10, %v7866_v55, %v7900_v43  ;;  %v14331_v55 = vld [vmem:[#allocation12 + $0x40] sm:$0xff] }
 0x74b   :  { %v7905_v34 = vpack.c.b16 %v7901_v54, %v7901_v54 }
 0x74d   :  { %8149 = vmatmul.bf16.vlgmr.msra.gmra.mxu3 %v7905_v34  ;;  %8819 = vmatpush.bf16.msrb.mxu2 %v14338_v2  ;;  %v14360_v2 = vld [vmem:[#allocation13 + $0x28] sm:$0xff] }
 0x74e   :  { %8832 = vmatpush.bf16.msra.mxu3 %v14346_v6  ;;  %v14378_v6 = vld [vmem:[#allocation16 + $0x38] sm:$0xff] }
 0x750   :  { %v8113_v50 = vpop.f32.mrf.mxu0 }
 0x751   :  { %8820 = vmatpush.bf16.msrb.mxu2 %v14337_v39  ;;  %v14409_v39 = vld [vmem:[%s18347_s6 + $0x34] sm:$0xf] }
 0x752   :  { %v8124_v51 = vpop.f32.mrf.mxu1  ;;  %8833 = vmatpush.bf16.msra.mxu3 %v14345_v22  ;;  %v14377_v22 = vld [vmem:[#allocation16 + $0x30] sm:$0xff] }
 0x753   :  { %v17987_v25 = vadd.f32 %v8124_v51, %v8111_v18  ;;  %v14376_v51 = vld [vmem:[#allocation16 + $0x28] sm:$0xff] }
 0x755   :  { %8821 = vmatpush.bf16.msrb.mxu2 %v14336_v5  ;;  %v13447_v5 = vld [vmem:[%s18347_s6 + $0x38] sm:$0xf0] }
 0x756   :  { %8834 = vmatpush.bf16.msra.mxu3 %v14344_v9  ;;  %v14375_v9 = vld [vmem:[#allocation16 + $0x20] sm:$0xff] }
 0x758   :  { %v8310_v60 = vpop.f32.mrf.mxu0 }
 0x759   :  { %8822 = vmatpush.bf16.msrb.mxu2 %v14335_v40  ;;  %v13450_v40 = vor.u32 %v14409_v39, %v13447_v5  ;;  %v13437_v5 = vld [vmem:[%s18347_s6 + $0x20] sm:$0xf] }
 0x75a   :  { %v8126_v10 = vpop.f32.mrf.mxu1  ;;  %8835 = vmatpush.bf16.msra.mxu3 %v14343_v12 }
 0x75d   :  { %8461 = vmatmul.bf16.vlgmr.msrb.gmra.mxu3 %v8388_v29  ;;  %8823 = vmatpush.bf16.msrb.mxu2 %v14334_v56  ;;  %v14407_v56 = vld [vmem:[%s18347_s6 + $0x24] sm:$0xf] }
 0x75e   :  { %8836 = vmatpush.bf16.msra.mxu3 %v14342_v30  ;;  %v14373_v30 = vld [vmem:[#allocation16 + $0x10] sm:$0xff] }
 0x760   :  { %v8312_v36 = vpop.f32.mrf.mxu0 }
 0x761   :  { %8824 = vmatpush.bf16.msrb.mxu2 %v14333_v48  ;;  %v14371_v36 = vld [vmem:[#allocation16] sm:$0xff]  ;;  %v13439_v48 = vld [vmem:[%s18347_s6 + $0x28] sm:$0xf0] }
 0x762   :  { %v8323_v59 = vpop.f32.mrf.mxu1  ;;  %8837 = vmatpush.bf16.msra.mxu3 %v14341_v19  ;;  %v14372_v19 = vld [vmem:[#allocation16 + $0x8] sm:$0xff] }
 0x763   :  { %v17991_v16 = vadd.f32 %v8323_v59, %v8310_v60  ;;  %v14374_v60 = vld [vmem:[#allocation16 + $0x18] sm:$0xff]  ;;  %v8955_v59 = vmax.f32 %v18342_v41, %v17973_v62  ;;  %v14399_v62 = vld [vmem:[%s18345_s4 + $0x60] sm:$0xff] }
 0x764   :  { %v14398_v41 = vld [vmem:[%s18345_s4 + $0x58] sm:$0xff] }
 0x765   :  { %8825 = vmatpush.bf16.msrb.mxu2 %v14332_v17  ;;  %v13442_v17 = vor.u32 %v14407_v56, %v13439_v48  ;;  %v13429_v56 = vld [vmem:[%s18347_s6 + $0x10] sm:$0xf]  ;;  %v14406_v48 = vld [vmem:[%s18347_s6 + $0x14] sm:$0xf0] }
 0x766   :  { %8838 = vmatpush.bf16.msra.mxu3 %v14340_v3  ;;  %v14402_v3 = vld [vmem:[%s18345_s4 + $0x78] sm:$0xff] }
 0x768   :  { %v17993_v37 = vpop.f32.mrf.mxu0 }
 0x769   :  { %8826 = vmatpush.bf16.msrb.mxu2 %v14331_v55  ;;  %v14405_v55 = vld [vmem:[%s18347_s6 + $0x14] sm:$0xf] }
 0x76a   :  { %v8325_v53 = vpop.f32.mrf.mxu1  ;;  %8839 = vmatpush.bf16.msra.mxu3 %v14339_v13 }
 0x76b   :  { %v14400_v53 = vld [vmem:[%s18345_s4 + $0x68] sm:$0xff] }
 0x76d   :  { %8840 = vmatmul.bf16.vlgmr.msra.gmra.mxu3 %v8548_v61 }
 0x76e   :  { %9102 = vmatpush.bf16.msrb.mxu3 %v14370_v57  ;;  %v8976_v57 = vpack.c.bf16 %v8955_v59, %v8955_v59  ;;  %v14388_v59 = vld [vmem:[%s18345_s4 + $0x8] sm:$0xff] }
 0x770   :  { %v8543_v8 = vpop.f32.mrf.mxu0 }
 0x771   :  { %v14417_v8 = vld [vmem:[%s18347_s6 + $0x74] sm:$0xf] }
 0x772   :  { %9103 = vmatpush.bf16.msrb.mxu3 %v14369_v24  ;;  %v18000_v27 = vpop.f32.mrf.mxu1  ;;  %v14397_v24 = vld [vmem:[%s18345_s4 + $0x50] sm:$0xff] }
 0x776   :  { %9104 = vmatpush.bf16.msrb.mxu3 %v14368_v20  ;;  %v14396_v20 = vld [vmem:[%s18345_s4 + $0x48] sm:$0xff] }
 0x77a   :  { %9105 = vmatpush.bf16.msrb.mxu3 %v14367_v47  ;;  %v8817_v35 = vpop.f32.mrf.mxu1  ;;  %v13479_v47 = vld [vmem:[%s18347_s6 + $0x78] sm:$0xf0] }
 0x77b   :  { %v13482_v32 = vor.u32 %v14417_v8, %v13479_v47  ;;  %v14532_v8 = vld [vmem:[%s18349_s15] ss:$0 sm:$0xff] }
 0x77e   :  { %9106 = vmatpush.bf16.msrb.mxu3 %v14366_v0  ;;  %v14395_v0 = vld [vmem:[%s18345_s4 + $0x40] sm:$0xff] }
 0x782   :  { %9107 = vmatpush.bf16.msrb.mxu3 %v14365_v44  ;;  %v14415_v44 = vld [vmem:[%s18347_s6 + $0x64] sm:$0xf] }
 0x783   :  { %v13474_v33 = vor.u32 %v14415_v44, %v13471_v58  ;;  %v14418_v44 = vld [vmem:[%s18347_s6 + $0x74] sm:$0xf0] }
 0x786   :  { %9108 = vmatpush.bf16.msrb.mxu3 %v14364_v63  ;;  %v14362_v63 = vld [vmem:[#allocation13 + $0x38] sm:$0xff] }
 0x787   :  { %8936 = vmatpush.bf16.msra.mxu1 %v14362_v63 }
 0x788   :  { %v18002_v14 = vpop.f32.mrf.mxu0 }
 0x78a   :  { %9109 = vmatpush.bf16.msrb.mxu3 %v14363_v52  ;;  %v9195_v52 = vpack.c.bf16 %v18348_v26, %v18348_v26 }
 0x78b   :  { %8937 = vmatpush.bf16.msra.mxu1 %v14361_v49  ;;  %v14412_v49 = vld [vmem:[%s18347_s6 + $0x44] sm:$0xf0] }
 0x78d   :  { %9110 = vmatmul.bf16.vlgmr.msrb.gmra.mxu3 %v8959_v4  ;;  %v13463_v4 = vld [vmem:[%s18347_s6 + $0x58] sm:$0xf0] }
 0x78e   :  { %v13466_v38 = vor.u32 %v14413_v31, %v13463_v4  ;;  %v13453_v4 = vld [vmem:[%s18347_s6 + $0x40] sm:$0xf] }
 0x78f   :  { %8938 = vmatpush.bf16.msra.mxu1 %v14360_v2  ;;  %v14410_v2 = vld [vmem:[%s18347_s6 + $0x34] sm:$0xf0] }
 0x790   :  { %v8856_v46 = vpop.f32.mrf.mxu0 }
 0x796   :  { %v8137_v15 = vpop.f32.mrf.mxu2 }
 0x797   :  { %v8138_v18 = vadd.f32 %v8137_v15, %v17987_v25  ;;  %v18346_v25 = vld [vmem:[#allocation57_spill] sm:$0xff]  ;;  %v13458_v15 = vor.u32 %v14411_v21, %v13455_v28  ;;  %v8951_v21 = vmax.f32 %v17945_v42, %v17996_v1  ;;  %v13445_v28 = vld [vmem:[%s18347_s6 + $0x30] sm:$0xf] }
 0x798   :  { %v8547_v10 = vpack.c.bf16 %v18346_v25, %v18346_v25  ;;  %v14393_v25 = vld [vmem:[%s18345_s4 + $0x30] sm:$0xff] }
 0x799   :  { %v9194_v39 = vpack.c.bf16 %v8951_v21, %v8951_v21  ;;  %v13413_v1 = vld [vmem:[#allocation19 + $0x70] sm:$0xf] }
 0x79e   :  { %v8139_v11 = vpop.f32.mrf.mxu2 }
 0x79f   :  { %v14359_v11 = vld [vmem:[#allocation13 + $0x20] sm:$0xff] }
 0x7a0   :  { %8939 = vmatpush.bf16.msra.mxu1 %v14359_v11  ;;  %v14408_v11 = vld [vmem:[%s18347_s6 + $0x24] sm:$0xf0] }
 0x7a8   :  { %v18006_v7 = vpop.f32.mrf.mxu0 }
 0x7b0   :  { %v9191_v45 = vpop.f32.mrf.mxu0 }
 0x7b1   :  { %v14358_v45 = vld [vmem:[#allocation13 + $0x18] sm:$0xff] }
 0x7b2   :  { %8940 = vmatpush.bf16.msra.mxu1 %v14358_v45  ;;  %v13430_v45 = vor.u32 %v14406_v48, %v13429_v56  ;;  %v14450_v48 = vld [vmem:[#allocation21 + $0x78] sm:$0xff] }
 0x7d0   :  { %v8150_v43 = vpop.f32.mrf.mxu3 }
 0x7d1   :  { %v8151_v54 = vadd.f32 %v8150_v43, %v8138_v18  ;;  %v13431_v18 = vld [vmem:[%s18347_s6 + $0x18] sm:$0xf0]  ;;  %v14357_v43 = vld [vmem:[#allocation13 + $0x10] sm:$0xff] }
 0x7d2   :  { %8941 = vmatpush.bf16.msra.mxu1 %v14357_v43  ;;  %v14434_v43 = vld [vmem:[#allocation19 + $0x74] sm:$0xf0] }
 0x7d3   :  { %v18009_v34 = vpack.c.bf16 %v8151_v54, %v8151_v54  ;;  %v13434_v54 = vor.u32 %v14405_v55, %v13431_v18  ;;  %v14404_v55 = vld [vmem:[%s18347_s6 + $0x4] sm:$0xf0] }
 0x7d5   :  { %8383 = vmatmul.bf16.vlgmr.msra.gmra.mxu2 %v18009_v34 }
 0x7d6   :  { %9041 = vmatpush.bf16.msra.mxu2 %v14378_v6  ;;  %v14403_v6 = vld [vmem:[%s18347_s6 + $0x4] sm:$0xf] }
 0x7d8   :  { %v8152_v50 = vpop.f32.mrf.mxu3 }
 0x7d9   :  { %v14356_v50 = vld [vmem:[#allocation13 + $0x8] sm:$0xff] }
 0x7da   :  { %9042 = vmatpush.bf16.msra.mxu2 %v14377_v22  ;;  %v13423_v22 = vld [vmem:[%s18347_s6 + $0x8] sm:$0xf0]  ;;  %8942 = vmatpush.bf16.msra.mxu1 %v14356_v50 }
 0x7de   :  { %9043 = vmatpush.bf16.msra.mxu2 %v14376_v51  ;;  %v13426_v51 = vor.u32 %v14403_v6, %v13423_v22  ;;  %v13414_v6 = vor.u32 %v14434_v43, %v13413_v1  ;;  %v13415_v22 = vld [vmem:[#allocation19 + $0x78] sm:$0xf0]  ;;  %v14448_v1 = vld [vmem:[#allocation21 + $0x68] sm:$0xff] }
 0x7df   :  { %v14440_v43 = vld [vmem:[#allocation21 + $0x28] sm:$0xff] }
 0x7e0   :  { %v18012_v12 = vpop.f32.mrf.mxu3  ;;  %9470 = vmatpush.bf16.msra.mxu3 %v13414_v6 }
 0x7e2   :  { %9044 = vmatpush.bf16.msra.mxu2 %v14375_v9  ;;  %v14355_v9 = vld [vmem:[#allocation13] sm:$0xff] }
 0x7e3   :  { %8943 = vmatpush.bf16.msra.mxu1 %v14355_v9 }
 0x7e5   :  { %8827 = vmatmul.bf16.vlgmr.msrb.gmra.mxu2 %v8547_v10  ;;  %v14392_v10 = vld [vmem:[%s18345_s4 + $0x28] sm:$0xff] }
 0x7e6   :  { %9045 = vmatpush.bf16.msra.mxu2 %v14374_v60  ;;  %v14394_v60 = vld [vmem:[%s18345_s4 + $0x38] sm:$0xff] }
 0x7e7   :  { %9324 = vmatpush.bf16.msrb.mxu1 %v14394_v60 }
 0x7e8   :  { %v8464_v29 = vpop.f32.mrf.mxu3 }
 0x7e9   :  { %v14390_v29 = vld [vmem:[%s18345_s4 + $0x18] sm:$0xff] }
 0x7ea   :  { %9046 = vmatpush.bf16.msra.mxu2 %v14373_v30  ;;  %v14391_v30 = vld [vmem:[%s18345_s4 + $0x20] sm:$0xff] }
 0x7eb   :  { %9325 = vmatpush.bf16.msrb.mxu1 %v14393_v25  ;;  %v13405_v25 = vld [vmem:[#allocation19 + $0x60] sm:$0xf] }
 0x7ee   :  { %9047 = vmatpush.bf16.msra.mxu2 %v14372_v19  ;;  %v14389_v19 = vld [vmem:[%s18345_s4 + $0x10] sm:$0xff] }
 0x7ef   :  { %9326 = vmatpush.bf16.msrb.mxu1 %v14392_v10  ;;  %v14432_v10 = vld [vmem:[#allocation19 + $0x64] sm:$0xf0] }
 0x7f0   :  { %v18019_v13 = vpop.f32.mrf.mxu3 }
 0x7f2   :  { %9048 = vmatpush.bf16.msra.mxu2 %v14371_v36 }
 0x7f3   :  { %9327 = vmatpush.bf16.msrb.mxu1 %v14391_v30  ;;  %v14431_v30 = vld [vmem:[#allocation19 + $0x64] sm:$0xf] }
 0x7f5   :  { %9049 = vmatmul.bf16.vlgmr.msra.gmra.mxu2 %v8976_v57 }
 0x7f6   :  { %9337 = vmatpush.bf16.msrb.mxu2 %v14402_v3  ;;  %v14387_v3 = vld [vmem:[%s18345_s4] sm:$0xff] }
 0x7f7   :  { %9328 = vmatpush.bf16.msrb.mxu1 %v14390_v29  ;;  %v13406_v29 = vor.u32 %v14432_v10, %v13405_v25 }
 0x7f8   :  { %v8843_v61 = vpop.f32.mrf.mxu3 }
 0x7f9   :  { %9471 = vmatpush.bf16.msra.mxu3 %v13406_v29 }
 0x7fa   :  { %9338 = vmatpush.bf16.msrb.mxu2 %v14401_v23 }
 0x7fb   :  { %9329 = vmatpush.bf16.msrb.mxu1 %v14389_v19  ;;  %v13407_v19 = vld [vmem:[#allocation19 + $0x68] sm:$0xf0] }
 0x7fe   :  { %9339 = vmatpush.bf16.msrb.mxu2 %v14400_v53 }
 0x7ff   :  { %9330 = vmatpush.bf16.msrb.mxu1 %v14388_v59  ;;  %v14430_v59 = vld [vmem:[#allocation19 + $0x54] sm:$0xf0] }
 0x802   :  { %9340 = vmatpush.bf16.msrb.mxu2 %v14399_v62 }
 0x803   :  { %9331 = vmatpush.bf16.msrb.mxu1 %v14387_v3  ;;  %v14429_v3 = vld [vmem:[#allocation19 + $0x54] sm:$0xf] }
 0x806   :  { %9341 = vmatpush.bf16.msrb.mxu2 %v14398_v41 }
 0x80a   :  { %9342 = vmatpush.bf16.msrb.mxu2 %v14397_v24 }
 0x80e   :  { %9343 = vmatpush.bf16.msrb.mxu2 %v14396_v20 }
 0x810   :  { %v18030_v35 = vpop.f32.mrf.mxu3 }
 0x812   :  { %9344 = vmatpush.bf16.msrb.mxu2 %v14395_v0 }
 0x815   :  { %9345 = vmatmul.bf16.vlgmr.msrb.gmra.mxu2 %v9195_v52  ;;  %v13461_v52 = vld [vmem:[%s18347_s6 + $0x50] sm:$0xf] }
 0x816   :  { %9589 = vmatpush.bf16.msra.mxu2 %v13482_v32 }
 0x818   :  { %v9113_v46 = vpop.f32.mrf.mxu3 }
 0x819   :  { %v13454_v46 = vor.u32 %v14412_v49, %v13453_v4  ;;  %v13367_v49 = vld [vmem:[#allocation19 + $0x18] sm:$0xf0] }
 0x81a   :  { %9590 = vmatpush.bf16.msra.mxu2 %v13474_v33  ;;  %v14414_v33 = vld [vmem:[%s18347_s6 + $0x54] sm:$0xf0] }
 0x81b   :  { %v13462_v31 = vor.u32 %v14414_v33, %v13461_v52  ;;  %v13365_v52 = vld [vmem:[#allocation19 + $0x10] sm:$0xf]  ;;  %v14422_v33 = vld [vmem:[#allocation19 + $0x14] sm:$0xf0] }
 0x81c   :  { %v13366_v4 = vor.u32 %v14422_v33, %v13365_v52 }
 0x81e   :  { %9591 = vmatpush.bf16.msra.mxu2 %v13466_v38 }
 0x822   :  { %9592 = vmatpush.bf16.msra.mxu2 %v13458_v15  ;;  %v13446_v15 = vor.u32 %v14410_v2, %v13445_v28  ;;  %v14419_v28 = vld [vmem:[#allocation19 + $0x4] sm:$0xf]  ;;  %v13359_v2 = vld [vmem:[#allocation19 + $0x8] sm:$0xf0] }
 0x826   :  { %9593 = vmatpush.bf16.msra.mxu2 %v13450_v40  ;;  %v13438_v40 = vor.u32 %v14408_v11, %v13437_v5  ;;  %v13362_v5 = vor.u32 %v14419_v28, %v13359_v2 }
 0x82a   :  { %9594 = vmatpush.bf16.msra.mxu2 %v13442_v17  ;;  %v13421_v17 = vld [vmem:[%s18347_s6] sm:$0xf] }
 0x82b   :  { %v13422_v18 = vor.u32 %v14404_v55, %v13421_v17  ;;  %v14449_v17 = vld [vmem:[#allocation21 + $0x70] sm:$0xff] }
 0x82c   :  { %v14441_v55 = vld [vmem:[#allocation21 + $0x30] sm:$0xff] }
 0x82e   :  { %9595 = vmatpush.bf16.msra.mxu2 %v13434_v54  ;;  %v14433_v54 = vld [vmem:[#allocation19 + $0x74] sm:$0xf] }
 0x82f   :  { %v13418_v50 = vor.u32 %v14433_v54, %v13415_v22 }
 0x831   :  { %9483 = vmatpush.bf16.msra.mxu0 %v13418_v50  ;;  %v14534_v50 = vld [vmem:[%s18351_s26] ss:$0 sm:$0xff] }
 0x832   :  { %9596 = vmatpush.bf16.msra.mxu2 %v13426_v51 }
 0x835   :  { %9597 = vmatmul.bf16.vlgmr.msra.gmra.mxu2 %v18009_v34 }
 0x858   :  { %v8384_v36 = vpop.f32.mrf.mxu2 }
 0x859   :  { %v8385_v23 = vadd.f32 %v8384_v36, %v17991_v16  ;;  %v13477_v16 = vld [vmem:[%s18347_s6 + $0x70] sm:$0xf] }
 0x85a   :  { %v13478_v58 = vor.u32 %v14418_v44, %v13477_v16  ;;  %v13397_v36 = vld [vmem:[#allocation19 + $0x50] sm:$0xf]  ;;  %v13383_v16 = vld [vmem:[#allocation19 + $0x38] sm:$0xf0] }
 0x85b   :  { %v8466_v61 = vadd.f32 %v18012_v12, %v8385_v23  ;;  %v13398_v23 = vor.u32 %v14430_v59, %v13397_v36  ;;  %v14438_v36 = vld [vmem:[#allocation21 + $0x18] sm:$0xff]  ;;  %v14444_v59 = vld [vmem:[#allocation21 + $0x48] sm:$0xff] }
 0x85d   :  { %v8545_v24 = vadd.f32 %v17993_v37, %v8466_v61  ;;  %v14416_v37 = vld [vmem:[%s18347_s6 + $0x64] sm:$0xf0]  ;;  %v13389_v61 = vld [vmem:[#allocation19 + $0x40] sm:$0xf]  ;;  %9472 = vmatpush.bf16.msra.mxu3 %v13398_v23  ;;  %v13605_v23 = vld [vmem:[#allocation22 + $0x70] sm:$0xf] }
 0x860   :  { %v8386_v57 = vpop.f32.mrf.mxu2 }
 0x861   :  { %v13399_v57 = vld [vmem:[#allocation19 + $0x58] sm:$0xf0] }
 0x868   :  { %v8828_v53 = vpop.f32.mrf.mxu2 }
 0x869   :  { %v8829_v62 = vadd.f32 %v8828_v53, %v18000_v27  ;;  %v13402_v53 = vor.u32 %v14429_v3, %v13399_v57  ;;  %v14443_v3 = vld [vmem:[#allocation21 + $0x40] sm:$0xff]  ;;  %v14436_v57 = vld [vmem:[#allocation21 + $0x8] sm:$0xff] }
 0x86b   :  { %v8842_v41 = vadd.f32 %v18019_v13, %v8829_v62  ;;  %v13469_v13 = vld [vmem:[%s18347_s6 + $0x60] sm:$0xf]  ;;  %v14428_v62 = vld [vmem:[#allocation19 + $0x44] sm:$0xf0] }
 0x86c   :  { %v13470_v26 = vor.u32 %v14416_v37, %v13469_v13  ;;  %v13375_v37 = vld [vmem:[#allocation19 + $0x28] sm:$0xf0] }
 0x86d   :  { %v8855_v20 = vadd.f32 %v18002_v14, %v8842_v41  ;;  %v14427_v41 = vld [vmem:[#allocation19 + $0x44] sm:$0xf] }
 0x86f   :  { %v8858_v47 = vadd.f32 %v8855_v20, %v8545_v24  ;;  %v13391_v24 = vld [vmem:[#allocation19 + $0x48] sm:$0xf0]  ;;  %v13390_v20 = vor.u32 %v14428_v62, %v13389_v61  ;;  %v14465_v61 = vld [vmem:[#allocation22 + $0x74] sm:$0xf] }
 0x870   :  { %v8830_v0 = vpop.f32.mrf.mxu2 }
 0x871   :  { %v8863_v32 = vadd.f32 %v14532_v8, %v8858_v47  ;;  %v13394_v8 = vor.u32 %v14427_v41, %v13391_v24  ;;  %v13381_v47 = vld [vmem:[#allocation19 + $0x30] sm:$0xf]  ;;  %v14426_v0 = vld [vmem:[#allocation19 + $0x34] sm:$0xf0]  ;;  %9473 = vmatpush.bf16.msra.mxu3 %v13390_v20  ;;  %v13607_v41 = vld [vmem:[#allocation22 + $0x78] sm:$0xf0] }
 0x872   :  { %v13382_v44 = vor.u32 %v14426_v0, %v13381_v47  ;;  %v13597_v24 = vld [vmem:[#allocation22 + $0x60] sm:$0xf]  ;;  %v14464_v20 = vld [vmem:[#allocation22 + $0x64] sm:$0xf0]  ;;  %v13610_v47 = vor.u32 %v14465_v61, %v13607_v41  ;;  %v14463_v0 = vld [vmem:[#allocation22 + $0x64] sm:$0xf] }
 0x873   :  { %vm8864_vm11 = vcmp.gt.f32.partialorder %v8863_v32, 0.0  ;;  %v8865_v12 = vmul.f32 0.2, %v8863_v32  ;;  %v14535_v41 = vld [vmem:[%s18353_s2] ss:$0 sm:$0xff] }
 0x874   :  { %9895 = vmatpush.bf16.msrb.mxu2 %v13610_v47 }
 0x875   :  { %v8866_v27 = vsel %vm8864_vm11, %v8863_v32, %v8865_v12  ;;  %v14425_v32 = vld [vmem:[#allocation19 + $0x34] sm:$0xf]  ;;  %9474 = vmatpush.bf16.msra.mxu3 %v13382_v44 }
 0x876   :  { %v8867_v63 = vpack.c.bf16 %v8866_v27, %v8866_v27  ;;  %v13386_v12 = vor.u32 %v14425_v32, %v13383_v16  ;;  %v13373_v27 = vld [vmem:[#allocation19 + $0x20] sm:$0xf]  ;;  %v13599_v32 = vld [vmem:[#allocation22 + $0x68] sm:$0xf0]  ;;  %v13598_v16 = vor.u32 %v14464_v20, %v13597_v24 }
 0x877   :  { %v13602_v44 = vor.u32 %v14463_v0, %v13599_v32 }
 0x878   :  { %8944 = vmatmul.bf16.vlgmr.msra.gmra.mxu1 %v8867_v63  ;;  %v18068_v14 = vpop.f32.mrf.mxu2  ;;  %v14423_v63 = vld [vmem:[#allocation19 + $0x24] sm:$0xf] }
 0x879   :  { %9576 = vmatpush.bf16.msra.mxu1 %v13478_v58  ;;  %v14424_v58 = vld [vmem:[#allocation19 + $0x24] sm:$0xf0]  ;;  %9896 = vmatpush.bf16.msrb.mxu2 %v13602_v44  ;;  %v9796_v44 = vld [vmem:[%s15138_s13] sm:$0x3] }
 0x87a   :  { %v13374_v13 = vor.u32 %v14424_v58, %v13373_v27  ;;  %v14462_v27 = vld [vmem:[#allocation22 + $0x54] sm:$0xf0]  ;;  %v14461_v58 = vld [vmem:[#allocation22 + $0x54] sm:$0xf] }
 0x87c   :  { %9475 = vmatpush.bf16.msra.mxu3 %v13374_v13 }
 0x87d   :  { %9577 = vmatpush.bf16.msra.mxu1 %v13470_v26  ;;  %v13378_v26 = vor.u32 %v14423_v63, %v13375_v37  ;;  %v13591_v63 = vld [vmem:[#allocation22 + $0x58] sm:$0xf0] }
 0x87e   :  { %v13594_v37 = vor.u32 %v14461_v58, %v13591_v63  ;;  %v9799_v63 = vperm.slane %v9796_v44, 1 }
 0x880   :  { %v9052_v38 = vpop.f32.mrf.mxu2  ;;  %9476 = vmatpush.bf16.msra.mxu3 %v13366_v4  ;;  %9897 = vmatpush.bf16.msrb.mxu2 %v13594_v37 }
 0x881   :  { %9578 = vmatpush.bf16.msra.mxu1 %v13462_v31  ;;  %v14421_v31 = vld [vmem:[#allocation19 + $0x14] sm:$0xf]  ;;  %v13357_v38 = vld [vmem:[#allocation19] sm:$0xf] }
 0x882   :  { %v13370_v21 = vor.u32 %v14421_v31, %v13367_v49 }
 0x885   :  { %9579 = vmatpush.bf16.msra.mxu1 %v13454_v46  ;;  %v14420_v46 = vld [vmem:[#allocation19 + $0x4] sm:$0xf0] }
 0x888   :  { %9332 = vmatmul.bf16.vlgmr.msrb.gmra.mxu1 %v9194_v39  ;;  %v13358_v39 = vor.u32 %v14420_v46, %v13357_v38 }
 0x889   :  { %9580 = vmatpush.bf16.msra.mxu1 %v13446_v15  ;;  %v14533_v15 = vld [vmem:[%s18350_s24] ss:$0 sm:$0xff] }
 0x88a   :  { %9477 = vmatpush.bf16.msra.mxu3 %v13358_v39 }
 0x88d   :  { %9581 = vmatpush.bf16.msra.mxu1 %v13438_v40 }
 0x891   :  { %9582 = vmatpush.bf16.msra.mxu1 %v13430_v45  ;;  %v14442_v45 = vld [vmem:[#allocation21 + $0x38] sm:$0xff] }
 0x892   :  { %9750 = vmatpush.bf16.msrb.mxu3 %v14442_v45  ;;  %v14460_v45 = vld [vmem:[#allocation22 + $0x44] sm:$0xf0] }
 0x895   :  { %9583 = vmatpush.bf16.msra.mxu1 %v13422_v18  ;;  %v9112_v18 = vadd.f32 %v18030_v35, %v18068_v14 }
 0x896   :  { %9751 = vmatpush.bf16.msrb.mxu3 %v14441_v55  ;;  %v13583_v55 = vld [vmem:[#allocation22 + $0x48] sm:$0xf0] }
 0x897   :  { %v9193_v6 = vadd.f32 %v18006_v7, %v9112_v18  ;;  %v13573_v18 = vld [vmem:[#allocation22 + $0x30] sm:$0xf] }
 0x898   :  { %v18084_v42 = vpop.f32.mrf.mxu2  ;;  %9584 = vmatmul.bf16.vlgmr.msra.gmra.mxu1 %v18009_v34  ;;  %v13410_v34 = vor.u32 %v14431_v30, %v13407_v19  ;;  %v14446_v30 = vld [vmem:[#allocation21 + $0x58] sm:$0xff]  ;;  %v14445_v19 = vld [vmem:[#allocation21 + $0x50] sm:$0xff] }
 0x89a   :  { %9484 = vmatpush.bf16.msra.mxu0 %v13410_v34  ;;  %9752 = vmatpush.bf16.msrb.mxu3 %v14440_v43  ;;  %v14437_v34 = vld [vmem:[#allocation21 + $0x10] sm:$0xff] }
 0x89e   :  { %9485 = vmatpush.bf16.msra.mxu0 %v13402_v53  ;;  %v14466_v53 = vld [vmem:[#allocation22 + $0x74] sm:$0xf0] }
 0x89f   :  { %v13606_v62 = vor.u32 %v14466_v53, %v13605_v23 }
 0x8a0   :  { %v9348_v51 = vpop.f32.mrf.mxu2 }
 0x8a1   :  { %v14447_v51 = vld [vmem:[#allocation21 + $0x60] sm:$0xff]  ;;  %9882 = vmatpush.bf16.msrb.mxu1 %v13606_v62 }
 0x8a2   :  { %9486 = vmatpush.bf16.msra.mxu0 %v13394_v8  ;;  %v14435_v8 = vld [vmem:[#allocation21] sm:$0xff] }
 0x8a5   :  { %9883 = vmatpush.bf16.msrb.mxu1 %v13598_v16 }
 0x8a6   :  { %9487 = vmatpush.bf16.msra.mxu0 %v13386_v12  ;;  %v13589_v12 = vld [vmem:[#allocation22 + $0x50] sm:$0xf] }
 0x8a7   :  { %v13590_v13 = vor.u32 %v14462_v27, %v13589_v12  ;;  %v9798_v12 = vperm.slane %v9796_v44, 0 }
 0x8a9   :  { %9884 = vmatpush.bf16.msrb.mxu1 %v13590_v13 }
 0x8aa   :  { %9488 = vmatpush.bf16.msra.mxu0 %v13378_v26 }
 0x8ae   :  { %9489 = vmatpush.bf16.msra.mxu0 %v13370_v21 }
 0x8b2   :  { %9490 = vmatpush.bf16.msra.mxu0 %v13362_v5 }
 0x8b6   :  { %9763 = vmatpush.bf16.msrb.mxu0 %v14450_v48  ;;  %v13581_v48 = vld [vmem:[#allocation22 + $0x40] sm:$0xf] }
 0x8b8   :  { %v18087_v9 = vpop.f32.mrf.mxu2 }
 0x8ba   :  { %9764 = vmatpush.bf16.msrb.mxu0 %v14449_v17  ;;  %v13582_v17 = vor.u32 %v14460_v45, %v13581_v48 }
 0x8bc   :  { %9885 = vmatpush.bf16.msrb.mxu1 %v13582_v17 }
 0x8be   :  { %9765 = vmatpush.bf16.msrb.mxu0 %v14448_v1  ;;  %v14458_v1 = vld [vmem:[#allocation22 + $0x34] sm:$0xf0] }
 0x8c0   :  { %v9600_v60 = vpop.f32.mrf.mxu2 }
 0x8c1   :  { %v14439_v60 = vld [vmem:[#allocation21 + $0x20] sm:$0xff] }
 0x8c2   :  { %9766 = vmatpush.bf16.msrb.mxu0 %v14447_v51  ;;  %9753 = vmatpush.bf16.msrb.mxu3 %v14439_v60  ;;  %v13565_v51 = vld [vmem:[#allocation22 + $0x20] sm:$0xf]  ;;  %v14456_v60 = vld [vmem:[#allocation22 + $0x24] sm:$0xf0] }
 0x8c6   :  { %9767 = vmatpush.bf16.msrb.mxu0 %v14446_v30  ;;  %9754 = vmatpush.bf16.msrb.mxu3 %v14438_v36  ;;  %v13567_v30 = vld [vmem:[#allocation22 + $0x28] sm:$0xf0]  ;;  %v13549_v36 = vld [vmem:[#allocation22] sm:$0xf] }
 0x8ca   :  { %9768 = vmatpush.bf16.msrb.mxu0 %v14445_v19  ;;  %9755 = vmatpush.bf16.msrb.mxu3 %v14437_v34  ;;  %v14453_v19 = vld [vmem:[#allocation22 + $0x14] sm:$0xf] }
 0x8ce   :  { %9769 = vmatpush.bf16.msrb.mxu0 %v14444_v59  ;;  %9756 = vmatpush.bf16.msrb.mxu3 %v14436_v57  ;;  %v14452_v59 = vld [vmem:[#allocation22 + $0x4] sm:$0xf0]  ;;  %v13551_v57 = vld [vmem:[#allocation22 + $0x8] sm:$0xf0] }
 0x8cf   :  { %v13550_v23 = vor.u32 %v14452_v59, %v13549_v36 }
 0x8d2   :  { %9770 = vmatpush.bf16.msrb.mxu0 %v14443_v3  ;;  %9757 = vmatpush.bf16.msrb.mxu3 %v14435_v8  ;;  %v14451_v3 = vld [vmem:[#allocation22 + $0x4] sm:$0xf] }
 0x8d3   :  { %v13554_v53 = vor.u32 %v14451_v3, %v13551_v57 }
 0x8f5   :  { %v8945_v11 = vpop.f32.mrf.mxu1 }
 0x8f6   :  { %v8946_v40 = vadd.f32 %v14533_v15, %v8945_v11 }
 0x8f8   :  { %8949 = vst [vmem:[%s15143_s5] sm:$0xff] %v8946_v40  ;;  %s18352_s5 = sld [smem:[#allocation50_spill]] }
 0x8fd   :  { %v8947_v56 = vpop.f32.mrf.mxu1 }
 0x8fe   :  { %v9602_v26 = vld [vmem:[%s18352_s5] sm:$0x3] }
 0x8ff   :  { %v9605_v52 = vperm.slane %v9602_v26, 1  ;;  %v9604_v38 = vperm.slane %v9602_v26, 0 }
 0x905   :  { %v9333_v54 = vpop.f32.mrf.mxu1 }
 0x906   :  { %v9347_v22 = vadd.f32 %v18084_v42, %v9333_v54  ;;  %v14457_v54 = vld [vmem:[#allocation22 + $0x34] sm:$0xf] }
 0x908   :  { %v9350_v25 = vadd.f32 %v9347_v22, %v9193_v6  ;;  %v13575_v6 = vld [vmem:[#allocation22 + $0x38] sm:$0xf0]  ;;  %v13574_v22 = vor.u32 %v14458_v1, %v13573_v18 }
 0x90a   :  { %v9355_v10 = vadd.f32 %v14534_v50, %v9350_v25  ;;  %v13578_v50 = vor.u32 %v14457_v54, %v13575_v6  ;;  %9886 = vmatpush.bf16.msrb.mxu1 %v13574_v22  ;;  %v14455_v25 = vld [vmem:[#allocation22 + $0x24] sm:$0xf] }
 0x90c   :  { %v9356_v35 = vmax.f32 %v9355_v10, 0.0  ;;  %v13566_v10 = vor.u32 %v14456_v60, %v13565_v51 }
 0x90d   :  { %v9335_v14 = vpop.f32.mrf.mxu1 }
 0x90e   :  { %v9373_v29 = vpack.c.bf16 %v9356_v35, %v9356_v35  ;;  %v13570_v35 = vor.u32 %v14455_v25, %v13567_v30  ;;  %9887 = vmatpush.bf16.msrb.mxu1 %v13566_v10  ;;  %v13557_v14 = vld [vmem:[#allocation22 + $0x10] sm:$0xf] }
 0x910   :  { %9478 = vmatmul.bf16.vlgmr.msra.gmra.mxu3 %v9373_v29  ;;  %9491 = vmatmul.bf16.vlgmr.msra.gmra.mxu0 %v9373_v29  ;;  %v14454_v29 = vld [vmem:[#allocation22 + $0x14] sm:$0xf0] }
 0x915   :  { %v9585_v7 = vpop.f32.mrf.mxu1 }
 0x91d   :  { %v9587_v42 = vpop.f32.mrf.mxu1 }
 0x91e   :  { %v13559_v42 = vld [vmem:[#allocation22 + $0x18] sm:$0xf0] }
 0x91f   :  { %v13562_v34 = vor.u32 %v14453_v19, %v13559_v42 }
 0x98d   :  { %v9492_v33 = vpop.f32.mrf.mxu0 }
 0x98e   :  { %v9599_v31 = vadd.f32 %v18087_v9, %v9492_v33  ;;  %v14459_v9 = vld [vmem:[#allocation22 + $0x44] sm:$0xf] }
 0x98f   :  { %v13586_v43 = vor.u32 %v14459_v9, %v13583_v55 }
 0x990   :  { %v9609_v4 = vadd.f32 %v9605_v52, %v9599_v31 }
 0x991   :  { %9898 = vmatpush.bf16.msrb.mxu2 %v13586_v43 }
 0x992   :  { %vm9611_vm12 = vcmp.gt.f32.partialorder %v9609_v4, 0.0  ;;  %v9613_v49 = vmul.f32 0.2, %v9609_v4 }
 0x993   :  { %v9479_v46 = vpop.f32.mrf.mxu3 }
 0x994   :  { %v9615_v21 = vsel %vm9611_vm12, %v9609_v4, %v9613_v49  ;;  %v9586_v28 = vadd.f32 %v9585_v7, %v9479_v46  ;;  %v13558_v7 = vor.u32 %v14454_v29, %v13557_v14 }
 0x995   :  { %v9617_v2 = vpack.c.bf16 %v9615_v21, %v9615_v21  ;;  %v9494_v15 = vpop.f32.mrf.mxu0  ;;  %9899 = vmatpush.bf16.msrb.mxu2 %v13578_v50 }
 0x996   :  { %v9608_v39 = vadd.f32 %v9604_v38, %v9586_v28  ;;  %9888 = vmatpush.bf16.msrb.mxu1 %v13558_v7 }
 0x997   :  { %9771 = vmatmul.bf16.vlgmr.msrb.gmra.mxu0 %v9617_v2 }
 0x998   :  { %vm9610_vm13 = vcmp.gt.f32.partialorder %v9608_v39, 0.0  ;;  %v9612_v5 = vmul.f32 0.2, %v9608_v39 }
 0x999   :  { %9900 = vmatpush.bf16.msrb.mxu2 %v13570_v35 }
 0x99a   :  { %v9614_v11 = vsel %vm9610_vm13, %v9608_v39, %v9612_v5  ;;  %9889 = vmatpush.bf16.msrb.mxu1 %v13550_v23 }
 0x99b   :  { %v9616_v40 = vpack.c.bf16 %v9614_v11, %v9614_v11  ;;  %v9481_v56 = vpop.f32.mrf.mxu3 }
 0x99d   :  { %9758 = vmatmul.bf16.vlgmr.msrb.gmra.mxu3 %v9616_v40  ;;  %9901 = vmatpush.bf16.msrb.mxu2 %v13562_v34 }
 0x9a1   :  { %9902 = vmatpush.bf16.msrb.mxu2 %v13554_v53 }
 0xa14   :  { %v9772_v61 = vpop.f32.mrf.mxu0 }
 0xa1c   :  { %v9774_v62 = vpop.f32.mrf.mxu0 }
 0xa20   :  { %v9759_v24 = vpop.f32.mrf.mxu3 }
 0xa21   :  { %v9760_v20 = vadd.f32 %v14535_v41, %v9759_v24 }
 0xa23   :  { %v9773_v8 = vadd.f32 %v9772_v61, %v9760_v20 }
 0xa25   :  { %vm9776_vm14 = vcmp.gt.f32.partialorder %v9773_v8, 0.0  ;;  %v9777_v47 = vmul.f32 0.2, %v9773_v8 }
 0xa27   :  { %v9778_v0 = vsel %vm9776_vm14, %v9773_v8, %v9777_v47 }
 0xa28   :  { %v9779_v32 = vpack.c.bf16 %v9778_v0, %v9778_v0  ;;  %v9761_v16 = vpop.f32.mrf.mxu3 }
 0xa2a   :  { %9890 = vmatmul.bf16.vlgmr.msrb.gmra.mxu1 %v9779_v32  ;;  %9903 = vmatmul.bf16.vlgmr.msrb.gmra.mxu2 %v9779_v32 }
 0xaa7   :  { %v9891_v27 = vpop.f32.mrf.mxu1 }
 0xaa8   :  { %v9892_v58 = vadd.f32 %v9891_v27, %v9798_v12 }
 0xaaa   :  { %9908 = vst [vmem:[%s15148_s14] sm:$0xff] %v9892_v58 }
 0xaad   :  { %v9904_v13 = vpop.f32.mrf.mxu2 }
 0xaae   :  { %v9905_v37 = vadd.f32 %v9904_v13, %v9799_v63 }
 0xaaf   :  { %v9893_v26 = vpop.f32.mrf.mxu1 }
 0xab0   :  { %9909 = vst [vmem:[%s15148_s14 + $0x8] sm:$0xff] %v9905_v37 }
 0xab5   :  { %v9906_v52 = vpop.f32.mrf.mxu2 }
 0xab6   :  { %9918 = vsyncpa [#allocation3], 1 }
 0xab7   :  { %9919 = vsyncpa [#allocation5], 1 }
 0xab8   :  { %9920 = vsyncpa [#allocation8], 1 }
 0xab9   :  { %9921 = vsyncpa [#allocation11], 1 }
 0xaba   :  { %9922 = vsyncpa [#allocation14], 1 }
 0xabb   :  { %9923 = vsyncpa [#allocation17], 1 }
 0xabc   :  { %9924 = vsyncpa [#allocation20], 1 }
 0xabd   :  { %9925 = vsyncpa [#allocation23], 1 }

</bundles_post_ra>
